<compile_context>
chip_gen: v7x
topology: tpu7x:2x2x1
jax: 0.10.0
libtpu: 0.0.40
codegen_flags: <defaults>
</compile_context>

<pallas_src>
import functools

import numpy as np
import jax
import jax.numpy as jnp
from jax.experimental import pallas as pl
from jax.experimental.pallas import tpu as pltpu


def _round_up(x, m):
    return ((x + m - 1) // m) * m


def _pick_tile(dim, cap, align):
    """Largest tile (multiple of `align`, <= cap) that divides round_up(dim, align).
    Falls back to the cap (i.e. accept padding) if only tiny divisors exist."""
    d = _round_up(dim, align)
    limit = min(cap, d)
    best = align
    for t in range(align, limit + 1, align):
        if d % t == 0:
            best = t
    if best * 4 < limit:          # divisor too small -> accept padding instead
        best = (limit // align) * align
    return best


# --------------------------------------------------------------------------
# Pallas kernel 1: M/N/K-tiled matmul + bias + fused activation.
# bf16 operands, f32 accumulator in VMEM scratch, K innermost (accumulate).
# --------------------------------------------------------------------------
def _matmul_bias_act_kernel(a_ref, b_ref, bias_ref, o_ref, acc_ref, *, activation):
    k = pl.program_id(2)

    @pl.when(k == 0)
    def _():
        acc_ref[...] = jnp.zeros_like(acc_ref)

    acc_ref[...] += jnp.dot(a_ref[...], b_ref[...],
                            preferred_element_type=jnp.float32)

    @pl.when(k == pl.num_programs(2) - 1)
    def _():
        r = acc_ref[...] + bias_ref[...]
        if activation == "relu":
            r = jnp.maximum(r, 0.0)
        elif activation == "swish":
            r = r * jax.nn.sigmoid(r)
        o_ref[...] = r.astype(o_ref.dtype)


def pallas_matmul_bias_act(a, b, bias=None, activation=None,
                           out_dtype=jnp.float32):
    """(M,K) @ (K,N) + bias[N] with optional fused activation on the MXU."""
    M, K = a.shape
    K2, N = b.shape
    assert K == K2
    if bias is None:
        bias = jnp.zeros((N,), jnp.float32)

    tm = _pick_tile(M, 512, 8)
    tk = _pick_tile(K, 1024, 128)
    tn = _pick_tile(N, 1024, 128)
    Mp, Kp, Np = _round_up(M, tm), _round_up(K, tk), _round_up(N, tn)

    # bf16 operands (MXU-native); astype is a no-op when already bf16.
    a_q = a.astype(jnp.bfloat16)
    b_q = b.astype(jnp.bfloat16)
    if (Mp, Kp) != (M, K):
        a_q = jnp.pad(a_q, ((0, Mp - M), (0, Kp - K)))
    if (Kp, Np) != (K, N):
        b_q = jnp.pad(b_q, ((0, Kp - K), (0, Np - N)))
    bias_p = bias.astype(jnp.float32).reshape(1, N)
    if Np != N:
        bias_p = jnp.pad(bias_p, ((0, 0), (0, Np - N)))

    grid = (Mp // tm, Np // tn, Kp // tk)
    flops = 2 * M * K * N
    transcendentals = M * N if activation == "swish" else 0
    bytes_accessed = ((Mp * Kp + Kp * Np) * 2 + Np * 4
                      + Mp * Np * jnp.dtype(out_dtype).itemsize)

    out = pl.pallas_call(
        functools.partial(_matmul_bias_act_kernel, activation=activation),
        out_shape=jax.ShapeDtypeStruct((Mp, Np), out_dtype),
        grid_spec=pltpu.PrefetchScalarGridSpec(
            num_scalar_prefetch=0,
            grid=grid,
            in_specs=[pl.BlockSpec((tm, tk), lambda m, n, k: (m, k)),
                      pl.BlockSpec((tk, tn), lambda m, n, k: (k, n)),
                      pl.BlockSpec((1, tn), lambda m, n, k: (0, n))],
            out_specs=pl.BlockSpec((tm, tn), lambda m, n, k: (m, n)),
            scratch_shapes=[pltpu.VMEM((tm, tn), jnp.float32)]),
        compiler_params=pltpu.CompilerParams(
            dimension_semantics=("parallel", "parallel", "arbitrary"),
            vmem_limit_bytes=32 * 1024 * 1024),
        cost_estimate=pl.CostEstimate(flops=flops,
                                      transcendentals=transcendentals,
                                      bytes_accessed=int(bytes_accessed)),
    )(a_q, b_q, bias_p)
    if (Mp, Np) != (M, N):
        out = out[:M, :N]
    return out


# --------------------------------------------------------------------------
# Pallas kernel 2: fused bilinear resize (height + width) + bias for the head.
# Per (batch n, class c):  out[n,c] = Wh @ g[n,c] @ WwT + bias[c].
# The 1x1 conv (64 -> C, no bias) is done beforehand with the shared matmul
# kernel, so the resize contraction is only h (not K*h) and contains no zeros.
# Both grid axes are "parallel" (no cross-iteration scratch), so v7x's two
# TensorCores are used even at batch 1.
# --------------------------------------------------------------------------
def _resize_bias_kernel(g_ref, wh_ref, wwT_ref, bias_ref, o_ref):
    c = pl.program_id(1)
    t = jnp.dot(wh_ref[...], g_ref[0, 0],
                preferred_element_type=jnp.float32)            # (OH, w) f32
    y = jnp.dot(t.astype(jnp.bfloat16), wwT_ref[...],
                preferred_element_type=jnp.float32)            # (OH, OW) f32
    o_ref[0, 0] = y + bias_ref[c]


def head_resize_bias(g_nchw, wh, wwT, bias):
    """g: (N, C, h, w) bf16 -> (N, C, OH, OW) f32 via bilinear resize + bias."""
    N, C, h, w = g_nchw.shape
    OH = wh.shape[0]
    OW = wwT.shape[1]
    assert wh.shape[1] == h and wwT.shape[0] == w

    flops = 2 * N * C * (OH * h * w + OH * w * OW)
    bytes_accessed = (N * C * h * w * 2 + OH * h * 2 + w * OW * 2
                      + N * C * OH * OW * 4)

    return pl.pallas_call(
        _resize_bias_kernel,
        out_shape=jax.ShapeDtypeStruct((N, C, OH, OW), jnp.float32),
        grid_spec=pltpu.PrefetchScalarGridSpec(
            num_scalar_prefetch=0,
            grid=(N, C),
            in_specs=[pl.BlockSpec((1, 1, h, w), lambda n, c: (n, c, 0, 0)),
                      pl.BlockSpec((OH, h), lambda n, c: (0, 0)),
                      pl.BlockSpec((w, OW), lambda n, c: (0, 0)),
                      pl.BlockSpec(memory_space=pltpu.MemorySpace.SMEM)],
            out_specs=pl.BlockSpec((1, 1, OH, OW), lambda n, c: (n, c, 0, 0))),
        compiler_params=pltpu.CompilerParams(
            dimension_semantics=("parallel", "parallel"),
            vmem_limit_bytes=32 * 1024 * 1024),
        cost_estimate=pl.CostEstimate(flops=flops, transcendentals=0,
                                      bytes_accessed=int(bytes_accessed)),
    )(g_nchw, wh, wwT, bias.astype(jnp.float32))


def bilinear_matrix(in_size, out_size):
    """PyTorch bilinear (align_corners=False) interpolation matrix (out, in)."""
    scale = in_size / out_size
    o = np.arange(out_size)
    src = (o + 0.5) * scale - 0.5
    src = np.clip(src, 0.0, None)
    i0 = np.minimum(np.floor(src).astype(np.int64), in_size - 1)
    i1 = np.minimum(i0 + 1, in_size - 1)
    lam = (src - i0).astype(np.float32)
    W = np.zeros((out_size, in_size), np.float32)
    W[o, i0] = W[o, i0] + (1.0 - lam)
    W[o, i1] = W[o, i1] + lam
    return jnp.asarray(W)


# --------------------------------------------------------------------------
# ConvTranspose2d(k=4, s=2, p=1) + ReLU: single fused pallas_call per layer.
# Shared 3x3-halo im2col A (bf16, built once) against a block-structured
# B (9*Cin, 4*Cout) holding all 4 output parities; depth-to-space epilogue.
# --------------------------------------------------------------------------
# Per output parity py: mapping from halo row position a in {0,1,2} to kernel
# tap ky (derived from out[2i+py] = sum_{ky} x[(2i+py+1-ky)/2] * w[ky]).
_PARITY_TAPS = ({0: 3, 1: 1},    # py == 0: rows {i-1, i} use taps {3, 1}
                {1: 2, 2: 0})    # py == 1: rows {i, i+1} use taps {2, 0}


def make_deconv_matrix(w_t):
    """PyTorch ConvTranspose2d weight (Cin, Cout, 4, 4) -> (9*Cin, 4*Cout) bf16."""
    w_np = np.asarray(jax.device_get(w_t), np.float32)
    cin, cout = w_np.shape[:2]
    B = np.zeros((9 * cin, 4 * cout), np.float32)
    for py in range(2):
        for px in range(2):
            ph = py * 2 + px
            for a, ky in _PARITY_TAPS[py].items():
                for b, kx in _PARITY_TAPS[px].items():
                    B[(a * 3 + b) * cin:(a * 3 + b + 1) * cin,
                      ph * cout:(ph + 1) * cout] = w_np[:, :, ky, kx]
    return jnp.asarray(B, jnp.bfloat16)


def deconv4x4_s2_relu(x_nhwc, B9, bias4):
    """x: (N,H,W,Cin) bf16 -> (N,2H,2W,Cout) bf16.  One matmul for all 4 parities."""
    N, H, W, Cin = x_nhwc.shape
    Cout = B9.shape[1] // 4
    xp = jnp.pad(x_nhwc, ((0, 0), (1, 1), (1, 1), (0, 0)))          # bf16 halo
    A = jnp.concatenate(
        [xp[:, a:a + H, b:b + W, :] for a in range(3) for b in range(3)],
        axis=-1).reshape(N * H * W, 9 * Cin)                        # bf16 im2col
    y = pallas_matmul_bias_act(A, B9, bias4, activation="relu",
                               out_dtype=jnp.bfloat16)              # (M, 4*Cout)
    y = (y.reshape(N, H, W, 2, 2, Cout)
          .transpose(0, 1, 3, 2, 4, 5)
          .reshape(N, 2 * H, 2 * W, Cout))
    return y


def backbone_stub(x_nchw, w_stem, b_stem):
    """Stand-in for EfficientNet-b0.extract_features (see TODO(synk) at top):
    stride-32 patchify conv + swish -> NHWC features (N, H/32, W/32, 1280)."""
    N, C, H, W = x_nchw.shape
    P = 32
    hp, wp = H // P, W // P
    patches = (x_nchw.astype(jnp.bfloat16)
               .reshape(N, C, hp, P, wp, P)
               .transpose(0, 2, 4, 1, 3, 5)
               .reshape(N * hp * wp, C * P * P))
    feat = pallas_matmul_bias_act(patches, w_stem, b_stem, activation="swish",
                                  out_dtype=jnp.bfloat16)
    return feat.reshape(N, hp, wp, w_stem.shape[1])


def efficientnet_segmentation_forward(x, p):
    f = backbone_stub(x, p["w_stem"], p["b_stem"])                  # (N,h,w,1280)
    f = deconv4x4_s2_relu(f, p["B_t1"], p["bias4_t1"])              # (N,2h,2w,512)
    f = deconv4x4_s2_relu(f, p["B_t2"], p["bias4_t2"])              # (N,4h,4w,128)
    f = deconv4x4_s2_relu(f, p["B_t3"], p["bias4_t3"])              # (N,8h,8w, 64)

    # Head: Conv2d(64,C,1) without bias first (tiny K=64 contraction), then the
    # bilinear resize as two dense matmuls with the bias fused in (exact w.r.t.
    # PyTorch's resize-then-conv order since all ops are linear).
    N, h, w, K = f.shape
    C = p["b1x1"].shape[0]
    assert p["Wh"].shape[1] == h and p["WwT"].shape[0] == w
    g = pallas_matmul_bias_act(f.reshape(N * h * w, K), p["w1x1"], None,
                               activation=None, out_dtype=jnp.bfloat16)
    g = g.reshape(N, h, w, C).transpose(0, 3, 1, 2)                 # (N,C,h,w)
    return head_resize_bias(g, p["Wh"], p["WwT"], p["b1x1"])        # (N,C,OH,OW)


# --------------------------------------------------------------------------
# Deterministic parameter init (shapes from the PyTorch module's __init__)
# plus a one-time prepare step (pre-packed / pre-cast weights; runs outside
# the jitted forward so no per-call weight passes).
# --------------------------------------------------------------------------
def init_params(key, num_classes):
    ks = jax.random.split(key, 10)

    def w(k, shape, fan_in):
        return jax.random.normal(k, shape, jnp.float32) / np.sqrt(fan_in)

    return {
        # backbone stand-in: patchify conv 3*32*32 -> 1280
        "w_stem": w(ks[0], (3 * 32 * 32, 1280), 3 * 32 * 32),
        "b_stem": 0.01 * jax.random.normal(ks[1], (1280,), jnp.float32),
        # ConvTranspose2d(1280, 512, 4, 2, 1)   (PyTorch layout: in,out,kh,kw)
        "w_t1": w(ks[2], (1280, 512, 4, 4), 1280 * 16),
        "b_t1": 0.01 * jax.random.normal(ks[3], (512,), jnp.float32),
        # ConvTranspose2d(512, 128, 4, 2, 1)
        "w_t2": w(ks[4], (512, 128, 4, 4), 512 * 16),
        "b_t2": 0.01 * jax.random.normal(ks[5], (128,), jnp.float32),
        # ConvTranspose2d(128, 64, 4, 2, 1)
        "w_t3": w(ks[6], (128, 64, 4, 4), 128 * 16),
        "b_t3": 0.01 * jax.random.normal(ks[7], (64,), jnp.float32),
        # Conv2d(64, num_classes, 1)
        "w_1x1": w(ks[8], (num_classes, 64, 1, 1), 64),
        "b_1x1": 0.01 * jax.random.normal(ks[9], (num_classes,), jnp.float32),
    }


def prepare_params(raw, num_classes, image_hw, out_size=(512, 640)):
    H, W = image_hw
    h3, w3 = (H // 32) * 8, (W // 32) * 8     # head input spatial (3 deconvs x2)
    p = {
        "w_stem": raw["w_stem"].astype(jnp.bfloat16),
        "b_stem": raw["b_stem"].astype(jnp.float32),
        "w1x1": raw["w_1x1"].reshape(num_classes, 64).T.astype(jnp.bfloat16),
        "b1x1": raw["b_1x1"].astype(jnp.float32),
        "Wh": bilinear_matrix(h3, out_size[0]).astype(jnp.bfloat16),
        "WwT": bilinear_matrix(w3, out_size[1]).T.astype(jnp.bfloat16),
    }
    for name in ("t1", "t2", "t3"):
        p["B_" + name] = make_deconv_matrix(raw["w_" + name])
        p["bias4_" + name] = jnp.tile(raw["b_" + name].astype(jnp.float32), 4)
    return p


if __name__ == "__main__":
    num_classes = 3
    key = jax.random.PRNGKey(0)
    k_params, k_x = jax.random.split(key)
    raw_params = init_params(k_params, num_classes)
    prep = prepare_params(raw_params, num_classes, image_hw=(64, 64))

    # small NCHW image; backbone stand-in downsamples by 32 -> (2, 1280, 2, 2)
    x = jax.random.normal(k_x, (2, 3, 64, 64), jnp.float32)

    fwd = jax.jit(efficientnet_segmentation_forward)
    out = jax.block_until_ready(fwd(x, prep))

    assert out.shape == (2, num_classes, 512, 640), out.shape
    assert out.dtype == jnp.float32
    assert bool(jnp.all(jnp.isfinite(out)))
    print("KERNEL_OK")
</pallas_src>

<mosaic_0001>
module attributes {stable_mosaic.version = 11 : i64} {
  func.func @_matmul_bias_act_kernel(%arg0: i32, %arg1: i32, %arg2: i32, %arg3: memref<8x1024xbf16, #tpu.memory_space<vmem>>, %arg4: memref<1024x640xbf16, #tpu.memory_space<vmem>>, %arg5: memref<1x640xf32, #tpu.memory_space<vmem>>, %arg6: memref<8x640xbf16, #tpu.memory_space<vmem>>, %arg7: memref<8x640xf32, #tpu.memory_space<vmem>>) attributes {dimension_semantics = [#tpu.dimension_semantics<parallel>, #tpu.dimension_semantics<parallel>, #tpu.dimension_semantics<arbitrary>], iteration_bounds = array<i64: 1, 2, 3>, scalar_prefetch = 0 : i64, scratch_operands = 1 : i64, tpu.core_type = #tpu.core_type<tc>, window_params = [{transform_indices = @transform_0, window_bounds = array<i64: 8, 1024>}, {transform_indices = @transform_1, window_bounds = array<i64: 1024, 640>}, {transform_indices = @transform_2, window_bounds = array<i64: 1, 640>}, {transform_indices = @transform_3, window_bounds = array<i64: 8, 640>}]} {
    %c0_i32 = arith.constant 0 : i32
    %0 = arith.cmpi eq, %arg2, %c0_i32 : i32
    %1 = arith.extui %0 : i1 to i32
    %c0_i32_0 = arith.constant 0 : i32
    %2 = arith.cmpi ne, %1, %c0_i32_0 : i32
    scf.if %2 {
      %cst_9 = arith.constant 0.000000e+00 : f32
      %12 = vector.broadcast %cst_9 : f32 to vector<8x640xf32>
      %c0_10 = arith.constant 0 : index
      %c0_11 = arith.constant 0 : index
      %13 = vector.load %arg7[%c0_10, %c0_11] : memref<8x640xf32, #tpu.memory_space<vmem>>, vector<8x640xf32>
      tpu.vector_store %arg7[%c0_10, %c0_11], %12 {strides = array<i32>} : memref<8x640xf32, #tpu.memory_space<vmem>>, vector<8x640xf32>,
    } else {
    }
    %c0 = arith.constant 0 : index
    %c0_1 = arith.constant 0 : index
    %3 = vector.load %arg7[%c0, %c0_1] : memref<8x640xf32, #tpu.memory_space<vmem>>, vector<8x640xf32>
    %c0_2 = arith.constant 0 : index
    %c0_3 = arith.constant 0 : index
    %4 = vector.load %arg3[%c0_2, %c0_3] : memref<8x1024xbf16, #tpu.memory_space<vmem>>, vector<8x1024xbf16>
    %c0_4 = arith.constant 0 : index
    %c0_5 = arith.constant 0 : index
    %5 = vector.load %arg4[%c0_4, %c0_5] : memref<1024x640xbf16, #tpu.memory_space<vmem>>, vector<1024x640xbf16>
    %cst = arith.constant dense<0.000000e+00> : vector<8x640xf32>
    %6 = tpu.matmul %4, %5, %cst {dimension_numbers = #tpu.dot_dimension_numbers<[1], [0], [0], [1], [0, 0, 1, 1], [], []>} : vector<8x1024xbf16>, vector<1024x640xbf16>, vector<8x640xf32> -> vector<8x640xf32>
    %7 = arith.addf %3, %6 : vector<8x640xf32>
    %c0_6 = arith.constant 0 : index
    %c0_7 = arith.constant 0 : index
    %8 = vector.load %arg7[%c0_6, %c0_7] : memref<8x640xf32, #tpu.memory_space<vmem>>, vector<8x640xf32>
    tpu.vector_store %arg7[%c0_6, %c0_7], %7 {strides = array<i32>} : memref<8x640xf32, #tpu.memory_space<vmem>>, vector<8x640xf32>,
    %c2_i32 = arith.constant 2 : i32
    %9 = arith.cmpi eq, %arg2, %c2_i32 : i32
    %10 = arith.extui %9 : i1 to i32
    %c0_i32_8 = arith.constant 0 : i32
    %11 = arith.cmpi ne, %10, %c0_i32_8 : i32
    scf.if %11 {
      %c0_9 = arith.constant 0 : index
      %c0_10 = arith.constant 0 : index
      %12 = vector.load %arg7[%c0_9, %c0_10] : memref<8x640xf32, #tpu.memory_space<vmem>>, vector<8x640xf32>
      %c0_11 = arith.constant 0 : index
      %c0_12 = arith.constant 0 : index
      %13 = vector.load %arg5[%c0_11, %c0_12] : memref<1x640xf32, #tpu.memory_space<vmem>>, vector<1x640xf32>
      %14 = vector.broadcast %13 : vector<1x640xf32> to vector<8x640xf32>
      %15 = arith.addf %12, %14 : vector<8x640xf32>
      %16 = arith.negf %15 : vector<8x640xf32>
      %17 = math.exp %16 : vector<8x640xf32>
      %cst_13 = arith.constant 1.000000e+00 : f32
      %18 = vector.broadcast %cst_13 : f32 to vector<8x640xf32>
      %19 = arith.addf %18, %17 : vector<8x640xf32>
      %20 = arith.divf %18, %19 : vector<8x640xf32>
      %21 = arith.mulf %15, %20 : vector<8x640xf32>
      %22 = arith.truncf %21 : vector<8x640xf32> to vector<8x640xbf16>
      %c0_14 = arith.constant 0 : index
      %c0_15 = arith.constant 0 : index
      %23 = vector.load %arg6[%c0_14, %c0_15] : memref<8x640xbf16, #tpu.memory_space<vmem>>, vector<8x640xbf16>
      tpu.vector_store %arg6[%c0_14, %c0_15], %22 {strides = array<i32>} : memref<8x640xbf16, #tpu.memory_space<vmem>>, vector<8x640xbf16>,
    } else {
    }
    return
  }
  func.func @transform_0(%arg0: i32, %arg1: i32, %arg2: i32) -> (i32, i32) {
    %c0_i32 = arith.constant 0 : i32
    return %arg0, %arg2 : i32, i32
  }
  func.func @transform_1(%arg0: i32, %arg1: i32, %arg2: i32) -> (i32, i32) {
    %c0_i32 = arith.constant 0 : i32
    return %arg2, %arg1 : i32, i32
  }
  func.func @transform_2(%arg0: i32, %arg1: i32, %arg2: i32) -> (i32, i32) {
    %c0_i32 = arith.constant 0 : i32
    %c0_i32_0 = arith.constant 0 : i32
    return %c0_i32, %arg1 : i32, i32
  }
  func.func @transform_3(%arg0: i32, %arg1: i32, %arg2: i32) -> (i32, i32) {
    %c0_i32 = arith.constant 0 : i32
    return %arg0, %arg1 : i32, i32
  }
}

module attributes {stable_mosaic.version = 11 : i64} {
  func.func @_matmul_bias_act_kernel(%arg0: i32, %arg1: i32, %arg2: i32, %arg3: memref<8x768xbf16, #tpu.memory_space<vmem>>, %arg4: memref<768x1024xbf16, #tpu.memory_space<vmem>>, %arg5: memref<1x1024xf32, #tpu.memory_space<vmem>>, %arg6: memref<8x1024xbf16, #tpu.memory_space<vmem>>, %arg7: memref<8x1024xf32, #tpu.memory_space<vmem>>) attributes {dimension_semantics = [#tpu.dimension_semantics<parallel>, #tpu.dimension_semantics<parallel>, #tpu.dimension_semantics<arbitrary>], iteration_bounds = array<i64: 1, 2, 15>, scalar_prefetch = 0 : i64, scratch_operands = 1 : i64, tpu.core_type = #tpu.core_type<tc>, window_params = [{transform_indices = @transform_0, window_bounds = array<i64: 8, 768>}, {transform_indices = @transform_1, window_bounds = array<i64: 768, 1024>}, {transform_indices = @transform_2, window_bounds = array<i64: 1, 1024>}, {transform_indices = @transform_3, window_bounds = array<i64: 8, 1024>}]} {
    %c0_i32 = arith.constant 0 : i32
    %0 = arith.cmpi eq, %arg2, %c0_i32 : i32
    %1 = arith.extui %0 : i1 to i32
    %c0_i32_0 = arith.constant 0 : i32
    %2 = arith.cmpi ne, %1, %c0_i32_0 : i32
    scf.if %2 {
      %cst_9 = arith.constant 0.000000e+00 : f32
      %12 = vector.broadcast %cst_9 : f32 to vector<8x1024xf32>
      %c0_10 = arith.constant 0 : index
      %c0_11 = arith.constant 0 : index
      %13 = vector.load %arg7[%c0_10, %c0_11] : memref<8x1024xf32, #tpu.memory_space<vmem>>, vector<8x1024xf32>
      tpu.vector_store %arg7[%c0_10, %c0_11], %12 {strides = array<i32>} : memref<8x1024xf32, #tpu.memory_space<vmem>>, vector<8x1024xf32>,
    } else {
    }
    %c0 = arith.constant 0 : index
    %c0_1 = arith.constant 0 : index
    %3 = vector.load %arg7[%c0, %c0_1] : memref<8x1024xf32, #tpu.memory_space<vmem>>, vector<8x1024xf32>
    %c0_2 = arith.constant 0 : index
    %c0_3 = arith.constant 0 : index
    %4 = vector.load %arg3[%c0_2, %c0_3] : memref<8x768xbf16, #tpu.memory_space<vmem>>, vector<8x768xbf16>
    %c0_4 = arith.constant 0 : index
    %c0_5 = arith.constant 0 : index
    %5 = vector.load %arg4[%c0_4, %c0_5] : memref<768x1024xbf16, #tpu.memory_space<vmem>>, vector<768x1024xbf16>
    %cst = arith.constant dense<0.000000e+00> : vector<8x1024xf32>
    %6 = tpu.matmul %4, %5, %cst {dimension_numbers = #tpu.dot_dimension_numbers<[1], [0], [0], [1], [0, 0, 1, 1], [], []>} : vector<8x768xbf16>, vector<768x1024xbf16>, vector<8x1024xf32> -> vector<8x1024xf32>
    %7 = arith.addf %3, %6 : vector<8x1024xf32>
    %c0_6 = arith.constant 0 : index
    %c0_7 = arith.constant 0 : index
    %8 = vector.load %arg7[%c0_6, %c0_7] : memref<8x1024xf32, #tpu.memory_space<vmem>>, vector<8x1024xf32>
    tpu.vector_store %arg7[%c0_6, %c0_7], %7 {strides = array<i32>} : memref<8x1024xf32, #tpu.memory_space<vmem>>, vector<8x1024xf32>,
    %c14_i32 = arith.constant 14 : i32
    %9 = arith.cmpi eq, %arg2, %c14_i32 : i32
    %10 = arith.extui %9 : i1 to i32
    %c0_i32_8 = arith.constant 0 : i32
    %11 = arith.cmpi ne, %10, %c0_i32_8 : i32
    scf.if %11 {
      %c0_9 = arith.constant 0 : index
      %c0_10 = arith.constant 0 : index
      %12 = vector.load %arg7[%c0_9, %c0_10] : memref<8x1024xf32, #tpu.memory_space<vmem>>, vector<8x1024xf32>
      %c0_11 = arith.constant 0 : index
      %c0_12 = arith.constant 0 : index
      %13 = vector.load %arg5[%c0_11, %c0_12] : memref<1x1024xf32, #tpu.memory_space<vmem>>, vector<1x1024xf32>
      %14 = vector.broadcast %13 : vector<1x1024xf32> to vector<8x1024xf32>
      %15 = arith.addf %12, %14 : vector<8x1024xf32>
      %cst_13 = arith.constant 0.000000e+00 : f32
      %16 = vector.broadcast %cst_13 : f32 to vector<8x1024xf32>
      %17 = arith.maximumf %15, %16 : vector<8x1024xf32>
      %18 = arith.truncf %17 : vector<8x1024xf32> to vector<8x1024xbf16>
      %c0_14 = arith.constant 0 : index
      %c0_15 = arith.constant 0 : index
      %19 = vector.load %arg6[%c0_14, %c0_15] : memref<8x1024xbf16, #tpu.memory_space<vmem>>, vector<8x1024xbf16>
      tpu.vector_store %arg6[%c0_14, %c0_15], %18 {strides = array<i32>} : memref<8x1024xbf16, #tpu.memory_space<vmem>>, vector<8x1024xbf16>,
    } else {
    }
    return
  }
  func.func @transform_0(%arg0: i32, %arg1: i32, %arg2: i32) -> (i32, i32) {
    %c0_i32 = arith.constant 0 : i32
    return %arg0, %arg2 : i32, i32
  }
  func.func @transform_1(%arg0: i32, %arg1: i32, %arg2: i32) -> (i32, i32) {
    %c0_i32 = arith.constant 0 : i32
    return %arg2, %arg1 : i32, i32
  }
  func.func @transform_2(%arg0: i32, %arg1: i32, %arg2: i32) -> (i32, i32) {
    %c0_i32 = arith.constant 0 : i32
    %c0_i32_0 = arith.constant 0 : i32
    return %c0_i32, %arg1 : i32, i32
  }
  func.func @transform_3(%arg0: i32, %arg1: i32, %arg2: i32) -> (i32, i32) {
    %c0_i32 = arith.constant 0 : i32
    return %arg0, %arg1 : i32, i32
  }
}

module attributes {stable_mosaic.version = 11 : i64} {
  func.func @_matmul_bias_act_kernel(%arg0: i32, %arg1: i32, %arg2: i32, %arg3: memref<32x768xbf16, #tpu.memory_space<vmem>>, %arg4: memref<768x512xbf16, #tpu.memory_space<vmem>>, %arg5: memref<1x512xf32, #tpu.memory_space<vmem>>, %arg6: memref<32x512xbf16, #tpu.memory_space<vmem>>, %arg7: memref<32x512xf32, #tpu.memory_space<vmem>>) attributes {dimension_semantics = [#tpu.dimension_semantics<parallel>, #tpu.dimension_semantics<parallel>, #tpu.dimension_semantics<arbitrary>], iteration_bounds = array<i64: 1, 1, 6>, scalar_prefetch = 0 : i64, scratch_operands = 1 : i64, tpu.core_type = #tpu.core_type<tc>, window_params = [{transform_indices = @transform_0, window_bounds = array<i64: 32, 768>}, {transform_indices = @transform_1, window_bounds = array<i64: 768, 512>}, {transform_indices = @transform_2, window_bounds = array<i64: 1, 512>}, {transform_indices = @transform_3, window_bounds = array<i64: 32, 512>}]} {
    %c0_i32 = arith.constant 0 : i32
    %0 = arith.cmpi eq, %arg2, %c0_i32 : i32
    %1 = arith.extui %0 : i1 to i32
    %c0_i32_0 = arith.constant 0 : i32
    %2 = arith.cmpi ne, %1, %c0_i32_0 : i32
    scf.if %2 {
      %cst_9 = arith.constant 0.000000e+00 : f32
      %12 = vector.broadcast %cst_9 : f32 to vector<32x512xf32>
      %c0_10 = arith.constant 0 : index
      %c0_11 = arith.constant 0 : index
      %13 = vector.load %arg7[%c0_10, %c0_11] : memref<32x512xf32, #tpu.memory_space<vmem>>, vector<32x512xf32>
      tpu.vector_store %arg7[%c0_10, %c0_11], %12 {strides = array<i32>} : memref<32x512xf32, #tpu.memory_space<vmem>>, vector<32x512xf32>,
    } else {
    }
    %c0 = arith.constant 0 : index
    %c0_1 = arith.constant 0 : index
    %3 = vector.load %arg7[%c0, %c0_1] : memref<32x512xf32, #tpu.memory_space<vmem>>, vector<32x512xf32>
    %c0_2 = arith.constant 0 : index
    %c0_3 = arith.constant 0 : index
    %4 = vector.load %arg3[%c0_2, %c0_3] : memref<32x768xbf16, #tpu.memory_space<vmem>>, vector<32x768xbf16>
    %c0_4 = arith.constant 0 : index
    %c0_5 = arith.constant 0 : index
    %5 = vector.load %arg4[%c0_4, %c0_5] : memref<768x512xbf16, #tpu.memory_space<vmem>>, vector<768x512xbf16>
    %cst = arith.constant dense<0.000000e+00> : vector<32x512xf32>
    %6 = tpu.matmul %4, %5, %cst {dimension_numbers = #tpu.dot_dimension_numbers<[1], [0], [0], [1], [0, 0, 1, 1], [], []>} : vector<32x768xbf16>, vector<768x512xbf16>, vector<32x512xf32> -> vector<32x512xf32>
    %7 = arith.addf %3, %6 : vector<32x512xf32>
    %c0_6 = arith.constant 0 : index
    %c0_7 = arith.constant 0 : index
    %8 = vector.load %arg7[%c0_6, %c0_7] : memref<32x512xf32, #tpu.memory_space<vmem>>, vector<32x512xf32>
    tpu.vector_store %arg7[%c0_6, %c0_7], %7 {strides = array<i32>} : memref<32x512xf32, #tpu.memory_space<vmem>>, vector<32x512xf32>,
    %c5_i32 = arith.constant 5 : i32
    %9 = arith.cmpi eq, %arg2, %c5_i32 : i32
    %10 = arith.extui %9 : i1 to i32
    %c0_i32_8 = arith.constant 0 : i32
    %11 = arith.cmpi ne, %10, %c0_i32_8 : i32
    scf.if %11 {
      %c0_9 = arith.constant 0 : index
      %c0_10 = arith.constant 0 : index
      %12 = vector.load %arg7[%c0_9, %c0_10] : memref<32x512xf32, #tpu.memory_space<vmem>>, vector<32x512xf32>
      %c0_11 = arith.constant 0 : index
      %c0_12 = arith.constant 0 : index
      %13 = vector.load %arg5[%c0_11, %c0_12] : memref<1x512xf32, #tpu.memory_space<vmem>>, vector<1x512xf32>
      %14 = vector.broadcast %13 : vector<1x512xf32> to vector<32x512xf32>
      %15 = arith.addf %12, %14 : vector<32x512xf32>
      %cst_13 = arith.constant 0.000000e+00 : f32
      %16 = vector.broadcast %cst_13 : f32 to vector<32x512xf32>
      %17 = arith.maximumf %15, %16 : vector<32x512xf32>
      %18 = arith.truncf %17 : vector<32x512xf32> to vector<32x512xbf16>
      %c0_14 = arith.constant 0 : index
      %c0_15 = arith.constant 0 : index
      %19 = vector.load %arg6[%c0_14, %c0_15] : memref<32x512xbf16, #tpu.memory_space<vmem>>, vector<32x512xbf16>
      tpu.vector_store %arg6[%c0_14, %c0_15], %18 {strides = array<i32>} : memref<32x512xbf16, #tpu.memory_space<vmem>>, vector<32x512xbf16>,
    } else {
    }
    return
  }
  func.func @transform_0(%arg0: i32, %arg1: i32, %arg2: i32) -> (i32, i32) {
    %c0_i32 = arith.constant 0 : i32
    return %arg0, %arg2 : i32, i32
  }
  func.func @transform_1(%arg0: i32, %arg1: i32, %arg2: i32) -> (i32, i32) {
    %c0_i32 = arith.constant 0 : i32
    return %arg2, %arg1 : i32, i32
  }
  func.func @transform_2(%arg0: i32, %arg1: i32, %arg2: i32) -> (i32, i32) {
    %c0_i32 = arith.constant 0 : i32
    %c0_i32_0 = arith.constant 0 : i32
    return %c0_i32, %arg1 : i32, i32
  }
  func.func @transform_3(%arg0: i32, %arg1: i32, %arg2: i32) -> (i32, i32) {
    %c0_i32 = arith.constant 0 : i32
    return %arg0, %arg1 : i32, i32
  }
}

module attributes {stable_mosaic.version = 11 : i64} {
  func.func @_matmul_bias_act_kernel(%arg0: i32, %arg1: i32, %arg2: i32, %arg3: memref<128x384xbf16, #tpu.memory_space<vmem>>, %arg4: memref<384x256xbf16, #tpu.memory_space<vmem>>, %arg5: memref<1x256xf32, #tpu.memory_space<vmem>>, %arg6: memref<128x256xbf16, #tpu.memory_space<vmem>>, %arg7: memref<128x256xf32, #tpu.memory_space<vmem>>) attributes {dimension_semantics = [#tpu.dimension_semantics<parallel>, #tpu.dimension_semantics<parallel>, #tpu.dimension_semantics<arbitrary>], iteration_bounds = array<i64: 1, 1, 3>, scalar_prefetch = 0 : i64, scratch_operands = 1 : i64, tpu.core_type = #tpu.core_type<tc>, window_params = [{transform_indices = @transform_0, window_bounds = array<i64: 128, 384>}, {transform_indices = @transform_1, window_bounds = array<i64: 384, 256>}, {transform_indices = @transform_2, window_bounds = array<i64: 1, 256>}, {transform_indices = @transform_3, window_bounds = array<i64: 128, 256>}]} {
    %c0_i32 = arith.constant 0 : i32
    %0 = arith.cmpi eq, %arg2, %c0_i32 : i32
    %1 = arith.extui %0 : i1 to i32
    %c0_i32_0 = arith.constant 0 : i32
    %2 = arith.cmpi ne, %1, %c0_i32_0 : i32
    scf.if %2 {
      %cst_9 = arith.constant 0.000000e+00 : f32
      %12 = vector.broadcast %cst_9 : f32 to vector<128x256xf32>
      %c0_10 = arith.constant 0 : index
      %c0_11 = arith.constant 0 : index
      %13 = vector.load %arg7[%c0_10, %c0_11] : memref<128x256xf32, #tpu.memory_space<vmem>>, vector<128x256xf32>
      tpu.vector_store %arg7[%c0_10, %c0_11], %12 {strides = array<i32>} : memref<128x256xf32, #tpu.memory_space<vmem>>, vector<128x256xf32>,
    } else {
    }
    %c0 = arith.constant 0 : index
    %c0_1 = arith.constant 0 : index
    %3 = vector.load %arg7[%c0, %c0_1] : memref<128x256xf32, #tpu.memory_space<vmem>>, vector<128x256xf32>
    %c0_2 = arith.constant 0 : index
    %c0_3 = arith.constant 0 : index
    %4 = vector.load %arg3[%c0_2, %c0_3] : memref<128x384xbf16, #tpu.memory_space<vmem>>, vector<128x384xbf16>
    %c0_4 = arith.constant 0 : index
    %c0_5 = arith.constant 0 : index
    %5 = vector.load %arg4[%c0_4, %c0_5] : memref<384x256xbf16, #tpu.memory_space<vmem>>, vector<384x256xbf16>
    %cst = arith.constant dense<0.000000e+00> : vector<128x256xf32>
    %6 = tpu.matmul %4, %5, %cst {dimension_numbers = #tpu.dot_dimension_numbers<[1], [0], [0], [1], [0, 0, 1, 1], [], []>} : vector<128x384xbf16>, vector<384x256xbf16>, vector<128x256xf32> -> vector<128x256xf32>
    %7 = arith.addf %3, %6 : vector<128x256xf32>
    %c0_6 = arith.constant 0 : index
    %c0_7 = arith.constant 0 : index
    %8 = vector.load %arg7[%c0_6, %c0_7] : memref<128x256xf32, #tpu.memory_space<vmem>>, vector<128x256xf32>
    tpu.vector_store %arg7[%c0_6, %c0_7], %7 {strides = array<i32>} : memref<128x256xf32, #tpu.memory_space<vmem>>, vector<128x256xf32>,
    %c2_i32 = arith.constant 2 : i32
    %9 = arith.cmpi eq, %arg2, %c2_i32 : i32
    %10 = arith.extui %9 : i1 to i32
    %c0_i32_8 = arith.constant 0 : i32
    %11 = arith.cmpi ne, %10, %c0_i32_8 : i32
    scf.if %11 {
      %c0_9 = arith.constant 0 : index
      %c0_10 = arith.constant 0 : index
      %12 = vector.load %arg7[%c0_9, %c0_10] : memref<128x256xf32, #tpu.memory_space<vmem>>, vector<128x256xf32>
      %c0_11 = arith.constant 0 : index
      %c0_12 = arith.constant 0 : index
      %13 = vector.load %arg5[%c0_11, %c0_12] : memref<1x256xf32, #tpu.memory_space<vmem>>, vector<1x256xf32>
      %14 = vector.broadcast %13 : vector<1x256xf32> to vector<128x256xf32>
      %15 = arith.addf %12, %14 : vector<128x256xf32>
      %cst_13 = arith.constant 0.000000e+00 : f32
      %16 = vector.broadcast %cst_13 : f32 to vector<128x256xf32>
      %17 = arith.maximumf %15, %16 : vector<128x256xf32>
      %18 = arith.truncf %17 : vector<128x256xf32> to vector<128x256xbf16>
      %c0_14 = arith.constant 0 : index
      %c0_15 = arith.constant 0 : index
      %19 = vector.load %arg6[%c0_14, %c0_15] : memref<128x256xbf16, #tpu.memory_space<vmem>>, vector<128x256xbf16>
      tpu.vector_store %arg6[%c0_14, %c0_15], %18 {strides = array<i32>} : memref<128x256xbf16, #tpu.memory_space<vmem>>, vector<128x256xbf16>,
    } else {
    }
    return
  }
  func.func @transform_0(%arg0: i32, %arg1: i32, %arg2: i32) -> (i32, i32) {
    %c0_i32 = arith.constant 0 : i32
    return %arg0, %arg2 : i32, i32
  }
  func.func @transform_1(%arg0: i32, %arg1: i32, %arg2: i32) -> (i32, i32) {
    %c0_i32 = arith.constant 0 : i32
    return %arg2, %arg1 : i32, i32
  }
  func.func @transform_2(%arg0: i32, %arg1: i32, %arg2: i32) -> (i32, i32) {
    %c0_i32 = arith.constant 0 : i32
    %c0_i32_0 = arith.constant 0 : i32
    return %c0_i32, %arg1 : i32, i32
  }
  func.func @transform_3(%arg0: i32, %arg1: i32, %arg2: i32) -> (i32, i32) {
    %c0_i32 = arith.constant 0 : i32
    return %arg0, %arg1 : i32, i32
  }
}

module attributes {stable_mosaic.version = 11 : i64} {
  func.func @_matmul_bias_act_kernel(%arg0: i32, %arg1: i32, %arg2: i32, %arg3: memref<512x128xbf16, #tpu.memory_space<vmem>>, %arg4: memref<128x128xbf16, #tpu.memory_space<vmem>>, %arg5: memref<1x128xf32, #tpu.memory_space<vmem>>, %arg6: memref<512x128xbf16, #tpu.memory_space<vmem>>, %arg7: memref<512x128xf32, #tpu.memory_space<vmem>>) attributes {dimension_semantics = [#tpu.dimension_semantics<parallel>, #tpu.dimension_semantics<parallel>, #tpu.dimension_semantics<arbitrary>], iteration_bounds = array<i64: 1, 1, 1>, scalar_prefetch = 0 : i64, scratch_operands = 1 : i64, tpu.core_type = #tpu.core_type<tc>, window_params = [{transform_indices = @transform_0, window_bounds = array<i64: 512, 128>}, {transform_indices = @transform_1, window_bounds = array<i64: 128, 128>}, {transform_indices = @transform_2, window_bounds = array<i64: 1, 128>}, {transform_indices = @transform_3, window_bounds = array<i64: 512, 128>}]} {
    %c0_i32 = arith.constant 0 : i32
    %0 = arith.cmpi eq, %arg2, %c0_i32 : i32
    %1 = arith.extui %0 : i1 to i32
    %c0_i32_0 = arith.constant 0 : i32
    %2 = arith.cmpi ne, %1, %c0_i32_0 : i32
    scf.if %2 {
      %cst_10 = arith.constant 0.000000e+00 : f32
      %12 = vector.broadcast %cst_10 : f32 to vector<512x128xf32>
      %c0_11 = arith.constant 0 : index
      %c0_12 = arith.constant 0 : index
      %13 = vector.load %arg7[%c0_11, %c0_12] : memref<512x128xf32, #tpu.memory_space<vmem>>, vector<512x128xf32>
      tpu.vector_store %arg7[%c0_11, %c0_12], %12 {strides = array<i32>} : memref<512x128xf32, #tpu.memory_space<vmem>>, vector<512x128xf32>,
    } else {
    }
    %c0 = arith.constant 0 : index
    %c0_1 = arith.constant 0 : index
    %3 = vector.load %arg7[%c0, %c0_1] : memref<512x128xf32, #tpu.memory_space<vmem>>, vector<512x128xf32>
    %c0_2 = arith.constant 0 : index
    %c0_3 = arith.constant 0 : index
    %4 = vector.load %arg3[%c0_2, %c0_3] : memref<512x128xbf16, #tpu.memory_space<vmem>>, vector<512x128xbf16>
    %c0_4 = arith.constant 0 : index
    %c0_5 = arith.constant 0 : index
    %5 = vector.load %arg4[%c0_4, %c0_5] : memref<128x128xbf16, #tpu.memory_space<vmem>>, vector<128x128xbf16>
    %cst = arith.constant dense<0.000000e+00> : vector<512x128xf32>
    %6 = tpu.matmul %4, %5, %cst {dimension_numbers = #tpu.dot_dimension_numbers<[1], [0], [0], [1], [0, 0, 1, 1], [], []>} : vector<512x128xbf16>, vector<128x128xbf16>, vector<512x128xf32> -> vector<512x128xf32>
    %7 = arith.addf %3, %6 : vector<512x128xf32>
    %c0_6 = arith.constant 0 : index
    %c0_7 = arith.constant 0 : index
    %8 = vector.load %arg7[%c0_6, %c0_7] : memref<512x128xf32, #tpu.memory_space<vmem>>, vector<512x128xf32>
    tpu.vector_store %arg7[%c0_6, %c0_7], %7 {strides = array<i32>} : memref<512x128xf32, #tpu.memory_space<vmem>>, vector<512x128xf32>,
    %c0_i32_8 = arith.constant 0 : i32
    %9 = arith.cmpi eq, %arg2, %c0_i32_8 : i32
    %10 = arith.extui %9 : i1 to i32
    %c0_i32_9 = arith.constant 0 : i32
    %11 = arith.cmpi ne, %10, %c0_i32_9 : i32
    scf.if %11 {
      %c0_10 = arith.constant 0 : index
      %c0_11 = arith.constant 0 : index
      %12 = vector.load %arg7[%c0_10, %c0_11] : memref<512x128xf32, #tpu.memory_space<vmem>>, vector<512x128xf32>
      %c0_12 = arith.constant 0 : index
      %c0_13 = arith.constant 0 : index
      %13 = vector.load %arg5[%c0_12, %c0_13] : memref<1x128xf32, #tpu.memory_space<vmem>>, vector<1x128xf32>
      %14 = vector.broadcast %13 : vector<1x128xf32> to vector<512x128xf32>
      %15 = arith.addf %12, %14 : vector<512x128xf32>
      %16 = arith.truncf %15 : vector<512x128xf32> to vector<512x128xbf16>
      %c0_14 = arith.constant 0 : index
      %c0_15 = arith.constant 0 : index
      %17 = vector.load %arg6[%c0_14, %c0_15] : memref<512x128xbf16, #tpu.memory_space<vmem>>, vector<512x128xbf16>
      tpu.vector_store %arg6[%c0_14, %c0_15], %16 {strides = array<i32>} : memref<512x128xbf16, #tpu.memory_space<vmem>>, vector<512x128xbf16>,
    } else {
    }
    return
  }
  func.func @transform_0(%arg0: i32, %arg1: i32, %arg2: i32) -> (i32, i32) {
    %c0_i32 = arith.constant 0 : i32
    return %arg0, %arg2 : i32, i32
  }
  func.func @transform_1(%arg0: i32, %arg1: i32, %arg2: i32) -> (i32, i32) {
    %c0_i32 = arith.constant 0 : i32
    return %arg2, %arg1 : i32, i32
  }
  func.func @transform_2(%arg0: i32, %arg1: i32, %arg2: i32) -> (i32, i32) {
    %c0_i32 = arith.constant 0 : i32
    %c0_i32_0 = arith.constant 0 : i32
    return %c0_i32, %arg1 : i32, i32
  }
  func.func @transform_3(%arg0: i32, %arg1: i32, %arg2: i32) -> (i32, i32) {
    %c0_i32 = arith.constant 0 : i32
    return %arg0, %arg1 : i32, i32
  }
}

module attributes {stable_mosaic.version = 11 : i64} {
  func.func @_resize_bias_kernel(%arg0: i32, %arg1: i32, %arg2: memref<1x1x16x16xbf16, #tpu.memory_space<vmem>>, %arg3: memref<512x16xbf16, #tpu.memory_space<vmem>>, %arg4: memref<16x640xbf16, #tpu.memory_space<vmem>>, %arg5: memref<3xf32, #tpu.memory_space<smem>>, %arg6: memref<1x1x512x640xf32, #tpu.memory_space<vmem>>) attributes {dimension_semantics = [#tpu.dimension_semantics<parallel>, #tpu.dimension_semantics<parallel>], iteration_bounds = array<i64: 2, 3>, scalar_prefetch = 0 : i64, scratch_operands = 0 : i64, tpu.core_type = #tpu.core_type<tc>, window_params = [{transform_indices = @transform_0, window_bounds = array<i64: 1, 1, 16, 16>}, {pipeline_mode = #tpu.pipeline_mode<synchronous>, transform_indices = @transform_1, window_bounds = array<i64: 512, 16>}, {pipeline_mode = #tpu.pipeline_mode<synchronous>, transform_indices = @transform_2, window_bounds = array<i64: 16, 640>}, {transform_indices = @transform_3, window_bounds = array<i64: 3>}, {transform_indices = @transform_4, window_bounds = array<i64: 1, 1, 512, 640>}]} {
    %c0 = arith.constant 0 : index
    %c0_0 = arith.constant 0 : index
    %0 = vector.load %arg3[%c0, %c0_0] : memref<512x16xbf16, #tpu.memory_space<vmem>>, vector<512x16xbf16>
    %c0_1 = arith.constant 0 : index
    %c0_2 = arith.constant 0 : index
    %c0_3 = arith.constant 0 : index
    %c0_4 = arith.constant 0 : index
    %1 = vector.load %arg2[%c0_1, %c0_2, %c0_3, %c0_4] : memref<1x1x16x16xbf16, #tpu.memory_space<vmem>>, vector<1x1x16x16xbf16>
    %2 = vector.shape_cast %1 : vector<1x1x16x16xbf16> to vector<16x16xbf16>
    %cst = arith.constant dense<0.000000e+00> : vector<512x16xf32>
    %3 = tpu.matmul %0, %2, %cst {dimension_numbers = #tpu.dot_dimension_numbers<[1], [0], [0], [1], [0, 0, 1, 1], [], []>} : vector<512x16xbf16>, vector<16x16xbf16>, vector<512x16xf32> -> vector<512x16xf32>
    %4 = arith.truncf %3 : vector<512x16xf32> to vector<512x16xbf16>
    %c0_5 = arith.constant 0 : index
    %c0_6 = arith.constant 0 : index
    %5 = vector.load %arg4[%c0_5, %c0_6] : memref<16x640xbf16, #tpu.memory_space<vmem>>, vector<16x640xbf16>
    %cst_7 = arith.constant dense<0.000000e+00> : vector<512x640xf32>
    %6 = tpu.matmul %4, %5, %cst_7 {dimension_numbers = #tpu.dot_dimension_numbers<[1], [0], [0], [1], [0, 0, 1, 1], [], []>} : vector<512x16xbf16>, vector<16x640xbf16>, vector<512x640xf32> -> vector<512x640xf32>
    %7 = arith.index_cast %arg1 : i32 to index
    %8 = memref.load %arg5[%7] : memref<3xf32, #tpu.memory_space<smem>>
    %9 = vector.broadcast %8 : f32 to vector<512x640xf32>
    %10 = arith.addf %6, %9 : vector<512x640xf32>
    %c0_8 = arith.constant 0 : index
    %c0_9 = arith.constant 0 : index
    %c0_10 = arith.constant 0 : index
    %c0_11 = arith.constant 0 : index
    %11 = vector.load %arg6[%c0_8, %c0_9, %c0_10, %c0_11] : memref<1x1x512x640xf32, #tpu.memory_space<vmem>>, vector<1x1x512x640xf32>
    %12 = vector.shape_cast %11 : vector<1x1x512x640xf32> to vector<512x640xf32>
    %13 = vector.shape_cast %10 : vector<512x640xf32> to vector<1x1x512x640xf32>
    tpu.vector_store %arg6[%c0_8, %c0_9, %c0_10, %c0_11], %13 {strides = array<i32>} : memref<1x1x512x640xf32, #tpu.memory_space<vmem>>, vector<1x1x512x640xf32>,
    return
  }
  func.func @transform_0(%arg0: i32, %arg1: i32) -> (i32, i32, i32, i32) {
    %c0_i32 = arith.constant 0 : i32
    %c0_i32_0 = arith.constant 0 : i32
    %c0_i32_1 = arith.constant 0 : i32
    return %arg0, %arg1, %c0_i32, %c0_i32_0 : i32, i32, i32, i32
  }
  func.func @transform_1(%arg0: i32, %arg1: i32) -> (i32, i32) {
    %c0_i32 = arith.constant 0 : i32
    %c0_i32_0 = arith.constant 0 : i32
    %c0_i32_1 = arith.constant 0 : i32
    return %c0_i32, %c0_i32_0 : i32, i32
  }
  func.func @transform_2(%arg0: i32, %arg1: i32) -> (i32, i32) {
    %c0_i32 = arith.constant 0 : i32
    %c0_i32_0 = arith.constant 0 : i32
    %c0_i32_1 = arith.constant 0 : i32
    return %c0_i32, %c0_i32_0 : i32, i32
  }
  func.func @transform_3(%arg0: i32, %arg1: i32) -> i32 {
    %c0_i32 = arith.constant 0 : i32
    %c0_i32_0 = arith.constant 0 : i32
    return %c0_i32 : i32
  }
  func.func @transform_4(%arg0: i32, %arg1: i32) -> (i32, i32, i32, i32) {
    %c0_i32 = arith.constant 0 : i32
    %c0_i32_0 = arith.constant 0 : i32
    %c0_i32_1 = arith.constant 0 : i32
    return %arg0, %arg1, %c0_i32, %c0_i32_0 : i32, i32, i32, i32
  }
}

</mosaic_0001>

<bundles_post_ra>
// kernel: efficientnet_segmentation_forward.6
= control target key start
LH: loop header
LB: loop body
LE: loop exit
PB: predicated region body
PF: predicated region fallthrough
CT: control target
= control target key end

     0   :  { %8 = vsyncpa [#allocation4], 0  ;;  %s4772_s0 = inlined_call_operand.vmem [shape: bf16[8,3072], index: 0, kind: input, shape index: {}]   ;;  %s4773_s1 = inlined_call_operand.hbm [shape: bf16[3072,1280], index: 1, kind: input, shape index: {}]   ;;  %s4774_s2 = inlined_call_operand.vmem [shape: f32[1,1280], index: 2, kind: input, shape index: {}]   ;;  %s4775_s3 = inlined_call_operand.vmem [shape: bf16[8,1280], index: 3, kind: output, shape index: {}]  }
   0x1   :  { %10 = vsyncpa [#allocation4 + $0x1], 0  ;;  %s4223_s12 = smov 0   ;;  %s4225_s13 = smov 0  }
   0x2   :  { %s4227_s14 = smov 0   ;;  %s4229_s15 = smov 0  }
   0x3   :  { %s4231_s16 = smov 0   ;;  %s4233_s17 = smov 0  }
   0x4   :  { %s4235_s18 = smov 0   ;;  %s4237_s19 = smov 0  }
   0x5 LB: > { %s3104_s20 = sadd.s32 4294967295, %s4196_s19   ;;  %s28_s21 = sadd.s32 1, %s4188_s17  ;;  %s4196_s19 = sphi %s4237_s19, %s16_s19   ;;  %s4192_s18 = sphi %s4235_s18, %s4784_s18   ;;  %s4188_s17 = sphi %s4233_s17, %s4783_s17   ;;  %s4184_s16 = sphi %s4231_s16, %s4782_s16   ;;  %s4180_s15 = sphi %s4229_s15, %s4781_s15   ;;  %s4176_s14 = sphi %s4227_s14, %s4780_s14   ;;  %s4172_s13 = sphi %s4225_s13, %s4779_s13   ;;  %s4168_s12 = sphi %s4223_s12, %s4778_s12  }
   0x6   : > { %p29_p0 = scmp.ge.s32.totalorder %s28_s21, 3  ;;  %s31_s22 = sadd.s32 1, %s4192_s18 }
   0x7   : > { %s72_s23 = sadd.s32 1, %s4176_s14  ;;  %p79_p1 = scmp.ne.s32.totalorder %s4176_s14, %s4172_s13 }
   0x8   : > { %s4786_s21 = smov (%p29_p0, %s28_s21), 0  ;;  %s4788_s22 = smov (!%p29_p0, %s31_s22), %s4192_s18 }
   0x9   : > { %s67_s24 = ssub.s32 %s4188_s17, %s4786_s21  ;;  %p80_p2 = scmp.eq.s32.totalorder %s4196_s19, 0 }
   0xa   : > { %p33_p3 = scmp.ge.s32.totalorder %s4788_s22, 2  ;;  %p85_p4 = scmp.ne.s32.totalorder %s4172_s13, %s4168_s12 }
   0xb   : > { %p81_p5 = por %p80_p2, %p79_p1  ;;  %p86_p6 = scmp.eq.s32.totalorder %s3104_s20, 0 }
   0xc   : > { %s4790_s22 = smov (%p33_p3, %s4788_s22), 0  ;;  %p3555_p8 = scmp.lt.s32.totalorder %s4196_s19, 6 }
   0xd   : > { %p4276_p7 = por %p86_p6, %p85_p4  ;;  %s68_s26 = ssub.s32 %s4192_s18, %s4790_s22 }
   0xe   : > { %s69_s27 = sor.u32 %s68_s26, %s67_s24  ;;  %s176_s28 = sand.u32 1, %s4176_s14  }
   0xf   : > { %p70_p9 = scmp.eq.s32.totalorder %s69_s27, 0  ;;  %s3546_s29 = smul.u32 2560, %s176_s28 }
  0x10   : > { %p4284_p10 = pnand %p3555_p8, %p81_p5  ;;  %s182_s5 = smul.u32 5, %s4192_s18 }
  0x11   : > { %s4289_s4 = scalar_select %p70_p9, %s4176_s14, %s72_s23  }
  0x12   : > { %s3547_s6 = smul.u32 1280, %s4188_s17  ;;  %s180_s7 = scalar_lea.vmem [#allocation3], %s3546_s29 }
  0x13   : > { %s190_s8 = sshll.u32 %s180_s7, 4  ;;  %s4300_s24 = scalar_lea.sflag [#allocation4], %s176_s28  ;;  %s4293_s8 = int_to_ptr.vmem [resolvable:$true] %s190_s8 }
  0x14   : > { %s187_s9 = sadd.s32 %s3547_s6, %s182_s5  ;;  %p4102_p12 = pneg %p4284_p10 }
  0x15   : > { %s3110_s10 = sshll.u32 %s187_s9, 6  ;;  %s4105_s29 = scalar_lea.hbm %s4773_s1, 245760 }
  0x16   : > { %s4298_s20 = scalar_lea.hbm %s4773_s1, %s3110_s10 }
  0x17   : > { %s4100_s23 = scalar_lea.hbm %s4298_s20, 40960  ;;  %p4106_p1 = scmp.lt.u32.totalorder %s4298_s20, %s4773_s1 }
  0x18   : > { %p4101_p11 = scmp.ne.s32.totalorder %s4298_s20, %s4100_s23  ;;  %p4107_p2 = scmp.lt.u32.totalorder %s4105_s29, %s4100_s23 }
  0x19   : > { %p4109_p4 = scmp.lt.u32.totalorder %s4100_s23, %s4298_s20 }
  0x1a   : > { %p4103_p13 = pnand %p4102_p12, %p4101_p11  ;;  %p4108_p3 = por %p4107_p2, %p4106_p1 }
  0x1c   : > { %p4104_p0 = pneg %p4103_p13  ;;  %p4110_p5 = por %p4109_p4, %p4108_p3 }
  0x1e   : > { %p4111_p6 = pnand %p4110_p5, %p4104_p0 }
  0x20   : > { %4114 = shalt.err (!%p4111_p6)
}
  0x21   : > { %s4115_s28 = scalar_lea.vmem %s4293_s8, 40960  ;;  %s4198_s7 = smov [#allocation3]  }
  0x22   : > { %p4116_p8 = scmp.ne.s32.totalorder %s4293_s8, %s4115_s28  ;;  %s4120_s9 = sshll.u32 %s4198_s7, 4  ;;  %s4121_s9 = int_to_ptr.vmem [resolvable:$false] %s4120_s9 }
  0x23   : > { %s4122_s10 = scalar_lea.vmem %s4121_s9, 81920  ;;  %p4123_p13 = scmp.lt.s32.totalorder %s4293_s8, %s4121_s9 }
  0x24   : > { %p4118_p9 = pnand %p4116_p8, %p4102_p12  ;;  %p4124_p1 = scmp.lt.s32.totalorder %s4122_s10, %s4115_s28 }
  0x26   : > { %p4119_p11 = pneg %p4118_p9  ;;  %p4125_p2 = por %p4124_p1, %p4123_p13 }
  0x28   : > { %p4126_p3 = pnand %p4125_p2, %p4119_p11 }
  0x2a   : > { %4129 = shalt.err (!%p4126_p3)
}
  0x2b   : > { %s4199_s11 = smov 640   ;;  %s4200_s12 = smov 320  }
  0x2c   : > { %s4201_s23 = smov 20   ;;  %p3111_p12 = scmp.ge.s32.totalorder %s4196_s19, 1 }
  0x2d   : > { %3554 = dma.hbm_to_vmem [thread:$0]  (!%p4284_p10), %s4298_s20, 40960, %s4293_s8, %s4300_s24, %s4199_s11, %s4200_s12, %s4201_s23  }
  0x2e   : > { %p206_p0 = scmp.lt.s32.totalorder %s4196_s19, 7 }
  0x30   : > { %p207_p4 = pnand %p3111_p12, %p206_p0 }
  0x31   : > { %s212_s26 = sand.u32 (!%p207_p4), 1, %s4172_s13  }
  0x32   : > { %210 = sbr.rel (%p207_p4) target bundleno = 651 (0x28b), region = 32  ;;  %s213_s29 = scalar_lea.sflag (!%p207_p4), [#allocation4], %s212_s26 }
  0x33   : > { %s3548_s27 = smul.u32 (!%p207_p4), 2560, %s212_s26 }
  0x35   : > { %s4331_s5 = scalar_lea.vmem (!%p207_p4), [#allocation3], %s3548_s27 }
  0x39   : > { %4163 = dma.done.wait (%p4276_p7), %s213_s29, 40960  }
  0x3a   : > { %4165 = vsyncadd (%p4276_p7), %s213_s29, 4294926336  ;;  %s3112_s30 = sshll.u32 %s4180_s15, 3  ;;  %s268_s8 = smul.u32 5, %s4184_s16 }
  0x3b   : > { %p259_p10 = scmp.lt.s32.totalorder %s3112_s30, 23  ;;  %p3115_p7 = scmp.ne.s32.totalorder %s4180_s15, 0 }
  0x3c   : > { %p269_p5 = scmp.lt.s32.totalorder %s268_s8, 9  ;;  %v4202_v0 = vmov (!%p3115_p7), 0.0  }
  0x3d   : > { %s4792_s30 = smov (!%p259_p10, %s3112_s30), 23  ;;  %287 = sbr.rel (%p3115_p7) target bundleno = 68 (0x44), region = 40 }
  0x3e   : > { %s4794_s8 = smov (!%p269_p5, %s268_s8), 9  ;;  %s3113_s20 = sshll.u32 %s4792_s30, 2  ;;  %288 = vst [vmem:[#allocation2] sm:$0xff] (!%p3115_p7), %v4202_v0  ;;  %289 = vst [vmem:[#allocation2 + $0x8] sm:$0xff] (!%p3115_p7), %v4202_v0 }
  0x3f   : > { %s4344_s28 = scalar_lea.vmem %s4772_s0, %s3113_s20  ;;  %s271_s9 = scalar_lea.vmem %s4774_s2, %s4794_s8  ;;  %290 = vst [vmem:[#allocation2 + $0x10] sm:$0xff] (!%p3115_p7), %v4202_v0  ;;  %291 = vst [vmem:[#allocation2 + $0x18] sm:$0xff] (!%p3115_p7), %v4202_v0 }
  0x40   : > { %s3114_s10 = sshll.u32 %s4794_s8, 2  ;;  %292 = vst [vmem:[#allocation2 + $0x20] sm:$0xff] (!%p3115_p7), %v4202_v0 }
  0x41   : > { %s4354_s12 = scalar_lea.vmem %s4775_s3, %s3114_s10 }
  0x44 PF: > { %v3624_v1 = vld [vmem:[%s4331_s5 + $0x4] ss:$20 sps:$4 sm:$0xff]   ;;  %v3628_v3 = vld [vmem:[%s4331_s5] ss:$20 sps:$4 sm:$0xff]   ;;  %v3634_v7 = vld [vmem:[%s4331_s5 + $0x28] ss:$20 sps:$4 sm:$0xff]  }
  0x45   : > { %v3626_v2 = vld [vmem:[%s4331_s5 + $0x284] ss:$20 sps:$4 sm:$0xff]   ;;  %2378 = vmatprep.subr.bf16.mxu0 %v3624_v1  ;;  %v3629_v4 = vld [vmem:[%s4331_s5 + $0x280] ss:$20 sps:$4 sm:$0xff]   ;;  %v3635_v8 = vld [vmem:[%s4331_s5 + $0x2a8] ss:$20 sps:$4 sm:$0xff]  }
  0x46   : > { %2419 = vmatprep.subr.bf16.mxu1 %v3626_v2  ;;  %v3630_v5 = vld [vmem:[%s4331_s5 + $0x2c] ss:$20 sps:$4 sm:$0xff]   ;;  %2379 = vmatpush1.bf16.msra.mxu0 %v3628_v3  ;;  %v3636_v9 = vld [vmem:[%s4331_s5 + $0x54] ss:$20 sps:$4 sm:$0xff]   ;;  %v3640_v11 = vld [vmem:[%s4331_s5 + $0x50] ss:$20 sps:$4 sm:$0xff]  }
  0x47   : > { %2420 = vmatpush1.bf16.msra.mxu1 %v3629_v4  ;;  %v3632_v6 = vld [vmem:[%s4331_s5 + $0x2ac] ss:$20 sps:$4 sm:$0xff]   ;;  %2380 = vmatprep.subr.bf16.mxu0 %v3630_v5  ;;  %v3638_v10 = vld [vmem:[%s4331_s5 + $0x2d4] ss:$20 sps:$4 sm:$0xff]   ;;  %v3641_v12 = vld [vmem:[%s4331_s5 + $0x2d0] ss:$20 sps:$4 sm:$0xff]  }
  0x48   : > { %2421 = vmatprep.subr.bf16.mxu1 %v3632_v6  ;;  %v3642_v13 = vld [vmem:[%s4331_s5 + $0x7c] ss:$20 sps:$4 sm:$0xff]   ;;  %v3646_v15 = vld [vmem:[%s4331_s5 + $0x78] ss:$20 sps:$4 sm:$0xff]   ;;  %v3652_v19 = vld [vmem:[%s4331_s5 + $0xa0] ss:$20 sps:$4 sm:$0xff]  }
  0x49   : > { %v3644_v14 = vld [vmem:[%s4331_s5 + $0x2fc] ss:$20 sps:$4 sm:$0xff]   ;;  %v3647_v16 = vld [vmem:[%s4331_s5 + $0x2f8] ss:$20 sps:$4 sm:$0xff]   ;;  %v3653_v20 = vld [vmem:[%s4331_s5 + $0x320] ss:$20 sps:$4 sm:$0xff]  }
  0x4a   : > { %2381 = vmatpush1.bf16.msra.mxu0 %v3634_v7  ;;  %v3648_v17 = vld [vmem:[%s4331_s5 + $0xa4] ss:$20 sps:$4 sm:$0xff]   ;;  %v3654_v21 = vld [vmem:[%s4331_s5 + $0xcc] ss:$20 sps:$4 sm:$0xff]   ;;  %v3658_v23 = vld [vmem:[%s4331_s5 + $0xc8] ss:$20 sps:$4 sm:$0xff]  }
  0x4b   : > { %2422 = vmatpush1.bf16.msra.mxu1 %v3635_v8  ;;  %2382 = vmatprep.subr.bf16.mxu0 %v3636_v9  ;;  %v3650_v18 = vld [vmem:[%s4331_s5 + $0x324] ss:$20 sps:$4 sm:$0xff]   ;;  %v3656_v22 = vld [vmem:[%s4331_s5 + $0x34c] ss:$20 sps:$4 sm:$0xff]   ;;  %v3659_v24 = vld [vmem:[%s4331_s5 + $0x348] ss:$20 sps:$4 sm:$0xff]  }
  0x4c   : > { %2423 = vmatprep.subr.bf16.mxu1 %v3638_v10  ;;  %v3660_v25 = vld [vmem:[%s4331_s5 + $0xf4] ss:$20 sps:$4 sm:$0xff]   ;;  %v3664_v27 = vld [vmem:[%s4331_s5 + $0xf0] ss:$20 sps:$4 sm:$0xff]   ;;  %v3670_v31 = vld [vmem:[%s4331_s5 + $0x118] ss:$20 sps:$4 sm:$0xff]  }
  0x4d   : > { %v3662_v26 = vld [vmem:[%s4331_s5 + $0x374] ss:$20 sps:$4 sm:$0xff]   ;;  %v3665_v28 = vld [vmem:[%s4331_s5 + $0x370] ss:$20 sps:$4 sm:$0xff]   ;;  %v3671_v32 = vld [vmem:[%s4331_s5 + $0x398] ss:$20 sps:$4 sm:$0xff]  }
  0x4e   : > { %2383 = vmatpush1.bf16.msra.mxu0 %v3640_v11  ;;  %v3666_v29 = vld [vmem:[%s4331_s5 + $0x11c] ss:$20 sps:$4 sm:$0xff]   ;;  %v3672_v33 = vld [vmem:[%s4331_s5 + $0x144] ss:$20 sps:$4 sm:$0xff]   ;;  %v3676_v35 = vld [vmem:[%s4331_s5 + $0x140] ss:$20 sps:$4 sm:$0xff]  }
  0x4f   : > { %2424 = vmatpush1.bf16.msra.mxu1 %v3641_v12  ;;  %2384 = vmatprep.subr.bf16.mxu0 %v3642_v13  ;;  %v3668_v30 = vld [vmem:[%s4331_s5 + $0x39c] ss:$20 sps:$4 sm:$0xff]   ;;  %v3674_v34 = vld [vmem:[%s4331_s5 + $0x3c4] ss:$20 sps:$4 sm:$0xff]   ;;  %v3677_v36 = vld [vmem:[%s4331_s5 + $0x3c0] ss:$20 sps:$4 sm:$0xff]  }
  0x50   : > { %2425 = vmatprep.subr.bf16.mxu1 %v3644_v14  ;;  %v3678_v37 = vld [vmem:[%s4331_s5 + $0x16c] ss:$20 sps:$4 sm:$0xff]   ;;  %v3682_v39 = vld [vmem:[%s4331_s5 + $0x168] ss:$20 sps:$4 sm:$0xff]   ;;  %v3688_v43 = vld [vmem:[%s4331_s5 + $0x190] ss:$20 sps:$4 sm:$0xff]  }
  0x51   : > { %v3680_v38 = vld [vmem:[%s4331_s5 + $0x3ec] ss:$20 sps:$4 sm:$0xff]   ;;  %v3683_v40 = vld [vmem:[%s4331_s5 + $0x3e8] ss:$20 sps:$4 sm:$0xff]   ;;  %v3689_v44 = vld [vmem:[%s4331_s5 + $0x410] ss:$20 sps:$4 sm:$0xff]  }
  0x52   : > { %2385 = vmatpush1.bf16.msra.mxu0 %v3646_v15  ;;  %v3684_v41 = vld [vmem:[%s4331_s5 + $0x194] ss:$20 sps:$4 sm:$0xff]   ;;  %v3690_v45 = vld [vmem:[%s4331_s5 + $0x1bc] ss:$20 sps:$4 sm:$0xff]   ;;  %v299_v49 = vld [vmem:[%s4344_s28 + $0x8] sm:$0xff]  ;;  %p3444_p6 = scmp.ne.s32.totalorder %s4180_s15, 2 }
  0x53   : > { %2426 = vmatpush1.bf16.msra.mxu1 %v3647_v16  ;;  %2386 = vmatprep.subr.bf16.mxu0 %v3648_v17  ;;  %v3686_v42 = vld [vmem:[%s4331_s5 + $0x414] ss:$20 sps:$4 sm:$0xff]   ;;  %v3692_v46 = vld [vmem:[%s4331_s5 + $0x43c] ss:$20 sps:$4 sm:$0xff]   ;;  %v3694_v50 = vld [vmem:[%s4331_s5 + $0x1b8] ss:$20 sps:$4 sm:$0xff]   ;;  %v4409_v52 = vcombine.high %v299_v49, %v299_v49  ;;  %v4433_v8 = vcombine.low %v299_v49, %v299_v49 }
  0x54   : > { %2427 = vmatprep.subr.bf16.mxu1 %v3650_v18  ;;  %v298_v47 = vld [vmem:[%s4344_s28] sm:$0xff]  ;;  %v3700_v55 = vld [vmem:[%s4331_s5 + $0x1e0] ss:$20 sps:$4 sm:$0xff]   ;;  %v3712_v63 = vld [vmem:[%s4331_s5 + $0x230] ss:$20 sps:$4 sm:$0xff]  }
  0x55   : > { %v4404_v48 = vcombine.high %v298_v47, %v298_v47  ;;  %v3695_v51 = vld [vmem:[%s4331_s5 + $0x438] ss:$20 sps:$4 sm:$0xff]   ;;  %2451 = vmatprep.mubr.bf16.mxu1 %v4409_v52  ;;  %v3701_v56 = vld [vmem:[%s4331_s5 + $0x460] ss:$20 sps:$4 sm:$0xff]   ;;  %v3706_v59 = vld [vmem:[%s4331_s5 + $0x208] ss:$20 sps:$4 sm:$0xff]   ;;  %v4431_v7 = vcombine.low %v298_v47, %v298_v47 }
  0x56   : > { %2387 = vmatpush1.bf16.msra.mxu0 %v3652_v19  ;;  %v3696_v53 = vld [vmem:[%s4331_s5 + $0x1e4] ss:$20 sps:$4 sm:$0xff]   ;;  %v3702_v57 = vld [vmem:[%s4331_s5 + $0x20c] ss:$20 sps:$4 sm:$0xff]   ;;  %v3707_v60 = vld [vmem:[%s4331_s5 + $0x488] ss:$20 sps:$4 sm:$0xff]  }
  0x57   : > { %2428 = vmatpush1.bf16.msra.mxu1 %v3653_v20  ;;  %2388 = vmatprep.subr.bf16.mxu0 %v3654_v21  ;;  %v3698_v54 = vld [vmem:[%s4331_s5 + $0x464] ss:$20 sps:$4 sm:$0xff]   ;;  %v3704_v58 = vld [vmem:[%s4331_s5 + $0x48c] ss:$20 sps:$4 sm:$0xff]   ;;  %v3708_v61 = vld [vmem:[%s4331_s5 + $0x234] ss:$20 sps:$4 sm:$0xff]  }
  0x58   : > { %2429 = vmatprep.subr.bf16.mxu1 %v3656_v22  ;;  %2410 = vmatprep.mubr.bf16.mxu0 %v4404_v48  ;;  %v3710_v62 = vld [vmem:[%s4331_s5 + $0x4b4] ss:$20 sps:$4 sm:$0xff]   ;;  %v3713_v0 = vld [vmem:[%s4331_s5 + $0x4b0] ss:$20 sps:$4 sm:$0xff]   ;;  %v3718_v3 = vld [vmem:[%s4331_s5 + $0x258] ss:$20 sps:$4 sm:$0xff]  }
  0x59   : > { %v3714_v1 = vld [vmem:[%s4331_s5 + $0x25c] ss:$20 sps:$4 sm:$0xff]   ;;  %v3719_v4 = vld [vmem:[%s4331_s5 + $0x4d8] ss:$20 sps:$4 sm:$0xff]   ;;  %v3724_v9 = vld [vmem:[%s4331_s5 + $0x500] ss:$20 sps:$4 sm:$0xff]  }
  0x5a   : > { %2389 = vmatpush1.bf16.msra.mxu0 %v3658_v23  ;;  %v3716_v2 = vld [vmem:[%s4331_s5 + $0x4dc] ss:$20 sps:$4 sm:$0xff]   ;;  %v3726_v5 = vld [vmem:[%s4331_s5 + $0x504] ss:$20 sps:$4 sm:$0xff]   ;;  %v3727_v10 = vld [vmem:[%s4331_s5 + $0x780] ss:$20 sps:$4 sm:$0xff]  }
  0x5b   : > { %2430 = vmatpush1.bf16.msra.mxu1 %v3659_v24  ;;  %2390 = vmatprep.subr.bf16.mxu0 %v3660_v25  ;;  %v3729_v6 = vld [vmem:[%s4331_s5 + $0x784] ss:$20 sps:$4 sm:$0xff]   ;;  %v3732_v11 = vld [vmem:[%s4331_s5 + $0x52c] ss:$20 sps:$4 sm:$0xff]   ;;  %v3730_v13 = vld [vmem:[%s4331_s5 + $0x528] ss:$20 sps:$4 sm:$0xff]  }
  0x5c   : > { %2431 = vmatprep.subr.bf16.mxu1 %v3662_v26  ;;  %v3735_v12 = vld [vmem:[%s4331_s5 + $0x7ac] ss:$20 sps:$4 sm:$0xff]   ;;  %v3733_v14 = vld [vmem:[%s4331_s5 + $0x7a8] ss:$20 sps:$4 sm:$0xff]   ;;  %v3736_v17 = vld [vmem:[%s4331_s5 + $0x550] ss:$20 sps:$4 sm:$0xff]  }
  0x5d   : > { %v3738_v15 = vld [vmem:[%s4331_s5 + $0x554] ss:$20 sps:$4 sm:$0xff]   ;;  %v3739_v18 = vld [vmem:[%s4331_s5 + $0x7d0] ss:$20 sps:$4 sm:$0xff]   ;;  %v3742_v21 = vld [vmem:[%s4331_s5 + $0x578] ss:$20 sps:$4 sm:$0xff]  }
  0x5e   : > { %2391 = vmatpush1.bf16.msra.mxu0 %v3664_v27  ;;  %v3741_v16 = vld [vmem:[%s4331_s5 + $0x7d4] ss:$20 sps:$4 sm:$0xff]   ;;  %v3744_v19 = vld [vmem:[%s4331_s5 + $0x57c] ss:$20 sps:$4 sm:$0xff]   ;;  %v3745_v22 = vld [vmem:[%s4331_s5 + $0x7f8] ss:$20 sps:$4 sm:$0xff]  }
  0x5f   : > { %2432 = vmatpush1.bf16.msra.mxu1 %v3665_v28  ;;  %2392 = vmatprep.subr.bf16.mxu0 %v3666_v29  ;;  %v3747_v20 = vld [vmem:[%s4331_s5 + $0x7fc] ss:$20 sps:$4 sm:$0xff]   ;;  %v3750_v23 = vld [vmem:[%s4331_s5 + $0x5a4] ss:$20 sps:$4 sm:$0xff]   ;;  %v3748_v25 = vld [vmem:[%s4331_s5 + $0x5a0] ss:$20 sps:$4 sm:$0xff]  }
  0x60   : > { %2433 = vmatprep.subr.bf16.mxu1 %v3668_v30  ;;  %v3753_v24 = vld [vmem:[%s4331_s5 + $0x824] ss:$20 sps:$4 sm:$0xff]   ;;  %v3751_v26 = vld [vmem:[%s4331_s5 + $0x820] ss:$20 sps:$4 sm:$0xff]   ;;  %v3754_v29 = vld [vmem:[%s4331_s5 + $0x5c8] ss:$20 sps:$4 sm:$0xff]  }
  0x61   : > { %v3756_v27 = vld [vmem:[%s4331_s5 + $0x5cc] ss:$20 sps:$4 sm:$0xff]   ;;  %v3757_v30 = vld [vmem:[%s4331_s5 + $0x848] ss:$20 sps:$4 sm:$0xff]  }
  0x62   : > { %2393 = vmatpush1.bf16.msra.mxu0 %v3670_v31  ;;  %v3759_v28 = vld [vmem:[%s4331_s5 + $0x84c] ss:$20 sps:$4 sm:$0xff]   ;;  %v3762_v31 = vld [vmem:[%s4331_s5 + $0x5f4] ss:$20 sps:$4 sm:$0xff]  }
  0x63   : > { %2434 = vmatpush1.bf16.msra.mxu1 %v3671_v32  ;;  %2394 = vmatprep.subr.bf16.mxu0 %v3672_v33  ;;  %v3765_v32 = vld [vmem:[%s4331_s5 + $0x874] ss:$20 sps:$4 sm:$0xff]   ;;  %v3780_v47 = vld [vmem:[%s4331_s5 + $0x66c] ss:$20 sps:$4 sm:$0xff]  }
  0x64   : > { %2435 = vmatprep.subr.bf16.mxu1 %v3674_v34  ;;  %v4462_v33 = vld [vmem:[%s4344_s28 + $0x10] sm:$0xff]  ;;  %v4465_v34 = vld [vmem:[%s4344_s28 + $0x18] sm:$0xff] }
  0x65   : > { %v3783_v49 = vld [vmem:[%s4331_s5 + $0x8ec] ss:$20 sps:$4 sm:$0xff]  }
  0x66   : > { %2395 = vmatpush1.bf16.msra.mxu0 %v3676_v35  ;;  %v3760_v35 = vld [vmem:[%s4331_s5 + $0x5f0] ss:$20 sps:$4 sm:$0xff]  }
  0x67   : > { %2436 = vmatpush1.bf16.msra.mxu1 %v3677_v36  ;;  %2396 = vmatprep.subr.bf16.mxu0 %v3678_v37  ;;  %v3763_v36 = vld [vmem:[%s4331_s5 + $0x870] ss:$20 sps:$4 sm:$0xff]   ;;  %v4471_v37 = vcombine.high %v4462_v33, %v4462_v33 }
  0x68   : > { %2437 = vmatprep.subr.bf16.mxu1 %v3680_v38  ;;  %v4475_v38 = vcombine.high %v4465_v34, %v4465_v34 }
  0x6a   : > { %2397 = vmatpush1.bf16.msra.mxu0 %v3682_v39  ;;  %v3768_v39 = vld [vmem:[%s4331_s5 + $0x61c] ss:$20 sps:$4 sm:$0xff]  }
  0x6b   : > { %2438 = vmatpush1.bf16.msra.mxu1 %v3683_v40  ;;  %2398 = vmatprep.subr.bf16.mxu0 %v3684_v41  ;;  %v3771_v40 = vld [vmem:[%s4331_s5 + $0x89c] ss:$20 sps:$4 sm:$0xff]   ;;  %v3766_v41 = vld [vmem:[%s4331_s5 + $0x618] ss:$20 sps:$4 sm:$0xff]  }
  0x6c   : > { %2439 = vmatprep.subr.bf16.mxu1 %v3686_v42  ;;  %v3769_v42 = vld [vmem:[%s4331_s5 + $0x898] ss:$20 sps:$4 sm:$0xff]  }
  0x6e   : > { %2399 = vmatpush1.bf16.msra.mxu0 %v3688_v43  ;;  %v3774_v43 = vld [vmem:[%s4331_s5 + $0x644] ss:$20 sps:$4 sm:$0xff]  }
  0x6f   : > { %2440 = vmatpush1.bf16.msra.mxu1 %v3689_v44  ;;  %2400 = vmatprep.subr.bf16.mxu0 %v3690_v45  ;;  %v3777_v44 = vld [vmem:[%s4331_s5 + $0x8c4] ss:$20 sps:$4 sm:$0xff]   ;;  %v3772_v45 = vld [vmem:[%s4331_s5 + $0x640] ss:$20 sps:$4 sm:$0xff]  }
  0x70   : > { %2441 = vmatprep.subr.bf16.mxu1 %v3692_v46  ;;  %v3775_v46 = vld [vmem:[%s4331_s5 + $0x8c0] ss:$20 sps:$4 sm:$0xff]  }
  0x72   : > { %2401 = vmatpush1.bf16.msra.mxu0 %v3694_v50  ;;  %v3778_v50 = vld [vmem:[%s4331_s5 + $0x668] ss:$20 sps:$4 sm:$0xff]  }
  0x73   : > { %2442 = vmatpush1.bf16.msra.mxu1 %v3695_v51  ;;  %2402 = vmatprep.subr.bf16.mxu0 %v3696_v53  ;;  %v3781_v51 = vld [vmem:[%s4331_s5 + $0x8e8] ss:$20 sps:$4 sm:$0xff]  }
  0x74   : > { %2443 = vmatprep.subr.bf16.mxu1 %v3698_v54  ;;  %v3786_v53 = vld [vmem:[%s4331_s5 + $0x694] ss:$20 sps:$4 sm:$0xff]  }
  0x75   : > { %v3789_v54 = vld [vmem:[%s4331_s5 + $0x914] ss:$20 sps:$4 sm:$0xff]  }
  0x76   : > { %2403 = vmatpush1.bf16.msra.mxu0 %v3700_v55  ;;  %v3784_v55 = vld [vmem:[%s4331_s5 + $0x690] ss:$20 sps:$4 sm:$0xff]  }
  0x77   : > { %2444 = vmatpush1.bf16.msra.mxu1 %v3701_v56  ;;  %2404 = vmatprep.subr.bf16.mxu0 %v3702_v57  ;;  %v3787_v56 = vld [vmem:[%s4331_s5 + $0x910] ss:$20 sps:$4 sm:$0xff]  }
  0x78   : > { %2445 = vmatprep.subr.bf16.mxu1 %v3704_v58  ;;  %v3792_v57 = vld [vmem:[%s4331_s5 + $0x6bc] ss:$20 sps:$4 sm:$0xff]  }
  0x79   : > { %v3795_v58 = vld [vmem:[%s4331_s5 + $0x93c] ss:$20 sps:$4 sm:$0xff]  }
  0x7a   : > { %2405 = vmatpush1.bf16.msra.mxu0 %v3706_v59  ;;  %v3790_v59 = vld [vmem:[%s4331_s5 + $0x6b8] ss:$20 sps:$4 sm:$0xff]  }
  0x7b   : > { %2446 = vmatpush1.bf16.msra.mxu1 %v3707_v60  ;;  %2406 = vmatprep.subr.bf16.mxu0 %v3708_v61  ;;  %v3793_v60 = vld [vmem:[%s4331_s5 + $0x938] ss:$20 sps:$4 sm:$0xff]  }
  0x7c   : > { %2447 = vmatprep.subr.bf16.mxu1 %v3710_v62  ;;  %v3798_v61 = vld [vmem:[%s4331_s5 + $0x6e4] ss:$20 sps:$4 sm:$0xff]  }
  0x7d   : > { %v3801_v62 = vld [vmem:[%s4331_s5 + $0x964] ss:$20 sps:$4 sm:$0xff]  }
  0x7e   : > { %2407 = vmatpush1.bf16.msra.mxu0 %v3712_v63  ;;  %v3796_v63 = vld [vmem:[%s4331_s5 + $0x6e0] ss:$20 sps:$4 sm:$0xff]  }
  0x7f   : > { %2448 = vmatpush1.bf16.msra.mxu1 %v3713_v0  ;;  %2408 = vmatprep.subr.bf16.mxu0 %v3714_v1  ;;  %v3799_v0 = vld [vmem:[%s4331_s5 + $0x960] ss:$20 sps:$4 sm:$0xff]  }
  0x80   : > { %2449 = vmatprep.subr.bf16.mxu1 %v3716_v2  ;;  %v3804_v1 = vld [vmem:[%s4331_s5 + $0x70c] ss:$20 sps:$4 sm:$0xff]  }
  0x81   : > { %v3807_v2 = vld [vmem:[%s4331_s5 + $0x98c] ss:$20 sps:$4 sm:$0xff]  }
  0x82   : > { %2409 = vmatpush1.bf16.msra.mxu0 %v3718_v3  ;;  %v3802_v3 = vld [vmem:[%s4331_s5 + $0x708] ss:$20 sps:$4 sm:$0xff]  }
  0x83   : > { %2450 = vmatpush1.bf16.msra.mxu1 %v3719_v4  ;;  %2460 = vmatprep.subr.bf16.mxu0 %v3726_v5  ;;  %v3805_v4 = vld [vmem:[%s4331_s5 + $0x988] ss:$20 sps:$4 sm:$0xff]  }
  0x84   : > { %2501 = vmatprep.subr.bf16.mxu1 %v3729_v6  ;;  %v3810_v5 = vld [vmem:[%s4331_s5 + $0x734] ss:$20 sps:$4 sm:$0xff]  }
  0x85   : > { %2411 = vmatmul.mubr.bf16.vlgmr.msra.gmra.mrb[0].mxu0 %v4431_v7  ;;  %v3813_v6 = vld [vmem:[%s4331_s5 + $0x9b4] ss:$20 sps:$4 sm:$0xff]  }
  0x86   : > { %2452 = vmatmul.mubr.bf16.vlgmr.msra.gmra.mrb[0].mxu1 %v4433_v8  ;;  %2461 = vmatpush1.bf16.msra.mxu0 %v3724_v9  ;;  %v3808_v9 = vld [vmem:[%s4331_s5 + $0x730] ss:$20 sps:$4 sm:$0xff]  }
  0x87   : > { %2502 = vmatpush1.bf16.msra.mxu1 %v3727_v10  ;;  %2462 = vmatprep.subr.bf16.mxu0 %v3732_v11  ;;  %v3811_v10 = vld [vmem:[%s4331_s5 + $0x9b0] ss:$20 sps:$4 sm:$0xff]  }
  0x88   : > { %2503 = vmatprep.subr.bf16.mxu1 %v3735_v12  ;;  %2492 = vmatprep.mubr.bf16.mxu0 %v4471_v37  ;;  %v3816_v11 = vld [vmem:[%s4331_s5 + $0x75c] ss:$20 sps:$4 sm:$0xff]  }
  0x89   : > { %2533 = vmatprep.mubr.bf16.mxu1 %v4475_v38  ;;  %v3819_v12 = vld [vmem:[%s4331_s5 + $0x9dc] ss:$20 sps:$4 sm:$0xff]  }
  0x8a   : > { %2463 = vmatpush1.bf16.msra.mxu0 %v3730_v13  ;;  %v3814_v13 = vld [vmem:[%s4331_s5 + $0x758] ss:$20 sps:$4 sm:$0xff]  }
  0x8b   : > { %2504 = vmatpush1.bf16.msra.mxu1 %v3733_v14  ;;  %2464 = vmatprep.subr.bf16.mxu0 %v3738_v15  ;;  %v3817_v14 = vld [vmem:[%s4331_s5 + $0x9d8] ss:$20 sps:$4 sm:$0xff]  }
  0x8c   : > { %2505 = vmatprep.subr.bf16.mxu1 %v3741_v16  ;;  %v3826_v15 = vld [vmem:[%s4331_s5 + $0xc] ss:$20 sps:$4 sm:$0xff]  }
  0x8d   : > { %v3829_v16 = vld [vmem:[%s4331_s5 + $0x28c] ss:$20 sps:$4 sm:$0xff]  }
  0x8e   : > { %2465 = vmatpush1.bf16.msra.mxu0 %v3736_v17  ;;  %v4519_v17 = vcombine.low %v4462_v33, %v4462_v33  ;;  %v3850_v33 = vld [vmem:[%s4331_s5 + $0xac] ss:$20 sps:$4 sm:$0xff]  }
  0x8f   : > { %2506 = vmatpush1.bf16.msra.mxu1 %v3739_v18  ;;  %2466 = vmatprep.subr.bf16.mxu0 %v3744_v19  ;;  %v4523_v18 = vcombine.low %v4465_v34, %v4465_v34  ;;  %v3824_v19 = vld [vmem:[%s4331_s5 + $0x8] ss:$20 sps:$4 sm:$0xff]   ;;  %v3853_v34 = vld [vmem:[%s4331_s5 + $0x32c] ss:$20 sps:$4 sm:$0xff]  }
  0x90   : > { %2507 = vmatprep.subr.bf16.mxu1 %v3747_v20  ;;  %v3827_v20 = vld [vmem:[%s4331_s5 + $0x288] ss:$20 sps:$4 sm:$0xff]  }
  0x92   : > { %2467 = vmatpush1.bf16.msra.mxu0 %v3742_v21  ;;  %v3832_v21 = vld [vmem:[%s4331_s5 + $0x34] ss:$20 sps:$4 sm:$0xff]  }
  0x93   : > { %2508 = vmatpush1.bf16.msra.mxu1 %v3745_v22  ;;  %2468 = vmatprep.subr.bf16.mxu0 %v3750_v23  ;;  %v3835_v22 = vld [vmem:[%s4331_s5 + $0x2b4] ss:$20 sps:$4 sm:$0xff]   ;;  %v3830_v23 = vld [vmem:[%s4331_s5 + $0x30] ss:$20 sps:$4 sm:$0xff]  }
  0x94   : > { %2509 = vmatprep.subr.bf16.mxu1 %v3753_v24  ;;  %v3833_v24 = vld [vmem:[%s4331_s5 + $0x2b0] ss:$20 sps:$4 sm:$0xff]  }
  0x96   : > { %2469 = vmatpush1.bf16.msra.mxu0 %v3748_v25  ;;  %v3838_v25 = vld [vmem:[%s4331_s5 + $0x5c] ss:$20 sps:$4 sm:$0xff]  }
  0x97   : > { %2510 = vmatpush1.bf16.msra.mxu1 %v3751_v26  ;;  %2470 = vmatprep.subr.bf16.mxu0 %v3756_v27  ;;  %v3841_v26 = vld [vmem:[%s4331_s5 + $0x2dc] ss:$20 sps:$4 sm:$0xff]   ;;  %v3836_v27 = vld [vmem:[%s4331_s5 + $0x58] ss:$20 sps:$4 sm:$0xff]  }
  0x98   : > { %2511 = vmatprep.subr.bf16.mxu1 %v3759_v28  ;;  %v3839_v28 = vld [vmem:[%s4331_s5 + $0x2d8] ss:$20 sps:$4 sm:$0xff]  }
  0x9a   : > { %2471 = vmatpush1.bf16.msra.mxu0 %v3754_v29  ;;  %v3844_v29 = vld [vmem:[%s4331_s5 + $0x84] ss:$20 sps:$4 sm:$0xff]  }
  0x9b   : > { %2512 = vmatpush1.bf16.msra.mxu1 %v3757_v30  ;;  %2472 = vmatprep.subr.bf16.mxu0 %v3762_v31  ;;  %v3847_v30 = vld [vmem:[%s4331_s5 + $0x304] ss:$20 sps:$4 sm:$0xff]   ;;  %v3842_v31 = vld [vmem:[%s4331_s5 + $0x80] ss:$20 sps:$4 sm:$0xff]  }
  0x9c   : > { %2513 = vmatprep.subr.bf16.mxu1 %v3765_v32  ;;  %v3845_v32 = vld [vmem:[%s4331_s5 + $0x300] ss:$20 sps:$4 sm:$0xff]  }
  0x9e   : > { %2473 = vmatpush1.bf16.msra.mxu0 %v3760_v35  ;;  %v3848_v35 = vld [vmem:[%s4331_s5 + $0xa8] ss:$20 sps:$4 sm:$0xff]  }
  0x9f   : > { %2514 = vmatpush1.bf16.msra.mxu1 %v3763_v36  ;;  %2474 = vmatprep.subr.bf16.mxu0 %v3768_v39  ;;  %v3851_v36 = vld [vmem:[%s4331_s5 + $0x328] ss:$20 sps:$4 sm:$0xff]  }
  0xa0   : > { %2515 = vmatprep.subr.bf16.mxu1 %v3771_v40  ;;  %v3856_v39 = vld [vmem:[%s4331_s5 + $0xd4] ss:$20 sps:$4 sm:$0xff]  }
  0xa1   : > { %v3859_v40 = vld [vmem:[%s4331_s5 + $0x354] ss:$20 sps:$4 sm:$0xff]  }
  0xa2   : > { %2475 = vmatpush1.bf16.msra.mxu0 %v3766_v41  ;;  %v3854_v41 = vld [vmem:[%s4331_s5 + $0xd0] ss:$20 sps:$4 sm:$0xff]  }
  0xa3   : > { %2516 = vmatpush1.bf16.msra.mxu1 %v3769_v42  ;;  %2476 = vmatprep.subr.bf16.mxu0 %v3774_v43  ;;  %v3857_v42 = vld [vmem:[%s4331_s5 + $0x350] ss:$20 sps:$4 sm:$0xff]  }
  0xa4   : > { %2517 = vmatprep.subr.bf16.mxu1 %v3777_v44  ;;  %v3862_v43 = vld [vmem:[%s4331_s5 + $0xfc] ss:$20 sps:$4 sm:$0xff]  }
  0xa5   : > { %v3865_v44 = vld [vmem:[%s4331_s5 + $0x37c] ss:$20 sps:$4 sm:$0xff]  }
  0xa6   : > { %2477 = vmatpush1.bf16.msra.mxu0 %v3772_v45  ;;  %v3860_v45 = vld [vmem:[%s4331_s5 + $0xf8] ss:$20 sps:$4 sm:$0xff]  }
  0xa7   : > { %2518 = vmatpush1.bf16.msra.mxu1 %v3775_v46  ;;  %2478 = vmatprep.subr.bf16.mxu0 %v3780_v47  ;;  %v3863_v46 = vld [vmem:[%s4331_s5 + $0x378] ss:$20 sps:$4 sm:$0xff]  }
  0xa8   : > { %2519 = vmatprep.subr.bf16.mxu1 %v3783_v49  ;;  %v3868_v47 = vld [vmem:[%s4331_s5 + $0x124] ss:$20 sps:$4 sm:$0xff]  }
  0xa9   : > { %v3871_v49 = vld [vmem:[%s4331_s5 + $0x3a4] ss:$20 sps:$4 sm:$0xff]  }
  0xaa   : > { %2479 = vmatpush1.bf16.msra.mxu0 %v3778_v50  ;;  %v3866_v50 = vld [vmem:[%s4331_s5 + $0x120] ss:$20 sps:$4 sm:$0xff]  }
  0xab   : > { %2520 = vmatpush1.bf16.msra.mxu1 %v3781_v51  ;;  %2480 = vmatprep.subr.bf16.mxu0 %v3786_v53  ;;  %v3869_v51 = vld [vmem:[%s4331_s5 + $0x3a0] ss:$20 sps:$4 sm:$0xff]  }
  0xac   : > { %2521 = vmatprep.subr.bf16.mxu1 %v3789_v54  ;;  %v3874_v53 = vld [vmem:[%s4331_s5 + $0x14c] ss:$20 sps:$4 sm:$0xff]  }
  0xad   : > { %v3877_v54 = vld [vmem:[%s4331_s5 + $0x3cc] ss:$20 sps:$4 sm:$0xff]  }
  0xae   : > { %2481 = vmatpush1.bf16.msra.mxu0 %v3784_v55  ;;  %v3872_v55 = vld [vmem:[%s4331_s5 + $0x148] ss:$20 sps:$4 sm:$0xff]  }
  0xaf   : > { %2522 = vmatpush1.bf16.msra.mxu1 %v3787_v56  ;;  %2482 = vmatprep.subr.bf16.mxu0 %v3792_v57  ;;  %v3875_v56 = vld [vmem:[%s4331_s5 + $0x3c8] ss:$20 sps:$4 sm:$0xff]  }
  0xb0   : > { %2523 = vmatprep.subr.bf16.mxu1 %v3795_v58  ;;  %v3880_v57 = vld [vmem:[%s4331_s5 + $0x174] ss:$20 sps:$4 sm:$0xff]  }
  0xb1   : > { %v3883_v58 = vld [vmem:[%s4331_s5 + $0x3f4] ss:$20 sps:$4 sm:$0xff]  }
  0xb2   : > { %2483 = vmatpush1.bf16.msra.mxu0 %v3790_v59  ;;  %v3878_v59 = vld [vmem:[%s4331_s5 + $0x170] ss:$20 sps:$4 sm:$0xff]  }
  0xb3   : > { %2524 = vmatpush1.bf16.msra.mxu1 %v3793_v60  ;;  %2484 = vmatprep.subr.bf16.mxu0 %v3798_v61  ;;  %v3881_v60 = vld [vmem:[%s4331_s5 + $0x3f0] ss:$20 sps:$4 sm:$0xff]  }
  0xb4   : > { %2525 = vmatprep.subr.bf16.mxu1 %v3801_v62  ;;  %v3886_v61 = vld [vmem:[%s4331_s5 + $0x19c] ss:$20 sps:$4 sm:$0xff]  }
  0xb5   : > { %v3889_v62 = vld [vmem:[%s4331_s5 + $0x41c] ss:$20 sps:$4 sm:$0xff]  }
  0xb6   : > { %2485 = vmatpush1.bf16.msra.mxu0 %v3796_v63  ;;  %v3884_v63 = vld [vmem:[%s4331_s5 + $0x198] ss:$20 sps:$4 sm:$0xff]  }
  0xb7   : > { %2526 = vmatpush1.bf16.msra.mxu1 %v3799_v0  ;;  %2486 = vmatprep.subr.bf16.mxu0 %v3804_v1  ;;  %v3887_v0 = vld [vmem:[%s4331_s5 + $0x418] ss:$20 sps:$4 sm:$0xff]  }
  0xb8   : > { %2527 = vmatprep.subr.bf16.mxu1 %v3807_v2  ;;  %v3892_v1 = vld [vmem:[%s4331_s5 + $0x1c4] ss:$20 sps:$4 sm:$0xff]  }
  0xb9   : > { %v3895_v2 = vld [vmem:[%s4331_s5 + $0x444] ss:$20 sps:$4 sm:$0xff]  }
  0xba   : > { %2487 = vmatpush1.bf16.msra.mxu0 %v3802_v3  ;;  %v3890_v3 = vld [vmem:[%s4331_s5 + $0x1c0] ss:$20 sps:$4 sm:$0xff]  }
  0xbb   : > { %2528 = vmatpush1.bf16.msra.mxu1 %v3805_v4  ;;  %2488 = vmatprep.subr.bf16.mxu0 %v3810_v5  ;;  %v3893_v4 = vld [vmem:[%s4331_s5 + $0x440] ss:$20 sps:$4 sm:$0xff]  }
  0xbc   : > { %2529 = vmatprep.subr.bf16.mxu1 %v3813_v6  ;;  %v3898_v5 = vld [vmem:[%s4331_s5 + $0x1ec] ss:$20 sps:$4 sm:$0xff]  }
  0xbd   : > { %v3901_v6 = vld [vmem:[%s4331_s5 + $0x46c] ss:$20 sps:$4 sm:$0xff]  }
  0xbe   : > { %2489 = vmatpush1.bf16.msra.mxu0 %v3808_v9  ;;  %v3896_v9 = vld [vmem:[%s4331_s5 + $0x1e8] ss:$20 sps:$4 sm:$0xff]  }
  0xbf   : > { %2530 = vmatpush1.bf16.msra.mxu1 %v3811_v10  ;;  %2490 = vmatprep.subr.bf16.mxu0 %v3816_v11  ;;  %v3899_v10 = vld [vmem:[%s4331_s5 + $0x468] ss:$20 sps:$4 sm:$0xff]  }
  0xc0   : > { %2531 = vmatprep.subr.bf16.mxu1 %v3819_v12  ;;  %v3904_v11 = vld [vmem:[%s4331_s5 + $0x214] ss:$20 sps:$4 sm:$0xff]  }
  0xc1   : > { %v3907_v12 = vld [vmem:[%s4331_s5 + $0x494] ss:$20 sps:$4 sm:$0xff]  }
  0xc2   : > { %2491 = vmatpush1.bf16.msra.mxu0 %v3814_v13  ;;  %v3902_v13 = vld [vmem:[%s4331_s5 + $0x210] ss:$20 sps:$4 sm:$0xff]  }
  0xc3   : > { %2532 = vmatpush1.bf16.msra.mxu1 %v3817_v14  ;;  %2542 = vmatprep.subr.bf16.mxu0 %v3826_v15  ;;  %v3905_v14 = vld [vmem:[%s4331_s5 + $0x490] ss:$20 sps:$4 sm:$0xff]  }
  0xc4   : > { %2583 = vmatprep.subr.bf16.mxu1 %v3829_v16  ;;  %v3910_v15 = vld [vmem:[%s4331_s5 + $0x23c] ss:$20 sps:$4 sm:$0xff]  }
  0xc5   : > { %2493 = vmatmul.mubr.bf16.vlgmr.msra.gmra.mrb[4].mxu0 %v4519_v17  ;;  %v3913_v16 = vld [vmem:[%s4331_s5 + $0x4bc] ss:$20 sps:$4 sm:$0xff]  }
  0xc6   : > { %2534 = vmatmul.mubr.bf16.vlgmr.msra.gmra.mrb[4].mxu1 %v4523_v18  ;;  %2543 = vmatpush1.bf16.msra.mxu0 %v3824_v19  ;;  %v3908_v19 = vld [vmem:[%s4331_s5 + $0x238] ss:$20 sps:$4 sm:$0xff]  }
  0xc7   : > { %2584 = vmatpush1.bf16.msra.mxu1 %v3827_v20  ;;  %2544 = vmatprep.subr.bf16.mxu0 %v3832_v21  ;;  %v3911_v20 = vld [vmem:[%s4331_s5 + $0x4b8] ss:$20 sps:$4 sm:$0xff]  }
  0xc8   : > { %2585 = vmatprep.subr.bf16.mxu1 %v3835_v22  ;;  %2574 = vmatprep.mubr.bf16.mxu0 %v4404_v48  ;;  %v3916_v21 = vld [vmem:[%s4331_s5 + $0x264] ss:$20 sps:$4 sm:$0xff]  }
  0xc9   : > { %2615 = vmatprep.mubr.bf16.mxu1 %v4409_v52  ;;  %v3919_v22 = vld [vmem:[%s4331_s5 + $0x4e4] ss:$20 sps:$4 sm:$0xff]  }
  0xca   : > { %2545 = vmatpush1.bf16.msra.mxu0 %v3830_v23  ;;  %v3914_v23 = vld [vmem:[%s4331_s5 + $0x260] ss:$20 sps:$4 sm:$0xff]  }
  0xcb   : > { %2586 = vmatpush1.bf16.msra.mxu1 %v3833_v24  ;;  %2546 = vmatprep.subr.bf16.mxu0 %v3838_v25  ;;  %v3917_v24 = vld [vmem:[%s4331_s5 + $0x4e0] ss:$20 sps:$4 sm:$0xff]  }
  0xcc   : > { %2587 = vmatprep.subr.bf16.mxu1 %v3841_v26  ;;  %v3922_v25 = vld [vmem:[%s4331_s5 + $0x50c] ss:$20 sps:$4 sm:$0xff]  }
  0xcd   : > { %v3925_v26 = vld [vmem:[%s4331_s5 + $0x78c] ss:$20 sps:$4 sm:$0xff]  }
  0xce   : > { %2547 = vmatpush1.bf16.msra.mxu0 %v3836_v27  ;;  %v3920_v27 = vld [vmem:[%s4331_s5 + $0x508] ss:$20 sps:$4 sm:$0xff]  }
  0xcf   : > { %2588 = vmatpush1.bf16.msra.mxu1 %v3839_v28  ;;  %2548 = vmatprep.subr.bf16.mxu0 %v3844_v29  ;;  %v3923_v28 = vld [vmem:[%s4331_s5 + $0x788] ss:$20 sps:$4 sm:$0xff]  }
  0xd0   : > { %2589 = vmatprep.subr.bf16.mxu1 %v3847_v30  ;;  %v3928_v29 = vld [vmem:[%s4331_s5 + $0x534] ss:$20 sps:$4 sm:$0xff]  }
  0xd1   : > { %v3931_v30 = vld [vmem:[%s4331_s5 + $0x7b4] ss:$20 sps:$4 sm:$0xff]  }
  0xd2   : > { %2549 = vmatpush1.bf16.msra.mxu0 %v3842_v31  ;;  %v3926_v31 = vld [vmem:[%s4331_s5 + $0x530] ss:$20 sps:$4 sm:$0xff]  }
  0xd3   : > { %2590 = vmatpush1.bf16.msra.mxu1 %v3845_v32  ;;  %2550 = vmatprep.subr.bf16.mxu0 %v3850_v33  ;;  %v3929_v32 = vld [vmem:[%s4331_s5 + $0x7b0] ss:$20 sps:$4 sm:$0xff]  }
  0xd4   : > { %2591 = vmatprep.subr.bf16.mxu1 %v3853_v34  ;;  %v3934_v33 = vld [vmem:[%s4331_s5 + $0x55c] ss:$20 sps:$4 sm:$0xff]  }
  0xd5   : > { %v3937_v34 = vld [vmem:[%s4331_s5 + $0x7dc] ss:$20 sps:$4 sm:$0xff]  }
  0xd6   : > { %2551 = vmatpush1.bf16.msra.mxu0 %v3848_v35  ;;  %v3932_v35 = vld [vmem:[%s4331_s5 + $0x558] ss:$20 sps:$4 sm:$0xff]  }
  0xd7   : > { %2592 = vmatpush1.bf16.msra.mxu1 %v3851_v36  ;;  %2552 = vmatprep.subr.bf16.mxu0 %v3856_v39  ;;  %v3935_v36 = vld [vmem:[%s4331_s5 + $0x7d8] ss:$20 sps:$4 sm:$0xff]  }
  0xd8   : > { %2593 = vmatprep.subr.bf16.mxu1 %v3859_v40  ;;  %v3940_v39 = vld [vmem:[%s4331_s5 + $0x584] ss:$20 sps:$4 sm:$0xff]  }
  0xd9   : > { %v3943_v40 = vld [vmem:[%s4331_s5 + $0x804] ss:$20 sps:$4 sm:$0xff]  }
  0xda   : > { %2553 = vmatpush1.bf16.msra.mxu0 %v3854_v41  ;;  %v3938_v41 = vld [vmem:[%s4331_s5 + $0x580] ss:$20 sps:$4 sm:$0xff]  }
  0xdb   : > { %2594 = vmatpush1.bf16.msra.mxu1 %v3857_v42  ;;  %2554 = vmatprep.subr.bf16.mxu0 %v3862_v43  ;;  %v3941_v42 = vld [vmem:[%s4331_s5 + $0x800] ss:$20 sps:$4 sm:$0xff]  }
  0xdc   : > { %2595 = vmatprep.subr.bf16.mxu1 %v3865_v44  ;;  %v3946_v43 = vld [vmem:[%s4331_s5 + $0x5ac] ss:$20 sps:$4 sm:$0xff]  }
  0xdd   : > { %v3949_v44 = vld [vmem:[%s4331_s5 + $0x82c] ss:$20 sps:$4 sm:$0xff]  }
  0xde   : > { %2555 = vmatpush1.bf16.msra.mxu0 %v3860_v45  ;;  %v3944_v45 = vld [vmem:[%s4331_s5 + $0x5a8] ss:$20 sps:$4 sm:$0xff]  }
  0xdf   : > { %2596 = vmatpush1.bf16.msra.mxu1 %v3863_v46  ;;  %2556 = vmatprep.subr.bf16.mxu0 %v3868_v47  ;;  %v3947_v46 = vld [vmem:[%s4331_s5 + $0x828] ss:$20 sps:$4 sm:$0xff]  }
  0xe0   : > { %2597 = vmatprep.subr.bf16.mxu1 %v3871_v49  ;;  %v3952_v47 = vld [vmem:[%s4331_s5 + $0x5d4] ss:$20 sps:$4 sm:$0xff]  }
  0xe1   : > { %v3955_v49 = vld [vmem:[%s4331_s5 + $0x854] ss:$20 sps:$4 sm:$0xff]  }
  0xe2   : > { %2557 = vmatpush1.bf16.msra.mxu0 %v3866_v50  ;;  %v3950_v50 = vld [vmem:[%s4331_s5 + $0x5d0] ss:$20 sps:$4 sm:$0xff]  }
  0xe3   : > { %2598 = vmatpush1.bf16.msra.mxu1 %v3869_v51  ;;  %2558 = vmatprep.subr.bf16.mxu0 %v3874_v53  ;;  %v3953_v51 = vld [vmem:[%s4331_s5 + $0x850] ss:$20 sps:$4 sm:$0xff]  }
  0xe4   : > { %2599 = vmatprep.subr.bf16.mxu1 %v3877_v54  ;;  %v3958_v53 = vld [vmem:[%s4331_s5 + $0x5fc] ss:$20 sps:$4 sm:$0xff]  }
  0xe5   : > { %v3961_v54 = vld [vmem:[%s4331_s5 + $0x87c] ss:$20 sps:$4 sm:$0xff]  }
  0xe6   : > { %2559 = vmatpush1.bf16.msra.mxu0 %v3872_v55  ;;  %v3956_v55 = vld [vmem:[%s4331_s5 + $0x5f8] ss:$20 sps:$4 sm:$0xff]  }
  0xe7   : > { %2600 = vmatpush1.bf16.msra.mxu1 %v3875_v56  ;;  %2560 = vmatprep.subr.bf16.mxu0 %v3880_v57  ;;  %v3959_v56 = vld [vmem:[%s4331_s5 + $0x878] ss:$20 sps:$4 sm:$0xff]  }
  0xe8   : > { %2601 = vmatprep.subr.bf16.mxu1 %v3883_v58  ;;  %v3964_v57 = vld [vmem:[%s4331_s5 + $0x624] ss:$20 sps:$4 sm:$0xff]  }
  0xe9   : > { %v3967_v58 = vld [vmem:[%s4331_s5 + $0x8a4] ss:$20 sps:$4 sm:$0xff]  }
  0xea   : > { %2561 = vmatpush1.bf16.msra.mxu0 %v3878_v59  ;;  %v3962_v59 = vld [vmem:[%s4331_s5 + $0x620] ss:$20 sps:$4 sm:$0xff]  }
  0xeb   : > { %2602 = vmatpush1.bf16.msra.mxu1 %v3881_v60  ;;  %2562 = vmatprep.subr.bf16.mxu0 %v3886_v61  ;;  %v3965_v60 = vld [vmem:[%s4331_s5 + $0x8a0] ss:$20 sps:$4 sm:$0xff]  }
  0xec   : > { %2603 = vmatprep.subr.bf16.mxu1 %v3889_v62  ;;  %v3970_v61 = vld [vmem:[%s4331_s5 + $0x64c] ss:$20 sps:$4 sm:$0xff]  }
  0xed   : > { %v3973_v62 = vld [vmem:[%s4331_s5 + $0x8cc] ss:$20 sps:$4 sm:$0xff]  }
  0xee   : > { %2563 = vmatpush1.bf16.msra.mxu0 %v3884_v63  ;;  %v3968_v63 = vld [vmem:[%s4331_s5 + $0x648] ss:$20 sps:$4 sm:$0xff]  }
  0xef   : > { %2604 = vmatpush1.bf16.msra.mxu1 %v3887_v0  ;;  %2564 = vmatprep.subr.bf16.mxu0 %v3892_v1  ;;  %v3971_v0 = vld [vmem:[%s4331_s5 + $0x8c8] ss:$20 sps:$4 sm:$0xff]  }
  0xf0   : > { %2605 = vmatprep.subr.bf16.mxu1 %v3895_v2  ;;  %v3976_v1 = vld [vmem:[%s4331_s5 + $0x674] ss:$20 sps:$4 sm:$0xff]  }
  0xf1   : > { %v3979_v2 = vld [vmem:[%s4331_s5 + $0x8f4] ss:$20 sps:$4 sm:$0xff]  }
  0xf2   : > { %2565 = vmatpush1.bf16.msra.mxu0 %v3890_v3  ;;  %v3974_v3 = vld [vmem:[%s4331_s5 + $0x670] ss:$20 sps:$4 sm:$0xff]  }
  0xf3   : > { %2606 = vmatpush1.bf16.msra.mxu1 %v3893_v4  ;;  %2566 = vmatprep.subr.bf16.mxu0 %v3898_v5  ;;  %v3977_v4 = vld [vmem:[%s4331_s5 + $0x8f0] ss:$20 sps:$4 sm:$0xff]  }
  0xf4   : > { %2607 = vmatprep.subr.bf16.mxu1 %v3901_v6  ;;  %v3982_v5 = vld [vmem:[%s4331_s5 + $0x69c] ss:$20 sps:$4 sm:$0xff]  }
  0xf5   : > { %v3985_v6 = vld [vmem:[%s4331_s5 + $0x91c] ss:$20 sps:$4 sm:$0xff]  }
  0xf6   : > { %2567 = vmatpush1.bf16.msra.mxu0 %v3896_v9  ;;  %v3980_v9 = vld [vmem:[%s4331_s5 + $0x698] ss:$20 sps:$4 sm:$0xff]  }
  0xf7   : > { %2608 = vmatpush1.bf16.msra.mxu1 %v3899_v10  ;;  %2568 = vmatprep.subr.bf16.mxu0 %v3904_v11  ;;  %v3983_v10 = vld [vmem:[%s4331_s5 + $0x918] ss:$20 sps:$4 sm:$0xff]  }
  0xf8   : > { %2609 = vmatprep.subr.bf16.mxu1 %v3907_v12  ;;  %v3988_v11 = vld [vmem:[%s4331_s5 + $0x6c4] ss:$20 sps:$4 sm:$0xff]  }
  0xf9   : > { %v3991_v12 = vld [vmem:[%s4331_s5 + $0x944] ss:$20 sps:$4 sm:$0xff]  }
  0xfa   : > { %2569 = vmatpush1.bf16.msra.mxu0 %v3902_v13  ;;  %v3986_v13 = vld [vmem:[%s4331_s5 + $0x6c0] ss:$20 sps:$4 sm:$0xff]  }
  0xfb   : > { %2610 = vmatpush1.bf16.msra.mxu1 %v3905_v14  ;;  %2570 = vmatprep.subr.bf16.mxu0 %v3910_v15  ;;  %v3989_v14 = vld [vmem:[%s4331_s5 + $0x940] ss:$20 sps:$4 sm:$0xff]  }
  0xfc   : > { %2611 = vmatprep.subr.bf16.mxu1 %v3913_v16  ;;  %v3994_v15 = vld [vmem:[%s4331_s5 + $0x6ec] ss:$20 sps:$4 sm:$0xff]  }
  0xfd   : > { %v3997_v16 = vld [vmem:[%s4331_s5 + $0x96c] ss:$20 sps:$4 sm:$0xff]  }
  0xfe   : > { %2571 = vmatpush1.bf16.msra.mxu0 %v3908_v19  ;;  %v3992_v19 = vld [vmem:[%s4331_s5 + $0x6e8] ss:$20 sps:$4 sm:$0xff]  }
  0xff   : > { %2612 = vmatpush1.bf16.msra.mxu1 %v3911_v20  ;;  %2572 = vmatprep.subr.bf16.mxu0 %v3916_v21  ;;  %v3995_v20 = vld [vmem:[%s4331_s5 + $0x968] ss:$20 sps:$4 sm:$0xff]  }
 0x100   : > { %2613 = vmatprep.subr.bf16.mxu1 %v3919_v22  ;;  %v4000_v21 = vld [vmem:[%s4331_s5 + $0x714] ss:$20 sps:$4 sm:$0xff]  }
 0x101   : > { %v4003_v22 = vld [vmem:[%s4331_s5 + $0x994] ss:$20 sps:$4 sm:$0xff]  }
 0x102   : > { %2573 = vmatpush1.bf16.msra.mxu0 %v3914_v23  ;;  %v3998_v23 = vld [vmem:[%s4331_s5 + $0x710] ss:$20 sps:$4 sm:$0xff]  }
 0x103   : > { %2614 = vmatpush1.bf16.msra.mxu1 %v3917_v24  ;;  %2624 = vmatprep.subr.bf16.mxu0 %v3922_v25  ;;  %v4001_v24 = vld [vmem:[%s4331_s5 + $0x990] ss:$20 sps:$4 sm:$0xff]  }
 0x104   : > { %2665 = vmatprep.subr.bf16.mxu1 %v3925_v26  ;;  %v4006_v25 = vld [vmem:[%s4331_s5 + $0x73c] ss:$20 sps:$4 sm:$0xff]  }
 0x105   : > { %2575 = vmatmul.mubr.bf16.vlgmr.msra.gmra.mrb[8].mxu0 %v4431_v7  ;;  %v4009_v26 = vld [vmem:[%s4331_s5 + $0x9bc] ss:$20 sps:$4 sm:$0xff]  }
 0x106   : > { %2616 = vmatmul.mubr.bf16.vlgmr.msra.gmra.mrb[8].mxu1 %v4433_v8  ;;  %2625 = vmatpush1.bf16.msra.mxu0 %v3920_v27  ;;  %v4004_v27 = vld [vmem:[%s4331_s5 + $0x738] ss:$20 sps:$4 sm:$0xff]  }
 0x107   : > { %2666 = vmatpush1.bf16.msra.mxu1 %v3923_v28  ;;  %2626 = vmatprep.subr.bf16.mxu0 %v3928_v29  ;;  %v4007_v28 = vld [vmem:[%s4331_s5 + $0x9b8] ss:$20 sps:$4 sm:$0xff]  }
 0x108   : > { %2667 = vmatprep.subr.bf16.mxu1 %v3931_v30  ;;  %2656 = vmatprep.mubr.bf16.mxu0 %v4471_v37  ;;  %v4012_v29 = vld [vmem:[%s4331_s5 + $0x764] ss:$20 sps:$4 sm:$0xff]  }
 0x109   : > { %2697 = vmatprep.mubr.bf16.mxu1 %v4475_v38  ;;  %v4015_v30 = vld [vmem:[%s4331_s5 + $0x9e4] ss:$20 sps:$4 sm:$0xff]  }
 0x10a   : > { %2627 = vmatpush1.bf16.msra.mxu0 %v3926_v31  ;;  %v4010_v31 = vld [vmem:[%s4331_s5 + $0x760] ss:$20 sps:$4 sm:$0xff]  }
 0x10b   : > { %2668 = vmatpush1.bf16.msra.mxu1 %v3929_v32  ;;  %2628 = vmatprep.subr.bf16.mxu0 %v3934_v33  ;;  %v4013_v32 = vld [vmem:[%s4331_s5 + $0x9e0] ss:$20 sps:$4 sm:$0xff]   ;;  %v4016_v33 = vld [vmem:[%s4331_s5 + $0x150] ss:$20 sps:$4 sm:$0xff]  }
 0x10c   : > { %2669 = vmatprep.subr.bf16.mxu1 %v3937_v34  ;;  %v4017_v34 = vld [vmem:[%s4331_s5 + $0x3d0] ss:$20 sps:$4 sm:$0xff]  }
 0x10e   : > { %2629 = vmatpush1.bf16.msra.mxu0 %v3932_v35  ;;  %v4018_v35 = vld [vmem:[%s4331_s5 + $0x10] ss:$20 sps:$4 sm:$0xff]  }
 0x10f   : > { %2670 = vmatpush1.bf16.msra.mxu1 %v3935_v36  ;;  %2630 = vmatprep.subr.bf16.mxu0 %v3940_v39  ;;  %v4019_v36 = vld [vmem:[%s4331_s5 + $0x290] ss:$20 sps:$4 sm:$0xff]   ;;  %v4020_v39 = vld [vmem:[%s4331_s5 + $0x178] ss:$20 sps:$4 sm:$0xff]  }
 0x110   : > { %2671 = vmatprep.subr.bf16.mxu1 %v3943_v40  ;;  %v4021_v40 = vld [vmem:[%s4331_s5 + $0x3f8] ss:$20 sps:$4 sm:$0xff]  }
 0x112   : > { %2631 = vmatpush1.bf16.msra.mxu0 %v3938_v41  ;;  %v4022_v41 = vld [vmem:[%s4331_s5 + $0x38] ss:$20 sps:$4 sm:$0xff]  }
 0x113   : > { %2672 = vmatpush1.bf16.msra.mxu1 %v3941_v42  ;;  %2632 = vmatprep.subr.bf16.mxu0 %v3946_v43  ;;  %v4023_v42 = vld [vmem:[%s4331_s5 + $0x2b8] ss:$20 sps:$4 sm:$0xff]   ;;  %v4024_v43 = vld [vmem:[%s4331_s5 + $0x1a0] ss:$20 sps:$4 sm:$0xff]  }
 0x114   : > { %2673 = vmatprep.subr.bf16.mxu1 %v3949_v44  ;;  %v4025_v44 = vld [vmem:[%s4331_s5 + $0x420] ss:$20 sps:$4 sm:$0xff]  }
 0x116   : > { %2633 = vmatpush1.bf16.msra.mxu0 %v3944_v45  ;;  %v4026_v45 = vld [vmem:[%s4331_s5 + $0x60] ss:$20 sps:$4 sm:$0xff]  }
 0x117   : > { %2674 = vmatpush1.bf16.msra.mxu1 %v3947_v46  ;;  %2634 = vmatprep.subr.bf16.mxu0 %v3952_v47  ;;  %v4027_v46 = vld [vmem:[%s4331_s5 + $0x2e0] ss:$20 sps:$4 sm:$0xff]   ;;  %v4028_v47 = vld [vmem:[%s4331_s5 + $0x1c8] ss:$20 sps:$4 sm:$0xff]  }
 0x118   : > { %2675 = vmatprep.subr.bf16.mxu1 %v3955_v49  ;;  %v4029_v49 = vld [vmem:[%s4331_s5 + $0x448] ss:$20 sps:$4 sm:$0xff]  }
 0x11a   : > { %2635 = vmatpush1.bf16.msra.mxu0 %v3950_v50  ;;  %v4030_v50 = vld [vmem:[%s4331_s5 + $0x88] ss:$20 sps:$4 sm:$0xff]  }
 0x11b   : > { %2676 = vmatpush1.bf16.msra.mxu1 %v3953_v51  ;;  %2636 = vmatprep.subr.bf16.mxu0 %v3958_v53  ;;  %v4033_v51 = vld [vmem:[%s4331_s5 + $0x470] ss:$20 sps:$4 sm:$0xff]  }
 0x11c   : > { %2677 = vmatprep.subr.bf16.mxu1 %v3961_v54  ;;  %v4034_v53 = vld [vmem:[%s4331_s5 + $0xb0] ss:$20 sps:$4 sm:$0xff]  }
 0x11d   : > { %v4035_v54 = vld [vmem:[%s4331_s5 + $0x330] ss:$20 sps:$4 sm:$0xff]  }
 0x11e   : > { %2637 = vmatpush1.bf16.msra.mxu0 %v3956_v55  ;;  %v4036_v55 = vld [vmem:[%s4331_s5 + $0x218] ss:$20 sps:$4 sm:$0xff]  }
 0x11f   : > { %2678 = vmatpush1.bf16.msra.mxu1 %v3959_v56  ;;  %2638 = vmatprep.subr.bf16.mxu0 %v3964_v57  ;;  %v4037_v56 = vld [vmem:[%s4331_s5 + $0x498] ss:$20 sps:$4 sm:$0xff]  }
 0x120   : > { %2679 = vmatprep.subr.bf16.mxu1 %v3967_v58  ;;  %v4038_v57 = vld [vmem:[%s4331_s5 + $0xd8] ss:$20 sps:$4 sm:$0xff]  }
 0x121   : > { %v4039_v58 = vld [vmem:[%s4331_s5 + $0x358] ss:$20 sps:$4 sm:$0xff]  }
 0x122   : > { %2639 = vmatpush1.bf16.msra.mxu0 %v3962_v59  ;;  %v4040_v59 = vld [vmem:[%s4331_s5 + $0x240] ss:$20 sps:$4 sm:$0xff]  }
 0x123   : > { %2680 = vmatpush1.bf16.msra.mxu1 %v3965_v60  ;;  %2640 = vmatprep.subr.bf16.mxu0 %v3970_v61  ;;  %v4041_v60 = vld [vmem:[%s4331_s5 + $0x4c0] ss:$20 sps:$4 sm:$0xff]  }
 0x124   : > { %2681 = vmatprep.subr.bf16.mxu1 %v3973_v62 }
 0x126   : > { %2641 = vmatpush1.bf16.msra.mxu0 %v3968_v63 }
 0x127   : > { %2682 = vmatpush1.bf16.msra.mxu1 %v3971_v0  ;;  %2642 = vmatprep.subr.bf16.mxu0 %v3976_v1 }
 0x128   : > { %2683 = vmatprep.subr.bf16.mxu1 %v3979_v2 }
 0x12a   : > { %2643 = vmatpush1.bf16.msra.mxu0 %v3974_v3 }
 0x12b   : > { %2684 = vmatpush1.bf16.msra.mxu1 %v3977_v4  ;;  %2644 = vmatprep.subr.bf16.mxu0 %v3982_v5  ;;  %v4042_v5 = vld [vmem:[%s4331_s5 + $0x100] ss:$20 sps:$4 sm:$0xff]  }
 0x12c   : > { %2685 = vmatprep.subr.bf16.mxu1 %v3985_v6  ;;  %v4043_v6 = vld [vmem:[%s4331_s5 + $0x380] ss:$20 sps:$4 sm:$0xff]  }
 0x12e   : > { %2645 = vmatpush1.bf16.msra.mxu0 %v3980_v9 }
 0x12f   : > { %2686 = vmatpush1.bf16.msra.mxu1 %v3983_v10  ;;  %2646 = vmatprep.subr.bf16.mxu0 %v3988_v11  ;;  %v4044_v11 = vld [vmem:[%s4331_s5 + $0x268] ss:$20 sps:$4 sm:$0xff]  }
 0x130   : > { %2687 = vmatprep.subr.bf16.mxu1 %v3991_v12  ;;  %v4045_v12 = vld [vmem:[%s4331_s5 + $0x4e8] ss:$20 sps:$4 sm:$0xff]  }
 0x132   : > { %2647 = vmatpush1.bf16.msra.mxu0 %v3986_v13  ;;  %v4046_v13 = vld [vmem:[%s4331_s5 + $0x128] ss:$20 sps:$4 sm:$0xff]  }
 0x133   : > { %2688 = vmatpush1.bf16.msra.mxu1 %v3989_v14  ;;  %2648 = vmatprep.subr.bf16.mxu0 %v3994_v15  ;;  %v4047_v14 = vld [vmem:[%s4331_s5 + $0x3a8] ss:$20 sps:$4 sm:$0xff]   ;;  %v4048_v15 = vld [vmem:[%s4331_s5 + $0x650] ss:$20 sps:$4 sm:$0xff]  }
 0x134   : > { %2689 = vmatprep.subr.bf16.mxu1 %v3997_v16  ;;  %v4049_v16 = vld [vmem:[%s4331_s5 + $0x8d0] ss:$20 sps:$4 sm:$0xff]  }
 0x136   : > { %2649 = vmatpush1.bf16.msra.mxu0 %v3992_v19  ;;  %v4050_v19 = vld [vmem:[%s4331_s5 + $0x510] ss:$20 sps:$4 sm:$0xff]  }
 0x137   : > { %2690 = vmatpush1.bf16.msra.mxu1 %v3995_v20  ;;  %2650 = vmatprep.subr.bf16.mxu0 %v4000_v21  ;;  %v4051_v20 = vld [vmem:[%s4331_s5 + $0x790] ss:$20 sps:$4 sm:$0xff]   ;;  %v4052_v21 = vld [vmem:[%s4331_s5 + $0x678] ss:$20 sps:$4 sm:$0xff]  }
 0x138   : > { %2691 = vmatprep.subr.bf16.mxu1 %v4003_v22  ;;  %v4053_v22 = vld [vmem:[%s4331_s5 + $0x8f8] ss:$20 sps:$4 sm:$0xff]  }
 0x13a   : > { %2651 = vmatpush1.bf16.msra.mxu0 %v3998_v23  ;;  %v4054_v23 = vld [vmem:[%s4331_s5 + $0x538] ss:$20 sps:$4 sm:$0xff]  }
 0x13b   : > { %2692 = vmatpush1.bf16.msra.mxu1 %v4001_v24  ;;  %2652 = vmatprep.subr.bf16.mxu0 %v4006_v25  ;;  %v4055_v24 = vld [vmem:[%s4331_s5 + $0x7b8] ss:$20 sps:$4 sm:$0xff]   ;;  %v4056_v25 = vld [vmem:[%s4331_s5 + $0x6a0] ss:$20 sps:$4 sm:$0xff]  }
 0x13c   : > { %2693 = vmatprep.subr.bf16.mxu1 %v4009_v26  ;;  %v4057_v26 = vld [vmem:[%s4331_s5 + $0x920] ss:$20 sps:$4 sm:$0xff]  }
 0x13e   : > { %2653 = vmatpush1.bf16.msra.mxu0 %v4004_v27  ;;  %v4060_v27 = vld [vmem:[%s4331_s5 + $0x6c8] ss:$20 sps:$4 sm:$0xff]  }
 0x13f   : > { %2694 = vmatpush1.bf16.msra.mxu1 %v4007_v28  ;;  %2654 = vmatprep.subr.bf16.mxu0 %v4012_v29  ;;  %v4061_v28 = vld [vmem:[%s4331_s5 + $0x948] ss:$20 sps:$4 sm:$0xff]  }
 0x140   : > { %2695 = vmatprep.subr.bf16.mxu1 %v4015_v30  ;;  %v4062_v29 = vld [vmem:[%s4331_s5 + $0x588] ss:$20 sps:$4 sm:$0xff]   ;;  %v4065_v30 = vld [vmem:[%s4331_s5 + $0x970] ss:$20 sps:$4 sm:$0xff]  }
 0x142   : > { %2655 = vmatpush1.bf16.msra.mxu0 %v4010_v31  ;;  %v4066_v31 = vld [vmem:[%s4331_s5 + $0x5b0] ss:$20 sps:$4 sm:$0xff]  }
 0x143   : > { %2696 = vmatpush1.bf16.msra.mxu1 %v4013_v32  ;;  %3458 = vmatprep.subr.bf16.mxu0 %v4016_v33  ;;  %v4067_v32 = vld [vmem:[%s4331_s5 + $0x830] ss:$20 sps:$4 sm:$0xff]   ;;  %v4068_v33 = vld [vmem:[%s4331_s5 + $0x718] ss:$20 sps:$4 sm:$0xff]  }
 0x144   : > { %3480 = vmatprep.subr.bf16.mxu1 %v4017_v34  ;;  %v4069_v34 = vld [vmem:[%s4331_s5 + $0x998] ss:$20 sps:$4 sm:$0xff]  }
 0x145   : > { %2657 = vmatmul.mubr.bf16.vlgmr.msra.gmra.mrb[12].mxu0 %v4519_v17 }
 0x146   : > { %2698 = vmatmul.mubr.bf16.vlgmr.msra.gmra.mrb[12].mxu1 %v4523_v18  ;;  %3459 = vmatpush3.bf16.msra.mxu0 %v4018_v35  ;;  %v4070_v35 = vld [vmem:[%s4331_s5 + $0x5d8] ss:$20 sps:$4 sm:$0xff]  }
 0x147   : > { %3481 = vmatpush3.bf16.msra.mxu1 %v4019_v36  ;;  %3460 = vmatprep.subr.bf16.mxu0 %v4020_v39  ;;  %v4071_v36 = vld [vmem:[%s4331_s5 + $0x858] ss:$20 sps:$4 sm:$0xff]   ;;  %v4072_v39 = vld [vmem:[%s4331_s5 + $0x740] ss:$20 sps:$4 sm:$0xff]  }
 0x148   : > { %3482 = vmatprep.subr.bf16.mxu1 %v4021_v40  ;;  %2738 = vmatprep.mubr.bf16.mxu0 %v4404_v48  ;;  %v4031_v48 = vld [vmem:[%s4331_s5 + $0x308] ss:$20 sps:$4 sm:$0xff]   ;;  %v4073_v40 = vld [vmem:[%s4331_s5 + $0x9c0] ss:$20 sps:$4 sm:$0xff]  }
 0x149   : > { %2778 = vmatprep.mubr.bf16.mxu1 %v4409_v52  ;;  %v4032_v52 = vld [vmem:[%s4331_s5 + $0x1f0] ss:$20 sps:$4 sm:$0xff]  }
 0x14a   : > { %3461 = vmatpush3.bf16.msra.mxu0 %v4022_v41  ;;  %v4074_v41 = vld [vmem:[%s4331_s5 + $0x600] ss:$20 sps:$4 sm:$0xff]  }
 0x14b   : > { %3483 = vmatpush3.bf16.msra.mxu1 %v4023_v42  ;;  %3462 = vmatprep.subr.bf16.mxu0 %v4024_v43  ;;  %v4075_v42 = vld [vmem:[%s4331_s5 + $0x880] ss:$20 sps:$4 sm:$0xff]   ;;  %v4076_v43 = vld [vmem:[%s4331_s5 + $0x768] ss:$20 sps:$4 sm:$0xff]  }
 0x14c   : > { %3484 = vmatprep.subr.bf16.mxu1 %v4025_v44  ;;  %v4077_v44 = vld [vmem:[%s4331_s5 + $0x9e8] ss:$20 sps:$4 sm:$0xff]  }
 0x14e   : > { %3463 = vmatpush3.bf16.msra.mxu0 %v4026_v45  ;;  %v4078_v45 = vld [vmem:[%s4331_s5 + $0x628] ss:$20 sps:$4 sm:$0xff]  }
 0x14f   : > { %3485 = vmatpush3.bf16.msra.mxu1 %v4027_v46  ;;  %3464 = vmatprep.subr.bf16.mxu0 %v4028_v47  ;;  %v4079_v46 = vld [vmem:[%s4331_s5 + $0x8a8] ss:$20 sps:$4 sm:$0xff]  }
 0x150   : > { %3486 = vmatprep.subr.bf16.mxu1 %v4029_v49 }
 0x152   : > { %3465 = vmatpush3.bf16.msra.mxu0 %v4030_v50 }
 0x153   : > { %3487 = vmatpush3.bf16.msra.mxu1 %v4031_v48  ;;  %3466 = vmatprep.subr.bf16.mxu0 %v4032_v52 }
 0x154   : > { %3488 = vmatprep.subr.bf16.mxu1 %v4033_v51  ;;  %v293_v51 = vld [vmem:[#allocation2] sm:$0xff] }
 0x156   : > { %3467 = vmatpush3.bf16.msra.mxu0 %v4034_v53 }
 0x157   : > { %3489 = vmatpush3.bf16.msra.mxu1 %v4035_v54  ;;  %3468 = vmatprep.subr.bf16.mxu0 %v4036_v55 }
 0x158   : > { %3490 = vmatprep.subr.bf16.mxu1 %v4037_v56  ;;  %v2412_v61 = vpop.f32.mrb[0].mxu0 }
 0x159   : > { %v2453_v62 = vpop.f32.mrb[0].mxu1  ;;  %v2414_v0 = vpop.f32.mrb[1].mxu0 }
 0x15a   : > { %v4689_v63 = vadd.f32 %v2453_v62, %v2412_v61  ;;  %v2455_v1 = vpop.f32.mrb[1].mxu1  ;;  %v2416_v3 = vpop.f32.mrb[2].mxu0  ;;  %3469 = vmatpush3.bf16.msra.mxu0 %v4038_v57  ;;  %v294_v57 = vld [vmem:[#allocation2 + $0x8] sm:$0xff] }
 0x15b   : > { %v4691_v2 = vadd.f32 %v2455_v1, %v2414_v0  ;;  %v2457_v4 = vpop.f32.mrb[2].mxu1  ;;  %3491 = vmatpush3.bf16.msra.mxu1 %v4039_v58  ;;  %v2417_v9 = vpop.f32.mrb[3].mxu0  ;;  %3470 = vmatprep.subr.bf16.mxu0 %v4040_v59 }
 0x15c   : > { %v2458_v10 = vpop.f32.mrb[3].mxu1  ;;  %3492 = vmatprep.subr.bf16.mxu1 %v4041_v60 }
 0x15e   : > { %3471 = vmatpush3.bf16.msra.mxu0 %v4042_v5 }
 0x15f   : > { %3493 = vmatpush3.bf16.msra.mxu1 %v4043_v6  ;;  %3472 = vmatprep.subr.bf16.mxu0 %v4044_v11 }
 0x160   : > { %3494 = vmatprep.subr.bf16.mxu1 %v4045_v12 }
 0x162   : > { %3473 = vmatpush3.bf16.msra.mxu0 %v4046_v13 }
 0x163   : > { %3495 = vmatpush3.bf16.msra.mxu1 %v4047_v14  ;;  %3502 = vmatprep.subr.bf16.mxu0 %v4048_v15  ;;  %v295_v14 = vld [vmem:[#allocation2 + $0x10] sm:$0xff] }
 0x164   : > { %3524 = vmatprep.subr.bf16.mxu1 %v4049_v16 }
 0x165   : > { %2739 = vmatmul.mubr.bf16.vlgmr.msra.gmra.mrb[16].mxu0 %v4431_v7  ;;  %v4058_v7 = vld [vmem:[%s4331_s5 + $0x560] ss:$20 sps:$4 sm:$0xff]  }
 0x166   : > { %2779 = vmatmul.mubr.bf16.vlgmr.msra.gmra.mrb[16].mxu1 %v4433_v8  ;;  %3503 = vmatpush3.bf16.msra.mxu0 %v4050_v19  ;;  %v4059_v8 = vld [vmem:[%s4331_s5 + $0x7e0] ss:$20 sps:$4 sm:$0xff]  }
 0x167   : > { %3525 = vmatpush3.bf16.msra.mxu1 %v4051_v20  ;;  %3504 = vmatprep.subr.bf16.mxu0 %v4052_v21  ;;  %v296_v21 = vld [vmem:[#allocation2 + $0x18] sm:$0xff] }
 0x168   : > { %3526 = vmatprep.subr.bf16.mxu1 %v4053_v22  ;;  %2818 = vmatprep.mubr.bf16.mxu0 %v4471_v37  ;;  %v4063_v37 = vld [vmem:[%s4331_s5 + $0x808] ss:$20 sps:$4 sm:$0xff]  }
 0x169   : > { %2858 = vmatprep.mubr.bf16.mxu1 %v4475_v38  ;;  %v4064_v38 = vld [vmem:[%s4331_s5 + $0x6f0] ss:$20 sps:$4 sm:$0xff]  }
 0x16a   : > { %3505 = vmatpush3.bf16.msra.mxu0 %v4054_v23 }
 0x16b   : > { %3527 = vmatpush3.bf16.msra.mxu1 %v4055_v24  ;;  %3506 = vmatprep.subr.bf16.mxu0 %v4056_v25 }
 0x16c   : > { %3528 = vmatprep.subr.bf16.mxu1 %v4057_v26 }
 0x16e   : > { %3507 = vmatpush3.bf16.msra.mxu0 %v4058_v7 }
 0x16f   : > { %3529 = vmatpush3.bf16.msra.mxu1 %v4059_v8  ;;  %3508 = vmatprep.subr.bf16.mxu0 %v4060_v27 }
 0x170   : > { %3530 = vmatprep.subr.bf16.mxu1 %v4061_v28 }
 0x172   : > { %3509 = vmatpush3.bf16.msra.mxu0 %v4062_v29 }
 0x173   : > { %3531 = vmatpush3.bf16.msra.mxu1 %v4063_v37  ;;  %3510 = vmatprep.subr.bf16.mxu0 %v4064_v38 }
 0x174   : > { %3532 = vmatprep.subr.bf16.mxu1 %v4065_v30 }
 0x176   : > { %3511 = vmatpush3.bf16.msra.mxu0 %v4066_v31 }
 0x177   : > { %3533 = vmatpush3.bf16.msra.mxu1 %v4067_v32  ;;  %3512 = vmatprep.subr.bf16.mxu0 %v4068_v33 }
 0x178   : > { %3534 = vmatprep.subr.bf16.mxu1 %v4069_v34 }
 0x17a   : > { %3513 = vmatpush3.bf16.msra.mxu0 %v4070_v35 }
 0x17b   : > { %3535 = vmatpush3.bf16.msra.mxu1 %v4071_v36  ;;  %3514 = vmatprep.subr.bf16.mxu0 %v4072_v39 }
 0x17c   : > { %3536 = vmatprep.subr.bf16.mxu1 %v4073_v40 }
 0x17e   : > { %3515 = vmatpush3.bf16.msra.mxu0 %v4074_v41 }
 0x17f   : > { %3537 = vmatpush3.bf16.msra.mxu1 %v4075_v42  ;;  %3516 = vmatprep.subr.bf16.mxu0 %v4076_v43 }
 0x180   : > { %3538 = vmatprep.subr.bf16.mxu1 %v4077_v44 }
 0x182   : > { %3517 = vmatpush3.bf16.msra.mxu0 %v4078_v45 }
 0x183   : > { %3539 = vmatpush3.bf16.msra.mxu1 %v4079_v46 }
 0x185   : > { %2819 = vmatmul.mubr.bf16.vlgmr.msra.gmra.mrb[20].mxu0 %v4519_v17 }
 0x186   : > { %2859 = vmatmul.mubr.bf16.vlgmr.msra.gmra.mrb[20].mxu1 %v4523_v18 }
 0x198   : > { %v2494_v47 = vpop.f32.mrb[4].mxu0 }
 0x199   : > { %v2535_v49 = vpop.f32.mrb[4].mxu1  ;;  %v2495_v50 = vadd.f32 %v2494_v47, %v4689_v63  ;;  %v2496_v48 = vpop.f32.mrb[5].mxu0  ;;  %v297_v47 = vld [vmem:[#allocation2 + $0x20] sm:$0xff] }
 0x19a   : > { %v2537_v52 = vpop.f32.mrb[5].mxu1  ;;  %v2497_v53 = vadd.f32 %v2496_v48, %v4691_v2  ;;  %v2498_v54 = vpop.f32.mrb[6].mxu0  ;;  %v2887_v48 = vlaneseq (!%p3444_p6) }
 0x19b   : > { %v2539_v55 = vpop.f32.mrb[6].mxu1  ;;  %v2536_v56 = vadd.f32 %v2535_v49, %v2495_v50  ;;  %v2499_v58 = vpop.f32.mrb[7].mxu0 }
 0x19c   : > { %v2540_v59 = vpop.f32.mrb[7].mxu1  ;;  %v2538_v60 = vadd.f32 %v2537_v52, %v2497_v53  ;;  %v2888_v52 = vshrl.u32 (!%p3444_p6), %v2887_v48, 7 }
 0x19d   : > { %v2866_v61 = vadd.f32 %v2536_v56, %v293_v51  ;;  %v2885_v51 = vld [vmem:[%s271_s9] sm:$0x1f] (!%p3444_p6) }
 0x19e   : > { %v2867_v17 = vadd.f32 %v2538_v60, %v294_v57  ;;  %v2889_v54 = vsub.s32 (!%p3444_p6), 0, %v2888_v52  ;;  %v2893_v55 = vsub.s32 (!%p3444_p6), 1, %v2888_v52  ;;  %v2897_v56 = vsub.s32 (!%p3444_p6), 2, %v2888_v52 }
 0x19f   : > { %2871 = vst [vmem:[#allocation2] sm:$0xff] %v2866_v61  ;;  %v2901_v57 = vsub.s32 (!%p3444_p6), 3, %v2888_v52  ;;  %v2905_v61 = vsub.s32 (!%p3444_p6), 4, %v2888_v52 }
 0x1a0   : > { %2872 = vst [vmem:[#allocation2 + $0x8] sm:$0xff] %v2867_v17  ;;  %v2890_v17 = vrot.slane (!%p3444_p6), %v2885_v51, %v2889_v54 }
 0x1a6   : > { %v2880_v53 = vld [vmem:[#allocation2] sm:$0xff] (!%p3444_p6) }
 0x1a7   : > { %v2881_v58 = vld [vmem:[#allocation2 + $0x8] sm:$0xff] (!%p3444_p6) }
 0x1d8   : > { %v2576_v18 = vpop.f32.mrb[8].mxu0 }
 0x1d9   : > { %v2617_v62 = vpop.f32.mrb[8].mxu1  ;;  %v2578_v63 = vpop.f32.mrb[9].mxu0 }
 0x1da   : > { %v2618_v0 = vadd.f32 %v2617_v62, %v2576_v18  ;;  %v2619_v1 = vpop.f32.mrb[9].mxu1  ;;  %v2580_v4 = vpop.f32.mrb[10].mxu0  ;;  %v2894_v18 = vrot.slane (!%p3444_p6), %v2885_v51, %v2893_v55  ;;  %v2898_v62 = vrot.slane (!%p3444_p6), %v2885_v51, %v2897_v56 }
 0x1db   : > { %v2620_v3 = vadd.f32 %v2619_v1, %v2578_v63  ;;  %v2621_v5 = vpop.f32.mrb[10].mxu1  ;;  %v2581_v2 = vpop.f32.mrb[11].mxu0  ;;  %v2906_v1 = vrot.slane (!%p3444_p6), %v2885_v51, %v2905_v61 }
 0x1dc   : > { %v2622_v6 = vpop.f32.mrb[11].mxu1  ;;  %v2913_v4 = vadd.f32 (!%p3444_p6), %v2894_v18, %v2881_v58 }
 0x218   : > { %v2658_v9 = vpop.f32.mrb[12].mxu0 }
 0x219   : > { %v2699_v10 = vpop.f32.mrb[12].mxu1  ;;  %v2659_v11 = vadd.f32 %v2658_v9, %v2618_v0  ;;  %v2660_v12 = vpop.f32.mrb[13].mxu0  ;;  %v2902_v0 = vrot.slane (!%p3444_p6), %v2885_v51, %v2901_v57 }
 0x21a   : > { %v2701_v13 = vpop.f32.mrb[13].mxu1  ;;  %v2661_v15 = vadd.f32 %v2660_v12, %v2620_v3  ;;  %v2662_v16 = vpop.f32.mrb[14].mxu0  ;;  %v2912_v3 = vadd.f32 (!%p3444_p6), %v2890_v17, %v2880_v53 }
 0x21b   : > { %v2703_v19 = vpop.f32.mrb[14].mxu1  ;;  %v2700_v20 = vadd.f32 %v2699_v10, %v2659_v11  ;;  %v2663_v22 = vpop.f32.mrb[15].mxu0  ;;  %v3446_v10 = vmul.f32 (!%p3444_p6), -1.442695, %v2913_v4 }
 0x21c   : > { %v2704_v23 = vpop.f32.mrb[15].mxu1  ;;  %v2702_v24 = vadd.f32 %v2701_v13, %v2661_v15  ;;  %v3445_v9 = vmul.f32 (!%p3444_p6), -1.442695, %v2912_v3 }
 0x21d   : > { %v2868_v25 = vadd.f32 %v2700_v20, %v295_v14 }
 0x21e   : > { %v2869_v26 = vadd.f32 %v2702_v24, %v296_v21  ;;  %4080 = vpow2.f32 (!%p3444_p6), %v3445_v9 }
 0x21f   : > { %2873 = vst [vmem:[#allocation2 + $0x10] sm:$0xff] %v2868_v25  ;;  %4082 = vpow2.f32 (!%p3444_p6), %v3446_v10 }
 0x220   : > { %2874 = vst [vmem:[#allocation2 + $0x18] sm:$0xff] %v2869_v26 }
 0x226   : > { %v2882_v59 = vld [vmem:[#allocation2 + $0x10] sm:$0xff] (!%p3444_p6) }
 0x227   : > { %v2883_v60 = vld [vmem:[#allocation2 + $0x18] sm:$0xff] (!%p3444_p6)  ;;  %v2914_v5 = vadd.f32 (!%p3444_p6), %v2898_v62, %v2882_v59 }
 0x228   : > { %v2915_v2 = vadd.f32 (!%p3444_p6), %v2902_v0, %v2883_v60  ;;  %v4081_v14 = vpop.eup (!%p3444_p6), %4080 }
 0x229   : > { %v3447_v11 = vmul.f32 (!%p3444_p6), -1.442695, %v2914_v5  ;;  %v4083_v15 = vpop.eup (!%p3444_p6), %4082  ;;  %v2932_v16 = vadd.f32 (!%p3444_p6), 1.0, %v4081_v14 }
 0x22a   : > { %v3448_v12 = vmul.f32 (!%p3444_p6), -1.442695, %v2915_v2  ;;  %v2933_v20 = vadd.f32 (!%p3444_p6), 1.0, %v4083_v15 }
 0x22b   : > { %4084 = vpow2.f32 (!%p3444_p6), %v3447_v11 }
 0x22c   : > { %4086 = vpow2.f32 (!%p3444_p6), %v3448_v12 }
 0x235   : > { %v4085_v19 = vpop.eup (!%p3444_p6), %4084 }
 0x236   : > { %v4087_v21 = vpop.eup (!%p3444_p6), %4086  ;;  %v2934_v22 = vadd.f32 (!%p3444_p6), 1.0, %v4085_v19 }
 0x237   : > { %v2935_v24 = vadd.f32 (!%p3444_p6), 1.0, %v4087_v21 }
 0x238   : > { %v3474_v7 = vpop.f32.mrb[16].mxu0 }
 0x239   : > { %v3496_v8 = vpop.f32.mrb[16].mxu1  ;;  %v3475_v27 = vpop.f32.mrb[17].mxu0 }
 0x23a   : > { %v3497_v28 = vpop.f32.mrb[17].mxu1  ;;  %v3476_v29 = vadd.f32 %v3475_v27, %v3474_v7  ;;  %v3477_v38 = vpop.f32.mrb[18].mxu0 }
 0x23b   : > { %v3498_v37 = vadd.f32 %v3497_v28, %v3496_v8  ;;  %v3499_v30 = vpop.f32.mrb[18].mxu1  ;;  %v3478_v31 = vpop.f32.mrb[19].mxu0 }
 0x23c   : > { %v3500_v32 = vpop.f32.mrb[19].mxu1 }
 0x23d   : > { %v2781_v33 = vadd.f32 %v3498_v37, %v3476_v29 }
 0x258   : > { %v3518_v34 = vpop.f32.mrb[20].mxu0 }
 0x259   : > { %v3540_v35 = vpop.f32.mrb[20].mxu1  ;;  %v3519_v36 = vpop.f32.mrb[21].mxu0 }
 0x25a   : > { %v3541_v39 = vpop.f32.mrb[21].mxu1  ;;  %v3520_v40 = vadd.f32 %v3519_v36, %v3518_v34  ;;  %v3521_v42 = vpop.f32.mrb[22].mxu0 }
 0x25b   : > { %v3542_v41 = vadd.f32 %v3541_v39, %v3540_v35  ;;  %v3543_v43 = vpop.f32.mrb[22].mxu1  ;;  %v3522_v44 = vpop.f32.mrb[23].mxu0 }
 0x25c   : > { %v3544_v45 = vpop.f32.mrb[23].mxu1  ;;  %v2821_v46 = vadd.f32 %v3520_v40, %v2781_v33  ;;  %2879 = sbr.rel (%p3444_p6) target bundleno = 651 (0x28b), region = 44 }
 0x25e   : > { %v2861_v49 = vadd.f32 %v3542_v41, %v2821_v46 }
 0x260   : > { %v2870_v50 = vadd.f32 %v2861_v49, %v297_v47 }
 0x262   : > { %2875 = vst [vmem:[#allocation2 + $0x20] sm:$0xff] %v2870_v50 }
 0x269   : > { %v2884_v63 = vld [vmem:[#allocation2 + $0x20] sm:$0xff] }
 0x26a   : > { %v2916_v6 = vadd.f32 %v2906_v1, %v2884_v63 }
 0x26c   : > { %v3449_v13 = vmul.f32 -1.442695, %v2916_v6 }
 0x26e   : > { %4088 = vpow2.f32 %v3449_v13 }
 0x26f   : > { %4090 = vrcp.f32 %v2932_v16 }
 0x270   : > { %4092 = vrcp.f32 %v2933_v20 }
 0x271   : > { %4094 = vrcp.f32 %v2934_v22 }
 0x272   : > { %4096 = vrcp.f32 %v2935_v24 }
 0x278   : > { %v4089_v23 = vpop.eup %4088 }
 0x279   : > { %v2936_v25 = vadd.f32 1.0, %v4089_v23  ;;  %v4091_v26 = vpop.eup %4090 }
 0x27a   : > { %v4093_v7 = vpop.eup %4092  ;;  %v2947_v8 = vmul.f32 %v4091_v26, %v2912_v3 }
 0x27b   : > { %4098 = vrcp.f32 %v2936_v25  ;;  %v4095_v27 = vpop.eup %4094  ;;  %v2948_v28 = vmul.f32 %v4093_v7, %v2913_v4 }
 0x27c   : > { %v4097_v29 = vpop.eup %4096  ;;  %v2949_v37 = vmul.f32 %v4095_v27, %v2914_v5 }
 0x27d   : > { %v3455_v30 = vpack.c.bf16 %v2948_v28, %v2947_v8  ;;  %v2950_v31 = vmul.f32 %v4097_v29, %v2915_v2 }
 0x27f   : > { %2973 = vst [vmem:[%s4354_s12] sm:$0xff] %v3455_v30  ;;  %v3456_v33 = vpack.c.bf16 %v2950_v31, %v2949_v37 }
 0x281   : > { %2974 = vst [vmem:[%s4354_s12 + $0x8] sm:$0xff] %v3456_v33 }
 0x285   : > { %v4099_v38 = vpop.eup %4098 }
 0x286   : > { %v2951_v32 = vmul.f32 %v4099_v38, %v2916_v6 }
 0x288   : > { %v3457_v34 = vpack.c.bf16 %v2951_v32, %v2951_v32 }
 0x28a   : > { %2975 = vst [vmem:[%s4354_s12 + $0x10] sm:$0xf] %v3457_v34 }
 0x28b PF: > { %s16_s19 = sadd.s32 1, %s4196_s19   ;;  %s4778_s12 = smov %s4172_s13 }
 0x28c   : > { %p13_p8 = scmp.ge.s32.totalorder %s16_s19, 8   ;;  %s4779_s13 = smov %s4176_s14 }
 0x28d   : > { %s4780_s14 = smov %s4289_s4  ;;  %s4781_s15 = smov %s4188_s17 }
 0x28e   : > { %s4782_s16 = smov %s4192_s18  ;;  %s4783_s17 = smov %s4786_s21 }
 0x28f   : > { %s4784_s18 = smov %s4790_s22  ;;  %15 = sbr.rel (!%p13_p8) target bundleno = 5 (0x5), region = 86 }
 0x296   :  { %3006 = vsyncpa [#allocation4], 1 }
 0x297   :  { %3008 = vsyncpa [#allocation4 + $0x1], 1 }

// kernel: efficientnet_segmentation_forward.7
= control target key start
LH: loop header
LB: loop body
LE: loop exit
PB: predicated region body
PF: predicated region fallthrough
CT: control target
= control target key end

     0   :  { %8 = vsyncpa [#allocation4], 0  ;;  %s4621_s0 = inlined_call_operand.vmem [shape: bf16[8,11520], index: 0, kind: input, shape index: {}]   ;;  %s4622_s1 = inlined_call_operand.hbm [shape: bf16[11520,2048], index: 1, kind: input, shape index: {}]   ;;  %s4623_s2 = inlined_call_operand.vmem [shape: f32[1,2048], index: 2, kind: input, shape index: {}]   ;;  %s4624_s3 = inlined_call_operand.vmem [shape: bf16[8,2048], index: 3, kind: output, shape index: {}]  }
   0x1   :  { %10 = vsyncpa [#allocation4 + $0x1], 0  ;;  %s3994_s12 = smov 0   ;;  %s3996_s13 = smov 0  }
   0x2   :  { %s3998_s14 = smov 0   ;;  %s4000_s15 = smov 0  }
   0x3   :  { %s4002_s16 = smov 0   ;;  %s4004_s17 = smov 0  }
   0x4   :  { %s4006_s18 = smov 0   ;;  %s4008_s19 = smov 0  }
   0x5 LB: > { %s3373_s20 = sadd.s32 4294967295, %s3967_s19   ;;  %s28_s21 = sadd.s32 1, %s3959_s17  ;;  %s3967_s19 = sphi %s4008_s19, %s16_s19   ;;  %s3963_s18 = sphi %s4006_s18, %s4634_s18   ;;  %s3959_s17 = sphi %s4004_s17, %s4633_s17   ;;  %s3955_s16 = sphi %s4002_s16, %s4632_s16   ;;  %s3951_s15 = sphi %s4000_s15, %s4631_s15   ;;  %s3947_s14 = sphi %s3998_s14, %s4630_s14   ;;  %s3943_s13 = sphi %s3996_s13, %s4629_s13   ;;  %s3939_s12 = sphi %s3994_s12, %s4628_s12  }
   0x6   : > { %p29_p0 = scmp.ge.s32.totalorder %s28_s21, 15  ;;  %s31_s22 = sadd.s32 1, %s3963_s18 }
   0x7   : > { %s72_s23 = sadd.s32 1, %s3947_s14  ;;  %p79_p1 = scmp.ne.s32.totalorder %s3947_s14, %s3943_s13 }
   0x8   : > { %s4636_s21 = smov (%p29_p0, %s28_s21), 0  ;;  %s4638_s22 = smov (!%p29_p0, %s31_s22), %s3963_s18 }
   0x9   : > { %s67_s24 = ssub.s32 %s3959_s17, %s4636_s21  ;;  %p80_p2 = scmp.eq.s32.totalorder %s3967_s19, 0 }
   0xa   : > { %p33_p3 = scmp.ge.s32.totalorder %s4638_s22, 2  ;;  %p85_p4 = scmp.ne.s32.totalorder %s3943_s13, %s3939_s12 }
   0xb   : > { %p4045_p5 = por %p80_p2, %p79_p1  ;;  %p86_p6 = scmp.eq.s32.totalorder %s3373_s20, 0 }
   0xc   : > { %s4640_s22 = smov (%p33_p3, %s4638_s22), 0  ;;  %p3796_p8 = scmp.lt.s32.totalorder %s3967_s19, 30 }
   0xd   : > { %p4051_p7 = por %p86_p6, %p85_p4  ;;  %s68_s27 = ssub.s32 %s3963_s18, %s4640_s22 }
   0xe   : > { %s69_s28 = sor.u32 %s68_s27, %s67_s24  ;;  %s176_s29 = sand.u32 1, %s3947_s14  }
   0xf   : > { %p70_p9 = scmp.eq.s32.totalorder %s69_s28, 0  ;;  %s3788_s30 = smul.u32 3072, %s176_s29 }
  0x10   : > { %s3377_s4 = sshll.u32 %s3963_s18, 3  ;;  %s3783_s6 = smul.u32 1536, %s3959_s17 }
  0x11   : > { %s4061_s5 = scalar_select %p70_p9, %s3947_s14, %s72_s23  }
  0x12   : > { %s180_s7 = scalar_lea.vmem [#allocation3], %s3788_s30  ;;  %p4066_p10 = pnand %p3796_p8, %p4045_p5 }
  0x13   : > { %s190_s8 = sshll.u32 %s180_s7, 4  ;;  %s187_s10 = sadd.s32 %s3783_s6, %s3377_s4  ;;  %s4070_s8 = int_to_ptr.vmem [resolvable:$true] %s190_s8 }
  0x14   : > { %s3379_s11 = sshll.u32 %s187_s10, 6  ;;  %s4077_s23 = scalar_lea.sflag [#allocation4], %s176_s29 }
  0x15   : > { %s4075_s24 = scalar_lea.hbm %s4622_s1, %s3379_s11  ;;  %p3873_p12 = pneg %p4066_p10 }
  0x16   : > { %s3871_s25 = scalar_lea.hbm %s4075_s24, 49152  ;;  %s3876_s30 = scalar_lea.hbm %s4622_s1, 1474560 }
  0x17   : > { %p3872_p11 = scmp.ne.s32.totalorder %s4075_s24, %s3871_s25  ;;  %p3877_p1 = scmp.lt.u32.totalorder %s4075_s24, %s4622_s1 }
  0x18   : > { %p3878_p2 = scmp.lt.u32.totalorder %s3876_s30, %s3871_s25  ;;  %p3880_p4 = scmp.lt.u32.totalorder %s3871_s25, %s4075_s24 }
  0x19   : > { %p3874_p13 = pnand %p3873_p12, %p3872_p11 }
  0x1a   : > { %p3879_p3 = por %p3878_p2, %p3877_p1 }
  0x1b   : > { %p3875_p0 = pneg %p3874_p13 }
  0x1c   : > { %p3881_p5 = por %p3880_p4, %p3879_p3 }
  0x1e   : > { %p3882_p6 = pnand %p3881_p5, %p3875_p0 }
  0x20   : > { %3885 = shalt.err (!%p3882_p6)
}
  0x21   : > { %s3886_s29 = scalar_lea.vmem %s4070_s8, 49152  ;;  %s3969_s7 = smov [#allocation3]  }
  0x22   : > { %p3887_p8 = scmp.ne.s32.totalorder %s4070_s8, %s3886_s29  ;;  %s3891_s10 = sshll.u32 %s3969_s7, 4  ;;  %s3892_s10 = int_to_ptr.vmem [resolvable:$false] %s3891_s10 }
  0x23   : > { %s3893_s11 = scalar_lea.vmem %s3892_s10, 98304  ;;  %p3894_p13 = scmp.lt.s32.totalorder %s4070_s8, %s3892_s10 }
  0x24   : > { %p3889_p9 = pnand %p3887_p8, %p3873_p12  ;;  %p3895_p1 = scmp.lt.s32.totalorder %s3893_s11, %s3886_s29 }
  0x26   : > { %p3890_p11 = pneg %p3889_p9  ;;  %p3896_p2 = por %p3895_p1, %p3894_p13 }
  0x28   : > { %p3897_p3 = pnand %p3896_p2, %p3890_p11 }
  0x2a   : > { %3900 = shalt.err (!%p3897_p3)
}
  0x2b   : > { %s3970_s12 = smov 1024   ;;  %s3971_s20 = smov 512  }
  0x2c   : > { %s3972_s25 = smov 32   ;;  %p3380_p12 = scmp.ge.s32.totalorder %s3967_s19, 1 }
  0x2d   : > { %3795 = dma.hbm_to_vmem [thread:$0]  (!%p4066_p10), %s4075_s24, 49152, %s4070_s8, %s4077_s23, %s3970_s12, %s3971_s20, %s3972_s25  }
  0x2e   : > { %p206_p0 = scmp.lt.s32.totalorder %s3967_s19, 31 }
  0x30   : > { %p207_p4 = pnand %p3380_p12, %p206_p0 }
  0x31   : > { %s212_s27 = sand.u32 (!%p207_p4), 1, %s3943_s13  }
  0x32   : > { %210 = sbr.rel (%p207_p4) target bundleno = 692 (0x2b4), region = 32  ;;  %s213_s30 = scalar_lea.sflag (!%p207_p4), [#allocation4], %s212_s27 }
  0x33   : > { %s3789_s28 = smul.u32 (!%p207_p4), 3072, %s212_s27 }
  0x35   : > { %s4108_s4 = scalar_lea.vmem (!%p207_p4), [#allocation3], %s3789_s28 }
  0x39   : > { %3934 = dma.done.wait (%p4051_p7), %s213_s30, 49152  }
  0x3a   : > { %3936 = vsyncadd (%p4051_p7), %s213_s30, 4294918144  ;;  %s256_s9 = smul.u32 6, %s3951_s15  ;;  %s3382_s8 = sshll.u32 %s3955_s16, 3 }
  0x3b   : > { %p269_p10 = scmp.lt.s32.totalorder %s3382_s8, 15  ;;  %p3385_p7 = scmp.ne.s32.totalorder %s3951_s15, 0 }
  0x3c   : > { %p259_p5 = scmp.lt.s32.totalorder %s256_s9, 89  ;;  %v3973_v0 = vmov (!%p3385_p7), 0.0  }
  0x3d   : > { %s4642_s8 = smov (!%p269_p10, %s3382_s8), 15  ;;  %286 = sbr.rel (%p3385_p7) target bundleno = 68 (0x44), region = 40 }
  0x3e   : > { %s4644_s9 = smov (!%p259_p5, %s256_s9), 89  ;;  %s271_s6 = scalar_lea.vmem %s4623_s2, %s4642_s8  ;;  %287 = vst [vmem:[#allocation2] sm:$0xff] (!%p3385_p7), %v3973_v0  ;;  %288 = vst [vmem:[#allocation2 + $0x8] sm:$0xff] (!%p3385_p7), %v3973_v0 }
  0x3f   : > { %s3384_s29 = sshll.u32 %s4642_s8, 2  ;;  %s3381_s7 = sshll.u32 %s4644_s9, 2  ;;  %289 = vst [vmem:[#allocation2 + $0x10] sm:$0xff] (!%p3385_p7), %v3973_v0  ;;  %290 = vst [vmem:[#allocation2 + $0x18] sm:$0xff] (!%p3385_p7), %v3973_v0 }
  0x40   : > { %s4126_s11 = scalar_lea.vmem %s4624_s3, %s3384_s29  ;;  %s4131_s20 = scalar_lea.vmem %s4621_s0, %s3381_s7  ;;  %291 = vst [vmem:[#allocation2 + $0x20] sm:$0xff] (!%p3385_p7), %v3973_v0  ;;  %292 = vst [vmem:[#allocation2 + $0x28] sm:$0xff] (!%p3385_p7), %v3973_v0 }
  0x41   : > { %293 = vst [vmem:[#allocation2 + $0x30] sm:$0xff] (!%p3385_p7), %v3973_v0  ;;  %294 = vst [vmem:[#allocation2 + $0x38] sm:$0xff] (!%p3385_p7), %v3973_v0 }
  0x44 PF: > { %v306_v1 = vld [vmem:[%s4108_s4] sm:$0xff]  ;;  %v4166_v55 = vld [vmem:[%s4131_s20 + $0x8] sm:$0xff]  ;;  %p3776_p6 = scmp.ne.s32.totalorder %s3951_s15, 14 }
  0x45   : > { %v310_v2 = vld [vmem:[%s4108_s4 + $0x20] sm:$0xff]  ;;  %v4176_v60 = vcombine.high %v4166_v55, %v4166_v55 }
  0x46   : > { %v434_v3 = vld [vmem:[%s4108_s4 + $0x400] sm:$0xff]  ;;  %v3393_v4 = vcombine.high %v306_v1, %v310_v2  ;;  %v3392_v6 = vcombine.low %v306_v1, %v310_v2 }
  0x47   : > { %v438_v5 = vld [vmem:[%s4108_s4 + $0x420] sm:$0xff]  ;;  %2704 = vmatprep.mubr.bf16.mxu1 %v4176_v60 }
  0x48   : > { %v314_v7 = vld [vmem:[%s4108_s4 + $0x40] sm:$0xff]  ;;  %v3521_v9 = vcombine.high %v434_v3, %v438_v5  ;;  %v3520_v10 = vcombine.low %v434_v3, %v438_v5  ;;  %2631 = vmatprep.subr.bf16.mxu0 %v3393_v4 }
  0x49   : > { %v318_v8 = vld [vmem:[%s4108_s4 + $0x60] sm:$0xff]  ;;  %2632 = vmatpush1.bf16.msra.mxu0 %v3392_v6 }
  0x4a   : > { %v3401_v11 = vcombine.high %v314_v7, %v318_v8  ;;  %v442_v12 = vld [vmem:[%s4108_s4 + $0x440] sm:$0xff]  ;;  %2672 = vmatprep.subr.bf16.mxu1 %v3521_v9  ;;  %v3400_v19 = vcombine.low %v314_v7, %v318_v8 }
  0x4b   : > { %v446_v13 = vld [vmem:[%s4108_s4 + $0x460] sm:$0xff]  ;;  %2673 = vmatpush1.bf16.msra.mxu1 %v3520_v10 }
  0x4c   : > { %v322_v14 = vld [vmem:[%s4108_s4 + $0x80] sm:$0xff]  ;;  %v3529_v15 = vcombine.high %v442_v12, %v446_v13  ;;  %2633 = vmatprep.subr.bf16.mxu0 %v3401_v11  ;;  %v3528_v20 = vcombine.low %v442_v12, %v446_v13 }
  0x4d   : > { %v326_v16 = vld [vmem:[%s4108_s4 + $0xa0] sm:$0xff]  ;;  %2634 = vmatpush1.bf16.msra.mxu0 %v3400_v19 }
  0x4e   : > { %v450_v17 = vld [vmem:[%s4108_s4 + $0x480] sm:$0xff]  ;;  %v3409_v21 = vcombine.high %v322_v14, %v326_v16  ;;  %2674 = vmatprep.subr.bf16.mxu1 %v3529_v15  ;;  %v3408_v27 = vcombine.low %v322_v14, %v326_v16 }
  0x4f   : > { %v454_v18 = vld [vmem:[%s4108_s4 + $0x4a0] sm:$0xff]  ;;  %2675 = vmatpush1.bf16.msra.mxu1 %v3528_v20 }
  0x50   : > { %v3537_v22 = vcombine.high %v450_v17, %v454_v18  ;;  %v330_v23 = vld [vmem:[%s4108_s4 + $0xc0] sm:$0xff]  ;;  %2635 = vmatprep.subr.bf16.mxu0 %v3409_v21  ;;  %v3536_v28 = vcombine.low %v450_v17, %v454_v18 }
  0x51   : > { %v334_v24 = vld [vmem:[%s4108_s4 + $0xe0] sm:$0xff]  ;;  %2636 = vmatpush1.bf16.msra.mxu0 %v3408_v27 }
  0x52   : > { %v458_v25 = vld [vmem:[%s4108_s4 + $0x4c0] sm:$0xff]  ;;  %v3417_v29 = vcombine.high %v330_v23, %v334_v24  ;;  %2676 = vmatprep.subr.bf16.mxu1 %v3537_v22  ;;  %v3416_v35 = vcombine.low %v330_v23, %v334_v24 }
  0x53   : > { %v462_v26 = vld [vmem:[%s4108_s4 + $0x4e0] sm:$0xff]  ;;  %2677 = vmatpush1.bf16.msra.mxu1 %v3536_v28 }
  0x54   : > { %v3545_v30 = vcombine.high %v458_v25, %v462_v26  ;;  %v338_v31 = vld [vmem:[%s4108_s4 + $0x100] sm:$0xff]  ;;  %2637 = vmatprep.subr.bf16.mxu0 %v3417_v29  ;;  %v3544_v36 = vcombine.low %v458_v25, %v462_v26 }
  0x55   : > { %v342_v32 = vld [vmem:[%s4108_s4 + $0x120] sm:$0xff]  ;;  %2638 = vmatpush1.bf16.msra.mxu0 %v3416_v35 }
  0x56   : > { %v466_v33 = vld [vmem:[%s4108_s4 + $0x500] sm:$0xff]  ;;  %v3425_v37 = vcombine.high %v338_v31, %v342_v32  ;;  %2678 = vmatprep.subr.bf16.mxu1 %v3545_v30  ;;  %v3424_v43 = vcombine.low %v338_v31, %v342_v32 }
  0x57   : > { %v470_v34 = vld [vmem:[%s4108_s4 + $0x520] sm:$0xff]  ;;  %2679 = vmatpush1.bf16.msra.mxu1 %v3544_v36 }
  0x58   : > { %v3553_v38 = vcombine.high %v466_v33, %v470_v34  ;;  %v346_v39 = vld [vmem:[%s4108_s4 + $0x140] sm:$0xff]  ;;  %2639 = vmatprep.subr.bf16.mxu0 %v3425_v37  ;;  %v3552_v44 = vcombine.low %v466_v33, %v470_v34 }
  0x59   : > { %v350_v40 = vld [vmem:[%s4108_s4 + $0x160] sm:$0xff]  ;;  %2640 = vmatpush1.bf16.msra.mxu0 %v3424_v43 }
  0x5a   : > { %v474_v41 = vld [vmem:[%s4108_s4 + $0x540] sm:$0xff]  ;;  %v3433_v45 = vcombine.high %v346_v39, %v350_v40  ;;  %2680 = vmatprep.subr.bf16.mxu1 %v3553_v38  ;;  %v3432_v51 = vcombine.low %v346_v39, %v350_v40 }
  0x5b   : > { %v478_v42 = vld [vmem:[%s4108_s4 + $0x560] sm:$0xff]  ;;  %2681 = vmatpush1.bf16.msra.mxu1 %v3552_v44 }
  0x5c   : > { %v3561_v46 = vcombine.high %v474_v41, %v478_v42  ;;  %v354_v47 = vld [vmem:[%s4108_s4 + $0x180] sm:$0xff]  ;;  %2641 = vmatprep.subr.bf16.mxu0 %v3433_v45  ;;  %v3560_v52 = vcombine.low %v474_v41, %v478_v42 }
  0x5d   : > { %v358_v48 = vld [vmem:[%s4108_s4 + $0x1a0] sm:$0xff]  ;;  %2642 = vmatpush1.bf16.msra.mxu0 %v3432_v51 }
  0x5e   : > { %v482_v49 = vld [vmem:[%s4108_s4 + $0x580] sm:$0xff]  ;;  %v3441_v53 = vcombine.high %v354_v47, %v358_v48  ;;  %2682 = vmatprep.subr.bf16.mxu1 %v3561_v46  ;;  %v3440_v63 = vcombine.low %v354_v47, %v358_v48 }
  0x5f   : > { %v486_v50 = vld [vmem:[%s4108_s4 + $0x5a0] sm:$0xff]  ;;  %2683 = vmatpush1.bf16.msra.mxu1 %v3560_v52 }
  0x60   : > { %v4163_v54 = vld [vmem:[%s4131_s20] sm:$0xff]  ;;  %v3569_v56 = vcombine.high %v482_v49, %v486_v50  ;;  %2643 = vmatprep.subr.bf16.mxu0 %v3441_v53  ;;  %v3568_v0 = vcombine.low %v482_v49, %v486_v50 }
  0x61   : > { %v362_v57 = vld [vmem:[%s4108_s4 + $0x1c0] sm:$0xff]  ;;  %v4172_v59 = vcombine.high %v4163_v54, %v4163_v54  ;;  %2644 = vmatpush1.bf16.msra.mxu0 %v3440_v63 }
  0x62   : > { %v366_v58 = vld [vmem:[%s4108_s4 + $0x1e0] sm:$0xff]  ;;  %2684 = vmatprep.subr.bf16.mxu1 %v3569_v56 }
  0x63   : > { %v490_v61 = vld [vmem:[%s4108_s4 + $0x5c0] sm:$0xff]  ;;  %2663 = vmatprep.mubr.bf16.mxu0 %v4172_v59  ;;  %v3449_v1 = vcombine.high %v362_v57, %v366_v58  ;;  %v3448_v7 = vcombine.low %v362_v57, %v366_v58  ;;  %2685 = vmatpush1.bf16.msra.mxu1 %v3568_v0 }
  0x64   : > { %v494_v62 = vld [vmem:[%s4108_s4 + $0x5e0] sm:$0xff] }
  0x65   : > { %v3577_v2 = vcombine.high %v490_v61, %v494_v62  ;;  %v370_v3 = vld [vmem:[%s4108_s4 + $0x200] sm:$0xff]  ;;  %2645 = vmatprep.subr.bf16.mxu0 %v3449_v1  ;;  %v3576_v8 = vcombine.low %v490_v61, %v494_v62 }
  0x66   : > { %v374_v4 = vld [vmem:[%s4108_s4 + $0x220] sm:$0xff]  ;;  %2646 = vmatpush1.bf16.msra.mxu0 %v3448_v7 }
  0x67   : > { %v498_v5 = vld [vmem:[%s4108_s4 + $0x600] sm:$0xff]  ;;  %v3457_v9 = vcombine.high %v370_v3, %v374_v4  ;;  %2686 = vmatprep.subr.bf16.mxu1 %v3577_v2  ;;  %v3456_v15 = vcombine.low %v370_v3, %v374_v4 }
  0x68   : > { %v502_v6 = vld [vmem:[%s4108_s4 + $0x620] sm:$0xff]  ;;  %2687 = vmatpush1.bf16.msra.mxu1 %v3576_v8 }
  0x69   : > { %v3585_v10 = vcombine.high %v498_v5, %v502_v6  ;;  %v378_v11 = vld [vmem:[%s4108_s4 + $0x240] sm:$0xff]  ;;  %2647 = vmatprep.subr.bf16.mxu0 %v3457_v9  ;;  %v3584_v16 = vcombine.low %v498_v5, %v502_v6  ;;  %v307_v9 = vld [vmem:[%s4108_s4 + $0x8] sm:$0xff] }
  0x6a   : > { %v382_v12 = vld [vmem:[%s4108_s4 + $0x260] sm:$0xff]  ;;  %2648 = vmatpush1.bf16.msra.mxu0 %v3456_v15 }
  0x6b   : > { %v506_v13 = vld [vmem:[%s4108_s4 + $0x640] sm:$0xff]  ;;  %v3465_v17 = vcombine.high %v378_v11, %v382_v12  ;;  %2688 = vmatprep.subr.bf16.mxu1 %v3585_v10  ;;  %v3464_v23 = vcombine.low %v378_v11, %v382_v12  ;;  %v311_v10 = vld [vmem:[%s4108_s4 + $0x28] sm:$0xff] }
  0x6c   : > { %v510_v14 = vld [vmem:[%s4108_s4 + $0x660] sm:$0xff]  ;;  %2689 = vmatpush1.bf16.msra.mxu1 %v3584_v16 }
  0x6d   : > { %v3593_v18 = vcombine.high %v506_v13, %v510_v14  ;;  %v386_v19 = vld [vmem:[%s4108_s4 + $0x280] sm:$0xff]  ;;  %2649 = vmatprep.subr.bf16.mxu0 %v3465_v17  ;;  %v3592_v24 = vcombine.low %v506_v13, %v510_v14  ;;  %v3395_v14 = vcombine.high %v307_v9, %v311_v10  ;;  %v4222_v17 = vcombine.low %v4163_v54, %v4163_v54 }
  0x6e   : > { %v390_v20 = vld [vmem:[%s4108_s4 + $0x2a0] sm:$0xff]  ;;  %2650 = vmatpush1.bf16.msra.mxu0 %v3464_v23  ;;  %v3394_v23 = vcombine.low %v307_v9, %v311_v10 }
  0x6f   : > { %v514_v21 = vld [vmem:[%s4108_s4 + $0x680] sm:$0xff]  ;;  %v3473_v25 = vcombine.high %v386_v19, %v390_v20  ;;  %2690 = vmatprep.subr.bf16.mxu1 %v3593_v18  ;;  %v3472_v31 = vcombine.low %v386_v19, %v390_v20  ;;  %v315_v18 = vld [vmem:[%s4108_s4 + $0x48] sm:$0xff]  ;;  %v4227_v20 = vld [vmem:[%s4131_s20 + $0x10] sm:$0xff] }
  0x70   : > { %v518_v22 = vld [vmem:[%s4108_s4 + $0x6a0] sm:$0xff]  ;;  %2691 = vmatpush1.bf16.msra.mxu1 %v3592_v24  ;;  %v319_v19 = vld [vmem:[%s4108_s4 + $0x68] sm:$0xff] }
  0x71   : > { %v3601_v26 = vcombine.high %v514_v21, %v518_v22  ;;  %v394_v27 = vld [vmem:[%s4108_s4 + $0x2c0] sm:$0xff]  ;;  %2651 = vmatprep.subr.bf16.mxu0 %v3473_v25  ;;  %v3600_v32 = vcombine.low %v514_v21, %v518_v22  ;;  %v4231_v21 = vcombine.low %v4166_v55, %v4166_v55  ;;  %v3403_v25 = vcombine.high %v315_v18, %v319_v19  ;;  %v323_v55 = vld [vmem:[%s4108_s4 + $0x88] sm:$0xff] }
  0x72   : > { %v398_v28 = vld [vmem:[%s4108_s4 + $0x2e0] sm:$0xff]  ;;  %2652 = vmatpush1.bf16.msra.mxu0 %v3472_v31 }
  0x73   : > { %v522_v29 = vld [vmem:[%s4108_s4 + $0x6c0] sm:$0xff]  ;;  %v3481_v33 = vcombine.high %v394_v27, %v398_v28  ;;  %2692 = vmatprep.subr.bf16.mxu1 %v3601_v26  ;;  %v3480_v39 = vcombine.low %v394_v27, %v398_v28  ;;  %v4237_v27 = vcombine.high %v4227_v20, %v4227_v20  ;;  %v327_v28 = vld [vmem:[%s4108_s4 + $0xa8] sm:$0xff] }
  0x74   : > { %v526_v30 = vld [vmem:[%s4108_s4 + $0x6e0] sm:$0xff]  ;;  %2693 = vmatpush1.bf16.msra.mxu1 %v3600_v32  ;;  %v3411_v32 = vcombine.high %v323_v55, %v327_v28 }
  0x75   : > { %v3609_v34 = vcombine.high %v522_v29, %v526_v30  ;;  %v402_v35 = vld [vmem:[%s4108_s4 + $0x300] sm:$0xff]  ;;  %2653 = vmatprep.subr.bf16.mxu0 %v3481_v33  ;;  %v3608_v40 = vcombine.low %v522_v29, %v526_v30  ;;  %v3402_v30 = vcombine.low %v315_v18, %v319_v19 }
  0x76   : > { %v406_v36 = vld [vmem:[%s4108_s4 + $0x320] sm:$0xff]  ;;  %2654 = vmatpush1.bf16.msra.mxu0 %v3480_v39 }
  0x77   : > { %v530_v37 = vld [vmem:[%s4108_s4 + $0x700] sm:$0xff]  ;;  %v3489_v41 = vcombine.high %v402_v35, %v406_v36  ;;  %2694 = vmatprep.subr.bf16.mxu1 %v3609_v34  ;;  %v3488_v47 = vcombine.low %v402_v35, %v406_v36  ;;  %v331_v35 = vld [vmem:[%s4108_s4 + $0xc8] sm:$0xff] }
  0x78   : > { %v534_v38 = vld [vmem:[%s4108_s4 + $0x720] sm:$0xff]  ;;  %2695 = vmatpush1.bf16.msra.mxu1 %v3608_v40  ;;  %v335_v36 = vld [vmem:[%s4108_s4 + $0xe8] sm:$0xff] }
  0x79   : > { %v3617_v42 = vcombine.high %v530_v37, %v534_v38  ;;  %v410_v43 = vld [vmem:[%s4108_s4 + $0x340] sm:$0xff]  ;;  %2655 = vmatprep.subr.bf16.mxu0 %v3489_v41  ;;  %v3616_v48 = vcombine.low %v530_v37, %v534_v38  ;;  %v3410_v38 = vcombine.low %v323_v55, %v327_v28  ;;  %v3419_v40 = vcombine.high %v331_v35, %v335_v36 }
  0x7a   : > { %v414_v44 = vld [vmem:[%s4108_s4 + $0x360] sm:$0xff]  ;;  %2656 = vmatpush1.bf16.msra.mxu0 %v3488_v47 }
  0x7b   : > { %v538_v45 = vld [vmem:[%s4108_s4 + $0x740] sm:$0xff]  ;;  %v3497_v49 = vcombine.high %v410_v43, %v414_v44  ;;  %2696 = vmatprep.subr.bf16.mxu1 %v3617_v42  ;;  %v3496_v57 = vcombine.low %v410_v43, %v414_v44  ;;  %v339_v43 = vld [vmem:[%s4108_s4 + $0x108] sm:$0xff] }
  0x7c   : > { %v542_v46 = vld [vmem:[%s4108_s4 + $0x760] sm:$0xff]  ;;  %2697 = vmatpush1.bf16.msra.mxu1 %v3616_v48  ;;  %v343_v44 = vld [vmem:[%s4108_s4 + $0x128] sm:$0xff] }
  0x7d   : > { %v3625_v50 = vcombine.high %v538_v45, %v542_v46  ;;  %v418_v51 = vld [vmem:[%s4108_s4 + $0x380] sm:$0xff]  ;;  %2657 = vmatprep.subr.bf16.mxu0 %v3497_v49  ;;  %v3624_v58 = vcombine.low %v538_v45, %v542_v46  ;;  %v3418_v46 = vcombine.low %v331_v35, %v335_v36  ;;  %v3427_v48 = vcombine.high %v339_v43, %v343_v44 }
  0x7e   : > { %v422_v52 = vld [vmem:[%s4108_s4 + $0x3a0] sm:$0xff]  ;;  %2658 = vmatpush1.bf16.msra.mxu0 %v3496_v57 }
  0x7f   : > { %v546_v53 = vld [vmem:[%s4108_s4 + $0x780] sm:$0xff]  ;;  %v3505_v61 = vcombine.high %v418_v51, %v422_v52  ;;  %2698 = vmatprep.subr.bf16.mxu1 %v3625_v50  ;;  %v3504_v3 = vcombine.low %v418_v51, %v422_v52  ;;  %v347_v51 = vld [vmem:[%s4108_s4 + $0x148] sm:$0xff] }
  0x80   : > { %v550_v56 = vld [vmem:[%s4108_s4 + $0x7a0] sm:$0xff]  ;;  %2699 = vmatpush1.bf16.msra.mxu1 %v3624_v58  ;;  %v351_v52 = vld [vmem:[%s4108_s4 + $0x168] sm:$0xff] }
  0x81   : > { %v3633_v62 = vcombine.high %v546_v53, %v550_v56  ;;  %v426_v63 = vld [vmem:[%s4108_s4 + $0x3c0] sm:$0xff]  ;;  %2659 = vmatprep.subr.bf16.mxu0 %v3505_v61  ;;  %v3632_v4 = vcombine.low %v546_v53, %v550_v56  ;;  %v3426_v56 = vcombine.low %v339_v43, %v343_v44  ;;  %v3435_v58 = vcombine.high %v347_v51, %v351_v52 }
  0x82   : > { %v430_v0 = vld [vmem:[%s4108_s4 + $0x3e0] sm:$0xff]  ;;  %2660 = vmatpush1.bf16.msra.mxu0 %v3504_v3 }
  0x83   : > { %v554_v1 = vld [vmem:[%s4108_s4 + $0x7c0] sm:$0xff]  ;;  %v3513_v5 = vcombine.high %v426_v63, %v430_v0  ;;  %2700 = vmatprep.subr.bf16.mxu1 %v3633_v62  ;;  %v3512_v11 = vcombine.low %v426_v63, %v430_v0  ;;  %v355_v63 = vld [vmem:[%s4108_s4 + $0x188] sm:$0xff] }
  0x84   : > { %v558_v2 = vld [vmem:[%s4108_s4 + $0x7e0] sm:$0xff]  ;;  %2701 = vmatpush1.bf16.msra.mxu1 %v3632_v4  ;;  %v359_v0 = vld [vmem:[%s4108_s4 + $0x1a8] sm:$0xff] }
  0x85   : > { %v3641_v6 = vcombine.high %v554_v1, %v558_v2  ;;  %v562_v7 = vld [vmem:[%s4108_s4 + $0x800] sm:$0xff]  ;;  %2661 = vmatprep.subr.bf16.mxu0 %v3513_v5  ;;  %v3640_v12 = vcombine.low %v554_v1, %v558_v2  ;;  %v3434_v2 = vcombine.low %v347_v51, %v351_v52  ;;  %v3443_v4 = vcombine.high %v355_v63, %v359_v0 }
  0x86   : > { %v566_v8 = vld [vmem:[%s4108_s4 + $0x820] sm:$0xff]  ;;  %2662 = vmatpush1.bf16.msra.mxu0 %v3512_v11  ;;  %v3442_v10 = vcombine.low %v355_v63, %v359_v0 }
  0x87   : > { %v3649_v13 = vcombine.high %v562_v7, %v566_v8  ;;  %2702 = vmatprep.subr.bf16.mxu1 %v3641_v6  ;;  %v570_v15 = vld [vmem:[%s4108_s4 + $0x840] sm:$0xff]  ;;  %v3648_v22 = vcombine.low %v562_v7, %v566_v8  ;;  %v363_v7 = vld [vmem:[%s4108_s4 + $0x1c8] sm:$0xff] }
  0x88   : > { %v574_v16 = vld [vmem:[%s4108_s4 + $0x860] sm:$0xff]  ;;  %2703 = vmatpush1.bf16.msra.mxu1 %v3640_v12  ;;  %v367_v8 = vld [vmem:[%s4108_s4 + $0x1e8] sm:$0xff] }
  0x89   : > { %2713 = vmatprep.subr.bf16.mxu0 %v3649_v13  ;;  %v3657_v24 = vcombine.high %v570_v15, %v574_v16  ;;  %2754 = vmatprep.subr.bf16.mxu1 %v3395_v14  ;;  %v578_v54 = vld [vmem:[%s4108_s4 + $0x880] sm:$0xff]  ;;  %v3656_v29 = vcombine.low %v570_v15, %v574_v16  ;;  %v3451_v12 = vcombine.high %v363_v7, %v367_v8  ;;  %v371_v15 = vld [vmem:[%s4108_s4 + $0x208] sm:$0xff] }
  0x8a   : > { %v582_v26 = vld [vmem:[%s4108_s4 + $0x8a0] sm:$0xff]  ;;  %2664 = vmatmul.mubr.bf16.vlgmr.msra.gmra.mrb[0].mxu0 %v4222_v17  ;;  %v375_v16 = vld [vmem:[%s4108_s4 + $0x228] sm:$0xff]  ;;  %v3450_v19 = vcombine.low %v363_v7, %v367_v8 }
  0x8b   : > { %2705 = vmatmul.mubr.bf16.vlgmr.msra.gmra.mrb[0].mxu1 %v4231_v21  ;;  %2714 = vmatpush1.bf16.msra.mxu0 %v3648_v22  ;;  %v3665_v31 = vcombine.high %v578_v54, %v582_v26  ;;  %v586_v33 = vld [vmem:[%s4108_s4 + $0x8c0] sm:$0xff]  ;;  %v3664_v37 = vcombine.low %v578_v54, %v582_v26  ;;  %v379_v54 = vld [vmem:[%s4108_s4 + $0x248] sm:$0xff]  ;;  %v3458_v28 = vcombine.low %v371_v15, %v375_v16 }
  0x8c   : > { %2755 = vmatpush1.bf16.msra.mxu1 %v3394_v23  ;;  %2715 = vmatprep.subr.bf16.mxu0 %v3657_v24  ;;  %v590_v34 = vld [vmem:[%s4108_s4 + $0x8e0] sm:$0xff]  ;;  %v3459_v23 = vcombine.high %v371_v15, %v375_v16  ;;  %v383_v26 = vld [vmem:[%s4108_s4 + $0x268] sm:$0xff] }
  0x8d   : > { %2756 = vmatprep.subr.bf16.mxu1 %v3403_v25  ;;  %2745 = vmatprep.mubr.bf16.mxu0 %v4237_v27  ;;  %v3673_v39 = vcombine.high %v586_v33, %v590_v34  ;;  %v594_v41 = vld [vmem:[%s4108_s4 + $0x900] sm:$0xff]  ;;  %v3672_v45 = vcombine.low %v586_v33, %v590_v34  ;;  %v387_v33 = vld [vmem:[%s4108_s4 + $0x288] sm:$0xff]  ;;  %v3466_v36 = vcombine.low %v379_v54, %v383_v26 }
  0x8e   : > { %2786 = vmatprep.mubr.bf16.mxu1 %v4172_v59  ;;  %v598_v42 = vld [vmem:[%s4108_s4 + $0x920] sm:$0xff]  ;;  %v391_v34 = vld [vmem:[%s4108_s4 + $0x2a8] sm:$0xff] }
  0x8f   : > { %2716 = vmatpush1.bf16.msra.mxu0 %v3656_v29  ;;  %v3681_v47 = vcombine.high %v594_v41, %v598_v42  ;;  %v602_v49 = vld [vmem:[%s4108_s4 + $0x940] sm:$0xff]  ;;  %v3680_v53 = vcombine.low %v594_v41, %v598_v42  ;;  %v395_v41 = vld [vmem:[%s4108_s4 + $0x2c8] sm:$0xff]  ;;  %v3474_v44 = vcombine.low %v387_v33, %v391_v34 }
  0x90   : > { %2757 = vmatpush1.bf16.msra.mxu1 %v3402_v30  ;;  %2717 = vmatprep.subr.bf16.mxu0 %v3665_v31  ;;  %v606_v50 = vld [vmem:[%s4108_s4 + $0x960] sm:$0xff]  ;;  %v3467_v30 = vcombine.high %v379_v54, %v383_v26  ;;  %v399_v42 = vld [vmem:[%s4108_s4 + $0x2e8] sm:$0xff] }
  0x91   : > { %2758 = vmatprep.subr.bf16.mxu1 %v3411_v32  ;;  %v3689_v57 = vcombine.high %v602_v49, %v606_v50  ;;  %v610_v61 = vld [vmem:[%s4108_s4 + $0x980] sm:$0xff]  ;;  %v3688_v1 = vcombine.low %v602_v49, %v606_v50  ;;  %v403_v49 = vld [vmem:[%s4108_s4 + $0x308] sm:$0xff]  ;;  %v3482_v52 = vcombine.low %v395_v41, %v399_v42 }
  0x92   : > { %v614_v62 = vld [vmem:[%s4108_s4 + $0x9a0] sm:$0xff]  ;;  %v407_v50 = vld [vmem:[%s4108_s4 + $0x328] sm:$0xff] }
  0x93   : > { %2718 = vmatpush1.bf16.msra.mxu0 %v3664_v37  ;;  %v3697_v3 = vcombine.high %v610_v61, %v614_v62  ;;  %v618_v5 = vld [vmem:[%s4108_s4 + $0x9c0] sm:$0xff]  ;;  %v3696_v9 = vcombine.low %v610_v61, %v614_v62  ;;  %v411_v61 = vld [vmem:[%s4108_s4 + $0x348] sm:$0xff]  ;;  %v3490_v0 = vcombine.low %v403_v49, %v407_v50 }
  0x94   : > { %2759 = vmatpush1.bf16.msra.mxu1 %v3410_v38  ;;  %2719 = vmatprep.subr.bf16.mxu0 %v3673_v39  ;;  %v622_v6 = vld [vmem:[%s4108_s4 + $0x9e0] sm:$0xff]  ;;  %v3475_v38 = vcombine.high %v387_v33, %v391_v34  ;;  %v415_v62 = vld [vmem:[%s4108_s4 + $0x368] sm:$0xff] }
  0x95   : > { %2760 = vmatprep.subr.bf16.mxu1 %v3419_v40  ;;  %v3705_v11 = vcombine.high %v618_v5, %v622_v6  ;;  %v626_v13 = vld [vmem:[%s4108_s4 + $0xa00] sm:$0xff]  ;;  %v3704_v18 = vcombine.low %v618_v5, %v622_v6  ;;  %v419_v5 = vld [vmem:[%s4108_s4 + $0x388] sm:$0xff]  ;;  %v3498_v8 = vcombine.low %v411_v61, %v415_v62 }
  0x96   : > { %v630_v14 = vld [vmem:[%s4108_s4 + $0xa20] sm:$0xff]  ;;  %v423_v6 = vld [vmem:[%s4108_s4 + $0x3a8] sm:$0xff] }
  0x97   : > { %2720 = vmatpush1.bf16.msra.mxu0 %v3672_v45  ;;  %v3713_v22 = vcombine.high %v626_v13, %v630_v14  ;;  %v634_v24 = vld [vmem:[%s4108_s4 + $0xa40] sm:$0xff]  ;;  %v3712_v55 = vcombine.low %v626_v13, %v630_v14  ;;  %v427_v13 = vld [vmem:[%s4108_s4 + $0x3c8] sm:$0xff]  ;;  %v3506_v16 = vcombine.low %v419_v5, %v423_v6 }
  0x98   : > { %2761 = vmatpush1.bf16.msra.mxu1 %v3418_v46  ;;  %2721 = vmatprep.subr.bf16.mxu0 %v3681_v47  ;;  %v638_v25 = vld [vmem:[%s4108_s4 + $0xa60] sm:$0xff]  ;;  %v3483_v46 = vcombine.high %v395_v41, %v399_v42  ;;  %v431_v14 = vld [vmem:[%s4108_s4 + $0x3e8] sm:$0xff] }
  0x99   : > { %2762 = vmatprep.subr.bf16.mxu1 %v3427_v48  ;;  %v3721_v29 = vcombine.high %v634_v24, %v638_v25  ;;  %v642_v31 = vld [vmem:[%s4108_s4 + $0xa80] sm:$0xff]  ;;  %v3720_v35 = vcombine.low %v634_v24, %v638_v25  ;;  %v563_v24 = vld [vmem:[%s4108_s4 + $0x808] sm:$0xff]  ;;  %v3514_v26 = vcombine.low %v427_v13, %v431_v14 }
  0x9a   : > { %v646_v32 = vld [vmem:[%s4108_s4 + $0xaa0] sm:$0xff]  ;;  %v567_v25 = vld [vmem:[%s4108_s4 + $0x828] sm:$0xff] }
  0x9b   : > { %2722 = vmatpush1.bf16.msra.mxu0 %v3680_v53  ;;  %v3729_v37 = vcombine.high %v642_v31, %v646_v32  ;;  %v650_v39 = vld [vmem:[%s4108_s4 + $0xac0] sm:$0xff]  ;;  %v3728_v43 = vcombine.low %v642_v31, %v646_v32  ;;  %v4305_v31 = vcombine.low %v4227_v20, %v4227_v20  ;;  %v571_v32 = vld [vmem:[%s4108_s4 + $0x848] sm:$0xff] }
  0x9c   : > { %2763 = vmatpush1.bf16.msra.mxu1 %v3426_v56  ;;  %2723 = vmatprep.subr.bf16.mxu0 %v3689_v57  ;;  %v654_v40 = vld [vmem:[%s4108_s4 + $0xae0] sm:$0xff]  ;;  %v3491_v56 = vcombine.high %v403_v49, %v407_v50  ;;  %v575_v33 = vld [vmem:[%s4108_s4 + $0x868] sm:$0xff] }
  0x9d   : > { %2764 = vmatprep.subr.bf16.mxu1 %v3435_v58  ;;  %v3737_v45 = vcombine.high %v650_v39, %v654_v40  ;;  %v658_v47 = vld [vmem:[%s4108_s4 + $0xb00] sm:$0xff]  ;;  %v3736_v51 = vcombine.low %v650_v39, %v654_v40  ;;  %v455_v39 = vld [vmem:[%s4108_s4 + $0x4a8] sm:$0xff]  ;;  %v3658_v42 = vcombine.low %v571_v32, %v575_v33 }
  0x9e   : > { %v662_v48 = vld [vmem:[%s4108_s4 + $0xb20] sm:$0xff]  ;;  %v579_v20 = vld [vmem:[%s4108_s4 + $0x888] sm:$0xff] }
  0x9f   : > { %2724 = vmatpush1.bf16.msra.mxu0 %v3688_v1  ;;  %v3745_v53 = vcombine.high %v658_v47, %v662_v48  ;;  %v666_v57 = vld [vmem:[%s4108_s4 + $0xb40] sm:$0xff]  ;;  %v3744_v63 = vcombine.low %v658_v47, %v662_v48  ;;  %v583_v40 = vld [vmem:[%s4108_s4 + $0x8a8] sm:$0xff] }
  0xa0   : > { %2765 = vmatpush1.bf16.msra.mxu1 %v3434_v2  ;;  %2725 = vmatprep.subr.bf16.mxu0 %v3697_v3  ;;  %v670_v58 = vld [vmem:[%s4108_s4 + $0xb60] sm:$0xff]  ;;  %v3499_v2 = vcombine.high %v411_v61, %v415_v62  ;;  %v587_v47 = vld [vmem:[%s4108_s4 + $0x8c8] sm:$0xff]  ;;  %v3666_v50 = vcombine.low %v579_v20, %v583_v40 }
  0xa1   : > { %2766 = vmatprep.subr.bf16.mxu1 %v3443_v4  ;;  %v3753_v1 = vcombine.high %v666_v57, %v670_v58  ;;  %v674_v3 = vld [vmem:[%s4108_s4 + $0xb80] sm:$0xff]  ;;  %v3752_v7 = vcombine.low %v666_v57, %v670_v58  ;;  %v591_v48 = vld [vmem:[%s4108_s4 + $0x8e8] sm:$0xff] }
  0xa2   : > { %v678_v4 = vld [vmem:[%s4108_s4 + $0xba0] sm:$0xff]  ;;  %v595_v57 = vld [vmem:[%s4108_s4 + $0x908] sm:$0xff]  ;;  %v3674_v62 = vcombine.low %v587_v47, %v591_v48 }
  0xa3   : > { %2726 = vmatpush1.bf16.msra.mxu0 %v3696_v9  ;;  %v3761_v9 = vcombine.high %v674_v3, %v678_v4  ;;  %v3760_v15 = vcombine.low %v674_v3, %v678_v4  ;;  %v599_v58 = vld [vmem:[%s4108_s4 + $0x928] sm:$0xff] }
  0xa4   : > { %2767 = vmatpush1.bf16.msra.mxu1 %v3442_v10  ;;  %2727 = vmatprep.subr.bf16.mxu0 %v3705_v11  ;;  %v3507_v10 = vcombine.high %v419_v5, %v423_v6  ;;  %v682_v11 = vld [vmem:[%s4108_s4 + $0xbc0] sm:$0xff]  ;;  %v603_v3 = vld [vmem:[%s4108_s4 + $0x948] sm:$0xff]  ;;  %v3682_v6 = vcombine.low %v595_v57, %v599_v58 }
  0xa5   : > { %2768 = vmatprep.subr.bf16.mxu1 %v3451_v12  ;;  %v686_v12 = vld [vmem:[%s4108_s4 + $0xbe0] sm:$0xff]  ;;  %v607_v4 = vld [vmem:[%s4108_s4 + $0x968] sm:$0xff] }
  0xa6   : > { %v3768_v54 = vcombine.low %v682_v11, %v686_v12 }
  0xa7   : > { %2728 = vmatpush1.bf16.msra.mxu0 %v3704_v18  ;;  %v3769_v18 = vcombine.high %v682_v11, %v686_v12  ;;  %v611_v11 = vld [vmem:[%s4108_s4 + $0x988] sm:$0xff] }
  0xa8   : > { %2769 = vmatpush1.bf16.msra.mxu1 %v3450_v19  ;;  %2729 = vmatprep.subr.bf16.mxu0 %v3713_v22  ;;  %v3515_v19 = vcombine.high %v427_v13, %v431_v14  ;;  %v435_v22 = vld [vmem:[%s4108_s4 + $0x408] sm:$0xff]  ;;  %v3690_v14 = vcombine.low %v603_v3, %v607_v4 }
  0xa9   : > { %2770 = vmatprep.subr.bf16.mxu1 %v3459_v23  ;;  %v439_v23 = vld [vmem:[%s4108_s4 + $0x428] sm:$0xff] }
  0xaa   : > { %v3522_v34 = vcombine.low %v435_v22, %v439_v23  ;;  %v615_v12 = vld [vmem:[%s4108_s4 + $0x9a8] sm:$0xff] }
  0xab   : > { %2730 = vmatpush1.bf16.msra.mxu0 %v3712_v55  ;;  %v3523_v55 = vcombine.high %v435_v22, %v439_v23  ;;  %v619_v22 = vld [vmem:[%s4108_s4 + $0x9c8] sm:$0xff] }
  0xac   : > { %2771 = vmatpush1.bf16.msra.mxu1 %v3458_v28  ;;  %2731 = vmatprep.subr.bf16.mxu0 %v3721_v29  ;;  %v3651_v28 = vcombine.high %v563_v24, %v567_v25  ;;  %v443_v29 = vld [vmem:[%s4108_s4 + $0x448] sm:$0xff] }
  0xad   : > { %2772 = vmatprep.subr.bf16.mxu1 %v3467_v30  ;;  %v447_v30 = vld [vmem:[%s4108_s4 + $0x468] sm:$0xff] }
  0xae   : > { %v3530_v41 = vcombine.low %v443_v29, %v447_v30  ;;  %v623_v23 = vld [vmem:[%s4108_s4 + $0x9e8] sm:$0xff] }
  0xaf   : > { %2732 = vmatpush1.bf16.msra.mxu0 %v3720_v35  ;;  %v3650_v35 = vcombine.low %v563_v24, %v567_v25  ;;  %v3698_v25 = vcombine.low %v611_v11, %v615_v12 }
  0xb0   : > { %2773 = vmatpush1.bf16.msra.mxu1 %v3466_v36  ;;  %2733 = vmatprep.subr.bf16.mxu0 %v3729_v37  ;;  %v3531_v36 = vcombine.high %v443_v29, %v447_v30  ;;  %v3659_v37 = vcombine.high %v571_v32, %v575_v33  ;;  %v627_v29 = vld [vmem:[%s4108_s4 + $0xa08] sm:$0xff]  ;;  %v3706_v33 = vcombine.low %v619_v22, %v623_v23 }
  0xb1   : > { %2774 = vmatprep.subr.bf16.mxu1 %v3475_v38  ;;  %v451_v38 = vld [vmem:[%s4108_s4 + $0x488] sm:$0xff] }
  0xb2   : > { %v3538_v49 = vcombine.low %v451_v38, %v455_v39  ;;  %v631_v30 = vld [vmem:[%s4108_s4 + $0xa28] sm:$0xff] }
  0xb3   : > { %2734 = vmatpush1.bf16.msra.mxu0 %v3728_v43  ;;  %v3539_v43 = vcombine.high %v451_v38, %v455_v39  ;;  %v635_v38 = vld [vmem:[%s4108_s4 + $0xa48] sm:$0xff] }
  0xb4   : > { %2775 = vmatpush1.bf16.msra.mxu1 %v3474_v44  ;;  %2735 = vmatprep.subr.bf16.mxu0 %v3737_v45  ;;  %v3667_v44 = vcombine.high %v579_v20, %v583_v40  ;;  %v459_v45 = vld [vmem:[%s4108_s4 + $0x4c8] sm:$0xff]  ;;  %v3714_v40 = vcombine.low %v627_v29, %v631_v30 }
  0xb5   : > { %2776 = vmatprep.subr.bf16.mxu1 %v3483_v46  ;;  %v463_v46 = vld [vmem:[%s4108_s4 + $0x4e8] sm:$0xff] }
  0xb6   : > { %v3546_v61 = vcombine.low %v459_v45, %v463_v46  ;;  %v639_v39 = vld [vmem:[%s4108_s4 + $0xa68] sm:$0xff] }
  0xb7   : > { %2736 = vmatpush1.bf16.msra.mxu0 %v3736_v51  ;;  %v3547_v51 = vcombine.high %v459_v45, %v463_v46  ;;  %v643_v45 = vld [vmem:[%s4108_s4 + $0xa88] sm:$0xff] }
  0xb8   : > { %2777 = vmatpush1.bf16.msra.mxu1 %v3482_v52  ;;  %2737 = vmatprep.subr.bf16.mxu0 %v3745_v53  ;;  %v3675_v52 = vcombine.high %v587_v47, %v591_v48  ;;  %v467_v53 = vld [vmem:[%s4108_s4 + $0x508] sm:$0xff]  ;;  %v3722_v48 = vcombine.low %v635_v38, %v639_v39 }
  0xb9   : > { %2778 = vmatprep.subr.bf16.mxu1 %v3491_v56  ;;  %v471_v56 = vld [vmem:[%s4108_s4 + $0x528] sm:$0xff] }
  0xba   : > { %v3554_v5 = vcombine.low %v467_v53, %v471_v56  ;;  %v647_v46 = vld [vmem:[%s4108_s4 + $0xaa8] sm:$0xff] }
  0xbb   : > { %2738 = vmatpush1.bf16.msra.mxu0 %v3744_v63  ;;  %v3555_v63 = vcombine.high %v467_v53, %v471_v56  ;;  %v651_v53 = vld [vmem:[%s4108_s4 + $0xac8] sm:$0xff] }
  0xbc   : > { %2779 = vmatpush1.bf16.msra.mxu1 %v3490_v0  ;;  %2739 = vmatprep.subr.bf16.mxu0 %v3753_v1  ;;  %v3683_v0 = vcombine.high %v595_v57, %v599_v58  ;;  %v475_v1 = vld [vmem:[%s4108_s4 + $0x548] sm:$0xff]  ;;  %v3730_v58 = vcombine.low %v643_v45, %v647_v46 }
  0xbd   : > { %2780 = vmatprep.subr.bf16.mxu1 %v3499_v2  ;;  %v479_v2 = vld [vmem:[%s4108_s4 + $0x568] sm:$0xff] }
  0xbe   : > { %v3562_v13 = vcombine.low %v475_v1, %v479_v2  ;;  %v655_v56 = vld [vmem:[%s4108_s4 + $0xae8] sm:$0xff] }
  0xbf   : > { %2740 = vmatpush1.bf16.msra.mxu0 %v3752_v7  ;;  %v3563_v7 = vcombine.high %v475_v1, %v479_v2  ;;  %v659_v1 = vld [vmem:[%s4108_s4 + $0xb08] sm:$0xff] }
  0xc0   : > { %2781 = vmatpush1.bf16.msra.mxu1 %v3498_v8  ;;  %2741 = vmatprep.subr.bf16.mxu0 %v3761_v9  ;;  %v3691_v8 = vcombine.high %v603_v3, %v607_v4  ;;  %v483_v9 = vld [vmem:[%s4108_s4 + $0x588] sm:$0xff]  ;;  %v3738_v4 = vcombine.low %v651_v53, %v655_v56 }
  0xc1   : > { %2782 = vmatprep.subr.bf16.mxu1 %v3507_v10  ;;  %v487_v10 = vld [vmem:[%s4108_s4 + $0x5a8] sm:$0xff] }
  0xc2   : > { %v3570_v24 = vcombine.low %v483_v9, %v487_v10  ;;  %v663_v2 = vld [vmem:[%s4108_s4 + $0xb28] sm:$0xff] }
  0xc3   : > { %2742 = vmatpush1.bf16.msra.mxu0 %v3760_v15  ;;  %v3571_v15 = vcombine.high %v483_v9, %v487_v10  ;;  %v667_v9 = vld [vmem:[%s4108_s4 + $0xb48] sm:$0xff] }
  0xc4   : > { %2783 = vmatpush1.bf16.msra.mxu1 %v3506_v16  ;;  %2743 = vmatprep.subr.bf16.mxu0 %v3769_v18  ;;  %v3699_v16 = vcombine.high %v611_v11, %v615_v12  ;;  %v491_v18 = vld [vmem:[%s4108_s4 + $0x5c8] sm:$0xff]  ;;  %v3746_v12 = vcombine.low %v659_v1, %v663_v2 }
  0xc5   : > { %2784 = vmatprep.subr.bf16.mxu1 %v3515_v19  ;;  %v495_v19 = vld [vmem:[%s4108_s4 + $0x5e8] sm:$0xff] }
  0xc6   : > { %v3578_v32 = vcombine.low %v491_v18, %v495_v19  ;;  %v671_v10 = vld [vmem:[%s4108_s4 + $0xb68] sm:$0xff] }
  0xc7   : > { %2744 = vmatpush1.bf16.msra.mxu0 %v3768_v54  ;;  %v3579_v54 = vcombine.high %v491_v18, %v495_v19  ;;  %v675_v18 = vld [vmem:[%s4108_s4 + $0xb88] sm:$0xff] }
  0xc8   : > { %2785 = vmatpush1.bf16.msra.mxu1 %v3514_v26  ;;  %2795 = vmatprep.subr.bf16.mxu0 %v3523_v55  ;;  %v3707_v26 = vcombine.high %v619_v22, %v623_v23  ;;  %v499_v55 = vld [vmem:[%s4108_s4 + $0x608] sm:$0xff]  ;;  %v3754_v23 = vcombine.low %v667_v9, %v671_v10 }
  0xc9   : > { %2836 = vmatprep.subr.bf16.mxu1 %v3651_v28  ;;  %v503_v28 = vld [vmem:[%s4108_s4 + $0x628] sm:$0xff] }
  0xca   : > { %2746 = vmatmul.mubr.bf16.vlgmr.msra.gmra.mrb[4].mxu0 %v4305_v31  ;;  %v3586_v20 = vcombine.low %v499_v55, %v503_v28  ;;  %v679_v19 = vld [vmem:[%s4108_s4 + $0xba8] sm:$0xff] }
  0xcb   : > { %2787 = vmatmul.mubr.bf16.vlgmr.msra.gmra.mrb[4].mxu1 %v4222_v17  ;;  %2796 = vmatpush1.bf16.msra.mxu0 %v3522_v34  ;;  %v3587_v34 = vcombine.high %v499_v55, %v503_v28  ;;  %v683_v55 = vld [vmem:[%s4108_s4 + $0xbc8] sm:$0xff] }
  0xcc   : > { %2837 = vmatpush1.bf16.msra.mxu1 %v3650_v35  ;;  %2797 = vmatprep.subr.bf16.mxu0 %v3531_v36  ;;  %v3715_v35 = vcombine.high %v627_v29, %v631_v30  ;;  %v507_v36 = vld [vmem:[%s4108_s4 + $0x648] sm:$0xff]  ;;  %v3762_v30 = vcombine.low %v675_v18, %v679_v19 }
  0xcd   : > { %2838 = vmatprep.subr.bf16.mxu1 %v3659_v37  ;;  %2827 = vmatprep.mubr.bf16.mxu0 %v4176_v60  ;;  %v511_v37 = vld [vmem:[%s4108_s4 + $0x668] sm:$0xff] }
  0xce   : > { %2868 = vmatprep.mubr.bf16.mxu1 %v4237_v27  ;;  %v3594_v47 = vcombine.low %v507_v36, %v511_v37  ;;  %v687_v28 = vld [vmem:[%s4108_s4 + $0xbe8] sm:$0xff] }
  0xcf   : > { %2798 = vmatpush1.bf16.msra.mxu0 %v3530_v41  ;;  %v3595_v41 = vcombine.high %v507_v36, %v511_v37  ;;  %v436_v36 = vld [vmem:[%s4108_s4 + $0x410] sm:$0xff] }
  0xd0   : > { %2839 = vmatpush1.bf16.msra.mxu1 %v3658_v42  ;;  %2799 = vmatprep.subr.bf16.mxu0 %v3539_v43  ;;  %v3723_v42 = vcombine.high %v635_v38, %v639_v39  ;;  %v515_v43 = vld [vmem:[%s4108_s4 + $0x688] sm:$0xff]  ;;  %v440_v37 = vld [vmem:[%s4108_s4 + $0x430] sm:$0xff]  ;;  %v3770_v39 = vcombine.low %v683_v55, %v687_v28 }
  0xd1   : > { %2840 = vmatprep.subr.bf16.mxu1 %v3667_v44  ;;  %v519_v44 = vld [vmem:[%s4108_s4 + $0x6a8] sm:$0xff] }
  0xd2   : > { %v3602_v57 = vcombine.low %v515_v43, %v519_v44 }
  0xd3   : > { %2800 = vmatpush1.bf16.msra.mxu0 %v3538_v49  ;;  %v3603_v49 = vcombine.high %v515_v43, %v519_v44  ;;  %v444_v43 = vld [vmem:[%s4108_s4 + $0x450] sm:$0xff] }
  0xd4   : > { %2841 = vmatpush1.bf16.msra.mxu1 %v3666_v50  ;;  %2801 = vmatprep.subr.bf16.mxu0 %v3547_v51  ;;  %v3731_v50 = vcombine.high %v643_v45, %v647_v46  ;;  %v523_v51 = vld [vmem:[%s4108_s4 + $0x6c8] sm:$0xff]  ;;  %v448_v44 = vld [vmem:[%s4108_s4 + $0x470] sm:$0xff]  ;;  %v3524_v46 = vcombine.low %v436_v36, %v440_v37 }
  0xd5   : > { %2842 = vmatprep.subr.bf16.mxu1 %v3675_v52  ;;  %v527_v52 = vld [vmem:[%s4108_s4 + $0x6e8] sm:$0xff] }
  0xd6   : > { %v3610_v3 = vcombine.low %v523_v51, %v527_v52 }
  0xd7   : > { %2802 = vmatpush1.bf16.msra.mxu0 %v3546_v61  ;;  %v3611_v61 = vcombine.high %v523_v51, %v527_v52  ;;  %v452_v51 = vld [vmem:[%s4108_s4 + $0x490] sm:$0xff] }
  0xd8   : > { %2843 = vmatpush1.bf16.msra.mxu1 %v3674_v62  ;;  %2803 = vmatprep.subr.bf16.mxu0 %v3555_v63  ;;  %v3739_v62 = vcombine.high %v651_v53, %v655_v56  ;;  %v531_v63 = vld [vmem:[%s4108_s4 + $0x708] sm:$0xff]  ;;  %v456_v52 = vld [vmem:[%s4108_s4 + $0x4b0] sm:$0xff]  ;;  %v3532_v56 = vcombine.low %v444_v43, %v448_v44 }
  0xd9   : > { %2844 = vmatprep.subr.bf16.mxu1 %v3683_v0  ;;  %v535_v0 = vld [vmem:[%s4108_s4 + $0x728] sm:$0xff] }
  0xda   : > { %v3618_v11 = vcombine.low %v531_v63, %v535_v0 }
  0xdb   : > { %2804 = vmatpush1.bf16.msra.mxu0 %v3554_v5  ;;  %v3619_v5 = vcombine.high %v531_v63, %v535_v0  ;;  %v460_v63 = vld [vmem:[%s4108_s4 + $0x4d0] sm:$0xff] }
  0xdc   : > { %2845 = vmatpush1.bf16.msra.mxu1 %v3682_v6  ;;  %2805 = vmatprep.subr.bf16.mxu0 %v3563_v7  ;;  %v3747_v6 = vcombine.high %v659_v1, %v663_v2  ;;  %v539_v7 = vld [vmem:[%s4108_s4 + $0x748] sm:$0xff]  ;;  %v464_v0 = vld [vmem:[%s4108_s4 + $0x4f0] sm:$0xff]  ;;  %v3540_v2 = vcombine.low %v452_v51, %v456_v52 }
  0xdd   : > { %2846 = vmatprep.subr.bf16.mxu1 %v3691_v8  ;;  %v543_v8 = vld [vmem:[%s4108_s4 + $0x768] sm:$0xff] }
  0xde   : > { %v3626_v22 = vcombine.low %v539_v7, %v543_v8 }
  0xdf   : > { %2806 = vmatpush1.bf16.msra.mxu0 %v3562_v13  ;;  %v3627_v13 = vcombine.high %v539_v7, %v543_v8  ;;  %v468_v7 = vld [vmem:[%s4108_s4 + $0x510] sm:$0xff] }
  0xe0   : > { %2847 = vmatpush1.bf16.msra.mxu1 %v3690_v14  ;;  %2807 = vmatprep.subr.bf16.mxu0 %v3571_v15  ;;  %v3755_v14 = vcombine.high %v667_v9, %v671_v10  ;;  %v547_v15 = vld [vmem:[%s4108_s4 + $0x788] sm:$0xff]  ;;  %v472_v8 = vld [vmem:[%s4108_s4 + $0x530] sm:$0xff]  ;;  %v3548_v10 = vcombine.low %v460_v63, %v464_v0 }
  0xe1   : > { %2848 = vmatprep.subr.bf16.mxu1 %v3699_v16  ;;  %v551_v16 = vld [vmem:[%s4108_s4 + $0x7a8] sm:$0xff] }
  0xe2   : > { %v3634_v29 = vcombine.low %v547_v15, %v551_v16 }
  0xe3   : > { %2808 = vmatpush1.bf16.msra.mxu0 %v3570_v24  ;;  %v3635_v24 = vcombine.high %v547_v15, %v551_v16  ;;  %v476_v15 = vld [vmem:[%s4108_s4 + $0x550] sm:$0xff] }
  0xe4   : > { %2849 = vmatpush1.bf16.msra.mxu1 %v3698_v25  ;;  %2809 = vmatprep.subr.bf16.mxu0 %v3579_v54  ;;  %v3763_v25 = vcombine.high %v675_v18, %v679_v19  ;;  %v555_v54 = vld [vmem:[%s4108_s4 + $0x7c8] sm:$0xff]  ;;  %v480_v16 = vld [vmem:[%s4108_s4 + $0x570] sm:$0xff]  ;;  %v3556_v19 = vcombine.low %v468_v7, %v472_v8 }
  0xe5   : > { %2850 = vmatprep.subr.bf16.mxu1 %v3707_v26  ;;  %v559_v26 = vld [vmem:[%s4108_s4 + $0x7e8] sm:$0xff] }
  0xe6   : > { %v3642_v38 = vcombine.low %v555_v54, %v559_v26 }
  0xe7   : > { %2810 = vmatpush1.bf16.msra.mxu0 %v3578_v32  ;;  %v3643_v32 = vcombine.high %v555_v54, %v559_v26  ;;  %v484_v54 = vld [vmem:[%s4108_s4 + $0x590] sm:$0xff] }
  0xe8   : > { %2851 = vmatpush1.bf16.msra.mxu1 %v3706_v33  ;;  %2811 = vmatprep.subr.bf16.mxu0 %v3587_v34  ;;  %v3771_v33 = vcombine.high %v683_v55, %v687_v28  ;;  %v308_v34 = vld [vmem:[%s4108_s4 + $0x10] sm:$0xff]  ;;  %v3564_v28 = vcombine.low %v476_v15, %v480_v16 }
  0xe9   : > { %2852 = vmatprep.subr.bf16.mxu1 %v3715_v35  ;;  %v312_v35 = vld [vmem:[%s4108_s4 + $0x30] sm:$0xff] }
  0xea   : > { %v3396_v45 = vcombine.low %v308_v34, %v312_v35  ;;  %v488_v26 = vld [vmem:[%s4108_s4 + $0x5b0] sm:$0xff] }
  0xeb   : > { %2812 = vmatpush1.bf16.msra.mxu0 %v3586_v20  ;;  %v3397_v20 = vcombine.high %v308_v34, %v312_v35  ;;  %v492_v34 = vld [vmem:[%s4108_s4 + $0x5d0] sm:$0xff] }
  0xec   : > { %2853 = vmatpush1.bf16.msra.mxu1 %v3714_v40  ;;  %2813 = vmatprep.subr.bf16.mxu0 %v3595_v41  ;;  %v3525_v40 = vcombine.high %v436_v36, %v440_v37  ;;  %v316_v41 = vld [vmem:[%s4108_s4 + $0x50] sm:$0xff]  ;;  %v3572_v37 = vcombine.low %v484_v54, %v488_v26 }
  0xed   : > { %2854 = vmatprep.subr.bf16.mxu1 %v3723_v42  ;;  %v320_v42 = vld [vmem:[%s4108_s4 + $0x70] sm:$0xff] }
  0xee   : > { %v3404_v53 = vcombine.low %v316_v41, %v320_v42  ;;  %v496_v35 = vld [vmem:[%s4108_s4 + $0x5f0] sm:$0xff] }
  0xef   : > { %2814 = vmatpush1.bf16.msra.mxu0 %v3594_v47  ;;  %v3405_v47 = vcombine.high %v316_v41, %v320_v42  ;;  %v500_v41 = vld [vmem:[%s4108_s4 + $0x610] sm:$0xff] }
  0xf0   : > { %2855 = vmatpush1.bf16.msra.mxu1 %v3722_v48  ;;  %2815 = vmatprep.subr.bf16.mxu0 %v3603_v49  ;;  %v3533_v48 = vcombine.high %v444_v43, %v448_v44  ;;  %v324_v49 = vld [vmem:[%s4108_s4 + $0x90] sm:$0xff]  ;;  %v3580_v44 = vcombine.low %v492_v34, %v496_v35 }
  0xf1   : > { %2856 = vmatprep.subr.bf16.mxu1 %v3731_v50  ;;  %v328_v50 = vld [vmem:[%s4108_s4 + $0xb0] sm:$0xff] }
  0xf2   : > { %v3412_v1 = vcombine.low %v324_v49, %v328_v50  ;;  %v504_v42 = vld [vmem:[%s4108_s4 + $0x630] sm:$0xff] }
  0xf3   : > { %2816 = vmatpush1.bf16.msra.mxu0 %v3602_v57  ;;  %v3413_v57 = vcombine.high %v324_v49, %v328_v50  ;;  %v508_v49 = vld [vmem:[%s4108_s4 + $0x650] sm:$0xff] }
  0xf4   : > { %2857 = vmatpush1.bf16.msra.mxu1 %v3730_v58  ;;  %2817 = vmatprep.subr.bf16.mxu0 %v3611_v61  ;;  %v3541_v58 = vcombine.high %v452_v51, %v456_v52  ;;  %v332_v61 = vld [vmem:[%s4108_s4 + $0xd0] sm:$0xff]  ;;  %v3588_v52 = vcombine.low %v500_v41, %v504_v42 }
  0xf5   : > { %2858 = vmatprep.subr.bf16.mxu1 %v3739_v62  ;;  %v336_v62 = vld [vmem:[%s4108_s4 + $0xf0] sm:$0xff] }
  0xf6   : > { %v3420_v9 = vcombine.low %v332_v61, %v336_v62  ;;  %v512_v50 = vld [vmem:[%s4108_s4 + $0x670] sm:$0xff] }
  0xf7   : > { %2818 = vmatpush1.bf16.msra.mxu0 %v3610_v3  ;;  %v3421_v3 = vcombine.high %v332_v61, %v336_v62  ;;  %v516_v61 = vld [vmem:[%s4108_s4 + $0x690] sm:$0xff] }
  0xf8   : > { %2859 = vmatpush1.bf16.msra.mxu1 %v3738_v4  ;;  %2819 = vmatprep.subr.bf16.mxu0 %v3619_v5  ;;  %v3549_v4 = vcombine.high %v460_v63, %v464_v0  ;;  %v340_v5 = vld [vmem:[%s4108_s4 + $0x110] sm:$0xff]  ;;  %v3596_v0 = vcombine.low %v508_v49, %v512_v50 }
  0xf9   : > { %2860 = vmatprep.subr.bf16.mxu1 %v3747_v6  ;;  %v344_v6 = vld [vmem:[%s4108_s4 + $0x130] sm:$0xff] }
  0xfa   : > { %v3428_v18 = vcombine.low %v340_v5, %v344_v6  ;;  %v520_v62 = vld [vmem:[%s4108_s4 + $0x6b0] sm:$0xff] }
  0xfb   : > { %2820 = vmatpush1.bf16.msra.mxu0 %v3618_v11  ;;  %v3429_v11 = vcombine.high %v340_v5, %v344_v6  ;;  %v524_v5 = vld [vmem:[%s4108_s4 + $0x6d0] sm:$0xff] }
  0xfc   : > { %2861 = vmatpush1.bf16.msra.mxu1 %v3746_v12  ;;  %2821 = vmatprep.subr.bf16.mxu0 %v3627_v13  ;;  %v3557_v12 = vcombine.high %v468_v7, %v472_v8  ;;  %v348_v13 = vld [vmem:[%s4108_s4 + $0x150] sm:$0xff]  ;;  %v3604_v8 = vcombine.low %v516_v61, %v520_v62 }
  0xfd   : > { %2862 = vmatprep.subr.bf16.mxu1 %v3755_v14  ;;  %v352_v14 = vld [vmem:[%s4108_s4 + $0x170] sm:$0xff] }
  0xfe   : > { %v3436_v55 = vcombine.low %v348_v13, %v352_v14  ;;  %v528_v6 = vld [vmem:[%s4108_s4 + $0x6f0] sm:$0xff] }
  0xff   : > { %2822 = vmatpush1.bf16.msra.mxu0 %v3626_v22  ;;  %v3437_v22 = vcombine.high %v348_v13, %v352_v14  ;;  %v532_v13 = vld [vmem:[%s4108_s4 + $0x710] sm:$0xff] }
 0x100   : > { %2863 = vmatpush1.bf16.msra.mxu1 %v3754_v23  ;;  %2823 = vmatprep.subr.bf16.mxu0 %v3635_v24  ;;  %v3565_v23 = vcombine.high %v476_v15, %v480_v16  ;;  %v356_v24 = vld [vmem:[%s4108_s4 + $0x190] sm:$0xff]  ;;  %v3612_v16 = vcombine.low %v524_v5, %v528_v6 }
 0x101   : > { %2864 = vmatprep.subr.bf16.mxu1 %v3763_v25  ;;  %v360_v25 = vld [vmem:[%s4108_s4 + $0x1b0] sm:$0xff] }
 0x102   : > { %v3444_v36 = vcombine.low %v356_v24, %v360_v25  ;;  %v536_v14 = vld [vmem:[%s4108_s4 + $0x730] sm:$0xff] }
 0x103   : > { %2824 = vmatpush1.bf16.msra.mxu0 %v3634_v29  ;;  %v3445_v29 = vcombine.high %v356_v24, %v360_v25  ;;  %v540_v24 = vld [vmem:[%s4108_s4 + $0x750] sm:$0xff] }
 0x104   : > { %2865 = vmatpush1.bf16.msra.mxu1 %v3762_v30  ;;  %2825 = vmatprep.subr.bf16.mxu0 %v3643_v32  ;;  %v3573_v30 = vcombine.high %v484_v54, %v488_v26  ;;  %v364_v32 = vld [vmem:[%s4108_s4 + $0x1d0] sm:$0xff]  ;;  %v3620_v26 = vcombine.low %v532_v13, %v536_v14 }
 0x105   : > { %2866 = vmatprep.subr.bf16.mxu1 %v3771_v33  ;;  %v368_v33 = vld [vmem:[%s4108_s4 + $0x1f0] sm:$0xff] }
 0x106   : > { %v3452_v43 = vcombine.low %v364_v32, %v368_v33  ;;  %v544_v25 = vld [vmem:[%s4108_s4 + $0x770] sm:$0xff] }
 0x107   : > { %2826 = vmatpush1.bf16.msra.mxu0 %v3642_v38  ;;  %v3453_v38 = vcombine.high %v364_v32, %v368_v33  ;;  %v548_v32 = vld [vmem:[%s4108_s4 + $0x790] sm:$0xff] }
 0x108   : > { %2867 = vmatpush1.bf16.msra.mxu1 %v3770_v39  ;;  %2877 = vmatprep.subr.bf16.mxu0 %v3397_v20  ;;  %v3581_v39 = vcombine.high %v492_v34, %v496_v35  ;;  %v372_v20 = vld [vmem:[%s4108_s4 + $0x210] sm:$0xff]  ;;  %v3628_v35 = vcombine.low %v540_v24, %v544_v25 }
 0x109   : > { %2918 = vmatprep.subr.bf16.mxu1 %v3525_v40  ;;  %v376_v40 = vld [vmem:[%s4108_s4 + $0x230] sm:$0xff] }
 0x10a   : > { %2828 = vmatmul.mubr.bf16.vlgmr.msra.gmra.mrb[8].mxu0 %v4231_v21  ;;  %v3460_v51 = vcombine.low %v372_v20, %v376_v40  ;;  %v552_v33 = vld [vmem:[%s4108_s4 + $0x7b0] sm:$0xff] }
 0x10b   : > { %2869 = vmatmul.mubr.bf16.vlgmr.msra.gmra.mrb[8].mxu1 %v4305_v31  ;;  %2878 = vmatpush1.bf16.msra.mxu0 %v3396_v45  ;;  %v3461_v45 = vcombine.high %v372_v20, %v376_v40  ;;  %v556_v20 = vld [vmem:[%s4108_s4 + $0x7d0] sm:$0xff] }
 0x10c   : > { %2919 = vmatpush1.bf16.msra.mxu1 %v3524_v46  ;;  %2879 = vmatprep.subr.bf16.mxu0 %v3405_v47  ;;  %v3589_v46 = vcombine.high %v500_v41, %v504_v42  ;;  %v380_v47 = vld [vmem:[%s4108_s4 + $0x250] sm:$0xff]  ;;  %v3636_v42 = vcombine.low %v548_v32, %v552_v33 }
 0x10d   : > { %2920 = vmatprep.subr.bf16.mxu1 %v3533_v48  ;;  %2909 = vmatprep.mubr.bf16.mxu0 %v4172_v59  ;;  %v384_v48 = vld [vmem:[%s4108_s4 + $0x270] sm:$0xff] }
 0x10e   : > { %2950 = vmatprep.mubr.bf16.mxu1 %v4176_v60  ;;  %v3468_v63 = vcombine.low %v380_v47, %v384_v48  ;;  %v560_v40 = vld [vmem:[%s4108_s4 + $0x7f0] sm:$0xff] }
 0x10f   : > { %2880 = vmatpush1.bf16.msra.mxu0 %v3404_v53  ;;  %v3469_v53 = vcombine.high %v380_v47, %v384_v48  ;;  %v309_v47 = vld [vmem:[%s4108_s4 + $0x18] sm:$0xff] }
 0x110   : > { %2921 = vmatpush1.bf16.msra.mxu1 %v3532_v56  ;;  %2881 = vmatprep.subr.bf16.mxu0 %v3413_v57  ;;  %v3597_v56 = vcombine.high %v508_v49, %v512_v50  ;;  %v388_v57 = vld [vmem:[%s4108_s4 + $0x290] sm:$0xff]  ;;  %v313_v48 = vld [vmem:[%s4108_s4 + $0x38] sm:$0xff]  ;;  %v3644_v50 = vcombine.low %v556_v20, %v560_v40 }
 0x111   : > { %2922 = vmatprep.subr.bf16.mxu1 %v3541_v58  ;;  %v392_v58 = vld [vmem:[%s4108_s4 + $0x2b0] sm:$0xff] }
 0x112   : > { %v3476_v7 = vcombine.low %v388_v57, %v392_v58 }
 0x113   : > { %2882 = vmatpush1.bf16.msra.mxu0 %v3412_v1  ;;  %v3477_v1 = vcombine.high %v388_v57, %v392_v58  ;;  %v317_v57 = vld [vmem:[%s4108_s4 + $0x58] sm:$0xff] }
 0x114   : > { %2923 = vmatpush1.bf16.msra.mxu1 %v3540_v2  ;;  %2883 = vmatprep.subr.bf16.mxu0 %v3421_v3  ;;  %v3605_v2 = vcombine.high %v516_v61, %v520_v62  ;;  %v396_v3 = vld [vmem:[%s4108_s4 + $0x2d0] sm:$0xff]  ;;  %v321_v58 = vld [vmem:[%s4108_s4 + $0x78] sm:$0xff]  ;;  %v3398_v62 = vcombine.low %v309_v47, %v313_v48 }
 0x115   : > { %2924 = vmatprep.subr.bf16.mxu1 %v3549_v4  ;;  %v400_v4 = vld [vmem:[%s4108_s4 + $0x2f0] sm:$0xff] }
 0x116   : > { %v3484_v15 = vcombine.low %v396_v3, %v400_v4 }
 0x117   : > { %2884 = vmatpush1.bf16.msra.mxu0 %v3420_v9  ;;  %v3485_v9 = vcombine.high %v396_v3, %v400_v4  ;;  %v325_v3 = vld [vmem:[%s4108_s4 + $0x98] sm:$0xff] }
 0x118   : > { %2925 = vmatpush1.bf16.msra.mxu1 %v3548_v10  ;;  %2885 = vmatprep.subr.bf16.mxu0 %v3429_v11  ;;  %v3613_v10 = vcombine.high %v524_v5, %v528_v6  ;;  %v404_v11 = vld [vmem:[%s4108_s4 + $0x310] sm:$0xff]  ;;  %v329_v4 = vld [vmem:[%s4108_s4 + $0xb8] sm:$0xff]  ;;  %v3406_v6 = vcombine.low %v317_v57, %v321_v58 }
 0x119   : > { %2926 = vmatprep.subr.bf16.mxu1 %v3557_v12  ;;  %v408_v12 = vld [vmem:[%s4108_s4 + $0x330] sm:$0xff] }
 0x11a   : > { %v3492_v54 = vcombine.low %v404_v11, %v408_v12 }
 0x11b   : > { %2886 = vmatpush1.bf16.msra.mxu0 %v3428_v18  ;;  %v3493_v18 = vcombine.high %v404_v11, %v408_v12  ;;  %v333_v11 = vld [vmem:[%s4108_s4 + $0xd8] sm:$0xff] }
 0x11c   : > { %2927 = vmatpush1.bf16.msra.mxu1 %v3556_v19  ;;  %2887 = vmatprep.subr.bf16.mxu0 %v3437_v22  ;;  %v3621_v19 = vcombine.high %v532_v13, %v536_v14  ;;  %v412_v22 = vld [vmem:[%s4108_s4 + $0x350] sm:$0xff]  ;;  %v337_v12 = vld [vmem:[%s4108_s4 + $0xf8] sm:$0xff]  ;;  %v3414_v14 = vcombine.low %v325_v3, %v329_v4 }
 0x11d   : > { %2928 = vmatprep.subr.bf16.mxu1 %v3565_v23  ;;  %v416_v23 = vld [vmem:[%s4108_s4 + $0x370] sm:$0xff] }
 0x11e   : > { %v3500_v34 = vcombine.low %v412_v22, %v416_v23 }
 0x11f   : > { %2888 = vmatpush1.bf16.msra.mxu0 %v3436_v55  ;;  %v3501_v55 = vcombine.high %v412_v22, %v416_v23  ;;  %v341_v22 = vld [vmem:[%s4108_s4 + $0x118] sm:$0xff] }
 0x120   : > { %2929 = vmatpush1.bf16.msra.mxu1 %v3564_v28  ;;  %2889 = vmatprep.subr.bf16.mxu0 %v3445_v29  ;;  %v3629_v28 = vcombine.high %v540_v24, %v544_v25  ;;  %v420_v29 = vld [vmem:[%s4108_s4 + $0x390] sm:$0xff]  ;;  %v345_v23 = vld [vmem:[%s4108_s4 + $0x138] sm:$0xff] }
 0x121   : > { %2930 = vmatprep.subr.bf16.mxu1 %v3573_v30  ;;  %v424_v30 = vld [vmem:[%s4108_s4 + $0x3b0] sm:$0xff] }
 0x122   : > { %v3508_v41 = vcombine.low %v420_v29, %v424_v30 }
 0x123   : > { %2890 = vmatpush1.bf16.msra.mxu0 %v3444_v36  ;;  %v3509_v36 = vcombine.high %v420_v29, %v424_v30  ;;  %v353_v29 = vld [vmem:[%s4108_s4 + $0x178] sm:$0xff] }
 0x124   : > { %2931 = vmatpush1.bf16.msra.mxu1 %v3572_v37  ;;  %2891 = vmatprep.subr.bf16.mxu0 %v3453_v38  ;;  %v3637_v37 = vcombine.high %v548_v32, %v552_v33  ;;  %v428_v38 = vld [vmem:[%s4108_s4 + $0x3d0] sm:$0xff]  ;;  %v3430_v32 = vcombine.low %v341_v22, %v345_v23 }
 0x125   : > { %2932 = vmatprep.subr.bf16.mxu1 %v3581_v39  ;;  %v432_v39 = vld [vmem:[%s4108_s4 + $0x3f0] sm:$0xff] }
 0x126   : > { %v3516_v49 = vcombine.low %v428_v38, %v432_v39 }
 0x127   : > { %2892 = vmatpush1.bf16.msra.mxu0 %v3452_v43  ;;  %v3517_v43 = vcombine.high %v428_v38, %v432_v39  ;;  %v361_v38 = vld [vmem:[%s4108_s4 + $0x1b8] sm:$0xff] }
 0x128   : > { %2933 = vmatpush1.bf16.msra.mxu1 %v3580_v44  ;;  %2893 = vmatprep.subr.bf16.mxu0 %v3461_v45  ;;  %v3645_v44 = vcombine.high %v556_v20, %v560_v40  ;;  %v564_v45 = vld [vmem:[%s4108_s4 + $0x810] sm:$0xff] }
 0x129   : > { %2934 = vmatprep.subr.bf16.mxu1 %v3589_v46  ;;  %v568_v46 = vld [vmem:[%s4108_s4 + $0x830] sm:$0xff] }
 0x12a   : > { %v3652_v61 = vcombine.low %v564_v45, %v568_v46 }
 0x12b   : > { %2894 = vmatpush1.bf16.msra.mxu0 %v3460_v51  ;;  %v3653_v51 = vcombine.high %v564_v45, %v568_v46 }
 0x12c   : > { %2935 = vmatpush1.bf16.msra.mxu1 %v3588_v52  ;;  %2895 = vmatprep.subr.bf16.mxu0 %v3469_v53  ;;  %v3399_v52 = vcombine.high %v309_v47, %v313_v48  ;;  %v572_v53 = vld [vmem:[%s4108_s4 + $0x850] sm:$0xff]  ;;  %v365_v47 = vld [vmem:[%s4108_s4 + $0x1d8] sm:$0xff] }
 0x12d   : > { %2936 = vmatprep.subr.bf16.mxu1 %v3597_v56  ;;  %v576_v56 = vld [vmem:[%s4108_s4 + $0x870] sm:$0xff]  ;;  %v369_v48 = vld [vmem:[%s4108_s4 + $0x1f8] sm:$0xff] }
 0x12e   : > { %v3660_v5 = vcombine.low %v572_v53, %v576_v56 }
 0x12f   : > { %2896 = vmatpush1.bf16.msra.mxu0 %v3468_v63  ;;  %v3661_v63 = vcombine.high %v572_v53, %v576_v56 }
 0x130   : > { %2937 = vmatpush1.bf16.msra.mxu1 %v3596_v0  ;;  %2897 = vmatprep.subr.bf16.mxu0 %v3477_v1  ;;  %v3407_v0 = vcombine.high %v317_v57, %v321_v58  ;;  %v580_v1 = vld [vmem:[%s4108_s4 + $0x890] sm:$0xff] }
 0x131   : > { %2938 = vmatprep.subr.bf16.mxu1 %v3605_v2  ;;  %v584_v2 = vld [vmem:[%s4108_s4 + $0x8b0] sm:$0xff] }
 0x132   : > { %v3668_v13 = vcombine.low %v580_v1, %v584_v2 }
 0x133   : > { %2898 = vmatpush1.bf16.msra.mxu0 %v3476_v7  ;;  %v3669_v7 = vcombine.high %v580_v1, %v584_v2  ;;  %v632_v1 = vld [vmem:[%s4108_s4 + $0xa30] sm:$0xff]  ;;  %v373_v2 = vld [vmem:[%s4108_s4 + $0x218] sm:$0xff] }
 0x134   : > { %2939 = vmatpush1.bf16.msra.mxu1 %v3604_v8  ;;  %2899 = vmatprep.subr.bf16.mxu0 %v3485_v9  ;;  %v3415_v8 = vcombine.high %v325_v3, %v329_v4  ;;  %v588_v9 = vld [vmem:[%s4108_s4 + $0x8d0] sm:$0xff]  ;;  %v377_v3 = vld [vmem:[%s4108_s4 + $0x238] sm:$0xff] }
 0x135   : > { %2940 = vmatprep.subr.bf16.mxu1 %v3613_v10  ;;  %v592_v10 = vld [vmem:[%s4108_s4 + $0x8f0] sm:$0xff] }
 0x136   : > { %v3676_v24 = vcombine.low %v588_v9, %v592_v10 }
 0x137   : > { %2900 = vmatpush1.bf16.msra.mxu0 %v3484_v15  ;;  %v3677_v15 = vcombine.high %v588_v9, %v592_v10  ;;  %v640_v9 = vld [vmem:[%s4108_s4 + $0xa70] sm:$0xff]  ;;  %v381_v10 = vld [vmem:[%s4108_s4 + $0x258] sm:$0xff] }
 0x138   : > { %2941 = vmatpush1.bf16.msra.mxu1 %v3612_v16  ;;  %2901 = vmatprep.subr.bf16.mxu0 %v3493_v18  ;;  %v3423_v16 = vcombine.high %v333_v11, %v337_v12  ;;  %v596_v18 = vld [vmem:[%s4108_s4 + $0x910] sm:$0xff] }
 0x139   : > { %2942 = vmatprep.subr.bf16.mxu1 %v3621_v19  ;;  %v600_v19 = vld [vmem:[%s4108_s4 + $0x930] sm:$0xff] }
 0x13a   : > { %v3685_v25 = vcombine.high %v596_v18, %v600_v19  ;;  %v3684_v30 = vcombine.low %v596_v18, %v600_v19  ;;  %v648_v18 = vld [vmem:[%s4108_s4 + $0xab0] sm:$0xff]  ;;  %v389_v19 = vld [vmem:[%s4108_s4 + $0x298] sm:$0xff] }
 0x13b   : > { %2902 = vmatpush1.bf16.msra.mxu0 %v3492_v54  ;;  %v3431_v54 = vcombine.high %v341_v22, %v345_v23  ;;  %v393_v22 = vld [vmem:[%s4108_s4 + $0x2b8] sm:$0xff] }
 0x13c   : > { %2943 = vmatpush1.bf16.msra.mxu1 %v3620_v26  ;;  %2903 = vmatprep.subr.bf16.mxu0 %v3501_v55  ;;  %v604_v26 = vld [vmem:[%s4108_s4 + $0x950] sm:$0xff] }
 0x13d   : > { %2944 = vmatprep.subr.bf16.mxu1 %v3629_v28  ;;  %v608_v55 = vld [vmem:[%s4108_s4 + $0x970] sm:$0xff]  ;;  %v349_v28 = vld [vmem:[%s4108_s4 + $0x158] sm:$0xff] }
 0x13e   : > { %v3693_v33 = vcombine.high %v604_v26, %v608_v55  ;;  %v3692_v39 = vcombine.low %v604_v26, %v608_v55  ;;  %v3438_v20 = vcombine.low %v349_v28, %v353_v29  ;;  %v656_v26 = vld [vmem:[%s4108_s4 + $0xaf0] sm:$0xff]  ;;  %v397_v55 = vld [vmem:[%s4108_s4 + $0x2d8] sm:$0xff] }
 0x13f   : > { %2904 = vmatpush1.bf16.msra.mxu0 %v3500_v34  ;;  %v3439_v34 = vcombine.high %v349_v28, %v353_v29  ;;  %v401_v28 = vld [vmem:[%s4108_s4 + $0x2f8] sm:$0xff] }
 0x140   : > { %2945 = vmatpush1.bf16.msra.mxu1 %v3628_v35  ;;  %2905 = vmatprep.subr.bf16.mxu0 %v3509_v36  ;;  %v612_v35 = vld [vmem:[%s4108_s4 + $0x990] sm:$0xff] }
 0x141   : > { %2946 = vmatprep.subr.bf16.mxu1 %v3637_v37  ;;  %v616_v36 = vld [vmem:[%s4108_s4 + $0x9b0] sm:$0xff]  ;;  %v357_v37 = vld [vmem:[%s4108_s4 + $0x198] sm:$0xff] }
 0x142   : > { %v3701_v40 = vcombine.high %v612_v35, %v616_v36  ;;  %v3446_v58 = vcombine.low %v357_v37, %v361_v38 }
 0x143   : > { %2906 = vmatpush1.bf16.msra.mxu0 %v3508_v41 }
 0x144   : > { %2947 = vmatpush1.bf16.msra.mxu1 %v3636_v42  ;;  %2907 = vmatprep.subr.bf16.mxu0 %v3517_v43  ;;  %v3447_v42 = vcombine.high %v357_v37, %v361_v38  ;;  %v620_v43 = vld [vmem:[%s4108_s4 + $0x9d0] sm:$0xff]  ;;  %v409_v37 = vld [vmem:[%s4108_s4 + $0x338] sm:$0xff] }
 0x145   : > { %2948 = vmatprep.subr.bf16.mxu1 %v3645_v44  ;;  %v624_v44 = vld [vmem:[%s4108_s4 + $0x9f0] sm:$0xff] }
 0x146   : > { %v3708_v4 = vcombine.low %v620_v43, %v624_v44 }
 0x147   : > { %2908 = vmatpush1.bf16.msra.mxu0 %v3516_v49 }
 0x148   : > { %2949 = vmatpush1.bf16.msra.mxu1 %v3644_v50  ;;  %2959 = vmatprep.subr.bf16.mxu0 %v3653_v51 }
 0x149   : > { %3000 = vmatprep.subr.bf16.mxu1 %v3399_v52  ;;  %v3700_v52 = vcombine.low %v612_v35, %v616_v36  ;;  %v664_v35 = vld [vmem:[%s4108_s4 + $0xb30] sm:$0xff]  ;;  %v405_v36 = vld [vmem:[%s4108_s4 + $0x318] sm:$0xff] }
 0x14a   : > { %2910 = vmatmul.mubr.bf16.vlgmr.msra.gmra.mrb[12].mxu0 %v4222_v17 }
 0x14b   : > { %2951 = vmatmul.mubr.bf16.vlgmr.msra.gmra.mrb[12].mxu1 %v4231_v21  ;;  %2960 = vmatpush1.bf16.msra.mxu0 %v3652_v61  ;;  %v3709_v61 = vcombine.high %v620_v43, %v624_v44  ;;  %v413_v43 = vld [vmem:[%s4108_s4 + $0x358] sm:$0xff] }
 0x14c   : > { %3001 = vmatpush1.bf16.msra.mxu1 %v3398_v62  ;;  %2961 = vmatprep.subr.bf16.mxu0 %v3661_v63  ;;  %v3455_v63 = vcombine.high %v365_v47, %v369_v48  ;;  %v417_v44 = vld [vmem:[%s4108_s4 + $0x378] sm:$0xff] }
 0x14d   : > { %3002 = vmatprep.subr.bf16.mxu1 %v3407_v0  ;;  %2991 = vmatprep.mubr.bf16.mxu0 %v4237_v27  ;;  %v628_v0 = vld [vmem:[%s4108_s4 + $0xa10] sm:$0xff] }
 0x14e   : > { %3032 = vmatprep.mubr.bf16.mxu1 %v4172_v59  ;;  %v3422_v59 = vcombine.low %v333_v11, %v337_v12  ;;  %v385_v11 = vld [vmem:[%s4108_s4 + $0x278] sm:$0xff]  ;;  %v3716_v12 = vcombine.low %v628_v0, %v632_v1 }
 0x14f   : > { %2962 = vmatpush1.bf16.msra.mxu0 %v3660_v5  ;;  %v3454_v5 = vcombine.low %v365_v47, %v369_v48  ;;  %v3503_v48 = vcombine.high %v413_v43, %v417_v44 }
 0x150   : > { %3003 = vmatpush1.bf16.msra.mxu1 %v3406_v6  ;;  %2963 = vmatprep.subr.bf16.mxu0 %v3669_v7  ;;  %v3717_v6 = vcombine.high %v628_v0, %v632_v1  ;;  %v3463_v7 = vcombine.high %v373_v2, %v377_v3  ;;  %v688_v0 = vld [vmem:[%s4108_s4 + $0xbf0] sm:$0xff]  ;;  %v429_v1 = vld [vmem:[%s4108_s4 + $0x3d8] sm:$0xff] }
 0x151   : > { %3004 = vmatprep.subr.bf16.mxu1 %v3415_v8  ;;  %v636_v8 = vld [vmem:[%s4108_s4 + $0xa50] sm:$0xff] }
 0x152   : > { %v3724_v23 = vcombine.low %v636_v8, %v640_v9 }
 0x153   : > { %2964 = vmatpush1.bf16.msra.mxu0 %v3668_v13  ;;  %v3462_v13 = vcombine.low %v373_v2, %v377_v3  ;;  %v433_v2 = vld [vmem:[%s4108_s4 + $0x3f8] sm:$0xff] }
 0x154   : > { %3005 = vmatpush1.bf16.msra.mxu1 %v3414_v14  ;;  %2965 = vmatprep.subr.bf16.mxu0 %v3677_v15  ;;  %v3725_v14 = vcombine.high %v636_v8, %v640_v9  ;;  %v3471_v15 = vcombine.high %v381_v10, %v385_v11  ;;  %v441_v8 = vld [vmem:[%s4108_s4 + $0x438] sm:$0xff] }
 0x155   : > { %3006 = vmatprep.subr.bf16.mxu1 %v3423_v16  ;;  %v644_v16 = vld [vmem:[%s4108_s4 + $0xa90] sm:$0xff]  ;;  %v565_v9 = vld [vmem:[%s4108_s4 + $0x818] sm:$0xff] }
 0x156   : > { %v3732_v29 = vcombine.low %v644_v16, %v648_v18 }
 0x157   : > { %2966 = vmatpush1.bf16.msra.mxu0 %v3676_v24  ;;  %v3470_v24 = vcombine.low %v381_v10, %v385_v11  ;;  %v569_v10 = vld [vmem:[%s4108_s4 + $0x838] sm:$0xff] }
 0x158   : > { %3007 = vmatpush1.bf16.msra.mxu1 %v3422_v59  ;;  %2967 = vmatprep.subr.bf16.mxu0 %v3685_v25  ;;  %v3733_v59 = vcombine.high %v644_v16, %v648_v18  ;;  %v3479_v25 = vcombine.high %v389_v19, %v393_v22  ;;  %v449_v16 = vld [vmem:[%s4108_s4 + $0x478] sm:$0xff] }
 0x159   : > { %3008 = vmatprep.subr.bf16.mxu1 %v3431_v54  ;;  %v652_v54 = vld [vmem:[%s4108_s4 + $0xad0] sm:$0xff]  ;;  %v573_v18 = vld [vmem:[%s4108_s4 + $0x858] sm:$0xff] }
 0x15a   : > { %v3740_v38 = vcombine.low %v652_v54, %v656_v26 }
 0x15b   : > { %2968 = vmatpush1.bf16.msra.mxu0 %v3684_v30  ;;  %v3478_v30 = vcombine.low %v389_v19, %v393_v22  ;;  %v577_v19 = vld [vmem:[%s4108_s4 + $0x878] sm:$0xff] }
 0x15c   : > { %3009 = vmatpush1.bf16.msra.mxu1 %v3430_v32  ;;  %2969 = vmatprep.subr.bf16.mxu0 %v3693_v33  ;;  %v3741_v32 = vcombine.high %v652_v54, %v656_v26  ;;  %v3487_v33 = vcombine.high %v397_v55, %v401_v28  ;;  %v457_v54 = vld [vmem:[%s4108_s4 + $0x4b8] sm:$0xff] }
 0x15d   : > { %v2665_v41 = vpop.f32.mrb[0].mxu0  ;;  %3010 = vmatprep.subr.bf16.mxu1 %v3439_v34  ;;  %v660_v34 = vld [vmem:[%s4108_s4 + $0xb10] sm:$0xff]  ;;  %v581_v26 = vld [vmem:[%s4108_s4 + $0x898] sm:$0xff] }
 0x15e   : > { %v2706_v45 = vpop.f32.mrb[0].mxu1  ;;  %v2667_v46 = vpop.f32.mrb[1].mxu0 }
 0x15f   : > { %v4473_v49 = vadd.f32 %v2706_v45, %v2665_v41  ;;  %v2708_v50 = vpop.f32.mrb[1].mxu1  ;;  %v2669_v51 = vpop.f32.mrb[2].mxu0  ;;  %2970 = vmatpush1.bf16.msra.mxu0 %v3692_v39  ;;  %v3486_v39 = vcombine.low %v397_v55, %v401_v28  ;;  %v668_v41 = vld [vmem:[%s4108_s4 + $0xb50] sm:$0xff]  ;;  %v3748_v45 = vcombine.low %v660_v34, %v664_v35  ;;  %v585_v55 = vld [vmem:[%s4108_s4 + $0x8b8] sm:$0xff] }
 0x160   : > { %v4475_v53 = vadd.f32 %v2708_v50, %v2667_v46  ;;  %v2710_v56 = vpop.f32.mrb[2].mxu1  ;;  %3011 = vmatpush1.bf16.msra.mxu1 %v3438_v20  ;;  %v2670_v57 = vpop.f32.mrb[3].mxu0  ;;  %2971 = vmatprep.subr.bf16.mxu0 %v3701_v40  ;;  %v3749_v20 = vcombine.high %v660_v34, %v664_v35  ;;  %v3495_v40 = vcombine.high %v405_v36, %v409_v37  ;;  %v676_v50 = vld [vmem:[%s4108_s4 + $0xb90] sm:$0xff]  ;;  %v465_v34 = vld [vmem:[%s4108_s4 + $0x4f8] sm:$0xff] }
 0x161   : > { %v2711_v62 = vpop.f32.mrb[3].mxu1  ;;  %3012 = vmatprep.subr.bf16.mxu1 %v3447_v42  ;;  %v672_v42 = vld [vmem:[%s4108_s4 + $0xb70] sm:$0xff]  ;;  %v3494_v46 = vcombine.low %v405_v36, %v409_v37  ;;  %v425_v56 = vld [vmem:[%s4108_s4 + $0x3b8] sm:$0xff]  ;;  %v3670_v37 = vcombine.low %v581_v26, %v585_v55 }
 0x162   : > { %v3757_v47 = vcombine.high %v668_v41, %v672_v42  ;;  %v680_v51 = vld [vmem:[%s4108_s4 + $0xbb0] sm:$0xff]  ;;  %v3756_v57 = vcombine.low %v668_v41, %v672_v42  ;;  %v589_v35 = vld [vmem:[%s4108_s4 + $0x8d8] sm:$0xff] }
 0x163   : > { %2972 = vmatpush1.bf16.msra.mxu0 %v3700_v52  ;;  %v421_v52 = vld [vmem:[%s4108_s4 + $0x398] sm:$0xff]  ;;  %v3764_v3 = vcombine.low %v676_v50, %v680_v51 }
 0x164   : > { %3013 = vmatpush1.bf16.msra.mxu1 %v3446_v58  ;;  %2973 = vmatprep.subr.bf16.mxu0 %v3709_v61  ;;  %v3502_v58 = vcombine.low %v413_v43, %v417_v44  ;;  %v3765_v61 = vcombine.high %v676_v50, %v680_v51  ;;  %v3511_v62 = vcombine.high %v421_v52, %v425_v56  ;;  %v593_v36 = vld [vmem:[%s4108_s4 + $0x8f8] sm:$0xff] }
 0x165   : > { %3014 = vmatprep.subr.bf16.mxu1 %v3455_v63  ;;  %v684_v63 = vld [vmem:[%s4108_s4 + $0xbd0] sm:$0xff]  ;;  %v597_v41 = vld [vmem:[%s4108_s4 + $0x918] sm:$0xff] }
 0x166   : > { %v3772_v11 = vcombine.low %v684_v63, %v688_v0 }
 0x167   : > { %2974 = vmatpush1.bf16.msra.mxu0 %v3708_v4  ;;  %v3510_v4 = vcombine.low %v421_v52, %v425_v56 }
 0x168   : > { %3015 = vmatpush1.bf16.msra.mxu1 %v3454_v5  ;;  %2975 = vmatprep.subr.bf16.mxu0 %v3717_v6  ;;  %v3773_v5 = vcombine.high %v684_v63, %v688_v0  ;;  %v3519_v6 = vcombine.high %v429_v1, %v433_v2 }
 0x169   : > { %3016 = vmatprep.subr.bf16.mxu1 %v3463_v7  ;;  %v437_v7 = vld [vmem:[%s4108_s4 + $0x418] sm:$0xff] }
 0x16a   : > { %v3526_v22 = vcombine.low %v437_v7, %v441_v8 }
 0x16b   : > { %2976 = vmatpush1.bf16.msra.mxu0 %v3716_v12  ;;  %v3518_v12 = vcombine.low %v429_v1, %v433_v2  ;;  %v295_v2 = vld [vmem:[#allocation2] sm:$0xff] }
 0x16c   : > { %3017 = vmatpush1.bf16.msra.mxu1 %v3462_v13  ;;  %2977 = vmatprep.subr.bf16.mxu0 %v3725_v14  ;;  %v3527_v13 = vcombine.high %v437_v7, %v441_v8  ;;  %v3655_v14 = vcombine.high %v565_v9, %v569_v10 }
 0x16d   : > { %3018 = vmatprep.subr.bf16.mxu1 %v3471_v15  ;;  %v445_v15 = vld [vmem:[%s4108_s4 + $0x458] sm:$0xff] }
 0x16e   : > { %v3534_v28 = vcombine.low %v445_v15, %v449_v16 }
 0x16f   : > { %2978 = vmatpush1.bf16.msra.mxu0 %v3724_v23  ;;  %v3654_v23 = vcombine.low %v565_v9, %v569_v10  ;;  %v296_v9 = vld [vmem:[#allocation2 + $0x8] sm:$0xff] }
 0x170   : > { %3019 = vmatpush1.bf16.msra.mxu1 %v3470_v24  ;;  %2979 = vmatprep.subr.bf16.mxu0 %v3733_v59  ;;  %v3535_v24 = vcombine.high %v445_v15, %v449_v16  ;;  %v3663_v59 = vcombine.high %v573_v18, %v577_v19 }
 0x171   : > { %3020 = vmatprep.subr.bf16.mxu1 %v3479_v25  ;;  %v453_v25 = vld [vmem:[%s4108_s4 + $0x498] sm:$0xff] }
 0x173   : > { %2980 = vmatpush1.bf16.msra.mxu0 %v3732_v29  ;;  %v3662_v29 = vcombine.low %v573_v18, %v577_v19 }
 0x174   : > { %3021 = vmatpush1.bf16.msra.mxu1 %v3478_v30  ;;  %2981 = vmatprep.subr.bf16.mxu0 %v3741_v32  ;;  %v3543_v30 = vcombine.high %v453_v25, %v457_v54  ;;  %v3671_v32 = vcombine.high %v581_v26, %v585_v55  ;;  %v629_v26 = vld [vmem:[%s4108_s4 + $0xa18] sm:$0xff] }
 0x175   : > { %3022 = vmatprep.subr.bf16.mxu1 %v3487_v33  ;;  %v461_v33 = vld [vmem:[%s4108_s4 + $0x4d8] sm:$0xff] }
 0x176   : > { %v3550_v42 = vcombine.low %v461_v33, %v465_v34  ;;  %v633_v55 = vld [vmem:[%s4108_s4 + $0xa38] sm:$0xff] }
 0x177   : > { %2982 = vmatpush1.bf16.msra.mxu0 %v3740_v38  ;;  %v3551_v38 = vcombine.high %v461_v33, %v465_v34  ;;  %v509_v33 = vld [vmem:[%s4108_s4 + $0x658] sm:$0xff] }
 0x178   : > { %3023 = vmatpush1.bf16.msra.mxu1 %v3486_v39  ;;  %2983 = vmatprep.subr.bf16.mxu0 %v3749_v20  ;;  %v3679_v39 = vcombine.high %v589_v35, %v593_v36  ;;  %v469_v20 = vld [vmem:[%s4108_s4 + $0x518] sm:$0xff] }
 0x179   : > { %3024 = vmatprep.subr.bf16.mxu1 %v3495_v40  ;;  %v473_v40 = vld [vmem:[%s4108_s4 + $0x538] sm:$0xff] }
 0x17a   : > { %v3559_v43 = vcombine.high %v469_v20, %v473_v40  ;;  %v3558_v50 = vcombine.low %v469_v20, %v473_v40  ;;  %v513_v34 = vld [vmem:[%s4108_s4 + $0x678] sm:$0xff] }
 0x17b   : > { %2984 = vmatpush1.bf16.msra.mxu0 %v3748_v45  ;;  %v477_v45 = vld [vmem:[%s4108_s4 + $0x558] sm:$0xff] }
 0x17c   : > { %3025 = vmatpush1.bf16.msra.mxu1 %v3494_v46  ;;  %2985 = vmatprep.subr.bf16.mxu0 %v3757_v47  ;;  %v481_v46 = vld [vmem:[%s4108_s4 + $0x578] sm:$0xff] }
 0x17d   : > { %3026 = vmatprep.subr.bf16.mxu1 %v3503_v48  ;;  %v605_v47 = vld [vmem:[%s4108_s4 + $0x958] sm:$0xff]  ;;  %v3567_v52 = vcombine.high %v477_v45, %v481_v46  ;;  %v3566_v63 = vcombine.low %v477_v45, %v481_v46 }
 0x17e   : > { %v609_v48 = vld [vmem:[%s4108_s4 + $0x978] sm:$0xff] }
 0x17f   : > { %2986 = vmatpush1.bf16.msra.mxu0 %v3756_v57  ;;  %v3695_v56 = vcombine.high %v605_v47, %v609_v48  ;;  %v485_v57 = vld [vmem:[%s4108_s4 + $0x598] sm:$0xff]  ;;  %v3694_v0 = vcombine.low %v605_v47, %v609_v48 }
 0x180   : > { %3027 = vmatpush1.bf16.msra.mxu1 %v3502_v58  ;;  %2987 = vmatprep.subr.bf16.mxu0 %v3765_v61  ;;  %v489_v58 = vld [vmem:[%s4108_s4 + $0x5b8] sm:$0xff] }
 0x181   : > { %3028 = vmatprep.subr.bf16.mxu1 %v3511_v62  ;;  %v613_v61 = vld [vmem:[%s4108_s4 + $0x998] sm:$0xff]  ;;  %v3575_v1 = vcombine.high %v485_v57, %v489_v58  ;;  %v3574_v16 = vcombine.low %v485_v57, %v489_v58 }
 0x182   : > { %v617_v62 = vld [vmem:[%s4108_s4 + $0x9b8] sm:$0xff] }
 0x183   : > { %2988 = vmatpush1.bf16.msra.mxu0 %v3764_v3  ;;  %v517_v20 = vld [vmem:[%s4108_s4 + $0x698] sm:$0xff] }
 0x184   : > { %3029 = vmatpush1.bf16.msra.mxu1 %v3510_v4  ;;  %2989 = vmatprep.subr.bf16.mxu0 %v3773_v5  ;;  %v3703_v4 = vcombine.high %v613_v61, %v617_v62  ;;  %v493_v5 = vld [vmem:[%s4108_s4 + $0x5d8] sm:$0xff] }
 0x185   : > { %3030 = vmatprep.subr.bf16.mxu1 %v3519_v6  ;;  %v497_v6 = vld [vmem:[%s4108_s4 + $0x5f8] sm:$0xff] }
 0x186   : > { %v521_v40 = vld [vmem:[%s4108_s4 + $0x6b8] sm:$0xff] }
 0x187   : > { %2990 = vmatpush1.bf16.msra.mxu0 %v3772_v11  ;;  %v621_v11 = vld [vmem:[%s4108_s4 + $0x9d8] sm:$0xff] }
 0x188   : > { %3031 = vmatpush1.bf16.msra.mxu1 %v3518_v12  ;;  %3041 = vmatprep.subr.bf16.mxu0 %v3527_v13  ;;  %v625_v12 = vld [vmem:[%s4108_s4 + $0x9f8] sm:$0xff] }
 0x189   : > { %3082 = vmatprep.subr.bf16.mxu1 %v3655_v14  ;;  %v525_v45 = vld [vmem:[%s4108_s4 + $0x6d8] sm:$0xff] }
 0x18a   : > { %2992 = vmatmul.mubr.bf16.vlgmr.msra.gmra.mrb[16].mxu0 %v4305_v31  ;;  %v529_v46 = vld [vmem:[%s4108_s4 + $0x6f8] sm:$0xff] }
 0x18b   : > { %3033 = vmatmul.mubr.bf16.vlgmr.msra.gmra.mrb[16].mxu1 %v4222_v17  ;;  %3042 = vmatpush1.bf16.msra.mxu0 %v3526_v22  ;;  %v3542_v17 = vcombine.low %v453_v25, %v457_v54  ;;  %v3702_v22 = vcombine.low %v613_v61, %v617_v62  ;;  %v501_v25 = vld [vmem:[%s4108_s4 + $0x618] sm:$0xff] }
 0x18c   : > { %3083 = vmatpush1.bf16.msra.mxu1 %v3654_v23  ;;  %3043 = vmatprep.subr.bf16.mxu0 %v3535_v24  ;;  %v3583_v23 = vcombine.high %v493_v5, %v497_v6  ;;  %v505_v54 = vld [vmem:[%s4108_s4 + $0x638] sm:$0xff] }
 0x18d   : > { %3084 = vmatprep.subr.bf16.mxu1 %v3663_v59  ;;  %3073 = vmatprep.mubr.bf16.mxu0 %v4176_v60  ;;  %v601_v60 = vld [vmem:[%s4108_s4 + $0x938] sm:$0xff] }
 0x18e   : > { %3114 = vmatprep.mubr.bf16.mxu1 %v4237_v27  ;;  %v3678_v27 = vcombine.low %v589_v35, %v593_v36  ;;  %v3687_v44 = vcombine.high %v597_v41, %v601_v60  ;;  %v3686_v51 = vcombine.low %v597_v41, %v601_v60  ;;  %v637_v35 = vld [vmem:[%s4108_s4 + $0xa58] sm:$0xff] }
 0x18f   : > { %3044 = vmatpush1.bf16.msra.mxu0 %v3534_v28  ;;  %v3582_v28 = vcombine.low %v493_v5, %v497_v6  ;;  %v641_v36 = vld [vmem:[%s4108_s4 + $0xa78] sm:$0xff] }
 0x190   : > { %3085 = vmatpush1.bf16.msra.mxu1 %v3662_v29  ;;  %3045 = vmatprep.subr.bf16.mxu0 %v3543_v30  ;;  %v3710_v29 = vcombine.low %v621_v11, %v625_v12  ;;  %v3591_v30 = vcombine.high %v501_v25, %v505_v54  ;;  %v645_v41 = vld [vmem:[%s4108_s4 + $0xa98] sm:$0xff] }
 0x191   : > { %3086 = vmatprep.subr.bf16.mxu1 %v3671_v32  ;;  %v3719_v32 = vcombine.high %v629_v26, %v633_v55  ;;  %v649_v60 = vld [vmem:[%s4108_s4 + $0xab8] sm:$0xff] }
 0x192   : > { %v653_v47 = vld [vmem:[%s4108_s4 + $0xad8] sm:$0xff] }
 0x193   : > { %3046 = vmatpush1.bf16.msra.mxu0 %v3542_v17  ;;  %v3590_v17 = vcombine.low %v501_v25, %v505_v54  ;;  %v657_v48 = vld [vmem:[%s4108_s4 + $0xaf8] sm:$0xff] }
 0x194   : > { %3087 = vmatpush1.bf16.msra.mxu1 %v3670_v37  ;;  %3047 = vmatprep.subr.bf16.mxu0 %v3551_v38  ;;  %v3718_v37 = vcombine.low %v629_v26, %v633_v55  ;;  %v3599_v38 = vcombine.high %v509_v33, %v513_v34  ;;  %v533_v57 = vld [vmem:[%s4108_s4 + $0x718] sm:$0xff] }
 0x195   : > { %3088 = vmatprep.subr.bf16.mxu1 %v3679_v39  ;;  %v3727_v39 = vcombine.high %v637_v35, %v641_v36  ;;  %v537_v58 = vld [vmem:[%s4108_s4 + $0x738] sm:$0xff] }
 0x196   : > { %v661_v61 = vld [vmem:[%s4108_s4 + $0xb18] sm:$0xff] }
 0x197   : > { %3048 = vmatpush1.bf16.msra.mxu0 %v3550_v42  ;;  %v3598_v42 = vcombine.low %v509_v33, %v513_v34  ;;  %v665_v62 = vld [vmem:[%s4108_s4 + $0xb38] sm:$0xff] }
 0x198   : > { %3089 = vmatpush1.bf16.msra.mxu1 %v3678_v27  ;;  %3049 = vmatprep.subr.bf16.mxu0 %v3559_v43  ;;  %v3726_v27 = vcombine.low %v637_v35, %v641_v36  ;;  %v3607_v43 = vcombine.high %v517_v20, %v521_v40  ;;  %v669_v5 = vld [vmem:[%s4108_s4 + $0xb58] sm:$0xff]  ;;  %v297_v35 = vld [vmem:[#allocation2 + $0x10] sm:$0xff] }
 0x199   : > { %3090 = vmatprep.subr.bf16.mxu1 %v3687_v44  ;;  %v3735_v44 = vcombine.high %v645_v41, %v649_v60  ;;  %v673_v6 = vld [vmem:[%s4108_s4 + $0xb78] sm:$0xff] }
 0x19b   : > { %3050 = vmatpush1.bf16.msra.mxu0 %v3558_v50  ;;  %v3606_v50 = vcombine.low %v517_v20, %v521_v40 }
 0x19c   : > { %3091 = vmatpush1.bf16.msra.mxu1 %v3686_v51  ;;  %3051 = vmatprep.subr.bf16.mxu0 %v3567_v52  ;;  %v3734_v51 = vcombine.low %v645_v41, %v649_v60  ;;  %v3615_v52 = vcombine.high %v525_v45, %v529_v46 }
 0x19d   : > { %v2747_v3 = vpop.f32.mrb[4].mxu0  ;;  %3092 = vmatprep.subr.bf16.mxu1 %v3695_v56  ;;  %v3743_v56 = vcombine.high %v653_v47, %v657_v48 }
 0x19e   : > { %v2748_v7 = vadd.f32 %v2747_v3, %v4473_v49  ;;  %v4544_v8 = vpop.f32.mrb[4].mxu1  ;;  %v2749_v10 = vpop.f32.mrb[5].mxu0  ;;  %v541_v3 = vld [vmem:[%s4108_s4 + $0x758] sm:$0xff] }
 0x19f   : > { %v2750_v13 = vadd.f32 %v2749_v10, %v4475_v53  ;;  %v4549_v14 = vpop.f32.mrb[5].mxu1  ;;  %v2751_v15 = vpop.f32.mrb[6].mxu0  ;;  %3052 = vmatpush1.bf16.msra.mxu0 %v3566_v63  ;;  %v3711_v53 = vcombine.high %v621_v11, %v625_v12  ;;  %v3614_v63 = vcombine.low %v525_v45, %v529_v46  ;;  %v3759_v11 = vcombine.high %v669_v5, %v673_v6  ;;  %v549_v12 = vld [vmem:[%s4108_s4 + $0x798] sm:$0xff] }
 0x1a0   : > { %v3123_v18 = vadd.f32 %v2748_v7, %v295_v2  ;;  %v2792_v19 = vpop.f32.mrb[6].mxu1  ;;  %3093 = vmatpush1.bf16.msra.mxu1 %v3694_v0  ;;  %v2752_v49 = vpop.f32.mrb[7].mxu0  ;;  %3053 = vmatprep.subr.bf16.mxu0 %v3575_v1  ;;  %v3742_v0 = vcombine.low %v653_v47, %v657_v48  ;;  %v3623_v1 = vcombine.high %v533_v57, %v537_v58  ;;  %v677_v15 = vld [vmem:[%s4108_s4 + $0xb98] sm:$0xff] }
 0x1a1   : > { %v3124_v24 = vadd.f32 %v2750_v13, %v296_v9  ;;  %v2793_v59 = vpop.f32.mrb[7].mxu1  ;;  %3094 = vmatprep.subr.bf16.mxu1 %v3703_v4  ;;  %v3751_v2 = vcombine.high %v661_v61, %v665_v62  ;;  %v545_v4 = vld [vmem:[%s4108_s4 + $0x778] sm:$0xff]  ;;  %v3622_v7 = vcombine.low %v533_v57, %v537_v58  ;;  %v3750_v9 = vcombine.low %v661_v61, %v665_v62  ;;  %v300_v57 = vld [vmem:[#allocation2 + $0x28] sm:$0xff] }
 0x1a2   : > { %3131 = vst [vmem:[#allocation2] sm:$0xff] %v3123_v18  ;;  %v3631_v10 = vcombine.high %v541_v3, %v545_v4  ;;  %v553_v13 = vld [vmem:[%s4108_s4 + $0x7b8] sm:$0xff]  ;;  %v3630_v18 = vcombine.low %v541_v3, %v545_v4  ;;  %v3758_v19 = vcombine.low %v669_v5, %v673_v6 }
 0x1a3   : > { %3132 = vst [vmem:[#allocation2 + $0x8] sm:$0xff] %v3124_v24  ;;  %3054 = vmatpush1.bf16.msra.mxu0 %v3574_v16  ;;  %v681_v16 = vld [vmem:[%s4108_s4 + $0xbb8] sm:$0xff]  ;;  %v3639_v49 = vcombine.high %v549_v12, %v553_v13  ;;  %v3638_v25 = vcombine.low %v549_v12, %v553_v13 }
 0x1a4   : > { %3095 = vmatpush1.bf16.msra.mxu1 %v3702_v22  ;;  %3055 = vmatprep.subr.bf16.mxu0 %v3583_v23  ;;  %v3767_v22 = vcombine.high %v677_v15, %v681_v16  ;;  %v557_v23 = vld [vmem:[%s4108_s4 + $0x7d8] sm:$0xff]  ;;  %v3766_v54 = vcombine.low %v677_v15, %v681_v16 }
 0x1a5   : > { %3096 = vmatprep.subr.bf16.mxu1 %v3711_v53  ;;  %v561_v24 = vld [vmem:[%s4108_s4 + $0x7f8] sm:$0xff] }
 0x1a6   : > { %v685_v59 = vld [vmem:[%s4108_s4 + $0xbd8] sm:$0xff]  ;;  %v3647_v26 = vcombine.high %v557_v23, %v561_v24 }
 0x1a7   : > { %3056 = vmatpush1.bf16.msra.mxu0 %v3582_v28  ;;  %v689_v53 = vld [vmem:[%s4108_s4 + $0xbf8] sm:$0xff]  ;;  %v3646_v28 = vcombine.low %v557_v23, %v561_v24 }
 0x1a8   : > { %3097 = vmatpush1.bf16.msra.mxu1 %v3710_v29  ;;  %3057 = vmatprep.subr.bf16.mxu0 %v3591_v30  ;;  %v3775_v55 = vcombine.high %v685_v59, %v689_v53  ;;  %v3774_v29 = vcombine.low %v685_v59, %v689_v53  ;;  %v302_v16 = vld [vmem:[#allocation2 + $0x38] sm:$0xff]  ;;  %v3153_v59 = vlaneseq (!%p3776_p6) }
 0x1a9   : > { %3098 = vmatprep.subr.bf16.mxu1 %v3719_v32 }
 0x1aa   : > { %v3154_v53 = vshrl.u32 (!%p3776_p6), %v3153_v59, 7 }
 0x1ab   : > { %3058 = vmatpush1.bf16.msra.mxu0 %v3590_v17 }
 0x1ac   : > { %3099 = vmatpush1.bf16.msra.mxu1 %v3718_v37  ;;  %3059 = vmatprep.subr.bf16.mxu0 %v3599_v38 }
 0x1ad   : > { %3100 = vmatprep.subr.bf16.mxu1 %v3727_v39  ;;  %v298_v39 = vld [vmem:[#allocation2 + $0x18] sm:$0xff] }
 0x1af   : > { %3060 = vmatpush1.bf16.msra.mxu0 %v3598_v42 }
 0x1b0   : > { %3101 = vmatpush1.bf16.msra.mxu1 %v3726_v27  ;;  %3061 = vmatprep.subr.bf16.mxu0 %v3607_v43 }
 0x1b1   : > { %3102 = vmatprep.subr.bf16.mxu1 %v3735_v44 }
 0x1b3   : > { %3062 = vmatpush1.bf16.msra.mxu0 %v3606_v50  ;;  %v299_v50 = vld [vmem:[#allocation2 + $0x20] sm:$0xff] }
 0x1b4   : > { %3103 = vmatpush1.bf16.msra.mxu1 %v3734_v51  ;;  %3063 = vmatprep.subr.bf16.mxu0 %v3615_v52 }
 0x1b5   : > { %3104 = vmatprep.subr.bf16.mxu1 %v3743_v56 }
 0x1b7   : > { %3064 = vmatpush1.bf16.msra.mxu0 %v3614_v63 }
 0x1b8   : > { %3105 = vmatpush1.bf16.msra.mxu1 %v3742_v0  ;;  %3065 = vmatprep.subr.bf16.mxu0 %v3623_v1 }
 0x1b9   : > { %3106 = vmatprep.subr.bf16.mxu1 %v3751_v2 }
 0x1bb   : > { %3066 = vmatpush1.bf16.msra.mxu0 %v3622_v7 }
 0x1bc   : > { %3107 = vmatpush1.bf16.msra.mxu1 %v3750_v9  ;;  %3067 = vmatprep.subr.bf16.mxu0 %v3631_v10  ;;  %v301_v10 = vld [vmem:[#allocation2 + $0x30] sm:$0xff] }
 0x1bd   : > { %3108 = vmatprep.subr.bf16.mxu1 %v3759_v11 }
 0x1bf   : > { %3068 = vmatpush1.bf16.msra.mxu0 %v3630_v18 }
 0x1c0   : > { %3109 = vmatpush1.bf16.msra.mxu1 %v3758_v19  ;;  %3069 = vmatprep.subr.bf16.mxu0 %v3639_v49 }
 0x1c1   : > { %3110 = vmatprep.subr.bf16.mxu1 %v3767_v22 }
 0x1c3   : > { %3070 = vmatpush1.bf16.msra.mxu0 %v3638_v25  ;;  %v3143_v25 = vld [vmem:[#allocation2] sm:$0xff] (!%p3776_p6) }
 0x1c4   : > { %3111 = vmatpush1.bf16.msra.mxu1 %v3766_v54  ;;  %3071 = vmatprep.subr.bf16.mxu0 %v3647_v26  ;;  %v3151_v54 = vld [vmem:[%s271_s6] sm:$0xff] (!%p3776_p6)  ;;  %v3144_v26 = vld [vmem:[#allocation2 + $0x8] sm:$0xff] (!%p3776_p6) }
 0x1c5   : > { %3112 = vmatprep.subr.bf16.mxu1 %v3775_v55  ;;  %v3155_v55 = vsub.s32 (!%p3776_p6), 0, %v3154_v53 }
 0x1c7   : > { %3072 = vmatpush1.bf16.msra.mxu0 %v3646_v28  ;;  %v3159_v28 = vsub.s32 (!%p3776_p6), 1, %v3154_v53 }
 0x1c8   : > { %3113 = vmatpush1.bf16.msra.mxu1 %v3774_v29 }
 0x1ca   : > { %3074 = vmatmul.mubr.bf16.vlgmr.msra.gmra.mrb[20].mxu0 %v4231_v21 }
 0x1cb   : > { %3115 = vmatmul.mubr.bf16.vlgmr.msra.gmra.mrb[20].mxu1 %v4305_v31 }
 0x1dd   : > { %v2829_v30 = vpop.f32.mrb[8].mxu0 }
 0x1de   : > { %v2830_v32 = vadd.f32 %v2829_v30, %v4544_v8  ;;  %v2870_v33 = vpop.f32.mrb[8].mxu1  ;;  %v2831_v34 = vpop.f32.mrb[9].mxu0  ;;  %v3163_v30 = vsub.s32 (!%p3776_p6), 2, %v3154_v53 }
 0x1df   : > { %v2832_v36 = vadd.f32 %v2831_v34, %v4549_v14  ;;  %v2872_v17 = vpop.f32.mrb[9].mxu1  ;;  %v2833_v37 = vpop.f32.mrb[10].mxu0 }
 0x1e0   : > { %v2871_v38 = vadd.f32 %v2870_v33, %v2830_v32  ;;  %v2874_v20 = vpop.f32.mrb[10].mxu1  ;;  %v2834_v40 = vpop.f32.mrb[11].mxu0  ;;  %v3167_v32 = vsub.s32 (!%p3776_p6), 3, %v3154_v53  ;;  %v3183_v37 = vsub.s32 (!%p3776_p6), 7, %v3154_v53 }
 0x1e1   : > { %v2873_v41 = vadd.f32 %v2872_v17, %v2832_v36  ;;  %v2875_v60 = vpop.f32.mrb[11].mxu1  ;;  %v3175_v36 = vsub.s32 (!%p3776_p6), 5, %v3154_v53  ;;  %v3179_v17 = vsub.s32 (!%p3776_p6), 6, %v3154_v53  ;;  %v3164_v20 = vrot.slane (!%p3776_p6), %v3151_v54, %v3163_v30 }
 0x1e2   : > { %v3125_v42 = vadd.f32 %v2871_v38, %v297_v35  ;;  %v3171_v35 = vsub.s32 (!%p3776_p6), 4, %v3154_v53  ;;  %v3156_v38 = vrot.slane (!%p3776_p6), %v3151_v54, %v3155_v55  ;;  %v3168_v40 = vrot.slane (!%p3776_p6), %v3151_v54, %v3167_v32 }
 0x1e3   : > { %v3126_v21 = vadd.f32 %v2873_v41, %v298_v39  ;;  %v3160_v39 = vrot.slane (!%p3776_p6), %v3151_v54, %v3159_v28 }
 0x1e4   : > { %3133 = vst [vmem:[#allocation2 + $0x10] sm:$0xff] %v3125_v42 }
 0x1e5   : > { %3134 = vst [vmem:[#allocation2 + $0x18] sm:$0xff] %v3126_v21  ;;  %v3172_v21 = vrot.slane (!%p3776_p6), %v3151_v54, %v3171_v35 }
 0x1eb   : > { %v3145_v29 = vld [vmem:[#allocation2 + $0x10] sm:$0xff] (!%p3776_p6) }
 0x1ec   : > { %v3146_v33 = vld [vmem:[#allocation2 + $0x18] sm:$0xff] (!%p3776_p6) }
 0x21d   : > { %v2911_v31 = vpop.f32.mrb[12].mxu0 }
 0x21e   : > { %v2952_v27 = vpop.f32.mrb[12].mxu1  ;;  %v2913_v8 = vpop.f32.mrb[13].mxu0 }
 0x21f   : > { %v2953_v43 = vadd.f32 %v2952_v27, %v2911_v31  ;;  %v2954_v44 = vpop.f32.mrb[13].mxu1  ;;  %v2915_v45 = vpop.f32.mrb[14].mxu0  ;;  %v3176_v31 = vrot.slane (!%p3776_p6), %v3151_v54, %v3175_v36  ;;  %v3180_v27 = vrot.slane (!%p3776_p6), %v3151_v54, %v3179_v17 }
 0x220   : > { %v2955_v46 = vadd.f32 %v2954_v44, %v2913_v8  ;;  %v2956_v14 = vpop.f32.mrb[14].mxu1  ;;  %v2916_v47 = vpop.f32.mrb[15].mxu0  ;;  %v3184_v8 = vrot.slane (!%p3776_p6), %v3151_v54, %v3183_v37  ;;  %v3194_v44 = vadd.f32 (!%p3776_p6), %v3160_v39, %v3144_v26  ;;  %v3195_v45 = vadd.f32 (!%p3776_p6), %v3164_v20, %v3145_v29 }
 0x221   : > { %v2957_v48 = vpop.f32.mrb[15].mxu1 }
 0x25d   : > { %v2993_v51 = vpop.f32.mrb[16].mxu0 }
 0x25e   : > { %v2994_v52 = vadd.f32 %v2993_v51, %v2953_v43  ;;  %v3034_v56 = vpop.f32.mrb[16].mxu1  ;;  %v2995_v58 = vpop.f32.mrb[17].mxu0  ;;  %v3193_v43 = vadd.f32 (!%p3776_p6), %v3156_v38, %v3143_v25 }
 0x25f   : > { %v2996_v61 = vadd.f32 %v2995_v58, %v2955_v46  ;;  %v3036_v62 = vpop.f32.mrb[17].mxu1  ;;  %v2997_v63 = vpop.f32.mrb[18].mxu0  ;;  %v3196_v46 = vadd.f32 (!%p3776_p6), %v3168_v40, %v3146_v33 }
 0x260   : > { %v3127_v0 = vadd.f32 %v2994_v52, %v299_v50  ;;  %v3038_v1 = vpop.f32.mrb[18].mxu1  ;;  %v2998_v2 = vpop.f32.mrb[19].mxu0  ;;  %v3201_v51 = vmax.f32 (!%p3776_p6), %v3193_v43, 0.0  ;;  %v3202_v52 = vmax.f32 (!%p3776_p6), %v3194_v44, 0.0 }
 0x261   : > { %v3128_v3 = vadd.f32 %v2996_v61, %v300_v57  ;;  %v3039_v4 = vpop.f32.mrb[19].mxu1  ;;  %v3204_v57 = vmax.f32 (!%p3776_p6), %v3196_v46, 0.0 }
 0x262   : > { %3135 = vst [vmem:[#allocation2 + $0x20] sm:$0xff] %v3127_v0  ;;  %v3784_v0 = vpack.c.bf16 (!%p3776_p6), %v3202_v52, %v3201_v51 }
 0x263   : > { %3136 = vst [vmem:[#allocation2 + $0x28] sm:$0xff] %v3128_v3 }
 0x264   : > { %3241 = vst [vmem:[%s4126_s11] sm:$0xff] (!%p3776_p6), %v3784_v0 }
 0x269   : > { %v3147_v34 = vld [vmem:[#allocation2 + $0x20] sm:$0xff] (!%p3776_p6) }
 0x26a   : > { %v3148_v41 = vld [vmem:[#allocation2 + $0x28] sm:$0xff] (!%p3776_p6)  ;;  %v3197_v14 = vadd.f32 (!%p3776_p6), %v3172_v21, %v3147_v34 }
 0x26b   : > { %v3198_v47 = vadd.f32 (!%p3776_p6), %v3176_v31, %v3148_v41 }
 0x26c   : > { %v3205_v58 = vmax.f32 (!%p3776_p6), %v3197_v14, 0.0 }
 0x26d   : > { %v3206_v61 = vmax.f32 (!%p3776_p6), %v3198_v47, 0.0 }
 0x26f   : > { %v3786_v2 = vpack.c.bf16 (!%p3776_p6), %v3206_v61, %v3205_v58 }
 0x271   : > { %3243 = vst [vmem:[%s4126_s11 + $0x10] sm:$0xff] (!%p3776_p6), %v3786_v2 }
 0x29d   : > { %v3075_v5 = vpop.f32.mrb[20].mxu0 }
 0x29e   : > { %v3076_v6 = vadd.f32 %v3075_v5, %v3034_v56  ;;  %v3116_v7 = vpop.f32.mrb[20].mxu1  ;;  %v3077_v9 = vpop.f32.mrb[21].mxu0  ;;  %v3203_v56 = vmax.f32 (!%p3776_p6), %v3195_v45, 0.0 }
 0x29f   : > { %v3078_v11 = vadd.f32 %v3077_v9, %v3036_v62  ;;  %v3118_v12 = vpop.f32.mrb[21].mxu1  ;;  %v3079_v13 = vpop.f32.mrb[22].mxu0  ;;  %3142 = sbr.rel (%p3776_p6) target bundleno = 692 (0x2b4), region = 44 }
 0x2a0   : > { %v3117_v15 = vadd.f32 %v3116_v7, %v3076_v6  ;;  %v3120_v18 = vpop.f32.mrb[22].mxu1  ;;  %v3080_v19 = vpop.f32.mrb[23].mxu0  ;;  %v3785_v1 = vpack.c.bf16 (!%p3776_p6), %v3204_v57, %v3203_v56 }
 0x2a1   : > { %v3119_v49 = vadd.f32 %v3118_v12, %v3078_v11  ;;  %v3121_v22 = vpop.f32.mrb[23].mxu1 }
 0x2a2   : > { %v3129_v23 = vadd.f32 %v3117_v15, %v301_v10  ;;  %3242 = vst [vmem:[%s4126_s11 + $0x8] sm:$0xff] (!%p3776_p6), %v3785_v1 }
 0x2a3   : > { %v3130_v24 = vadd.f32 %v3119_v49, %v302_v16 }
 0x2a4   : > { %3137 = vst [vmem:[#allocation2 + $0x30] sm:$0xff] %v3129_v23 }
 0x2a5   : > { %3138 = vst [vmem:[#allocation2 + $0x38] sm:$0xff] %v3130_v24 }
 0x2ab   : > { %v3149_v60 = vld [vmem:[#allocation2 + $0x30] sm:$0xff] }
 0x2ac   : > { %v3150_v42 = vld [vmem:[#allocation2 + $0x38] sm:$0xff]  ;;  %v3199_v48 = vadd.f32 %v3180_v27, %v3149_v60 }
 0x2ad   : > { %v3200_v50 = vadd.f32 %v3184_v8, %v3150_v42 }
 0x2ae   : > { %v3207_v62 = vmax.f32 %v3199_v48, 0.0 }
 0x2af   : > { %v3208_v63 = vmax.f32 %v3200_v50, 0.0 }
 0x2b1   : > { %v3787_v3 = vpack.c.bf16 %v3208_v63, %v3207_v62 }
 0x2b3   : > { %3244 = vst [vmem:[%s4126_s11 + $0x18] sm:$0xff] %v3787_v3 }
 0x2b4 PF: > { %s16_s19 = sadd.s32 1, %s3967_s19   ;;  %s4628_s12 = smov %s3943_s13 }
 0x2b5   : > { %p13_p8 = scmp.ge.s32.totalorder %s16_s19, 32   ;;  %s4629_s13 = smov %s3947_s14 }
 0x2b6   : > { %s4630_s14 = smov %s4061_s5  ;;  %s4631_s15 = smov %s3959_s17 }
 0x2b7   : > { %s4632_s16 = smov %s3963_s18  ;;  %s4633_s17 = smov %s4636_s21 }
 0x2b8   : > { %s4634_s18 = smov %s4640_s22  ;;  %15 = sbr.rel (!%p13_p8) target bundleno = 5 (0x5), region = 86 }
 0x2bf   :  { %3275 = vsyncpa [#allocation4], 1 }
 0x2c0   :  { %3277 = vsyncpa [#allocation4 + $0x1], 1 }

// kernel: efficientnet_segmentation_forward.8
= control target key start
LH: loop header
LB: loop body
LE: loop exit
PB: predicated region body
PF: predicated region fallthrough
CT: control target
= control target key end

     0   :  { %s2854_s12 = smov 0   ;;  %s2856_s13 = smov 0   ;;  %s3156_s0 = inlined_call_operand.vmem [shape: bf16[32,4608], index: 0, kind: input, shape index: {}]   ;;  %s3157_s1 = inlined_call_operand.vmem [shape: bf16[4608,512], index: 1, kind: input, shape index: {}]   ;;  %s3158_s2 = inlined_call_operand.vmem [shape: f32[1,512], index: 2, kind: input, shape index: {}]   ;;  %s3159_s3 = inlined_call_operand.vmem [shape: bf16[32,512], index: 3, kind: output, shape index: {}]  }
   0x1   :  { %s2858_s14 = smov 0   ;;  %s2860_s15 = smov 0  }
   0x2   :  { %s2862_s16 = smov 0  }
   0x3 LB: > { %s25_s17 = sadd.s32 1, %s2827_s15  ;;  %p48_p1 = scmp.ne.s32.totalorder %s2819_s13, %s2815_s12  ;;  %s2831_s16 = sphi %s2862_s16, %s13_s16   ;;  %s2827_s15 = sphi %s2860_s15, %s3163_s15   ;;  %s2823_s14 = sphi %s2858_s14, %s3162_s14   ;;  %s2819_s13 = sphi %s2856_s13, %s3161_s13   ;;  %s2815_s12 = sphi %s2854_s12, %s3160_s12  }
   0x4   : > { %p26_p0 = scmp.ge.s32.totalorder %s25_s17, 6  ;;  %p49_p2 = scmp.eq.s32.totalorder %s2831_s16, 0 }
   0x5   : > { %s41_s19 = sadd.s32 1, %s2819_s13  ;;  %p2179_p5 = scmp.ge.s32.totalorder %s2831_s16, 6 }
   0x6   : > { %s3165_s17 = smov (%p26_p0, %s25_s17), 0  ;;  %p50_p3 = por %p49_p2, %p48_p1 }
   0x7   : > { %s37_s18 = ssub.s32 %s2827_s15, %s3165_s17  ;;  %164 = sbr.rel (%p2179_p5) target bundleno = 25 (0x19), region = 20 }
   0x8   : > { %p39_p4 = scmp.eq.s32.totalorder %s37_s18, 0 }
   0xa   : > { %s2889_s20 = scalar_select %p39_p4, %s2819_s13, %s41_s19  }
   0xe   : > { %167 = sbr.rel (!%p50_p3) target bundleno = 25 (0x19), region = 24  ;;  %s169_s21 = sand.u32 (%p50_p3), 1, %s2819_s13  }
   0xf   : > { %s2402_s22 = smul.u32 (%p50_p3), 24, %s2827_s15 }
  0x10   : > { %s2444_s23 = smul.u32 (%p50_p3), 96, %s169_s21 }
  0x11   : > { %s177_s26 = scalar_lea.vmem (%p50_p3), %s3156_s0, %s2402_s22 }
  0x12   : > { %v190_v0 = vld [vmem:[%s177_s26] sm:$0xff] (%p50_p3)  ;;  %v192_v1 = vld [vmem:[%s177_s26 + $0x8] sm:$0xff] (%p50_p3)  ;;  %v194_v2 = vld [vmem:[%s177_s26 + $0x10] sm:$0xff] (%p50_p3)  ;;  %s171_s27 = scalar_lea.vmem (%p50_p3), [#allocation3], %s2444_s23 }
  0x13   : > { %191 = vst [vmem:[%s171_s27] sm:$0xff] (%p50_p3), %v190_v0  ;;  %193 = vst [vmem:[%s171_s27 + $0x8] sm:$0xff] (%p50_p3), %v192_v1  ;;  %v196_v3 = vld [vmem:[%s177_s26 + $0x90] sm:$0xff] (%p50_p3)  ;;  %v198_v4 = vld [vmem:[%s177_s26 + $0x98] sm:$0xff] (%p50_p3) }
  0x14   : > { %195 = vst [vmem:[%s171_s27 + $0x10] sm:$0xff] (%p50_p3), %v194_v2  ;;  %v200_v5 = vld [vmem:[%s177_s26 + $0xa0] sm:$0xff] (%p50_p3)  ;;  %197 = vst [vmem:[%s171_s27 + $0x18] sm:$0xff] (%p50_p3), %v196_v3  ;;  %v204_v7 = vld [vmem:[%s177_s26 + $0x128] sm:$0xff] (%p50_p3) }
  0x15   : > { %199 = vst [vmem:[%s171_s27 + $0x20] sm:$0xff] %v198_v4  ;;  %201 = vst [vmem:[%s171_s27 + $0x28] sm:$0xff] %v200_v5  ;;  %v202_v6 = vld [vmem:[%s177_s26 + $0x120] sm:$0xff]  ;;  %v206_v8 = vld [vmem:[%s177_s26 + $0x130] sm:$0xff] }
  0x16   : > { %203 = vst [vmem:[%s171_s27 + $0x30] sm:$0xff] %v202_v6  ;;  %205 = vst [vmem:[%s171_s27 + $0x38] sm:$0xff] %v204_v7  ;;  %v208_v9 = vld [vmem:[%s177_s26 + $0x1b0] sm:$0xff]  ;;  %v210_v10 = vld [vmem:[%s177_s26 + $0x1b8] sm:$0xff] }
  0x17   : > { %207 = vst [vmem:[%s171_s27 + $0x40] sm:$0xff] %v206_v8  ;;  %v212_v11 = vld [vmem:[%s177_s26 + $0x1c0] sm:$0xff]  ;;  %209 = vst [vmem:[%s171_s27 + $0x48] sm:$0xff] %v208_v9 }
  0x18   : > { %211 = vst [vmem:[%s171_s27 + $0x50] sm:$0xff] %v210_v10  ;;  %213 = vst [vmem:[%s171_s27 + $0x58] sm:$0xff] %v212_v11 }
  0x19 PF: > { %p2181_p6 = scmp.ge.s32.totalorder %s2831_s16, 1  ;;  %p233_p7 = scmp.lt.s32.totalorder %s2831_s16, 7 }
  0x1b   : > { %p234_p8 = pnand %p2181_p6, %p233_p7 }
  0x1c   : > { %s240_s28 = sand.u32 (!%p234_p8), 1, %s2815_s12   ;;  %s284_s29 = smul.u32 (!%p234_p8), 96, %s2823_s14 }
  0x1d   : > { %237 = sbr.rel (%p234_p8) target bundleno = 479 (0x1df), region = 51  ;;  %p2184_p10 = scmp.ne.s32.totalorder (!%p234_p8), %s2823_s14, 0 }
  0x1e   : > { %s2445_s30 = smul.u32 (!%p234_p8), 96, %s240_s28  ;;  %p286_p9 = scmp.lt.s32.totalorder (!%p234_p8), %s284_s29, 575 }
  0x20   : > { %s2906_s8 = scalar_lea.vmem (!%p234_p8), [#allocation3], %s2445_s30 }
  0x24   : > { %s3167_s29 = smov (!%p286_p9, %s284_s29), 575  ;;  %316 = sbr.rel (%p2184_p10) target bundleno = 46 (0x2e), region = 59 }
  0x25   : > { %s2403_s4 = sshll.u32 %s3167_s29, 4  ;;  %v2833_v12 = vmov (!%p2184_p10), 0.0  }
  0x26   : > { %s2904_s7 = scalar_lea.vmem %s3157_s1, %s2403_s4  ;;  %317 = vst [vmem:[#allocation2] sm:$0xff] (!%p2184_p10), %v2833_v12  ;;  %318 = vst [vmem:[#allocation2 + $0x8] sm:$0xff] (!%p2184_p10), %v2833_v12 }
  0x27   : > { %319 = vst [vmem:[#allocation2 + $0x10] sm:$0xff] (!%p2184_p10), %v2833_v12  ;;  %320 = vst [vmem:[#allocation2 + $0x18] sm:$0xff] (!%p2184_p10), %v2833_v12 }
  0x28   : > { %321 = vst [vmem:[#allocation2 + $0x20] sm:$0xff] (!%p2184_p10), %v2833_v12  ;;  %322 = vst [vmem:[#allocation2 + $0x28] sm:$0xff] (!%p2184_p10), %v2833_v12 }
  0x29   : > { %323 = vst [vmem:[#allocation2 + $0x30] sm:$0xff] (!%p2184_p10), %v2833_v12  ;;  %324 = vst [vmem:[#allocation2 + $0x38] sm:$0xff] (!%p2184_p10), %v2833_v12 }
  0x2a   : > { %325 = vst [vmem:[#allocation2 + $0x40] sm:$0xff] (!%p2184_p10), %v2833_v12  ;;  %326 = vst [vmem:[#allocation2 + $0x48] sm:$0xff] (!%p2184_p10), %v2833_v12 }
  0x2b   : > { %327 = vst [vmem:[#allocation2 + $0x50] sm:$0xff] %v2833_v12  ;;  %328 = vst [vmem:[#allocation2 + $0x58] sm:$0xff] %v2833_v12 }
  0x2c   : > { %329 = vst [vmem:[#allocation2 + $0x60] sm:$0xff] %v2833_v12  ;;  %330 = vst [vmem:[#allocation2 + $0x68] sm:$0xff] %v2833_v12 }
  0x2d   : > { %331 = vst [vmem:[#allocation2 + $0x70] sm:$0xff] %v2833_v12  ;;  %332 = vst [vmem:[#allocation2 + $0x78] sm:$0xff] %v2833_v12 }
  0x2e PF: > { %v2487_v13 = vld [vmem:[%s2904_s7 + $0x4] ss:$16 sps:$4 sm:$0xff]   ;;  %v2489_v14 = vld [vmem:[%s2904_s7 + $0xc] ss:$16 sps:$4 sm:$0xff]   ;;  %v2491_v15 = vld [vmem:[%s2904_s7] ss:$16 sps:$4 sm:$0xff]  }
  0x2f   : > { %1573 = vmatprep.subr.bf16.mxu0 %v2487_v13  ;;  %v2492_v16 = vld [vmem:[%s2904_s7 + $0x8] ss:$16 sps:$4 sm:$0xff]   ;;  %1732 = vmatprep.subr.bf16.mxu1 %v2489_v14  ;;  %v2493_v17 = vld [vmem:[%s2904_s7 + $0x24] ss:$16 sps:$4 sm:$0xff]   ;;  %v2495_v18 = vld [vmem:[%s2904_s7 + $0x2c] ss:$16 sps:$4 sm:$0xff]  }
  0x30   : > { %1574 = vmatpush1.bf16.msra.mxu0 %v2491_v15  ;;  %1733 = vmatpush1.bf16.msra.mxu1 %v2492_v16  ;;  %v2497_v19 = vld [vmem:[%s2904_s7 + $0x20] ss:$16 sps:$4 sm:$0xff]   ;;  %v2498_v20 = vld [vmem:[%s2904_s7 + $0x28] ss:$16 sps:$4 sm:$0xff]   ;;  %v2499_v21 = vld [vmem:[%s2904_s7 + $0x44] ss:$16 sps:$4 sm:$0xff]  }
  0x31   : > { %1575 = vmatprep.subr.bf16.mxu0 %v2493_v17  ;;  %1734 = vmatprep.subr.bf16.mxu1 %v2495_v18  ;;  %v2501_v22 = vld [vmem:[%s2904_s7 + $0x4c] ss:$16 sps:$4 sm:$0xff]   ;;  %v2503_v23 = vld [vmem:[%s2904_s7 + $0x40] ss:$16 sps:$4 sm:$0xff]   ;;  %v2504_v24 = vld [vmem:[%s2904_s7 + $0x48] ss:$16 sps:$4 sm:$0xff]  }
  0x32   : > { %v2505_v25 = vld [vmem:[%s2904_s7 + $0x64] ss:$16 sps:$4 sm:$0xff]   ;;  %v2507_v26 = vld [vmem:[%s2904_s7 + $0x6c] ss:$16 sps:$4 sm:$0xff]   ;;  %v2509_v27 = vld [vmem:[%s2904_s7 + $0x60] ss:$16 sps:$4 sm:$0xff]  }
  0x33   : > { %v2510_v28 = vld [vmem:[%s2904_s7 + $0x68] ss:$16 sps:$4 sm:$0xff]   ;;  %v2511_v29 = vld [vmem:[%s2904_s7 + $0x84] ss:$16 sps:$4 sm:$0xff]   ;;  %v2513_v30 = vld [vmem:[%s2904_s7 + $0x8c] ss:$16 sps:$4 sm:$0xff]  }
  0x34   : > { %1576 = vmatpush1.bf16.msra.mxu0 %v2497_v19  ;;  %1735 = vmatpush1.bf16.msra.mxu1 %v2498_v20  ;;  %v2515_v31 = vld [vmem:[%s2904_s7 + $0x80] ss:$16 sps:$4 sm:$0xff]   ;;  %v2516_v32 = vld [vmem:[%s2904_s7 + $0x88] ss:$16 sps:$4 sm:$0xff]   ;;  %v2517_v33 = vld [vmem:[%s2904_s7 + $0xa4] ss:$16 sps:$4 sm:$0xff]  }
  0x35   : > { %1577 = vmatprep.subr.bf16.mxu0 %v2499_v21  ;;  %1736 = vmatprep.subr.bf16.mxu1 %v2501_v22  ;;  %v2519_v34 = vld [vmem:[%s2904_s7 + $0xac] ss:$16 sps:$4 sm:$0xff]   ;;  %v2521_v35 = vld [vmem:[%s2904_s7 + $0xa0] ss:$16 sps:$4 sm:$0xff]   ;;  %v2522_v36 = vld [vmem:[%s2904_s7 + $0xa8] ss:$16 sps:$4 sm:$0xff]  }
  0x36   : > { %v2523_v37 = vld [vmem:[%s2904_s7 + $0xc4] ss:$16 sps:$4 sm:$0xff]   ;;  %v2525_v38 = vld [vmem:[%s2904_s7 + $0xcc] ss:$16 sps:$4 sm:$0xff]   ;;  %v2527_v39 = vld [vmem:[%s2904_s7 + $0xc0] ss:$16 sps:$4 sm:$0xff]  }
  0x37   : > { %v2528_v40 = vld [vmem:[%s2904_s7 + $0xc8] ss:$16 sps:$4 sm:$0xff]   ;;  %v2529_v41 = vld [vmem:[%s2904_s7 + $0xe4] ss:$16 sps:$4 sm:$0xff]   ;;  %v2531_v42 = vld [vmem:[%s2904_s7 + $0xec] ss:$16 sps:$4 sm:$0xff]  }
  0x38   : > { %1578 = vmatpush1.bf16.msra.mxu0 %v2503_v23  ;;  %1737 = vmatpush1.bf16.msra.mxu1 %v2504_v24  ;;  %v2533_v43 = vld [vmem:[%s2904_s7 + $0xe0] ss:$16 sps:$4 sm:$0xff]   ;;  %v2534_v44 = vld [vmem:[%s2904_s7 + $0xe8] ss:$16 sps:$4 sm:$0xff]   ;;  %v2535_v45 = vld [vmem:[%s2904_s7 + $0x104] ss:$16 sps:$4 sm:$0xff]  }
  0x39   : > { %1579 = vmatprep.subr.bf16.mxu0 %v2505_v25  ;;  %1738 = vmatprep.subr.bf16.mxu1 %v2507_v26  ;;  %v2537_v46 = vld [vmem:[%s2904_s7 + $0x10c] ss:$16 sps:$4 sm:$0xff]   ;;  %v2539_v47 = vld [vmem:[%s2904_s7 + $0x100] ss:$16 sps:$4 sm:$0xff]   ;;  %v2540_v48 = vld [vmem:[%s2904_s7 + $0x108] ss:$16 sps:$4 sm:$0xff]  }
  0x3a   : > { %v2541_v49 = vld [vmem:[%s2904_s7 + $0x124] ss:$16 sps:$4 sm:$0xff]   ;;  %v2543_v50 = vld [vmem:[%s2904_s7 + $0x12c] ss:$16 sps:$4 sm:$0xff]   ;;  %v2545_v51 = vld [vmem:[%s2904_s7 + $0x120] ss:$16 sps:$4 sm:$0xff]  }
  0x3b   : > { %v2546_v52 = vld [vmem:[%s2904_s7 + $0x128] ss:$16 sps:$4 sm:$0xff]   ;;  %v2547_v53 = vld [vmem:[%s2904_s7 + $0x144] ss:$16 sps:$4 sm:$0xff]   ;;  %v2549_v54 = vld [vmem:[%s2904_s7 + $0x14c] ss:$16 sps:$4 sm:$0xff]  }
  0x3c   : > { %1580 = vmatpush1.bf16.msra.mxu0 %v2509_v27  ;;  %1739 = vmatpush1.bf16.msra.mxu1 %v2510_v28  ;;  %v2551_v55 = vld [vmem:[%s2904_s7 + $0x140] ss:$16 sps:$4 sm:$0xff]   ;;  %v2552_v56 = vld [vmem:[%s2904_s7 + $0x148] ss:$16 sps:$4 sm:$0xff]   ;;  %v2553_v57 = vld [vmem:[%s2904_s7 + $0x164] ss:$16 sps:$4 sm:$0xff]  }
  0x3d   : > { %1581 = vmatprep.subr.bf16.mxu0 %v2511_v29  ;;  %1740 = vmatprep.subr.bf16.mxu1 %v2513_v30  ;;  %v2555_v58 = vld [vmem:[%s2904_s7 + $0x16c] ss:$16 sps:$4 sm:$0xff]   ;;  %v2557_v59 = vld [vmem:[%s2904_s7 + $0x160] ss:$16 sps:$4 sm:$0xff]   ;;  %v2558_v60 = vld [vmem:[%s2904_s7 + $0x168] ss:$16 sps:$4 sm:$0xff]  }
  0x3e   : > { %v2585_v61 = vld [vmem:[%s2906_s8 + $0x4] ss:$24 sps:$4 sm:$0xff]   ;;  %v2563_v0 = vld [vmem:[%s2904_s7 + $0x180] ss:$16 sps:$4 sm:$0xff]   ;;  %v2564_v1 = vld [vmem:[%s2904_s7 + $0x188] ss:$16 sps:$4 sm:$0xff]  }
  0x3f   : > { %v2559_v62 = vld [vmem:[%s2904_s7 + $0x184] ss:$16 sps:$4 sm:$0xff]   ;;  %v2561_v63 = vld [vmem:[%s2904_s7 + $0x18c] ss:$16 sps:$4 sm:$0xff]   ;;  %1605 = vmatprep.mubr.bf16.mxu0 %v2585_v61  ;;  %1764 = vmatprep.mubr.bf16.mxu1 %v2585_v61  ;;  %v2569_v4 = vld [vmem:[%s2904_s7 + $0x1a0] ss:$16 sps:$4 sm:$0xff]  }
  0x40   : > { %1582 = vmatpush1.bf16.msra.mxu0 %v2515_v31  ;;  %1741 = vmatpush1.bf16.msra.mxu1 %v2516_v32  ;;  %v2565_v2 = vld [vmem:[%s2904_s7 + $0x1a4] ss:$16 sps:$4 sm:$0xff]   ;;  %v2567_v3 = vld [vmem:[%s2904_s7 + $0x1ac] ss:$16 sps:$4 sm:$0xff]   ;;  %v2570_v5 = vld [vmem:[%s2904_s7 + $0x1a8] ss:$16 sps:$4 sm:$0xff]  }
  0x41   : > { %1583 = vmatprep.subr.bf16.mxu0 %v2517_v33  ;;  %1742 = vmatprep.subr.bf16.mxu1 %v2519_v34  ;;  %v2571_v6 = vld [vmem:[%s2904_s7 + $0x1c4] ss:$16 sps:$4 sm:$0xff]   ;;  %v2573_v7 = vld [vmem:[%s2904_s7 + $0x1cc] ss:$16 sps:$4 sm:$0xff]   ;;  %v2575_v8 = vld [vmem:[%s2904_s7 + $0x1c0] ss:$16 sps:$4 sm:$0xff]  }
  0x42   : > { %v2576_v9 = vld [vmem:[%s2904_s7 + $0x1c8] ss:$16 sps:$4 sm:$0xff]   ;;  %v2577_v10 = vld [vmem:[%s2904_s7 + $0x1e4] ss:$16 sps:$4 sm:$0xff]   ;;  %v2579_v11 = vld [vmem:[%s2904_s7 + $0x1ec] ss:$16 sps:$4 sm:$0xff]  }
  0x43   : > { %v2581_v12 = vld [vmem:[%s2904_s7 + $0x1e0] ss:$16 sps:$4 sm:$0xff]   ;;  %v2582_v13 = vld [vmem:[%s2904_s7 + $0x1e8] ss:$16 sps:$4 sm:$0xff]   ;;  %v2588_v14 = vld [vmem:[%s2904_s7 + $0x204] ss:$16 sps:$4 sm:$0xff]  }
  0x44   : > { %1584 = vmatpush1.bf16.msra.mxu0 %v2521_v35  ;;  %1743 = vmatpush1.bf16.msra.mxu1 %v2522_v36  ;;  %v2591_v15 = vld [vmem:[%s2904_s7 + $0x20c] ss:$16 sps:$4 sm:$0xff]   ;;  %v2583_v16 = vld [vmem:[%s2906_s8] ss:$24 sps:$4 sm:$0xff]   ;;  %v2594_v19 = vld [vmem:[%s2904_s7 + $0x224] ss:$16 sps:$4 sm:$0xff]  }
  0x45   : > { %1585 = vmatprep.subr.bf16.mxu0 %v2523_v37  ;;  %1744 = vmatprep.subr.bf16.mxu1 %v2525_v38  ;;  %v2586_v17 = vld [vmem:[%s2904_s7 + $0x200] ss:$16 sps:$4 sm:$0xff]   ;;  %v2589_v18 = vld [vmem:[%s2904_s7 + $0x208] ss:$16 sps:$4 sm:$0xff]   ;;  %v2597_v20 = vld [vmem:[%s2904_s7 + $0x22c] ss:$16 sps:$4 sm:$0xff]  }
  0x46   : > { %v2592_v21 = vld [vmem:[%s2904_s7 + $0x220] ss:$16 sps:$4 sm:$0xff]   ;;  %v2595_v22 = vld [vmem:[%s2904_s7 + $0x228] ss:$16 sps:$4 sm:$0xff]   ;;  %v2600_v23 = vld [vmem:[%s2904_s7 + $0x244] ss:$16 sps:$4 sm:$0xff]  }
  0x47   : > { %v2603_v24 = vld [vmem:[%s2904_s7 + $0x24c] ss:$16 sps:$4 sm:$0xff]   ;;  %v2598_v25 = vld [vmem:[%s2904_s7 + $0x240] ss:$16 sps:$4 sm:$0xff]   ;;  %v2601_v26 = vld [vmem:[%s2904_s7 + $0x248] ss:$16 sps:$4 sm:$0xff]  }
  0x48   : > { %1586 = vmatpush1.bf16.msra.mxu0 %v2527_v39  ;;  %1745 = vmatpush1.bf16.msra.mxu1 %v2528_v40  ;;  %v2606_v27 = vld [vmem:[%s2904_s7 + $0x264] ss:$16 sps:$4 sm:$0xff]   ;;  %v2609_v28 = vld [vmem:[%s2904_s7 + $0x26c] ss:$16 sps:$4 sm:$0xff]   ;;  %v2604_v29 = vld [vmem:[%s2904_s7 + $0x260] ss:$16 sps:$4 sm:$0xff]  }
  0x49   : > { %1587 = vmatprep.subr.bf16.mxu0 %v2529_v41  ;;  %1746 = vmatprep.subr.bf16.mxu1 %v2531_v42  ;;  %v2607_v30 = vld [vmem:[%s2904_s7 + $0x268] ss:$16 sps:$4 sm:$0xff]   ;;  %v2612_v31 = vld [vmem:[%s2904_s7 + $0x284] ss:$16 sps:$4 sm:$0xff]   ;;  %v2615_v32 = vld [vmem:[%s2904_s7 + $0x28c] ss:$16 sps:$4 sm:$0xff]  }
  0x4a   : > { %v2610_v33 = vld [vmem:[%s2904_s7 + $0x280] ss:$16 sps:$4 sm:$0xff]   ;;  %v2613_v34 = vld [vmem:[%s2904_s7 + $0x288] ss:$16 sps:$4 sm:$0xff]   ;;  %v2618_v35 = vld [vmem:[%s2904_s7 + $0x2a4] ss:$16 sps:$4 sm:$0xff]  }
  0x4b   : > { %v2621_v36 = vld [vmem:[%s2904_s7 + $0x2ac] ss:$16 sps:$4 sm:$0xff]   ;;  %v2616_v38 = vld [vmem:[%s2904_s7 + $0x2a0] ss:$16 sps:$4 sm:$0xff]   ;;  %v2619_v39 = vld [vmem:[%s2904_s7 + $0x2a8] ss:$16 sps:$4 sm:$0xff]  }
  0x4c   : > { %1588 = vmatpush1.bf16.msra.mxu0 %v2533_v43  ;;  %1747 = vmatpush1.bf16.msra.mxu1 %v2534_v44  ;;  %v2670_v37 = vld [vmem:[%s2906_s8 + $0x34] ss:$24 sps:$4 sm:$0xff]   ;;  %v2678_v42 = vld [vmem:[%s2906_s8 + $0x30] ss:$24 sps:$4 sm:$0xff]   ;;  %p2389_p11 = scmp.ne.s32.totalorder %s2823_s14, 5 }
  0x4d   : > { %1589 = vmatprep.subr.bf16.mxu0 %v2535_v45  ;;  %1748 = vmatprep.subr.bf16.mxu1 %v2537_v46  ;;  %v2624_v40 = vld [vmem:[%s2904_s7 + $0x2c4] ss:$16 sps:$4 sm:$0xff]   ;;  %v2627_v41 = vld [vmem:[%s2904_s7 + $0x2cc] ss:$16 sps:$4 sm:$0xff]   ;;  %v2622_v43 = vld [vmem:[%s2904_s7 + $0x2c0] ss:$16 sps:$4 sm:$0xff]  }
  0x4e   : > { %v2625_v44 = vld [vmem:[%s2904_s7 + $0x2c8] ss:$16 sps:$4 sm:$0xff]   ;;  %v2630_v45 = vld [vmem:[%s2904_s7 + $0x2e4] ss:$16 sps:$4 sm:$0xff]   ;;  %v2633_v46 = vld [vmem:[%s2904_s7 + $0x2ec] ss:$16 sps:$4 sm:$0xff]  }
  0x4f   : > { %v2649_v61 = vld [vmem:[%s2904_s7 + $0x348] ss:$16 sps:$4 sm:$0xff]  }
  0x50   : > { %1590 = vmatpush1.bf16.msra.mxu0 %v2539_v47  ;;  %1749 = vmatpush1.bf16.msra.mxu1 %v2540_v48  ;;  %v2687_v47 = vld [vmem:[%s2906_s8 + $0xc] ss:$24 sps:$4 sm:$0xff]   ;;  %v2628_v48 = vld [vmem:[%s2904_s7 + $0x2e0] ss:$16 sps:$4 sm:$0xff]  }
  0x51   : > { %1591 = vmatprep.subr.bf16.mxu0 %v2541_v49  ;;  %1750 = vmatprep.subr.bf16.mxu1 %v2543_v50  ;;  %v2631_v49 = vld [vmem:[%s2904_s7 + $0x2e8] ss:$16 sps:$4 sm:$0xff]   ;;  %v2636_v50 = vld [vmem:[%s2904_s7 + $0x304] ss:$16 sps:$4 sm:$0xff]  }
  0x54   : > { %1592 = vmatpush1.bf16.msra.mxu0 %v2545_v51  ;;  %1751 = vmatpush1.bf16.msra.mxu1 %v2546_v52  ;;  %v2639_v51 = vld [vmem:[%s2904_s7 + $0x30c] ss:$16 sps:$4 sm:$0xff]   ;;  %v2634_v52 = vld [vmem:[%s2904_s7 + $0x300] ss:$16 sps:$4 sm:$0xff]  }
  0x55   : > { %1593 = vmatprep.subr.bf16.mxu0 %v2547_v53  ;;  %1752 = vmatprep.subr.bf16.mxu1 %v2549_v54  ;;  %v2637_v53 = vld [vmem:[%s2904_s7 + $0x308] ss:$16 sps:$4 sm:$0xff]   ;;  %v2642_v54 = vld [vmem:[%s2904_s7 + $0x324] ss:$16 sps:$4 sm:$0xff]  }
  0x58   : > { %1594 = vmatpush1.bf16.msra.mxu0 %v2551_v55  ;;  %1753 = vmatpush1.bf16.msra.mxu1 %v2552_v56  ;;  %v2645_v55 = vld [vmem:[%s2904_s7 + $0x32c] ss:$16 sps:$4 sm:$0xff]   ;;  %v2640_v56 = vld [vmem:[%s2904_s7 + $0x320] ss:$16 sps:$4 sm:$0xff]  }
  0x59   : > { %1595 = vmatprep.subr.bf16.mxu0 %v2553_v57  ;;  %1754 = vmatprep.subr.bf16.mxu1 %v2555_v58  ;;  %v2643_v57 = vld [vmem:[%s2904_s7 + $0x328] ss:$16 sps:$4 sm:$0xff]   ;;  %v2648_v58 = vld [vmem:[%s2904_s7 + $0x344] ss:$16 sps:$4 sm:$0xff]  }
  0x5c   : > { %1596 = vmatpush1.bf16.msra.mxu0 %v2557_v59  ;;  %1755 = vmatpush1.bf16.msra.mxu1 %v2558_v60  ;;  %v2651_v59 = vld [vmem:[%s2904_s7 + $0x34c] ss:$16 sps:$4 sm:$0xff]   ;;  %v2646_v60 = vld [vmem:[%s2904_s7 + $0x340] ss:$16 sps:$4 sm:$0xff]  }
  0x5d   : > { %1597 = vmatprep.subr.bf16.mxu0 %v2559_v62  ;;  %1756 = vmatprep.subr.bf16.mxu1 %v2561_v63  ;;  %v2654_v62 = vld [vmem:[%s2904_s7 + $0x364] ss:$16 sps:$4 sm:$0xff]   ;;  %v2657_v63 = vld [vmem:[%s2904_s7 + $0x36c] ss:$16 sps:$4 sm:$0xff]  }
  0x60   : > { %1598 = vmatpush1.bf16.msra.mxu0 %v2563_v0  ;;  %1757 = vmatpush1.bf16.msra.mxu1 %v2564_v1  ;;  %v2652_v0 = vld [vmem:[%s2904_s7 + $0x360] ss:$16 sps:$4 sm:$0xff]   ;;  %v2655_v1 = vld [vmem:[%s2904_s7 + $0x368] ss:$16 sps:$4 sm:$0xff]  }
  0x61   : > { %1599 = vmatprep.subr.bf16.mxu0 %v2565_v2  ;;  %1758 = vmatprep.subr.bf16.mxu1 %v2567_v3  ;;  %v2660_v2 = vld [vmem:[%s2904_s7 + $0x384] ss:$16 sps:$4 sm:$0xff]   ;;  %v2663_v3 = vld [vmem:[%s2904_s7 + $0x38c] ss:$16 sps:$4 sm:$0xff]  }
  0x64   : > { %1600 = vmatpush1.bf16.msra.mxu0 %v2569_v4  ;;  %1759 = vmatpush1.bf16.msra.mxu1 %v2570_v5  ;;  %v2658_v4 = vld [vmem:[%s2904_s7 + $0x380] ss:$16 sps:$4 sm:$0xff]   ;;  %v2661_v5 = vld [vmem:[%s2904_s7 + $0x388] ss:$16 sps:$4 sm:$0xff]  }
  0x65   : > { %1601 = vmatprep.subr.bf16.mxu0 %v2571_v6  ;;  %1760 = vmatprep.subr.bf16.mxu1 %v2573_v7  ;;  %v2666_v6 = vld [vmem:[%s2904_s7 + $0x3a4] ss:$16 sps:$4 sm:$0xff]   ;;  %v2669_v7 = vld [vmem:[%s2904_s7 + $0x3ac] ss:$16 sps:$4 sm:$0xff]  }
  0x68   : > { %1602 = vmatpush1.bf16.msra.mxu0 %v2575_v8  ;;  %1761 = vmatpush1.bf16.msra.mxu1 %v2576_v9  ;;  %v2664_v8 = vld [vmem:[%s2904_s7 + $0x3a0] ss:$16 sps:$4 sm:$0xff]   ;;  %v2667_v9 = vld [vmem:[%s2904_s7 + $0x3a8] ss:$16 sps:$4 sm:$0xff]  }
  0x69   : > { %1603 = vmatprep.subr.bf16.mxu0 %v2577_v10  ;;  %1762 = vmatprep.subr.bf16.mxu1 %v2579_v11  ;;  %v2674_v10 = vld [vmem:[%s2904_s7 + $0x3c4] ss:$16 sps:$4 sm:$0xff]   ;;  %v2677_v11 = vld [vmem:[%s2904_s7 + $0x3cc] ss:$16 sps:$4 sm:$0xff]  }
  0x6c   : > { %1604 = vmatpush1.bf16.msra.mxu0 %v2581_v12  ;;  %1763 = vmatpush1.bf16.msra.mxu1 %v2582_v13  ;;  %v2672_v12 = vld [vmem:[%s2904_s7 + $0x3c0] ss:$16 sps:$4 sm:$0xff]   ;;  %v2675_v13 = vld [vmem:[%s2904_s7 + $0x3c8] ss:$16 sps:$4 sm:$0xff]  }
  0x6d   : > { %1626 = vmatprep.subr.bf16.mxu0 %v2588_v14  ;;  %1785 = vmatprep.subr.bf16.mxu1 %v2591_v15  ;;  %v2681_v14 = vld [vmem:[%s2904_s7 + $0x3e4] ss:$16 sps:$4 sm:$0xff]   ;;  %v2684_v15 = vld [vmem:[%s2904_s7 + $0x3ec] ss:$16 sps:$4 sm:$0xff]  }
  0x6f   : > { %1606 = vmatmul.mubr.bf16.vlgmr.msra.gmra.mrb[0].mxu0 %v2583_v16  ;;  %1765 = vmatmul.mubr.bf16.vlgmr.msra.gmra.mrb[0].mxu1 %v2583_v16  ;;  %v2679_v16 = vld [vmem:[%s2904_s7 + $0x3e0] ss:$16 sps:$4 sm:$0xff]  }
  0x70   : > { %1627 = vmatpush1.bf16.msra.mxu0 %v2586_v17  ;;  %1786 = vmatpush1.bf16.msra.mxu1 %v2589_v18  ;;  %v2682_v17 = vld [vmem:[%s2904_s7 + $0x3e8] ss:$16 sps:$4 sm:$0xff]   ;;  %v2690_v18 = vld [vmem:[%s2904_s7 + $0x404] ss:$16 sps:$4 sm:$0xff]  }
  0x71   : > { %1628 = vmatprep.subr.bf16.mxu0 %v2594_v19  ;;  %1787 = vmatprep.subr.bf16.mxu1 %v2597_v20  ;;  %v2693_v19 = vld [vmem:[%s2904_s7 + $0x40c] ss:$16 sps:$4 sm:$0xff]   ;;  %v2685_v20 = vld [vmem:[%s2906_s8 + $0x8] ss:$24 sps:$4 sm:$0xff]  }
  0x72   : > { %1615 = vmatprep.mubr.bf16.mxu0 %v2670_v37  ;;  %1774 = vmatprep.mubr.bf16.mxu1 %v2670_v37  ;;  %v2709_v37 = vld [vmem:[%s2904_s7 + $0x468] ss:$16 sps:$4 sm:$0xff]  }
  0x74   : > { %1629 = vmatpush1.bf16.msra.mxu0 %v2592_v21  ;;  %1788 = vmatpush1.bf16.msra.mxu1 %v2595_v22  ;;  %v2688_v21 = vld [vmem:[%s2904_s7 + $0x400] ss:$16 sps:$4 sm:$0xff]   ;;  %v2691_v22 = vld [vmem:[%s2904_s7 + $0x408] ss:$16 sps:$4 sm:$0xff]  }
  0x75   : > { %1630 = vmatprep.subr.bf16.mxu0 %v2600_v23  ;;  %1789 = vmatprep.subr.bf16.mxu1 %v2603_v24  ;;  %v2696_v23 = vld [vmem:[%s2904_s7 + $0x424] ss:$16 sps:$4 sm:$0xff]   ;;  %v2699_v24 = vld [vmem:[%s2904_s7 + $0x42c] ss:$16 sps:$4 sm:$0xff]  }
  0x77   : > { %1616 = vmatmul.mubr.bf16.gmra.mrb[4].mxu0 %v2678_v42  ;;  %1775 = vmatmul.mubr.bf16.gmra.mrb[4].mxu1 %v2678_v42  ;;  %v2720_v42 = vld [vmem:[%s2904_s7 + $0x4a4] ss:$16 sps:$4 sm:$0xff]  }
  0x78   : > { %1631 = vmatpush1.bf16.msra.mxu0 %v2598_v25  ;;  %1790 = vmatpush1.bf16.msra.mxu1 %v2601_v26  ;;  %v2772_v25 = vld [vmem:[%s2906_s8 + $0x3c] ss:$24 sps:$4 sm:$0xff]   ;;  %v2694_v26 = vld [vmem:[%s2904_s7 + $0x420] ss:$16 sps:$4 sm:$0xff]  }
  0x79   : > { %1632 = vmatprep.subr.bf16.mxu0 %v2606_v27  ;;  %1791 = vmatprep.subr.bf16.mxu1 %v2609_v28  ;;  %v2697_v27 = vld [vmem:[%s2904_s7 + $0x428] ss:$16 sps:$4 sm:$0xff]   ;;  %v2702_v28 = vld [vmem:[%s2904_s7 + $0x444] ss:$16 sps:$4 sm:$0xff]  }
  0x7a   : > { %1658 = vmatprep.mubr.bf16.mxu0 %v2687_v47  ;;  %1817 = vmatprep.mubr.bf16.mxu1 %v2687_v47  ;;  %v2729_v47 = vld [vmem:[%s2904_s7 + $0x4cc] ss:$16 sps:$4 sm:$0xff]  }
  0x7c   : > { %1633 = vmatpush1.bf16.msra.mxu0 %v2604_v29  ;;  %1792 = vmatpush1.bf16.msra.mxu1 %v2607_v30  ;;  %v2705_v29 = vld [vmem:[%s2904_s7 + $0x44c] ss:$16 sps:$4 sm:$0xff]   ;;  %v2774_v30 = vld [vmem:[%s2906_s8 + $0x38] ss:$24 sps:$4 sm:$0xff]  }
  0x7d   : > { %1634 = vmatprep.subr.bf16.mxu0 %v2612_v31  ;;  %1793 = vmatprep.subr.bf16.mxu1 %v2615_v32  ;;  %v2700_v31 = vld [vmem:[%s2904_s7 + $0x440] ss:$16 sps:$4 sm:$0xff]   ;;  %v2703_v32 = vld [vmem:[%s2904_s7 + $0x448] ss:$16 sps:$4 sm:$0xff]  }
  0x80   : > { %1635 = vmatpush1.bf16.msra.mxu0 %v2610_v33  ;;  %1794 = vmatpush1.bf16.msra.mxu1 %v2613_v34  ;;  %v2708_v33 = vld [vmem:[%s2904_s7 + $0x464] ss:$16 sps:$4 sm:$0xff]   ;;  %v2711_v34 = vld [vmem:[%s2904_s7 + $0x46c] ss:$16 sps:$4 sm:$0xff]  }
  0x81   : > { %1636 = vmatprep.subr.bf16.mxu0 %v2618_v35  ;;  %1795 = vmatprep.subr.bf16.mxu1 %v2621_v36  ;;  %v2789_v35 = vld [vmem:[%s2906_s8 + $0x14] ss:$24 sps:$4 sm:$0xff]   ;;  %v2706_v36 = vld [vmem:[%s2904_s7 + $0x460] ss:$16 sps:$4 sm:$0xff]  }
  0x84   : > { %1637 = vmatpush1.bf16.msra.mxu0 %v2616_v38  ;;  %1796 = vmatpush1.bf16.msra.mxu1 %v2619_v39  ;;  %v2714_v38 = vld [vmem:[%s2904_s7 + $0x484] ss:$16 sps:$4 sm:$0xff]   ;;  %v2717_v39 = vld [vmem:[%s2904_s7 + $0x48c] ss:$16 sps:$4 sm:$0xff]  }
  0x85   : > { %1638 = vmatprep.subr.bf16.mxu0 %v2624_v40  ;;  %1797 = vmatprep.subr.bf16.mxu1 %v2627_v41  ;;  %v2712_v40 = vld [vmem:[%s2904_s7 + $0x480] ss:$16 sps:$4 sm:$0xff]   ;;  %v2715_v41 = vld [vmem:[%s2904_s7 + $0x488] ss:$16 sps:$4 sm:$0xff]  }
  0x88   : > { %1639 = vmatpush1.bf16.msra.mxu0 %v2622_v43  ;;  %1798 = vmatpush1.bf16.msra.mxu1 %v2625_v44  ;;  %v2723_v43 = vld [vmem:[%s2904_s7 + $0x4ac] ss:$16 sps:$4 sm:$0xff]   ;;  %v2718_v44 = vld [vmem:[%s2904_s7 + $0x4a0] ss:$16 sps:$4 sm:$0xff]  }
  0x89   : > { %1640 = vmatprep.subr.bf16.mxu0 %v2630_v45  ;;  %1799 = vmatprep.subr.bf16.mxu1 %v2633_v46  ;;  %v2721_v45 = vld [vmem:[%s2904_s7 + $0x4a8] ss:$16 sps:$4 sm:$0xff]   ;;  %v2726_v46 = vld [vmem:[%s2904_s7 + $0x4c4] ss:$16 sps:$4 sm:$0xff]  }
  0x8c   : > { %1641 = vmatpush1.bf16.msra.mxu0 %v2628_v48  ;;  %1800 = vmatpush1.bf16.msra.mxu1 %v2631_v49  ;;  %v2724_v48 = vld [vmem:[%s2904_s7 + $0x4c0] ss:$16 sps:$4 sm:$0xff]   ;;  %v2727_v49 = vld [vmem:[%s2904_s7 + $0x4c8] ss:$16 sps:$4 sm:$0xff]  }
  0x8d   : > { %1642 = vmatprep.subr.bf16.mxu0 %v2636_v50  ;;  %1801 = vmatprep.subr.bf16.mxu1 %v2639_v51  ;;  %v2732_v50 = vld [vmem:[%s2904_s7 + $0x4e4] ss:$16 sps:$4 sm:$0xff]   ;;  %v2735_v51 = vld [vmem:[%s2904_s7 + $0x4ec] ss:$16 sps:$4 sm:$0xff]  }
  0x90   : > { %1643 = vmatpush1.bf16.msra.mxu0 %v2634_v52  ;;  %1802 = vmatpush1.bf16.msra.mxu1 %v2637_v53  ;;  %v2730_v52 = vld [vmem:[%s2904_s7 + $0x4e0] ss:$16 sps:$4 sm:$0xff]   ;;  %v2733_v53 = vld [vmem:[%s2904_s7 + $0x4e8] ss:$16 sps:$4 sm:$0xff]  }
  0x91   : > { %1644 = vmatprep.subr.bf16.mxu0 %v2642_v54  ;;  %1803 = vmatprep.subr.bf16.mxu1 %v2645_v55  ;;  %v2738_v54 = vld [vmem:[%s2904_s7 + $0x504] ss:$16 sps:$4 sm:$0xff]   ;;  %v2741_v55 = vld [vmem:[%s2904_s7 + $0x50c] ss:$16 sps:$4 sm:$0xff]  }
  0x94   : > { %1645 = vmatpush1.bf16.msra.mxu0 %v2640_v56  ;;  %1804 = vmatpush1.bf16.msra.mxu1 %v2643_v57  ;;  %v2736_v56 = vld [vmem:[%s2904_s7 + $0x500] ss:$16 sps:$4 sm:$0xff]   ;;  %v2739_v57 = vld [vmem:[%s2904_s7 + $0x508] ss:$16 sps:$4 sm:$0xff]  }
  0x95   : > { %1646 = vmatprep.subr.bf16.mxu0 %v2648_v58  ;;  %1805 = vmatprep.subr.bf16.mxu1 %v2651_v59  ;;  %v2744_v58 = vld [vmem:[%s2904_s7 + $0x524] ss:$16 sps:$4 sm:$0xff]   ;;  %v2747_v59 = vld [vmem:[%s2904_s7 + $0x52c] ss:$16 sps:$4 sm:$0xff]  }
  0x98   : > { %1647 = vmatpush1.bf16.msra.mxu0 %v2646_v60  ;;  %1806 = vmatpush1.bf16.msra.mxu1 %v2649_v61  ;;  %v2742_v60 = vld [vmem:[%s2904_s7 + $0x520] ss:$16 sps:$4 sm:$0xff]   ;;  %v2745_v61 = vld [vmem:[%s2904_s7 + $0x528] ss:$16 sps:$4 sm:$0xff]  }
  0x99   : > { %1648 = vmatprep.subr.bf16.mxu0 %v2654_v62  ;;  %1807 = vmatprep.subr.bf16.mxu1 %v2657_v63  ;;  %v2750_v62 = vld [vmem:[%s2904_s7 + $0x544] ss:$16 sps:$4 sm:$0xff]   ;;  %v2753_v63 = vld [vmem:[%s2904_s7 + $0x54c] ss:$16 sps:$4 sm:$0xff]  }
  0x9c   : > { %1649 = vmatpush1.bf16.msra.mxu0 %v2652_v0  ;;  %1808 = vmatpush1.bf16.msra.mxu1 %v2655_v1  ;;  %v2748_v0 = vld [vmem:[%s2904_s7 + $0x540] ss:$16 sps:$4 sm:$0xff]   ;;  %v2751_v1 = vld [vmem:[%s2904_s7 + $0x548] ss:$16 sps:$4 sm:$0xff]  }
  0x9d   : > { %1650 = vmatprep.subr.bf16.mxu0 %v2660_v2  ;;  %1809 = vmatprep.subr.bf16.mxu1 %v2663_v3  ;;  %v2756_v2 = vld [vmem:[%s2904_s7 + $0x564] ss:$16 sps:$4 sm:$0xff]   ;;  %v2759_v3 = vld [vmem:[%s2904_s7 + $0x56c] ss:$16 sps:$4 sm:$0xff]  }
  0xa0   : > { %1651 = vmatpush1.bf16.msra.mxu0 %v2658_v4  ;;  %1810 = vmatpush1.bf16.msra.mxu1 %v2661_v5  ;;  %v2754_v4 = vld [vmem:[%s2904_s7 + $0x560] ss:$16 sps:$4 sm:$0xff]   ;;  %v2757_v5 = vld [vmem:[%s2904_s7 + $0x568] ss:$16 sps:$4 sm:$0xff]  }
  0xa1   : > { %1652 = vmatprep.subr.bf16.mxu0 %v2666_v6  ;;  %1811 = vmatprep.subr.bf16.mxu1 %v2669_v7  ;;  %v2762_v6 = vld [vmem:[%s2904_s7 + $0x584] ss:$16 sps:$4 sm:$0xff]   ;;  %v2765_v7 = vld [vmem:[%s2904_s7 + $0x58c] ss:$16 sps:$4 sm:$0xff]  }
  0xa4   : > { %1653 = vmatpush1.bf16.msra.mxu0 %v2664_v8  ;;  %1812 = vmatpush1.bf16.msra.mxu1 %v2667_v9  ;;  %v2760_v8 = vld [vmem:[%s2904_s7 + $0x580] ss:$16 sps:$4 sm:$0xff]   ;;  %v2763_v9 = vld [vmem:[%s2904_s7 + $0x588] ss:$16 sps:$4 sm:$0xff]  }
  0xa5   : > { %1654 = vmatprep.subr.bf16.mxu0 %v2674_v10  ;;  %1813 = vmatprep.subr.bf16.mxu1 %v2677_v11  ;;  %v2768_v10 = vld [vmem:[%s2904_s7 + $0x5a4] ss:$16 sps:$4 sm:$0xff]   ;;  %v2771_v11 = vld [vmem:[%s2904_s7 + $0x5ac] ss:$16 sps:$4 sm:$0xff]  }
  0xa8   : > { %1655 = vmatpush1.bf16.msra.mxu0 %v2672_v12  ;;  %1814 = vmatpush1.bf16.msra.mxu1 %v2675_v13  ;;  %v2766_v12 = vld [vmem:[%s2904_s7 + $0x5a0] ss:$16 sps:$4 sm:$0xff]   ;;  %v2769_v13 = vld [vmem:[%s2904_s7 + $0x5a8] ss:$16 sps:$4 sm:$0xff]  }
  0xa9   : > { %1656 = vmatprep.subr.bf16.mxu0 %v2681_v14  ;;  %1815 = vmatprep.subr.bf16.mxu1 %v2684_v15  ;;  %v2777_v14 = vld [vmem:[%s2904_s7 + $0x5c4] ss:$16 sps:$4 sm:$0xff]   ;;  %v2780_v15 = vld [vmem:[%s2904_s7 + $0x5cc] ss:$16 sps:$4 sm:$0xff]  }
  0xac   : > { %1657 = vmatpush1.bf16.msra.mxu0 %v2679_v16  ;;  %1816 = vmatpush1.bf16.msra.mxu1 %v2682_v17  ;;  %v2775_v16 = vld [vmem:[%s2904_s7 + $0x5c0] ss:$16 sps:$4 sm:$0xff]   ;;  %v2778_v17 = vld [vmem:[%s2904_s7 + $0x5c8] ss:$16 sps:$4 sm:$0xff]  }
  0xad   : > { %1679 = vmatprep.subr.bf16.mxu0 %v2690_v18  ;;  %1838 = vmatprep.subr.bf16.mxu1 %v2693_v19  ;;  %v2783_v18 = vld [vmem:[%s2904_s7 + $0x5e4] ss:$16 sps:$4 sm:$0xff]   ;;  %v2786_v19 = vld [vmem:[%s2904_s7 + $0x5ec] ss:$16 sps:$4 sm:$0xff]  }
  0xaf   : > { %1659 = vmatmul.mubr.bf16.vlgmr.msra.gmra.mrb[0].mxu0 %v2685_v20  ;;  %1818 = vmatmul.mubr.bf16.vlgmr.msra.gmra.mrb[0].mxu1 %v2685_v20  ;;  %v2781_v20 = vld [vmem:[%s2904_s7 + $0x5e0] ss:$16 sps:$4 sm:$0xff]  }
  0xb0   : > { %1680 = vmatpush1.bf16.msra.mxu0 %v2688_v21  ;;  %1839 = vmatpush1.bf16.msra.mxu1 %v2691_v22  ;;  %v2784_v21 = vld [vmem:[%s2904_s7 + $0x5e8] ss:$16 sps:$4 sm:$0xff]  }
  0xb1   : > { %1681 = vmatprep.subr.bf16.mxu0 %v2696_v23  ;;  %1840 = vmatprep.subr.bf16.mxu1 %v2699_v24  ;;  %v2787_v22 = vld [vmem:[%s2906_s8 + $0x10] ss:$24 sps:$4 sm:$0xff]   ;;  %v2790_v23 = vld [vmem:[%s2906_s8 + $0x44] ss:$24 sps:$4 sm:$0xff]   ;;  %v2792_v24 = vld [vmem:[%s2906_s8 + $0x40] ss:$24 sps:$4 sm:$0xff]  }
  0xb2   : > { %1668 = vmatprep.mubr.bf16.mxu0 %v2772_v25  ;;  %1827 = vmatprep.mubr.bf16.mxu1 %v2772_v25  ;;  %v333_v25 = vld [vmem:[#allocation2] sm:$0xff] }
  0xb4   : > { %1682 = vmatpush1.bf16.msra.mxu0 %v2694_v26  ;;  %1841 = vmatpush1.bf16.msra.mxu1 %v2697_v27  ;;  %v335_v26 = vld [vmem:[#allocation2 + $0x10] sm:$0xff]  ;;  %v334_v27 = vld [vmem:[#allocation2 + $0x8] sm:$0xff] }
  0xb5   : > { %1683 = vmatprep.subr.bf16.mxu0 %v2702_v28  ;;  %1842 = vmatprep.subr.bf16.mxu1 %v2705_v29  ;;  %v336_v28 = vld [vmem:[#allocation2 + $0x18] sm:$0xff] }
  0xb7   : > { %1669 = vmatmul.mubr.bf16.gmra.mrb[4].mxu0 %v2774_v30  ;;  %1828 = vmatmul.mubr.bf16.gmra.mrb[4].mxu1 %v2774_v30 }
  0xb8   : > { %1684 = vmatpush1.bf16.msra.mxu0 %v2700_v31  ;;  %1843 = vmatpush1.bf16.msra.mxu1 %v2703_v32  ;;  %v337_v31 = vld [vmem:[#allocation2 + $0x20] sm:$0xff]  ;;  %v339_v32 = vld [vmem:[#allocation2 + $0x30] sm:$0xff] }
  0xb9   : > { %1685 = vmatprep.subr.bf16.mxu0 %v2708_v33  ;;  %1844 = vmatprep.subr.bf16.mxu1 %v2711_v34 }
  0xba   : > { %1711 = vmatprep.mubr.bf16.mxu0 %v2789_v35  ;;  %1870 = vmatprep.mubr.bf16.mxu1 %v2789_v35 }
  0xbc   : > { %1686 = vmatpush1.bf16.msra.mxu0 %v2706_v36  ;;  %1845 = vmatpush1.bf16.msra.mxu1 %v2709_v37  ;;  %v338_v37 = vld [vmem:[#allocation2 + $0x28] sm:$0xff] }
  0xbd   : > { %1687 = vmatprep.subr.bf16.mxu0 %v2714_v38  ;;  %1846 = vmatprep.subr.bf16.mxu1 %v2717_v39  ;;  %v340_v38 = vld [vmem:[#allocation2 + $0x38] sm:$0xff] }
  0xc0   : > { %1688 = vmatpush1.bf16.msra.mxu0 %v2712_v40  ;;  %1847 = vmatpush1.bf16.msra.mxu1 %v2715_v41 }
  0xc1   : > { %1689 = vmatprep.subr.bf16.mxu0 %v2720_v42  ;;  %1848 = vmatprep.subr.bf16.mxu1 %v2723_v43 }
  0xc4   : > { %1690 = vmatpush1.bf16.msra.mxu0 %v2718_v44  ;;  %1849 = vmatpush1.bf16.msra.mxu1 %v2721_v45 }
  0xc5   : > { %1691 = vmatprep.subr.bf16.mxu0 %v2726_v46  ;;  %1850 = vmatprep.subr.bf16.mxu1 %v2729_v47 }
  0xc8   : > { %1692 = vmatpush1.bf16.msra.mxu0 %v2724_v48  ;;  %1851 = vmatpush1.bf16.msra.mxu1 %v2727_v49  ;;  %v341_v49 = vld [vmem:[#allocation2 + $0x40] sm:$0xff] }
  0xc9   : > { %1693 = vmatprep.subr.bf16.mxu0 %v2732_v50  ;;  %1852 = vmatprep.subr.bf16.mxu1 %v2735_v51  ;;  %v343_v50 = vld [vmem:[#allocation2 + $0x50] sm:$0xff]  ;;  %v342_v51 = vld [vmem:[#allocation2 + $0x48] sm:$0xff] }
  0xcc   : > { %1694 = vmatpush1.bf16.msra.mxu0 %v2730_v52  ;;  %1853 = vmatpush1.bf16.msra.mxu1 %v2733_v53  ;;  %v344_v52 = vld [vmem:[#allocation2 + $0x58] sm:$0xff] }
  0xcd   : > { %1695 = vmatprep.subr.bf16.mxu0 %v2738_v54  ;;  %1854 = vmatprep.subr.bf16.mxu1 %v2741_v55  ;;  %v345_v55 = vld [vmem:[#allocation2 + $0x60] sm:$0xff] }
  0xd0   : > { %1696 = vmatpush1.bf16.msra.mxu0 %v2736_v56  ;;  %1855 = vmatpush1.bf16.msra.mxu1 %v2739_v57  ;;  %v347_v56 = vld [vmem:[#allocation2 + $0x70] sm:$0xff] }
  0xd1   : > { %1697 = vmatprep.subr.bf16.mxu0 %v2744_v58  ;;  %1856 = vmatprep.subr.bf16.mxu1 %v2747_v59 }
  0xd4   : > { %1698 = vmatpush1.bf16.msra.mxu0 %v2742_v60  ;;  %1857 = vmatpush1.bf16.msra.mxu1 %v2745_v61  ;;  %v346_v61 = vld [vmem:[#allocation2 + $0x68] sm:$0xff] }
  0xd5   : > { %1699 = vmatprep.subr.bf16.mxu0 %v2750_v62  ;;  %1858 = vmatprep.subr.bf16.mxu1 %v2753_v63  ;;  %v348_v62 = vld [vmem:[#allocation2 + $0x78] sm:$0xff] }
  0xd8   : > { %1700 = vmatpush1.bf16.msra.mxu0 %v2748_v0  ;;  %1859 = vmatpush1.bf16.msra.mxu1 %v2751_v1 }
  0xd9   : > { %1701 = vmatprep.subr.bf16.mxu0 %v2756_v2  ;;  %1860 = vmatprep.subr.bf16.mxu1 %v2759_v3 }
  0xdc   : > { %1702 = vmatpush1.bf16.msra.mxu0 %v2754_v4  ;;  %1861 = vmatpush1.bf16.msra.mxu1 %v2757_v5 }
  0xdd   : > { %1703 = vmatprep.subr.bf16.mxu0 %v2762_v6  ;;  %1862 = vmatprep.subr.bf16.mxu1 %v2765_v7 }
  0xe0   : > { %1704 = vmatpush1.bf16.msra.mxu0 %v2760_v8  ;;  %1863 = vmatpush1.bf16.msra.mxu1 %v2763_v9  ;;  %v1945_v9 = vlaneseq (!%p2389_p11) }
  0xe1   : > { %1705 = vmatprep.subr.bf16.mxu0 %v2768_v10  ;;  %1864 = vmatprep.subr.bf16.mxu1 %v2771_v11  ;;  %v1943_v11 = vld [vmem:[%s3158_s2] sm:$0xf] (!%p2389_p11) }
  0xe2   : > { %v1946_v10 = vshrl.u32 (!%p2389_p11), %v1945_v9, 7 }
  0xe4   : > { %1706 = vmatpush1.bf16.msra.mxu0 %v2766_v12  ;;  %1865 = vmatpush1.bf16.msra.mxu1 %v2769_v13 }
  0xe5   : > { %1707 = vmatprep.subr.bf16.mxu0 %v2777_v14  ;;  %1866 = vmatprep.subr.bf16.mxu1 %v2780_v15  ;;  %v1947_v14 = vsub.s32 (!%p2389_p11), 0, %v1946_v10  ;;  %v1951_v15 = vsub.s32 (!%p2389_p11), 1, %v1946_v10 }
  0xe8   : > { %1708 = vmatpush1.bf16.msra.mxu0 %v2775_v16  ;;  %1867 = vmatpush1.bf16.msra.mxu1 %v2778_v17  ;;  %v1955_v16 = vsub.s32 (!%p2389_p11), 2, %v1946_v10  ;;  %v1959_v17 = vsub.s32 (!%p2389_p11), 3, %v1946_v10 }
  0xe9   : > { %1709 = vmatprep.subr.bf16.mxu0 %v2783_v18  ;;  %1868 = vmatprep.subr.bf16.mxu1 %v2786_v19 }
  0xec   : > { %1710 = vmatpush1.bf16.msra.mxu0 %v2781_v20  ;;  %1869 = vmatpush1.bf16.msra.mxu1 %v2784_v21  ;;  %v1948_v21 = vrot.slane (!%p2389_p11), %v1943_v11, %v1947_v14 }
  0xef   : > { %1712 = vmatmul.mubr.bf16.vlgmr.msra.gmra.mrb[0].mxu0 %v2787_v22  ;;  %1871 = vmatmul.mubr.bf16.vlgmr.msra.gmra.mrb[0].mxu1 %v2787_v22  ;;  %v1952_v22 = vrot.slane (!%p2389_p11), %v1943_v11, %v1951_v15 }
  0xf0   : > { %1721 = vmatprep.mubr.bf16.mxu0 %v2790_v23  ;;  %1880 = vmatprep.mubr.bf16.mxu1 %v2790_v23  ;;  %v1956_v23 = vrot.slane (!%p2389_p11), %v1943_v11, %v1955_v16 }
  0xf7   : > { %1722 = vmatmul.mubr.bf16.gmra.mrb[4].mxu0 %v2792_v24  ;;  %1881 = vmatmul.mubr.bf16.gmra.mrb[4].mxu1 %v2792_v24  ;;  %v1960_v24 = vrot.slane (!%p2389_p11), %v1943_v11, %v1959_v17 }
 0x1c2   : > { %v1713_v29 = vpop.f32.mrb[0].mxu0  ;;  %v1872_v30 = vpop.f32.mrb[0].mxu1 }
 0x1c3   : > { %v1891_v33 = vadd.f32 %v1713_v29, %v333_v25  ;;  %v1893_v34 = vadd.f32 %v1872_v30, %v335_v26  ;;  %v1715_v35 = vpop.f32.mrb[1].mxu0  ;;  %v1874_v36 = vpop.f32.mrb[1].mxu1 }
 0x1c4   : > { %v1892_v39 = vadd.f32 %v1715_v35, %v334_v27  ;;  %v1894_v40 = vadd.f32 %v1874_v36, %v336_v28  ;;  %v1717_v41 = vpop.f32.mrb[2].mxu0  ;;  %v1876_v42 = vpop.f32.mrb[2].mxu1 }
 0x1c5   : > { %1907 = vst [vmem:[#allocation2] sm:$0xff] %v1891_v33  ;;  %1909 = vst [vmem:[#allocation2 + $0x10] sm:$0xff] %v1893_v34  ;;  %v1895_v43 = vadd.f32 %v1717_v41, %v337_v31  ;;  %v1897_v44 = vadd.f32 %v1876_v42, %v339_v32  ;;  %v1719_v45 = vpop.f32.mrb[3].mxu0  ;;  %v1878_v46 = vpop.f32.mrb[3].mxu1 }
 0x1c6   : > { %1908 = vst [vmem:[#allocation2 + $0x8] sm:$0xff] %v1892_v39  ;;  %1910 = vst [vmem:[#allocation2 + $0x18] sm:$0xff] %v1894_v40  ;;  %v1896_v47 = vadd.f32 %v1719_v45, %v338_v37  ;;  %v1898_v48 = vadd.f32 %v1878_v46, %v340_v38 }
 0x1c7   : > { %1911 = vst [vmem:[#allocation2 + $0x20] sm:$0xff] %v1895_v43  ;;  %1913 = vst [vmem:[#allocation2 + $0x30] sm:$0xff] %v1897_v44 }
 0x1c8   : > { %1912 = vst [vmem:[#allocation2 + $0x28] sm:$0xff] %v1896_v47  ;;  %1914 = vst [vmem:[#allocation2 + $0x38] sm:$0xff] %v1898_v48 }
 0x1ca   : > { %v1723_v53 = vpop.f32.mrb[4].mxu0  ;;  %v1882_v54 = vpop.f32.mrb[4].mxu1  ;;  %1926 = sbr.rel (%p2389_p11) target bundleno = 479 (0x1df), region = 63 }
 0x1cb   : > { %v1899_v57 = vadd.f32 %v1723_v53, %v341_v49  ;;  %v1901_v58 = vadd.f32 %v1882_v54, %v343_v50  ;;  %v1725_v59 = vpop.f32.mrb[5].mxu0  ;;  %v1884_v60 = vpop.f32.mrb[5].mxu1 }
 0x1cc   : > { %v1900_v63 = vadd.f32 %v1725_v59, %v342_v51  ;;  %v1902_v0 = vadd.f32 %v1884_v60, %v344_v52  ;;  %v1727_v1 = vpop.f32.mrb[6].mxu0  ;;  %v1886_v2 = vpop.f32.mrb[6].mxu1  ;;  %v1927_v12 = vld [vmem:[#allocation2] sm:$0xff] (!%p2389_p11)  ;;  %v1929_v18 = vld [vmem:[#allocation2 + $0x10] sm:$0xff] (!%p2389_p11) }
 0x1cd   : > { %1915 = vst [vmem:[#allocation2 + $0x40] sm:$0xff] %v1899_v57  ;;  %1917 = vst [vmem:[#allocation2 + $0x50] sm:$0xff] %v1901_v58  ;;  %v1903_v3 = vadd.f32 %v1727_v1, %v345_v55  ;;  %v1905_v4 = vadd.f32 %v1886_v2, %v347_v56  ;;  %v1729_v5 = vpop.f32.mrb[7].mxu0  ;;  %v1888_v6 = vpop.f32.mrb[7].mxu1  ;;  %v1928_v13 = vld [vmem:[#allocation2 + $0x8] sm:$0xff] (!%p2389_p11)  ;;  %v1930_v19 = vld [vmem:[#allocation2 + $0x18] sm:$0xff] (!%p2389_p11)  ;;  %v1965_v28 = vadd.f32 (!%p2389_p11), %v1948_v21, %v1927_v12 }
 0x1ce   : > { %1916 = vst [vmem:[#allocation2 + $0x48] sm:$0xff] %v1900_v63  ;;  %1918 = vst [vmem:[#allocation2 + $0x58] sm:$0xff] %v1902_v0  ;;  %v1904_v7 = vadd.f32 %v1729_v5, %v346_v61  ;;  %v1906_v8 = vadd.f32 %v1888_v6, %v348_v62  ;;  %v1931_v20 = vld [vmem:[#allocation2 + $0x20] sm:$0xff] (!%p2389_p11)  ;;  %v1933_v26 = vld [vmem:[#allocation2 + $0x30] sm:$0xff] (!%p2389_p11)  ;;  %v1966_v29 = vadd.f32 (!%p2389_p11), %v1952_v22, %v1928_v13 }
 0x1cf   : > { %1919 = vst [vmem:[#allocation2 + $0x60] sm:$0xff] %v1903_v3  ;;  %1921 = vst [vmem:[#allocation2 + $0x70] sm:$0xff] %v1905_v4  ;;  %v1932_v25 = vld [vmem:[#allocation2 + $0x28] sm:$0xff] (!%p2389_p11)  ;;  %v1934_v27 = vld [vmem:[#allocation2 + $0x38] sm:$0xff] (!%p2389_p11)  ;;  %v1967_v30 = vadd.f32 (!%p2389_p11), %v1956_v23, %v1929_v18  ;;  %v1968_v31 = vadd.f32 (!%p2389_p11), %v1960_v24, %v1930_v19  ;;  %v1969_v32 = vadd.f32 (!%p2389_p11), %v1948_v21, %v1931_v20  ;;  %v1981_v38 = vmax.f32 (!%p2389_p11), %v1965_v28, 0.0 }
 0x1d0   : > { %1920 = vst [vmem:[#allocation2 + $0x68] sm:$0xff] %v1904_v7  ;;  %1922 = vst [vmem:[#allocation2 + $0x78] sm:$0xff] %v1906_v8  ;;  %v1970_v33 = vadd.f32 (!%p2389_p11), %v1952_v22, %v1932_v25  ;;  %v1971_v34 = vadd.f32 (!%p2389_p11), %v1956_v23, %v1933_v26  ;;  %v1972_v35 = vadd.f32 (!%p2389_p11), %v1960_v24, %v1934_v27  ;;  %v1982_v39 = vmax.f32 (!%p2389_p11), %v1966_v29, 0.0 }
 0x1d1   : > { %v1983_v40 = vmax.f32 %v1967_v30, 0.0  ;;  %v1984_v41 = vmax.f32 %v1968_v31, 0.0  ;;  %v1985_v44 = vmax.f32 %v1969_v32, 0.0 }
 0x1d2   : > { %v1986_v45 = vmax.f32 %v1970_v33, 0.0  ;;  %v1987_v46 = vmax.f32 %v1971_v34, 0.0  ;;  %v1988_v47 = vmax.f32 %v1972_v35, 0.0  ;;  %v2404_v50 = vpack.c.bf16 %v1982_v39, %v1981_v38 }
 0x1d3   : > { %v2405_v51 = vpack.c.bf16 %v1984_v41, %v1983_v40 }
 0x1d4   : > { %v1935_v36 = vld [vmem:[#allocation2 + $0x40] sm:$0xff]  ;;  %v1937_v42 = vld [vmem:[#allocation2 + $0x50] sm:$0xff]  ;;  %v2406_v56 = vpack.c.bf16 %v1986_v45, %v1985_v44  ;;  %v2407_v57 = vpack.c.bf16 %v1988_v47, %v1987_v46  ;;  %2045 = vst [vmem:[%s3159_s3] sm:$0xff] %v2404_v50 }
 0x1d5   : > { %v1936_v37 = vld [vmem:[#allocation2 + $0x48] sm:$0xff]  ;;  %v1938_v43 = vld [vmem:[#allocation2 + $0x58] sm:$0xff]  ;;  %v1973_v52 = vadd.f32 %v1948_v21, %v1935_v36  ;;  %v1975_v58 = vadd.f32 %v1956_v23, %v1937_v42  ;;  %2046 = vst [vmem:[%s3159_s3 + $0x8] sm:$0xff] %v2405_v51 }
 0x1d6   : > { %v1939_v48 = vld [vmem:[#allocation2 + $0x60] sm:$0xff]  ;;  %v1974_v53 = vadd.f32 %v1952_v22, %v1936_v37  ;;  %v1941_v54 = vld [vmem:[#allocation2 + $0x70] sm:$0xff]  ;;  %v1976_v59 = vadd.f32 %v1960_v24, %v1938_v43  ;;  %2047 = vst [vmem:[%s3159_s3 + $0x10] sm:$0xff] %v2406_v56  ;;  %2048 = vst [vmem:[%s3159_s3 + $0x18] sm:$0xff] %v2407_v57 }
 0x1d7   : > { %v1940_v49 = vld [vmem:[#allocation2 + $0x68] sm:$0xff]  ;;  %v1942_v55 = vld [vmem:[#allocation2 + $0x78] sm:$0xff]  ;;  %v1989_v60 = vmax.f32 %v1973_v52, 0.0  ;;  %v1977_v62 = vadd.f32 %v1948_v21, %v1939_v48  ;;  %v1991_v0 = vmax.f32 %v1975_v58, 0.0  ;;  %v1979_v2 = vadd.f32 %v1956_v23, %v1941_v54 }
 0x1d8   : > { %v1990_v61 = vmax.f32 %v1974_v53, 0.0  ;;  %v1978_v63 = vadd.f32 %v1952_v22, %v1940_v49  ;;  %v1992_v1 = vmax.f32 %v1976_v59, 0.0  ;;  %v1980_v3 = vadd.f32 %v1960_v24, %v1942_v55 }
 0x1d9   : > { %v1993_v5 = vmax.f32 %v1977_v62, 0.0  ;;  %v1995_v8 = vmax.f32 %v1979_v2, 0.0 }
 0x1da   : > { %v2408_v4 = vpack.c.bf16 %v1990_v61, %v1989_v60  ;;  %v1994_v6 = vmax.f32 %v1978_v63, 0.0  ;;  %v2409_v7 = vpack.c.bf16 %v1992_v1, %v1991_v0  ;;  %v1996_v9 = vmax.f32 %v1980_v3, 0.0 }
 0x1dc   : > { %2049 = vst [vmem:[%s3159_s3 + $0x20] sm:$0xff] %v2408_v4  ;;  %v2410_v10 = vpack.c.bf16 %v1994_v6, %v1993_v5  ;;  %2050 = vst [vmem:[%s3159_s3 + $0x28] sm:$0xff] %v2409_v7  ;;  %v2411_v11 = vpack.c.bf16 %v1996_v9, %v1995_v8 }
 0x1de   : > { %2051 = vst [vmem:[%s3159_s3 + $0x30] sm:$0xff] %v2410_v10  ;;  %2052 = vst [vmem:[%s3159_s3 + $0x38] sm:$0xff] %v2411_v11 }
 0x1df PF: > { %s13_s16 = sadd.s32 1, %s2831_s16   ;;  %s3160_s12 = smov %s2819_s13 }
 0x1e0   : > { %p10_p12 = scmp.ge.s32.totalorder %s13_s16, 8   ;;  %s3161_s13 = smov %s2889_s20 }
 0x1e1   : > { %s3162_s14 = smov %s2827_s15  ;;  %s3163_s15 = smov %s3165_s17 }
 0x1e2   :  { %12 = sbr.rel (!%p10_p12) target bundleno = 3 (0x3), region = 104 }

// kernel: efficientnet_segmentation_forward.9
= control target key start
LH: loop header
LB: loop body
LE: loop exit
PB: predicated region body
PF: predicated region fallthrough
CT: control target
= control target key end

     0   :  { %s1914_s12 = smov 0   ;;  %s1916_s13 = smov 0   ;;  %s2241_s0 = inlined_call_operand.vmem [shape: bf16[128,1152], index: 0, kind: input, shape index: {}]   ;;  %s2242_s1 = inlined_call_operand.vmem [shape: bf16[1152,256], index: 1, kind: input, shape index: {}]   ;;  %s2243_s2 = inlined_call_operand.vmem [shape: f32[1,256], index: 2, kind: input, shape index: {}]   ;;  %s2244_s3 = inlined_call_operand.vmem [shape: bf16[128,256], index: 3, kind: output, shape index: {}]  }
   0x1   :  { %s1918_s14 = smov 0   ;;  %s1920_s15 = smov 0  }
   0x2   :  { %s1922_s16 = smov 0  }
   0x3 LB: > { %s25_s17 = sadd.s32 1, %s1886_s15  ;;  %p48_p1 = scmp.ne.s32.totalorder %s1878_s13, %s1874_s12  ;;  %s1890_s16 = sphi %s1922_s16, %s13_s16   ;;  %s1886_s15 = sphi %s1920_s15, %s2248_s15   ;;  %s1882_s14 = sphi %s1918_s14, %s2247_s14   ;;  %s1878_s13 = sphi %s1916_s13, %s2246_s13   ;;  %s1874_s12 = sphi %s1914_s12, %s2245_s12  }
   0x4   : > { %p26_p0 = scmp.ge.s32.totalorder %s25_s17, 3  ;;  %p49_p2 = scmp.eq.s32.totalorder %s1890_s16, 0 }
   0x5   : > { %s41_s19 = sadd.s32 1, %s1878_s13  ;;  %p1523_p5 = scmp.ge.s32.totalorder %s1890_s16, 3 }
   0x6   : > { %s2250_s17 = smov (%p26_p0, %s25_s17), 0  ;;  %p50_p3 = por %p49_p2, %p48_p1 }
   0x7   : > { %s37_s18 = ssub.s32 %s1886_s15, %s2250_s17  ;;  %164 = sbr.rel (%p1523_p5) target bundleno = 37 (0x25), region = 20 }
   0x8   : > { %p39_p4 = scmp.eq.s32.totalorder %s37_s18, 0 }
   0xa   : > { %s1949_s20 = scalar_select %p39_p4, %s1878_s13, %s41_s19  }
   0xe   : > { %167 = sbr.rel (!%p50_p3) target bundleno = 37 (0x25), region = 24  ;;  %s169_s21 = sand.u32 (%p50_p3), 1, %s1878_s13  }
   0xf   : > { %s1654_s22 = smul.u32 (%p50_p3), 12, %s1886_s15 }
  0x10   : > { %s1704_s23 = smul.u32 (%p50_p3), 192, %s169_s21 }
  0x11   : > { %s1957_s26 = scalar_lea.vmem (%p50_p3), %s2241_s0, %s1654_s22 }
  0x12   : > { %v192_v0 = vld [vmem:[%s1957_s26] sm:$0xff] (%p50_p3)  ;;  %v196_v2 = vld [vmem:[%s1957_s26 + $0x48] sm:$0xff] (%p50_p3)  ;;  %s1962_s27 = scalar_lea.vmem (%p50_p3), [#allocation3], %s1704_s23  ;;  %v200_v4 = vld [vmem:[%s1957_s26 + $0x90] sm:$0xff] (%p50_p3) }
  0x13   : > { %v194_v1 = vld [vmem:[%s1957_s26 + $0x24] sm:$0xff] (%p50_p3)  ;;  %193 = vst [vmem:[%s1962_s27] sm:$0xff] (%p50_p3), %v192_v0  ;;  %197 = vst [vmem:[%s1962_s27 + $0x18] sm:$0xff] (%p50_p3), %v196_v2  ;;  %v198_v3 = vld [vmem:[%s1957_s26 + $0x6c] sm:$0xff] (%p50_p3) }
  0x14   : > { %195 = vst [vmem:[%s1962_s27 + $0xc] sm:$0xff] (%p50_p3), %v194_v1  ;;  %v202_v5 = vld [vmem:[%s1957_s26 + $0xb4] sm:$0xff] (%p50_p3)  ;;  %199 = vst [vmem:[%s1962_s27 + $0x24] sm:$0xff] (%p50_p3), %v198_v3  ;;  %v206_v7 = vld [vmem:[%s1957_s26 + $0xfc] sm:$0xff] (%p50_p3) }
  0x15   : > { %201 = vst [vmem:[%s1962_s27 + $0x30] sm:$0xff] %v200_v4  ;;  %203 = vst [vmem:[%s1962_s27 + $0x3c] sm:$0xff] %v202_v5  ;;  %v204_v6 = vld [vmem:[%s1957_s26 + $0xd8] sm:$0xff]  ;;  %v208_v8 = vld [vmem:[%s1957_s26 + $0x120] sm:$0xff] }
  0x16   : > { %205 = vst [vmem:[%s1962_s27 + $0x48] sm:$0xff] %v204_v6  ;;  %207 = vst [vmem:[%s1962_s27 + $0x54] sm:$0xff] %v206_v7  ;;  %v210_v9 = vld [vmem:[%s1957_s26 + $0x144] sm:$0xff]  ;;  %v214_v11 = vld [vmem:[%s1957_s26 + $0x18c] sm:$0xff] }
  0x17   : > { %209 = vst [vmem:[%s1962_s27 + $0x60] sm:$0xff] %v208_v8  ;;  %v212_v10 = vld [vmem:[%s1957_s26 + $0x168] sm:$0xff]  ;;  %211 = vst [vmem:[%s1962_s27 + $0x6c] sm:$0xff] %v210_v9  ;;  %v216_v12 = vld [vmem:[%s1957_s26 + $0x1b0] sm:$0xff] }
  0x18   : > { %213 = vst [vmem:[%s1962_s27 + $0x78] sm:$0xff] %v212_v10  ;;  %215 = vst [vmem:[%s1962_s27 + $0x84] sm:$0xff] %v214_v11  ;;  %v218_v13 = vld [vmem:[%s1957_s26 + $0x1d4] sm:$0xff]  ;;  %v222_v15 = vld [vmem:[%s1957_s26 + $0x21c] sm:$0xff] }
  0x19   : > { %v220_v14 = vld [vmem:[%s1957_s26 + $0x1f8] sm:$0xff]  ;;  %217 = vst [vmem:[%s1962_s27 + $0x90] sm:$0xff] %v216_v12  ;;  %219 = vst [vmem:[%s1962_s27 + $0x9c] sm:$0xff] %v218_v13  ;;  %v1525_v16 = vld [vmem:[%s1957_s26 + $0x8] sm:$0xf] }
  0x1a   : > { %221 = vst [vmem:[%s1962_s27 + $0xa8] sm:$0xff] %v220_v14  ;;  %v1527_v17 = vld [vmem:[%s1957_s26 + $0x2c] sm:$0xf]  ;;  %223 = vst [vmem:[%s1962_s27 + $0xb4] sm:$0xff] %v222_v15  ;;  %v1529_v18 = vld [vmem:[%s1957_s26 + $0x50] sm:$0xf] }
  0x1b   : > { %1526 = vst [vmem:[%s1962_s27 + $0x8] sm:$0xf] %v1525_v16  ;;  %1528 = vst [vmem:[%s1962_s27 + $0x14] sm:$0xf] %v1527_v17  ;;  %v1531_v19 = vld [vmem:[%s1957_s26 + $0x74] sm:$0xf] }
  0x1c   : > { %v1533_v20 = vld [vmem:[%s1957_s26 + $0x98] sm:$0xf]  ;;  %1530 = vst [vmem:[%s1962_s27 + $0x20] sm:$0xf] %v1529_v18  ;;  %1532 = vst [vmem:[%s1962_s27 + $0x2c] sm:$0xf] %v1531_v19 }
  0x1d   : > { %1534 = vst [vmem:[%s1962_s27 + $0x38] sm:$0xf] %v1533_v20  ;;  %v1535_v21 = vld [vmem:[%s1957_s26 + $0xbc] sm:$0xf]  ;;  %v1537_v22 = vld [vmem:[%s1957_s26 + $0xe0] sm:$0xf] }
  0x1e   : > { %v1539_v23 = vld [vmem:[%s1957_s26 + $0x104] sm:$0xf]  ;;  %1536 = vst [vmem:[%s1962_s27 + $0x44] sm:$0xf] %v1535_v21  ;;  %1538 = vst [vmem:[%s1962_s27 + $0x50] sm:$0xf] %v1537_v22 }
  0x1f   : > { %1540 = vst [vmem:[%s1962_s27 + $0x5c] sm:$0xf] %v1539_v23  ;;  %v1541_v24 = vld [vmem:[%s1957_s26 + $0x128] sm:$0xf]  ;;  %v1543_v25 = vld [vmem:[%s1957_s26 + $0x14c] sm:$0xf] }
  0x20   : > { %v1545_v26 = vld [vmem:[%s1957_s26 + $0x170] sm:$0xf]  ;;  %1542 = vst [vmem:[%s1962_s27 + $0x68] sm:$0xf] %v1541_v24  ;;  %1544 = vst [vmem:[%s1962_s27 + $0x74] sm:$0xf] %v1543_v25 }
  0x21   : > { %1546 = vst [vmem:[%s1962_s27 + $0x80] sm:$0xf] %v1545_v26  ;;  %v1547_v27 = vld [vmem:[%s1957_s26 + $0x194] sm:$0xf]  ;;  %v1549_v28 = vld [vmem:[%s1957_s26 + $0x1b8] sm:$0xf] }
  0x22   : > { %v1551_v29 = vld [vmem:[%s1957_s26 + $0x1dc] sm:$0xf]  ;;  %1548 = vst [vmem:[%s1962_s27 + $0x8c] sm:$0xf] %v1547_v27  ;;  %1550 = vst [vmem:[%s1962_s27 + $0x98] sm:$0xf] %v1549_v28 }
  0x23   : > { %1552 = vst [vmem:[%s1962_s27 + $0xa4] sm:$0xf] %v1551_v29  ;;  %v1553_v30 = vld [vmem:[%s1957_s26 + $0x200] sm:$0xf]  ;;  %v1555_v31 = vld [vmem:[%s1957_s26 + $0x224] sm:$0xf] }
  0x24   : > { %1554 = vst [vmem:[%s1962_s27 + $0xb0] sm:$0xf] %v1553_v30  ;;  %1556 = vst [vmem:[%s1962_s27 + $0xbc] sm:$0xf] %v1555_v31 }
  0x25 PF: > { %p1557_p6 = scmp.ge.s32.totalorder %s1890_s16, 1  ;;  %p282_p7 = scmp.lt.s32.totalorder %s1890_s16, 4 }
  0x27   : > { %p283_p8 = pnand %p1557_p6, %p282_p7 }
  0x28   : > { %s289_s28 = sand.u32 (!%p283_p8), 1, %s1874_s12   ;;  %s333_s29 = smul.u32 (!%p283_p8), 48, %s1882_s14 }
  0x29   : > { %286 = sbr.rel (%p283_p8) target bundleno = 425 (0x1a9), region = 54  ;;  %p1560_p10 = scmp.ne.s32.totalorder (!%p283_p8), %s1882_s14, 0 }
  0x2a   : > { %s1705_s30 = smul.u32 (!%p283_p8), 192, %s289_s28  ;;  %p335_p9 = scmp.lt.s32.totalorder (!%p283_p8), %s333_s29, 143 }
  0x2c   : > { %s2034_s8 = scalar_lea.vmem (!%p283_p8), [#allocation3], %s1705_s30 }
  0x30   : > { %s2252_s29 = smov (!%p335_p9, %s333_s29), 143  ;;  %366 = sbr.rel (%p1560_p10) target bundleno = 66 (0x42), region = 62 }
  0x31   : > { %s1655_s4 = sshll.u32 %s2252_s29, 3  ;;  %v1892_v32 = vmov (!%p1560_p10), 0.0  }
  0x32   : > { %s2032_s7 = scalar_lea.vmem %s2242_s1, %s1655_s4  ;;  %367 = vst [vmem:[#allocation2] sm:$0xff] (!%p1560_p10), %v1892_v32  ;;  %368 = vst [vmem:[#allocation2 + $0x8] sm:$0xff] (!%p1560_p10), %v1892_v32 }
  0x33   : > { %369 = vst [vmem:[#allocation2 + $0x10] sm:$0xff] (!%p1560_p10), %v1892_v32  ;;  %370 = vst [vmem:[#allocation2 + $0x18] sm:$0xff] (!%p1560_p10), %v1892_v32 }
  0x34   : > { %371 = vst [vmem:[#allocation2 + $0x20] sm:$0xff] (!%p1560_p10), %v1892_v32  ;;  %372 = vst [vmem:[#allocation2 + $0x28] sm:$0xff] (!%p1560_p10), %v1892_v32 }
  0x35   : > { %373 = vst [vmem:[#allocation2 + $0x30] sm:$0xff] (!%p1560_p10), %v1892_v32  ;;  %374 = vst [vmem:[#allocation2 + $0x38] sm:$0xff] (!%p1560_p10), %v1892_v32 }
  0x36   : > { %375 = vst [vmem:[#allocation2 + $0x40] sm:$0xff] (!%p1560_p10), %v1892_v32  ;;  %376 = vst [vmem:[#allocation2 + $0x48] sm:$0xff] (!%p1560_p10), %v1892_v32 }
  0x37   : > { %377 = vst [vmem:[#allocation2 + $0x50] sm:$0xff] %v1892_v32  ;;  %378 = vst [vmem:[#allocation2 + $0x58] sm:$0xff] %v1892_v32 }
  0x38   : > { %379 = vst [vmem:[#allocation2 + $0x60] sm:$0xff] %v1892_v32  ;;  %380 = vst [vmem:[#allocation2 + $0x68] sm:$0xff] %v1892_v32 }
  0x39   : > { %381 = vst [vmem:[#allocation2 + $0x70] sm:$0xff] %v1892_v32  ;;  %382 = vst [vmem:[#allocation2 + $0x78] sm:$0xff] %v1892_v32 }
  0x3a   : > { %383 = vst [vmem:[#allocation2 + $0x80] sm:$0xff] %v1892_v32  ;;  %384 = vst [vmem:[#allocation2 + $0x88] sm:$0xff] %v1892_v32 }
  0x3b   : > { %385 = vst [vmem:[#allocation2 + $0x90] sm:$0xff] %v1892_v32  ;;  %386 = vst [vmem:[#allocation2 + $0x98] sm:$0xff] %v1892_v32 }
  0x3c   : > { %387 = vst [vmem:[#allocation2 + $0xa0] sm:$0xff] %v1892_v32  ;;  %388 = vst [vmem:[#allocation2 + $0xa8] sm:$0xff] %v1892_v32 }
  0x3d   : > { %389 = vst [vmem:[#allocation2 + $0xb0] sm:$0xff] %v1892_v32  ;;  %390 = vst [vmem:[#allocation2 + $0xb8] sm:$0xff] %v1892_v32 }
  0x3e   : > { %391 = vst [vmem:[#allocation2 + $0xc0] sm:$0xff] %v1892_v32  ;;  %392 = vst [vmem:[#allocation2 + $0xc8] sm:$0xff] %v1892_v32 }
  0x3f   : > { %393 = vst [vmem:[#allocation2 + $0xd0] sm:$0xff] %v1892_v32  ;;  %394 = vst [vmem:[#allocation2 + $0xd8] sm:$0xff] %v1892_v32 }
  0x40   : > { %395 = vst [vmem:[#allocation2 + $0xe0] sm:$0xff] %v1892_v32  ;;  %396 = vst [vmem:[#allocation2 + $0xe8] sm:$0xff] %v1892_v32 }
  0x41   : > { %397 = vst [vmem:[#allocation2 + $0xf0] sm:$0xff] %v1892_v32  ;;  %398 = vst [vmem:[#allocation2 + $0xf8] sm:$0xff] %v1892_v32 }
  0x42 PF: > { %v1748_v33 = vld [vmem:[%s2032_s7 + $0x4] ss:$8 sps:$4 sm:$0xff]   ;;  %v1750_v34 = vld [vmem:[%s2032_s7] ss:$8 sps:$4 sm:$0xff]   ;;  %v1893_v35 = vmov 0   ;;  %p1633_p11 = scmp.ne.s32.totalorder %s1882_s14, 2 }
  0x43   : > { %1024 = vmatprep.mubr.bf16.mxu0 %v1893_v35  ;;  %879 = vmatprep.subr.bf16.mxu1 %v1748_v33  ;;  %v1751_v36 = vld [vmem:[%s2032_s7 + $0x14] ss:$8 sps:$4 sm:$0xff]   ;;  %v1753_v37 = vld [vmem:[%s2032_s7 + $0x10] ss:$8 sps:$4 sm:$0xff]   ;;  %v1754_v38 = vld [vmem:[%s2032_s7 + $0x24] ss:$8 sps:$4 sm:$0xff]  }
  0x44   : > { %880 = vmatpush1.bf16.msra.mxu1 %v1750_v34  ;;  %v1756_v39 = vld [vmem:[%s2032_s7 + $0x20] ss:$8 sps:$4 sm:$0xff]   ;;  %v1757_v40 = vld [vmem:[%s2032_s7 + $0x34] ss:$8 sps:$4 sm:$0xff]   ;;  %v1759_v41 = vld [vmem:[%s2032_s7 + $0x30] ss:$8 sps:$4 sm:$0xff]  }
  0x45   : > { %881 = vmatprep.subr.bf16.mxu1 %v1751_v36  ;;  %v1772_v42 = vld [vmem:[%s2032_s7 + $0x104] ss:$8 sps:$4 sm:$0xff]   ;;  %v1774_v43 = vld [vmem:[%s2032_s7 + $0x100] ss:$8 sps:$4 sm:$0xff]   ;;  %v1778_v45 = vld [vmem:[%s2032_s7 + $0x114] ss:$8 sps:$4 sm:$0xff]  }
  0x46   : > { %v1760_v44 = vld [vmem:[%s2032_s7 + $0x44] ss:$8 sps:$4 sm:$0xff]   ;;  %992 = vmatprep.subr.bf16.mxu0 %v1772_v42  ;;  %v1780_v46 = vld [vmem:[%s2032_s7 + $0x110] ss:$8 sps:$4 sm:$0xff]   ;;  %v1762_v47 = vld [vmem:[%s2032_s7 + $0x40] ss:$8 sps:$4 sm:$0xff]  }
  0x47   : > { %993 = vmatpush1.bf16.msra.mxu0 %v1774_v43  ;;  %v1763_v48 = vld [vmem:[%s2032_s7 + $0x54] ss:$8 sps:$4 sm:$0xff]   ;;  %v1784_v49 = vld [vmem:[%s2032_s7 + $0x124] ss:$8 sps:$4 sm:$0xff]   ;;  %v1786_v50 = vld [vmem:[%s2032_s7 + $0x120] ss:$8 sps:$4 sm:$0xff]  }
  0x48   : > { %882 = vmatpush1.bf16.msra.mxu1 %v1753_v37  ;;  %994 = vmatprep.subr.bf16.mxu0 %v1778_v45  ;;  %v1765_v51 = vld [vmem:[%s2032_s7 + $0x50] ss:$8 sps:$4 sm:$0xff]   ;;  %v1790_v52 = vld [vmem:[%s2032_s7 + $0x134] ss:$8 sps:$4 sm:$0xff]   ;;  %v1766_v53 = vld [vmem:[%s2032_s7 + $0x64] ss:$8 sps:$4 sm:$0xff]  }
  0x49   : > { %883 = vmatprep.subr.bf16.mxu1 %v1754_v38  ;;  %v1792_v54 = vld [vmem:[%s2032_s7 + $0x130] ss:$8 sps:$4 sm:$0xff]   ;;  %v1768_v55 = vld [vmem:[%s2032_s7 + $0x60] ss:$8 sps:$4 sm:$0xff]   ;;  %v1796_v56 = vld [vmem:[%s2032_s7 + $0x144] ss:$8 sps:$4 sm:$0xff]  }
  0x4a   : > { %v1769_v57 = vld [vmem:[%s2032_s7 + $0x74] ss:$8 sps:$4 sm:$0xff]   ;;  %v1798_v58 = vld [vmem:[%s2032_s7 + $0x140] ss:$8 sps:$4 sm:$0xff]   ;;  %v1771_v59 = vld [vmem:[%s2032_s7 + $0x70] ss:$8 sps:$4 sm:$0xff]  }
  0x4b   : > { %995 = vmatpush1.bf16.msra.mxu0 %v1780_v46  ;;  %v1802_v60 = vld [vmem:[%s2032_s7 + $0x154] ss:$8 sps:$4 sm:$0xff]   ;;  %v1775_v61 = vld [vmem:[%s2032_s7 + $0x84] ss:$8 sps:$4 sm:$0xff]   ;;  %v1804_v62 = vld [vmem:[%s2032_s7 + $0x150] ss:$8 sps:$4 sm:$0xff]  }
  0x4c   : > { %884 = vmatpush1.bf16.msra.mxu1 %v1756_v39  ;;  %996 = vmatprep.subr.bf16.mxu0 %v1784_v49  ;;  %v1777_v63 = vld [vmem:[%s2032_s7 + $0x80] ss:$8 sps:$4 sm:$0xff]   ;;  %v1808_v0 = vld [vmem:[%s2032_s7 + $0x164] ss:$8 sps:$4 sm:$0xff]   ;;  %v1781_v1 = vld [vmem:[%s2032_s7 + $0x94] ss:$8 sps:$4 sm:$0xff]  }
  0x4d   : > { %885 = vmatprep.subr.bf16.mxu1 %v1757_v40  ;;  %v1783_v2 = vld [vmem:[%s2032_s7 + $0x90] ss:$8 sps:$4 sm:$0xff]   ;;  %v1810_v3 = vld [vmem:[%s2032_s7 + $0x160] ss:$8 sps:$4 sm:$0xff]   ;;  %v1814_v5 = vld [vmem:[%s2032_s7 + $0x174] ss:$8 sps:$4 sm:$0xff]  }
  0x4e   : > { %v1823_v4 = vld [vmem:[%s2034_s8 + $0x4] ss:$12 sps:$4 sm:$0xff]   ;;  %v1789_v8 = vld [vmem:[%s2032_s7 + $0xa0] ss:$8 sps:$4 sm:$0xff]   ;;  %v1793_v9 = vld [vmem:[%s2032_s7 + $0xb4] ss:$8 sps:$4 sm:$0xff]  }
  0x4f   : > { %997 = vmatpush1.bf16.msra.mxu0 %v1786_v50  ;;  %v1787_v6 = vld [vmem:[%s2032_s7 + $0xa4] ss:$8 sps:$4 sm:$0xff]   ;;  %911 = vmatprep.mubr.bf16.mxu1 %v1823_v4  ;;  %v1816_v7 = vld [vmem:[%s2032_s7 + $0x170] ss:$8 sps:$4 sm:$0xff]   ;;  %v1820_v10 = vld [vmem:[%s2034_s8 + $0x8] ss:$12 sps:$4 sm:$0xff]  }
  0x50   : > { %886 = vmatpush1.bf16.msra.mxu1 %v1759_v41  ;;  %998 = vmatprep.subr.bf16.mxu0 %v1790_v52  ;;  %v1795_v11 = vld [vmem:[%s2032_s7 + $0xb0] ss:$8 sps:$4 sm:$0xff]   ;;  %v1799_v12 = vld [vmem:[%s2032_s7 + $0xc4] ss:$8 sps:$4 sm:$0xff]   ;;  %v1801_v13 = vld [vmem:[%s2032_s7 + $0xc0] ss:$8 sps:$4 sm:$0xff]  }
  0x51   : > { %887 = vmatprep.subr.bf16.mxu1 %v1760_v44  ;;  %v1805_v14 = vld [vmem:[%s2032_s7 + $0xd4] ss:$8 sps:$4 sm:$0xff]   ;;  %v1824_v15 = vld [vmem:[%s2034_s8 + $0x20] ss:$12 sps:$4 sm:$0xff]   ;;  %v1807_v16 = vld [vmem:[%s2032_s7 + $0xd0] ss:$8 sps:$4 sm:$0xff]  }
  0x52   : > { %v1811_v17 = vld [vmem:[%s2032_s7 + $0xe4] ss:$8 sps:$4 sm:$0xff]   ;;  %v1813_v18 = vld [vmem:[%s2032_s7 + $0xe0] ss:$8 sps:$4 sm:$0xff]   ;;  %v1817_v19 = vld [vmem:[%s2032_s7 + $0xf4] ss:$8 sps:$4 sm:$0xff]  }
  0x53   : > { %999 = vmatpush1.bf16.msra.mxu0 %v1792_v54  ;;  %v1828_v20 = vld [vmem:[%s2034_s8 + $0x38] ss:$12 sps:$4 sm:$0xff]   ;;  %v1821_v22 = vld [vmem:[%s2034_s8] ss:$12 sps:$4 sm:$0xff]   ;;  %v1825_v23 = vld [vmem:[%s2034_s8 + $0x1c] ss:$12 sps:$4 sm:$0xff]  }
  0x54   : > { %888 = vmatpush1.bf16.msra.mxu1 %v1762_v47  ;;  %1000 = vmatprep.subr.bf16.mxu0 %v1796_v56  ;;  %v1819_v21 = vld [vmem:[%s2032_s7 + $0xf0] ss:$8 sps:$4 sm:$0xff]   ;;  %v1829_v26 = vld [vmem:[%s2034_s8 + $0x34] ss:$12 sps:$4 sm:$0xff]   ;;  %v1841_v36 = vld [vmem:[%s2034_s8 + $0x7c] ss:$12 sps:$4 sm:$0xff]  }
  0x55   : > { %889 = vmatprep.subr.bf16.mxu1 %v1763_v48  ;;  %v1832_v24 = vld [vmem:[%s2034_s8 + $0x50] ss:$12 sps:$4 sm:$0xff]   ;;  %v1827_v25 = vld [vmem:[%s2034_s8 + $0x18] ss:$12 sps:$4 sm:$0xff]   ;;  %v1836_v27 = vld [vmem:[%s2034_s8 + $0x68] ss:$12 sps:$4 sm:$0xff]  }
  0x56   : > { %v1831_v28 = vld [vmem:[%s2034_s8 + $0x30] ss:$12 sps:$4 sm:$0xff]   ;;  %v1833_v29 = vld [vmem:[%s2034_s8 + $0x4c] ss:$12 sps:$4 sm:$0xff]   ;;  %v1835_v31 = vld [vmem:[%s2034_s8 + $0x48] ss:$12 sps:$4 sm:$0xff]  }
  0x57   : > { %1001 = vmatpush1.bf16.msra.mxu0 %v1798_v58  ;;  %v1840_v30 = vld [vmem:[%s2034_s8 + $0x80] ss:$12 sps:$4 sm:$0xff]   ;;  %v1837_v32 = vld [vmem:[%s2034_s8 + $0x64] ss:$12 sps:$4 sm:$0xff]   ;;  %v1851_v42 = vld [vmem:[%s2034_s8 + $0xa8] ss:$12 sps:$4 sm:$0xff]  }
  0x58   : > { %890 = vmatpush1.bf16.msra.mxu1 %v1765_v51  ;;  %1002 = vmatprep.subr.bf16.mxu0 %v1802_v60  ;;  %v1844_v33 = vld [vmem:[%s2034_s8 + $0x98] ss:$12 sps:$4 sm:$0xff]   ;;  %v1839_v34 = vld [vmem:[%s2034_s8 + $0x60] ss:$12 sps:$4 sm:$0xff]   ;;  %v1848_v37 = vld [vmem:[%s2034_s8 + $0xb0] ss:$12 sps:$4 sm:$0xff]  }
  0x59   : > { %891 = vmatprep.subr.bf16.mxu1 %v1766_v53  ;;  %v1843_v38 = vld [vmem:[%s2034_s8 + $0x78] ss:$12 sps:$4 sm:$0xff]   ;;  %v1845_v39 = vld [vmem:[%s2034_s8 + $0x94] ss:$12 sps:$4 sm:$0xff]   ;;  %v1847_v40 = vld [vmem:[%s2034_s8 + $0x90] ss:$12 sps:$4 sm:$0xff]  }
  0x5a   : > { %v1849_v41 = vld [vmem:[%s2034_s8 + $0xac] ss:$12 sps:$4 sm:$0xff]   ;;  %v399_v54 = vld [vmem:[#allocation2] sm:$0xff]  ;;  %v401_v60 = vld [vmem:[#allocation2 + $0x10] sm:$0xff] }
  0x5b   : > { %1003 = vmatpush1.bf16.msra.mxu0 %v1804_v62 }
  0x5c   : > { %892 = vmatpush1.bf16.msra.mxu1 %v1768_v55  ;;  %1004 = vmatprep.subr.bf16.mxu0 %v1808_v0  ;;  %v402_v0 = vld [vmem:[#allocation2 + $0x18] sm:$0xff] }
  0x5d   : > { %893 = vmatprep.subr.bf16.mxu1 %v1769_v57  ;;  %v400_v57 = vld [vmem:[#allocation2 + $0x8] sm:$0xff] }
  0x5f   : > { %1005 = vmatpush1.bf16.msra.mxu0 %v1810_v3 }
  0x60   : > { %894 = vmatpush1.bf16.msra.mxu1 %v1771_v59  ;;  %1006 = vmatprep.subr.bf16.mxu0 %v1814_v5 }
  0x61   : > { %895 = vmatprep.subr.bf16.mxu1 %v1775_v61 }
  0x63   : > { %1007 = vmatpush1.bf16.msra.mxu0 %v1816_v7 }
  0x64   : > { %896 = vmatpush1.bf16.msra.mxu1 %v1777_v63 }
  0x65   : > { %897 = vmatprep.subr.bf16.mxu1 %v1781_v1 }
  0x66   : > { %1025 = vmatmul.mubr.bf16.vlgmr.msra.gmra.mrb[0].mxu0 %v1820_v10  ;;  %v403_v10 = vld [vmem:[#allocation2 + $0x20] sm:$0xff] }
  0x67   : > { %1034 = vmatprep.mubr.bf16.mxu0 %v1893_v35 }
  0x68   : > { %898 = vmatpush1.bf16.msra.mxu1 %v1783_v2 }
  0x69   : > { %899 = vmatprep.subr.bf16.mxu1 %v1787_v6 }
  0x6c   : > { %900 = vmatpush1.bf16.msra.mxu1 %v1789_v8 }
  0x6d   : > { %901 = vmatprep.subr.bf16.mxu1 %v1793_v9 }
  0x6e   : > { %1035 = vmatmul.mubr.bf16.gmra.mrb[4].mxu0 %v1824_v15 }
  0x6f   : > { %1044 = vmatprep.mubr.bf16.mxu0 %v1893_v35 }
  0x70   : > { %902 = vmatpush1.bf16.msra.mxu1 %v1795_v11 }
  0x71   : > { %903 = vmatprep.subr.bf16.mxu1 %v1799_v12 }
  0x74   : > { %904 = vmatpush1.bf16.msra.mxu1 %v1801_v13  ;;  %v404_v13 = vld [vmem:[#allocation2 + $0x28] sm:$0xff] }
  0x75   : > { %905 = vmatprep.subr.bf16.mxu1 %v1805_v14 }
  0x76   : > { %1045 = vmatmul.mubr.bf16.gmra.mrb[8].mxu0 %v1828_v20  ;;  %v406_v20 = vld [vmem:[#allocation2 + $0x38] sm:$0xff] }
  0x77   : > { %1054 = vmatprep.mubr.bf16.mxu0 %v1893_v35 }
  0x78   : > { %906 = vmatpush1.bf16.msra.mxu1 %v1807_v16  ;;  %v405_v16 = vld [vmem:[#allocation2 + $0x30] sm:$0xff] }
  0x79   : > { %907 = vmatprep.subr.bf16.mxu1 %v1811_v17 }
  0x7c   : > { %908 = vmatpush1.bf16.msra.mxu1 %v1813_v18 }
  0x7d   : > { %909 = vmatprep.subr.bf16.mxu1 %v1817_v19 }
  0x7e   : > { %1055 = vmatmul.mubr.bf16.gmra.mrb[12].mxu0 %v1832_v24 }
  0x7f   : > { %1064 = vmatprep.mubr.bf16.mxu0 %v1893_v35 }
  0x80   : > { %910 = vmatpush1.bf16.msra.mxu1 %v1819_v21 }
  0x83   : > { %912 = vmatmul.mubr.bf16.vlgmr.msra.gmra.mrb[0].mxu1 %v1821_v22 }
  0x84   : > { %921 = vmatprep.mubr.bf16.mxu1 %v1825_v23 }
  0x86   : > { %1065 = vmatmul.mubr.bf16.gmra.mrb[16].mxu0 %v1836_v27 }
  0x87   : > { %1074 = vmatprep.mubr.bf16.mxu0 %v1893_v35 }
  0x8b   : > { %922 = vmatmul.mubr.bf16.gmra.mrb[4].mxu1 %v1827_v25 }
  0x8c   : > { %931 = vmatprep.mubr.bf16.mxu1 %v1829_v26 }
  0x8e   : > { %1075 = vmatmul.mubr.bf16.gmra.mrb[20].mxu0 %v1840_v30  ;;  %v407_v30 = vld [vmem:[#allocation2 + $0x40] sm:$0xff] }
  0x8f   : > { %1084 = vmatprep.mubr.bf16.mxu0 %v1893_v35 }
  0x93   : > { %932 = vmatmul.mubr.bf16.gmra.mrb[8].mxu1 %v1831_v28 }
  0x94   : > { %941 = vmatprep.mubr.bf16.mxu1 %v1833_v29 }
  0x96   : > { %1085 = vmatmul.mubr.bf16.gmra.mrb[24].mxu0 %v1844_v33  ;;  %v408_v33 = vld [vmem:[#allocation2 + $0x48] sm:$0xff] }
  0x97   : > { %1094 = vmatprep.mubr.bf16.mxu0 %v1893_v35 }
  0x9b   : > { %942 = vmatmul.mubr.bf16.gmra.mrb[12].mxu1 %v1835_v31 }
  0x9c   : > { %951 = vmatprep.mubr.bf16.mxu1 %v1837_v32 }
  0x9e   : > { %1095 = vmatmul.mubr.bf16.gmra.mrb[28].mxu0 %v1848_v37  ;;  %v409_v37 = vld [vmem:[#allocation2 + $0x50] sm:$0xff] }
  0xa3   : > { %952 = vmatmul.mubr.bf16.gmra.mrb[16].mxu1 %v1839_v34 }
  0xa4   : > { %961 = vmatprep.mubr.bf16.mxu1 %v1841_v36 }
  0xab   : > { %962 = vmatmul.mubr.bf16.gmra.mrb[20].mxu1 %v1843_v38 }
  0xac   : > { %971 = vmatprep.mubr.bf16.mxu1 %v1845_v39 }
  0xb3   : > { %972 = vmatmul.mubr.bf16.gmra.mrb[24].mxu1 %v1847_v40 }
  0xb4   : > { %981 = vmatprep.mubr.bf16.mxu1 %v1849_v41  ;;  %v410_v41 = vld [vmem:[#allocation2 + $0x58] sm:$0xff] }
  0xbb   : > { %982 = vmatmul.mubr.bf16.gmra.mrb[28].mxu1 %v1851_v42 }
 0x139   : > { %v1026_v43 = vpop.f32.mrb[0].mxu0 }
 0x13a   : > { %v1028_v44 = vpop.f32.mrb[1].mxu0 }
 0x13b   : > { %v1030_v45 = vpop.f32.mrb[2].mxu0 }
 0x13c   : > { %v1032_v46 = vpop.f32.mrb[3].mxu0 }
 0x141   : > { %v1036_v35 = vpop.f32.mrb[4].mxu0 }
 0x142   : > { %v1038_v47 = vpop.f32.mrb[5].mxu0 }
 0x143   : > { %v1040_v48 = vpop.f32.mrb[6].mxu0 }
 0x144   : > { %v1042_v49 = vpop.f32.mrb[7].mxu0 }
 0x149   : > { %v1046_v50 = vpop.f32.mrb[8].mxu0 }
 0x14a   : > { %v1048_v51 = vpop.f32.mrb[9].mxu0 }
 0x14b   : > { %v1050_v52 = vpop.f32.mrb[10].mxu0 }
 0x14c   : > { %v2117_v53 = vpop.f32.mrb[11].mxu0 }
 0x151   : > { %v1056_v2 = vpop.f32.mrb[12].mxu0 }
 0x152   : > { %v1058_v5 = vpop.f32.mrb[13].mxu0 }
 0x153   : > { %v2119_v7 = vpop.f32.mrb[14].mxu0 }
 0x154   : > { %v2121_v9 = vpop.f32.mrb[15].mxu0 }
 0x156   : > { %v913_v55 = vpop.f32.mrb[0].mxu1 }
 0x157   : > { %v1027_v56 = vadd.f32 %v1026_v43, %v913_v55  ;;  %v915_v58 = vpop.f32.mrb[1].mxu1 }
 0x158   : > { %v1029_v59 = vadd.f32 %v1028_v44, %v915_v58  ;;  %v917_v61 = vpop.f32.mrb[2].mxu1 }
 0x159   : > { %v1105_v62 = vadd.f32 %v1027_v56, %v399_v54  ;;  %v1031_v63 = vadd.f32 %v1030_v45, %v917_v61  ;;  %v919_v1 = vpop.f32.mrb[3].mxu1  ;;  %v1066_v22 = vpop.f32.mrb[16].mxu0  ;;  %v412_v54 = vld [vmem:[#allocation2 + $0x68] sm:$0xff] }
 0x15a   : > { %v1106_v3 = vadd.f32 %v1029_v59, %v400_v57  ;;  %v1033_v4 = vadd.f32 %v1032_v46, %v919_v1  ;;  %v1068_v25 = vpop.f32.mrb[17].mxu0  ;;  %v413_v57 = vld [vmem:[#allocation2 + $0x70] sm:$0xff] }
 0x15b   : > { %1137 = vst [vmem:[#allocation2] sm:$0xff] %v1105_v62  ;;  %v1107_v6 = vadd.f32 %v1031_v63, %v401_v60  ;;  %v2123_v27 = vpop.f32.mrb[18].mxu0  ;;  %v414_v60 = vld [vmem:[#allocation2 + $0x78] sm:$0xff] }
 0x15c   : > { %1138 = vst [vmem:[#allocation2 + $0x8] sm:$0xff] %v1106_v3  ;;  %v1108_v8 = vadd.f32 %v1033_v4, %v402_v0  ;;  %v2125_v29 = vpop.f32.mrb[19].mxu0 }
 0x15d   : > { %1139 = vst [vmem:[#allocation2 + $0x10] sm:$0xff] %v1107_v6 }
 0x15e   : > { %1140 = vst [vmem:[#allocation2 + $0x18] sm:$0xff] %v1108_v8  ;;  %v923_v11 = vpop.f32.mrb[4].mxu1 }
 0x15f   : > { %v1037_v12 = vadd.f32 %v1036_v35, %v923_v11  ;;  %v925_v14 = vpop.f32.mrb[5].mxu1  ;;  %v416_v11 = vld [vmem:[#allocation2 + $0x88] sm:$0xff] }
 0x160   : > { %v1039_v15 = vadd.f32 %v1038_v47, %v925_v14  ;;  %v927_v17 = vpop.f32.mrb[6].mxu1 }
 0x161   : > { %v1109_v18 = vadd.f32 %v1037_v12, %v403_v10  ;;  %v1041_v19 = vadd.f32 %v1040_v48, %v927_v17  ;;  %v929_v21 = vpop.f32.mrb[7].mxu1  ;;  %v1076_v43 = vpop.f32.mrb[20].mxu0 }
 0x162   : > { %v1110_v23 = vadd.f32 %v1039_v15, %v404_v13  ;;  %v1043_v24 = vadd.f32 %v1042_v49, %v929_v21  ;;  %v1078_v46 = vpop.f32.mrb[21].mxu0  ;;  %v417_v13 = vld [vmem:[#allocation2 + $0x90] sm:$0xff] }
 0x163   : > { %1141 = vst [vmem:[#allocation2 + $0x20] sm:$0xff] %v1109_v18  ;;  %v1111_v26 = vadd.f32 %v1041_v19, %v405_v16  ;;  %v2128_v47 = vpop.f32.mrb[22].mxu0  ;;  %v418_v16 = vld [vmem:[#allocation2 + $0x98] sm:$0xff] }
 0x164   : > { %1142 = vst [vmem:[#allocation2 + $0x28] sm:$0xff] %v1110_v23  ;;  %v1112_v28 = vadd.f32 %v1043_v24, %v406_v20  ;;  %v2130_v49 = vpop.f32.mrb[23].mxu0 }
 0x165   : > { %1143 = vst [vmem:[#allocation2 + $0x30] sm:$0xff] %v1111_v26 }
 0x166   : > { %1144 = vst [vmem:[#allocation2 + $0x38] sm:$0xff] %v1112_v28  ;;  %v933_v31 = vpop.f32.mrb[8].mxu1 }
 0x167   : > { %v1047_v32 = vadd.f32 %v1046_v50, %v933_v31  ;;  %v935_v34 = vpop.f32.mrb[9].mxu1  ;;  %v411_v50 = vld [vmem:[#allocation2 + $0x60] sm:$0xff]  ;;  %v420_v31 = vld [vmem:[#allocation2 + $0xa8] sm:$0xff] }
 0x168   : > { %v1049_v36 = vadd.f32 %v1048_v51, %v935_v34  ;;  %v937_v38 = vpop.f32.mrb[10].mxu1 }
 0x169   : > { %v1113_v39 = vadd.f32 %v1047_v32, %v407_v30  ;;  %v1051_v40 = vadd.f32 %v1050_v52, %v937_v38  ;;  %v939_v42 = vpop.f32.mrb[11].mxu1  ;;  %v1086_v62 = vpop.f32.mrb[24].mxu0 }
 0x16a   : > { %v1114_v44 = vadd.f32 %v1049_v36, %v408_v33  ;;  %v1053_v45 = vadd.f32 %v2117_v53, %v939_v42  ;;  %v1088_v1 = vpop.f32.mrb[25].mxu0  ;;  %v421_v33 = vld [vmem:[#allocation2 + $0xb0] sm:$0xff] }
 0x16b   : > { %1145 = vst [vmem:[#allocation2 + $0x40] sm:$0xff] %v1113_v39  ;;  %v1115_v35 = vadd.f32 %v1051_v40, %v409_v37  ;;  %v1090_v4 = vpop.f32.mrb[26].mxu0  ;;  %v422_v37 = vld [vmem:[#allocation2 + $0xb8] sm:$0xff] }
 0x16c   : > { %1146 = vst [vmem:[#allocation2 + $0x48] sm:$0xff] %v1114_v44  ;;  %v1116_v48 = vadd.f32 %v1053_v45, %v410_v41  ;;  %v1092_v6 = vpop.f32.mrb[27].mxu0 }
 0x16d   : > { %1147 = vst [vmem:[#allocation2 + $0x50] sm:$0xff] %v1115_v35 }
 0x16e   : > { %1148 = vst [vmem:[#allocation2 + $0x58] sm:$0xff] %v1116_v48  ;;  %v943_v51 = vpop.f32.mrb[12].mxu1 }
 0x16f   : > { %v1057_v52 = vadd.f32 %v1056_v2, %v943_v51  ;;  %v945_v55 = vpop.f32.mrb[13].mxu1 }
 0x170   : > { %v1059_v56 = vadd.f32 %v1058_v5, %v945_v55  ;;  %v947_v58 = vpop.f32.mrb[14].mxu1  ;;  %v415_v5 = vld [vmem:[#allocation2 + $0x80] sm:$0xff] }
 0x171   : > { %v1117_v53 = vadd.f32 %v1057_v52, %v411_v50  ;;  %v1061_v59 = vadd.f32 %v2119_v7, %v947_v58  ;;  %v949_v61 = vpop.f32.mrb[15].mxu1  ;;  %v1096_v18 = vpop.f32.mrb[28].mxu0  ;;  %v425_v50 = vld [vmem:[#allocation2 + $0xd0] sm:$0xff] }
 0x172   : > { %v1118_v63 = vadd.f32 %v1059_v56, %v412_v54  ;;  %v1063_v0 = vadd.f32 %v2121_v9, %v949_v61  ;;  %v1098_v21 = vpop.f32.mrb[29].mxu0  ;;  %v426_v54 = vld [vmem:[#allocation2 + $0xd8] sm:$0xff]  ;;  %v428_v61 = vld [vmem:[#allocation2 + $0xe8] sm:$0xff] }
 0x173   : > { %1149 = vst [vmem:[#allocation2 + $0x60] sm:$0xff] %v1117_v53  ;;  %v1119_v3 = vadd.f32 %v1061_v59, %v413_v57  ;;  %v1100_v24 = vpop.f32.mrb[30].mxu0  ;;  %v427_v53 = vld [vmem:[#allocation2 + $0xe0] sm:$0xff] }
 0x174   : > { %1150 = vst [vmem:[#allocation2 + $0x68] sm:$0xff] %v1118_v63  ;;  %v1120_v2 = vadd.f32 %v1063_v0, %v414_v60  ;;  %v1102_v26 = vpop.f32.mrb[31].mxu0  ;;  %v429_v0 = vld [vmem:[#allocation2 + $0xf0] sm:$0xff] }
 0x175   : > { %1151 = vst [vmem:[#allocation2 + $0x70] sm:$0xff] %v1119_v3 }
 0x176   : > { %1152 = vst [vmem:[#allocation2 + $0x78] sm:$0xff] %v1120_v2  ;;  %v953_v8 = vpop.f32.mrb[16].mxu1  ;;  %v430_v2 = vld [vmem:[#allocation2 + $0xf8] sm:$0xff] }
 0x177   : > { %v1067_v10 = vadd.f32 %v1066_v22, %v953_v8  ;;  %v955_v7 = vpop.f32.mrb[17].mxu1 }
 0x178   : > { %v1069_v12 = vadd.f32 %v1068_v25, %v955_v7  ;;  %v957_v14 = vpop.f32.mrb[18].mxu1  ;;  %v419_v25 = vld [vmem:[#allocation2 + $0xa0] sm:$0xff]  ;;  %v1207_v7 = vlaneseq (!%p1633_p11) }
 0x179   : > { %v1121_v15 = vadd.f32 %v1067_v10, %v415_v5  ;;  %v1071_v9 = vadd.f32 %v2123_v27, %v957_v14  ;;  %v959_v17 = vpop.f32.mrb[19].mxu1  ;;  %v1173_v14 = vld [vmem:[#allocation2] sm:$0xff] (!%p1633_p11) }
 0x17a   : > { %v1122_v19 = vadd.f32 %v1069_v12, %v416_v11  ;;  %v1073_v20 = vadd.f32 %v2125_v29, %v959_v17  ;;  %v1208_v12 = vshrl.u32 (!%p1633_p11), %v1207_v7, 7  ;;  %v1175_v17 = vld [vmem:[#allocation2 + $0x10] sm:$0xff] (!%p1633_p11) }
 0x17b   : > { %1153 = vst [vmem:[#allocation2 + $0x80] sm:$0xff] %v1121_v15  ;;  %v1123_v23 = vadd.f32 %v1071_v9, %v417_v13  ;;  %v1205_v13 = vld [vmem:[%s2243_s2] sm:$0x3] (!%p1633_p11)  ;;  %v1174_v15 = vld [vmem:[#allocation2 + $0x8] sm:$0xff] (!%p1633_p11) }
 0x17c   : > { %1154 = vst [vmem:[#allocation2 + $0x88] sm:$0xff] %v1122_v19  ;;  %v1124_v22 = vadd.f32 %v1073_v20, %v418_v16  ;;  %v1209_v9 = vsub.s32 (!%p1633_p11), 0, %v1208_v12  ;;  %v1213_v16 = vsub.s32 (!%p1633_p11), 1, %v1208_v12  ;;  %v1177_v19 = vld [vmem:[#allocation2 + $0x20] sm:$0xff] (!%p1633_p11) }
 0x17d   : > { %1155 = vst [vmem:[#allocation2 + $0x90] sm:$0xff] %v1123_v23  ;;  %v1178_v23 = vld [vmem:[#allocation2 + $0x28] sm:$0xff] (!%p1633_p11) }
 0x17e   : > { %1156 = vst [vmem:[#allocation2 + $0x98] sm:$0xff] %v1124_v22  ;;  %v963_v28 = vpop.f32.mrb[20].mxu1  ;;  %v2142_v20 = vrot.slane (!%p1633_p11), %v1205_v13, %v1209_v9  ;;  %v1180_v22 = vld [vmem:[#allocation2 + $0x38] sm:$0xff] (!%p1633_p11) }
 0x17f   : > { %v1077_v30 = vadd.f32 %v1076_v43, %v963_v28  ;;  %v965_v27 = vpop.f32.mrb[21].mxu1  ;;  %v423_v43 = vld [vmem:[#allocation2 + $0xc0] sm:$0xff] }
 0x180   : > { %v1079_v32 = vadd.f32 %v1078_v46, %v965_v27  ;;  %v967_v34 = vpop.f32.mrb[22].mxu1  ;;  %v424_v46 = vld [vmem:[#allocation2 + $0xc8] sm:$0xff]  ;;  %v1219_v28 = vadd.f32 (!%p1633_p11), %v2142_v20, %v1175_v17 }
 0x181   : > { %v1125_v36 = vadd.f32 %v1077_v30, %v419_v25  ;;  %v1081_v29 = vadd.f32 %v2128_v47, %v967_v34  ;;  %v969_v38 = vpop.f32.mrb[23].mxu1  ;;  %v1181_v34 = vld [vmem:[#allocation2 + $0x40] sm:$0xff] (!%p1633_p11) }
 0x182   : > { %v1126_v39 = vadd.f32 %v1079_v32, %v420_v31  ;;  %v1083_v40 = vadd.f32 %v2130_v49, %v969_v38  ;;  %v1221_v31 = vadd.f32 (!%p1633_p11), %v2142_v20, %v1177_v19  ;;  %v1251_v38 = vmax.f32 (!%p1633_p11), %v1219_v28, 0.0 }
 0x183   : > { %1157 = vst [vmem:[#allocation2 + $0xa0] sm:$0xff] %v1125_v36  ;;  %v1127_v41 = vadd.f32 %v1081_v29, %v421_v33  ;;  %v1182_v36 = vld [vmem:[#allocation2 + $0x48] sm:$0xff] (!%p1633_p11) }
 0x184   : > { %1158 = vst [vmem:[#allocation2 + $0xa8] sm:$0xff] %v1126_v39  ;;  %v1128_v42 = vadd.f32 %v1083_v40, %v422_v37  ;;  %v1183_v40 = vld [vmem:[#allocation2 + $0x50] sm:$0xff] (!%p1633_p11) }
 0x185   : > { %1159 = vst [vmem:[#allocation2 + $0xb0] sm:$0xff] %v1127_v41  ;;  %v1184_v41 = vld [vmem:[#allocation2 + $0x58] sm:$0xff] (!%p1633_p11) }
 0x186   : > { %1160 = vst [vmem:[#allocation2 + $0xb8] sm:$0xff] %v1128_v42  ;;  %v973_v44 = vpop.f32.mrb[24].mxu1  ;;  %v1253_v42 = vmax.f32 (!%p1633_p11), %v1221_v31, 0.0 }
 0x187   : > { %v1087_v45 = vadd.f32 %v1086_v62, %v973_v44  ;;  %v975_v35 = vpop.f32.mrb[25].mxu1 }
 0x188   : > { %v1089_v48 = vadd.f32 %v1088_v1, %v975_v35  ;;  %v977_v51 = vpop.f32.mrb[26].mxu1  ;;  %v1186_v35 = vld [vmem:[#allocation2 + $0x68] sm:$0xff] (!%p1633_p11) }
 0x189   : > { %v1129_v47 = vadd.f32 %v1087_v45, %v423_v43  ;;  %v1091_v52 = vadd.f32 %v1090_v4, %v977_v51  ;;  %v979_v55 = vpop.f32.mrb[27].mxu1  ;;  %v1225_v51 = vadd.f32 (!%p1633_p11), %v2142_v20, %v1181_v34 }
 0x18a   : > { %v1130_v56 = vadd.f32 %v1089_v48, %v424_v46  ;;  %v1093_v49 = vadd.f32 %v1092_v6, %v979_v55  ;;  %v1185_v46 = vld [vmem:[#allocation2 + $0x60] sm:$0xff] (!%p1633_p11) }
 0x18b   : > { %1161 = vst [vmem:[#allocation2 + $0xc0] sm:$0xff] %v1129_v47  ;;  %v1131_v57 = vadd.f32 %v1091_v52, %v425_v50  ;;  %v1187_v52 = vld [vmem:[#allocation2 + $0x70] sm:$0xff] (!%p1633_p11)  ;;  %v1194_v7 = vld [vmem:[#allocation2 + $0xa8] sm:$0xff] (!%p1633_p11) }
 0x18c   : > { %1162 = vst [vmem:[#allocation2 + $0xc8] sm:$0xff] %v1130_v56  ;;  %v1132_v58 = vadd.f32 %v1093_v49, %v426_v54  ;;  %v1188_v54 = vld [vmem:[#allocation2 + $0x78] sm:$0xff] (!%p1633_p11)  ;;  %v1227_v49 = vadd.f32 (!%p1633_p11), %v2142_v20, %v1183_v40  ;;  %v1195_v9 = vld [vmem:[#allocation2 + $0xb0] sm:$0xff] (!%p1633_p11) }
 0x18d   : > { %1163 = vst [vmem:[#allocation2 + $0xd0] sm:$0xff] %v1131_v57 }
 0x18e   : > { %1164 = vst [vmem:[#allocation2 + $0xd8] sm:$0xff] %v1132_v58  ;;  %v983_v59 = vpop.f32.mrb[28].mxu1  ;;  %v1189_v58 = vld [vmem:[#allocation2 + $0x80] sm:$0xff] (!%p1633_p11) }
 0x18f   : > { %v1097_v60 = vadd.f32 %v1096_v18, %v983_v59  ;;  %v985_v62 = vpop.f32.mrb[29].mxu1  ;;  %v1176_v18 = vld [vmem:[#allocation2 + $0x18] sm:$0xff] (!%p1633_p11) }
 0x190   : > { %v1099_v63 = vadd.f32 %v1098_v21, %v985_v62  ;;  %v987_v1 = vpop.f32.mrb[30].mxu1  ;;  %1172 = sbr.rel (%p1633_p11) target bundleno = 425 (0x1a9), region = 66  ;;  %v2144_v21 = vrot.slane (!%p1633_p11), %v1205_v13, %v1213_v16  ;;  %v1190_v62 = vld [vmem:[#allocation2 + $0x88] sm:$0xff] (!%p1633_p11)  ;;  %v1196_v16 = vld [vmem:[#allocation2 + $0xb8] sm:$0xff] (!%p1633_p11) }
 0x191   : > { %v1133_v3 = vadd.f32 %v1097_v60, %v427_v53  ;;  %v1101_v4 = vadd.f32 %v1100_v24, %v987_v1  ;;  %v989_v5 = vpop.f32.mrb[31].mxu1  ;;  %v1179_v24 = vld [vmem:[#allocation2 + $0x30] sm:$0xff] (!%p1633_p11)  ;;  %v1257_v53 = vmax.f32 (!%p1633_p11), %v1225_v51, 0.0  ;;  %v1229_v60 = vadd.f32 (!%p1633_p11), %v2142_v20, %v1185_v46 }
 0x192   : > { %v1134_v8 = vadd.f32 %v1099_v63, %v428_v61  ;;  %v1103_v6 = vadd.f32 %v1102_v26, %v989_v5  ;;  %v1217_v26 = vadd.f32 (!%p1633_p11), %v2142_v20, %v1173_v14  ;;  %v1218_v25 = vadd.f32 (!%p1633_p11), %v2144_v21, %v1174_v15 }
 0x193   : > { %1165 = vst [vmem:[#allocation2 + $0xe0] sm:$0xff] %v1133_v3  ;;  %v1135_v10 = vadd.f32 %v1101_v4, %v429_v0  ;;  %v1220_v30 = vadd.f32 (!%p1633_p11), %v2144_v21, %v1176_v18  ;;  %v1222_v27 = vadd.f32 (!%p1633_p11), %v2144_v21, %v1178_v23  ;;  %v1223_v32 = vadd.f32 (!%p1633_p11), %v2142_v20, %v1179_v24  ;;  %v1191_v4 = vld [vmem:[#allocation2 + $0x90] sm:$0xff] (!%p1633_p11)  ;;  %v1197_v24 = vld [vmem:[#allocation2 + $0xc0] sm:$0xff] (!%p1633_p11) }
 0x194   : > { %1166 = vst [vmem:[#allocation2 + $0xe8] sm:$0xff] %v1134_v8  ;;  %v1136_v11 = vadd.f32 %v1103_v6, %v430_v2  ;;  %v1224_v33 = vadd.f32 (!%p1633_p11), %v2144_v21, %v1180_v22  ;;  %v1249_v29 = vmax.f32 (!%p1633_p11), %v1217_v26, 0.0  ;;  %v1250_v37 = vmax.f32 (!%p1633_p11), %v1218_v25, 0.0  ;;  %v1192_v2 = vld [vmem:[#allocation2 + $0x98] sm:$0xff] (!%p1633_p11)  ;;  %v1199_v34 = vld [vmem:[#allocation2 + $0xd0] sm:$0xff] (!%p1633_p11) }
 0x195   : > { %1167 = vst [vmem:[#allocation2 + $0xf0] sm:$0xff] %v1135_v10  ;;  %v1252_v39 = vmax.f32 (!%p1633_p11), %v1220_v30, 0.0  ;;  %v1254_v43 = vmax.f32 (!%p1633_p11), %v1222_v27, 0.0  ;;  %v1255_v44 = vmax.f32 (!%p1633_p11), %v1223_v32, 0.0  ;;  %v1226_v47 = vadd.f32 (!%p1633_p11), %v2144_v21, %v1182_v36  ;;  %v1198_v30 = vld [vmem:[#allocation2 + $0xc8] sm:$0xff] (!%p1633_p11)  ;;  %v1200_v36 = vld [vmem:[#allocation2 + $0xd8] sm:$0xff] (!%p1633_p11) }
 0x196   : > { %1168 = vst [vmem:[#allocation2 + $0xf8] sm:$0xff] %v1136_v11  ;;  %v1256_v45 = vmax.f32 (!%p1633_p11), %v1224_v33, 0.0  ;;  %v1656_v48 = vpack.c.bf16 (!%p1633_p11), %v1250_v37, %v1249_v29  ;;  %v1228_v57 = vadd.f32 (!%p1633_p11), %v2144_v21, %v1184_v41  ;;  %v1230_v61 = vadd.f32 (!%p1633_p11), %v2144_v21, %v1186_v35  ;;  %v1193_v11 = vld [vmem:[#allocation2 + $0xa0] sm:$0xff] (!%p1633_p11) }
 0x197   : > { %v1657_v50 = vpack.c.bf16 %v1252_v39, %v1251_v38  ;;  %v1658_v55 = vpack.c.bf16 %v1254_v43, %v1253_v42  ;;  %v1258_v59 = vmax.f32 %v1226_v47, 0.0  ;;  %v1259_v63 = vmax.f32 %v1227_v49, 0.0 }
 0x198   : > { %v1659_v56 = vpack.c.bf16 %v1256_v45, %v1255_v44  ;;  %1377 = vst [vmem:[%s2244_s3] sm:$0xff] %v1656_v48  ;;  %v1260_v0 = vmax.f32 %v1228_v57, 0.0  ;;  %v1231_v1 = vadd.f32 %v2142_v20, %v1187_v52  ;;  %v1232_v3 = vadd.f32 %v2144_v21, %v1188_v54 }
 0x199   : > { %1378 = vst [vmem:[%s2244_s3 + $0x8] sm:$0xff] %v1657_v50  ;;  %1379 = vst [vmem:[%s2244_s3 + $0x10] sm:$0xff] %v1658_v55  ;;  %v1660_v5 = vpack.c.bf16 %v1258_v59, %v1257_v53  ;;  %v1261_v8 = vmax.f32 %v1229_v60, 0.0  ;;  %v1262_v6 = vmax.f32 %v1230_v61, 0.0  ;;  %v1233_v10 = vadd.f32 %v2142_v20, %v1189_v58 }
 0x19a   : > { %1380 = vst [vmem:[%s2244_s3 + $0x18] sm:$0xff] %v1659_v56  ;;  %v1661_v12 = vpack.c.bf16 %v1260_v0, %v1259_v63  ;;  %v1263_v13 = vmax.f32 %v1231_v1, 0.0  ;;  %v1264_v14 = vmax.f32 %v1232_v3, 0.0  ;;  %v1234_v15 = vadd.f32 %v2144_v21, %v1190_v62  ;;  %v1201_v40 = vld [vmem:[#allocation2 + $0xe0] sm:$0xff] }
 0x19b   : > { %1381 = vst [vmem:[%s2244_s3 + $0x20] sm:$0xff] %v1660_v5  ;;  %v1662_v17 = vpack.c.bf16 %v1262_v6, %v1261_v8  ;;  %v1265_v18 = vmax.f32 %v1233_v10, 0.0  ;;  %v1235_v19 = vadd.f32 %v2142_v20, %v1191_v4  ;;  %v1236_v23 = vadd.f32 %v2144_v21, %v1192_v2  ;;  %v1202_v41 = vld [vmem:[#allocation2 + $0xe8] sm:$0xff] }
 0x19c   : > { %1382 = vst [vmem:[%s2244_s3 + $0x28] sm:$0xff] %v1661_v12  ;;  %v1663_v22 = vpack.c.bf16 %v1264_v14, %v1263_v13  ;;  %v1266_v26 = vmax.f32 %v1234_v15, 0.0  ;;  %v1237_v25 = vadd.f32 %v2142_v20, %v1193_v11  ;;  %v1238_v28 = vadd.f32 %v2144_v21, %v1194_v7  ;;  %v1203_v46 = vld [vmem:[#allocation2 + $0xf0] sm:$0xff] }
 0x19d   : > { %1383 = vst [vmem:[%s2244_s3 + $0x30] sm:$0xff] %v1662_v17  ;;  %v1267_v31 = vmax.f32 %v1235_v19, 0.0  ;;  %v1268_v27 = vmax.f32 %v1236_v23, 0.0  ;;  %v1239_v32 = vadd.f32 %v2142_v20, %v1195_v9  ;;  %v1240_v33 = vadd.f32 %v2144_v21, %v1196_v16  ;;  %v1204_v35 = vld [vmem:[#allocation2 + $0xf8] sm:$0xff] }
 0x19e   : > { %1384 = vst [vmem:[%s2244_s3 + $0x38] sm:$0xff] %v1663_v22  ;;  %v1664_v29 = vpack.c.bf16 %v1266_v26, %v1265_v18  ;;  %v1269_v37 = vmax.f32 %v1237_v25, 0.0  ;;  %v1270_v38 = vmax.f32 %v1238_v28, 0.0  ;;  %v1241_v39 = vadd.f32 %v2142_v20, %v1197_v24 }
 0x19f   : > { %v1665_v42 = vpack.c.bf16 %v1268_v27, %v1267_v31  ;;  %v1271_v43 = vmax.f32 %v1239_v32, 0.0  ;;  %v1272_v44 = vmax.f32 %v1240_v33, 0.0  ;;  %v1242_v45 = vadd.f32 %v2144_v21, %v1198_v30 }
 0x1a0   : > { %1385 = vst [vmem:[%s2244_s3 + $0x40] sm:$0xff] %v1664_v29  ;;  %v1666_v48 = vpack.c.bf16 %v1270_v38, %v1269_v37  ;;  %v1273_v50 = vmax.f32 %v1241_v39, 0.0  ;;  %v1243_v51 = vadd.f32 %v2142_v20, %v1199_v34  ;;  %v1244_v47 = vadd.f32 %v2144_v21, %v1200_v36 }
 0x1a1   : > { %1386 = vst [vmem:[%s2244_s3 + $0x48] sm:$0xff] %v1665_v42  ;;  %v1667_v52 = vpack.c.bf16 %v1272_v44, %v1271_v43  ;;  %v1274_v54 = vmax.f32 %v1242_v45, 0.0  ;;  %v1245_v55 = vadd.f32 %v2142_v20, %v1201_v40  ;;  %v1246_v56 = vadd.f32 %v2144_v21, %v1202_v41 }
 0x1a2   : > { %1387 = vst [vmem:[%s2244_s3 + $0x50] sm:$0xff] %v1666_v48  ;;  %v1275_v49 = vmax.f32 %v1243_v51, 0.0  ;;  %v1276_v57 = vmax.f32 %v1244_v47, 0.0  ;;  %v1247_v58 = vadd.f32 %v2142_v20, %v1203_v46  ;;  %v1248_v53 = vadd.f32 %v2144_v21, %v1204_v35 }
 0x1a3   : > { %1388 = vst [vmem:[%s2244_s3 + $0x58] sm:$0xff] %v1667_v52  ;;  %v1668_v59 = vpack.c.bf16 %v1274_v54, %v1273_v50  ;;  %v1277_v60 = vmax.f32 %v1245_v55, 0.0  ;;  %v1278_v61 = vmax.f32 %v1246_v56, 0.0 }
 0x1a4   : > { %v1669_v62 = vpack.c.bf16 %v1276_v57, %v1275_v49  ;;  %v1279_v63 = vmax.f32 %v1247_v58, 0.0  ;;  %v1280_v0 = vmax.f32 %v1248_v53, 0.0 }
 0x1a5   : > { %1389 = vst [vmem:[%s2244_s3 + $0x60] sm:$0xff] %v1668_v59  ;;  %v1670_v1 = vpack.c.bf16 %v1278_v61, %v1277_v60 }
 0x1a6   : > { %1390 = vst [vmem:[%s2244_s3 + $0x68] sm:$0xff] %v1669_v62  ;;  %v1671_v20 = vpack.c.bf16 %v1280_v0, %v1279_v63 }
 0x1a7   : > { %1391 = vst [vmem:[%s2244_s3 + $0x70] sm:$0xff] %v1670_v1 }
 0x1a8   : > { %1392 = vst [vmem:[%s2244_s3 + $0x78] sm:$0xff] %v1671_v20 }
 0x1a9 PF: > { %s13_s16 = sadd.s32 1, %s1890_s16   ;;  %s2245_s12 = smov %s1878_s13 }
 0x1aa   : > { %p10_p12 = scmp.ge.s32.totalorder %s13_s16, 5   ;;  %s2246_s13 = smov %s1949_s20 }
 0x1ab   : > { %s2247_s14 = smov %s1886_s15  ;;  %s2248_s15 = smov %s2250_s17 }
 0x1ac   :  { %12 = sbr.rel (!%p10_p12) target bundleno = 3 (0x3), region = 113 }

// kernel: efficientnet_segmentation_forward.10
= control target key start
LH: loop header
LB: loop body
LE: loop exit
PB: predicated region body
PF: predicated region fallthrough
CT: control target
= control target key end

     0   :  { %s2187_s1 = inlined_call_operand.vmem [shape: bf16[128,128], index: 1, kind: input, shape index: {}]   ;;  %s2188_s0 = inlined_call_operand.vmem [shape: bf16[512,128], index: 0, kind: input, shape index: {}]   ;;  %s2189_s2 = inlined_call_operand.vmem [shape: f32[1,128], index: 2, kind: input, shape index: {}]   ;;  %s2190_s3 = inlined_call_operand.vmem [shape: bf16[512,128], index: 3, kind: output, shape index: {}]  }
   0x1   :  { %v1842_v0 = vld [vmem:[%s2187_s1] sm:$0xff]   ;;  %v1843_v1 = vld [vmem:[%s2187_s1 + $0x8] sm:$0xff]   ;;  %v1844_v2 = vld [vmem:[%s2187_s1 + $0x10] sm:$0xff]  }
   0x2   :  { %1746 = vmatprep.subr.bf16.mxu0 %v1842_v0  ;;  %1826 = vmatprep.subr.bf16.mxu1 %v1842_v0  ;;  %v1845_v3 = vld [vmem:[%s2187_s1 + $0x18] sm:$0xff]   ;;  %v1850_v4 = vld [vmem:[%s2188_s0] sm:$0xff]   ;;  %v1847_v7 = vld [vmem:[%s2187_s1 + $0x28] sm:$0xff]  }
   0x3   :  { %1747 = vmatpush3.bf16.msra.mxu0 %v1842_v0  ;;  %1834 = vmatpush3.bf16.msra.mxu1 %v1842_v0  ;;  %v1851_v5 = vld [vmem:[%s2188_s0 + $0x80] sm:$0xff]   ;;  %v1848_v8 = vld [vmem:[%s2187_s1 + $0x30] sm:$0xff]   ;;  %v1849_v9 = vld [vmem:[%s2187_s1 + $0x38] sm:$0xff]  }
   0x4   :  { %1748 = vmatprep.subr.bf16.mxu0 %v1843_v1  ;;  %1827 = vmatprep.subr.bf16.mxu1 %v1843_v1  ;;  %v1846_v6 = vld [vmem:[%s2187_s1 + $0x20] sm:$0xff]   ;;  %v1852_v10 = vld [vmem:[%s2188_s0 + $0x8] sm:$0xff]   ;;  %v1854_v12 = vld [vmem:[%s2188_s0 + $0x10] sm:$0xff]  }
   0x5   :  { %1762 = vmatprep.mubr.bf16.mxu0 %v1850_v4  ;;  %1794 = vmatprep.mubr.bf16.mxu1 %v1851_v5  ;;  %v1853_v11 = vld [vmem:[%s2188_s0 + $0x88] sm:$0xff]   ;;  %v1855_v13 = vld [vmem:[%s2188_s0 + $0x90] sm:$0xff]   ;;  %v1856_v14 = vld [vmem:[%s2188_s0 + $0x18] sm:$0xff]  }
   0x6   :  { %v1857_v15 = vld [vmem:[%s2188_s0 + $0x98] sm:$0xff]   ;;  %v1858_v16 = vld [vmem:[%s2188_s0 + $0x20] sm:$0xff]   ;;  %v1860_v18 = vld [vmem:[%s2188_s0 + $0x28] sm:$0xff]  }
   0x7   :  { %1749 = vmatpush3.bf16.msra.mxu0 %v1843_v1  ;;  %1835 = vmatpush3.bf16.msra.mxu1 %v1843_v1  ;;  %v1859_v17 = vld [vmem:[%s2188_s0 + $0xa0] sm:$0xff]   ;;  %v1861_v19 = vld [vmem:[%s2188_s0 + $0xa8] sm:$0xff]   ;;  %v1862_v20 = vld [vmem:[%s2188_s0 + $0x30] sm:$0xff]  }
   0x8   :  { %1750 = vmatprep.subr.bf16.mxu0 %v1844_v2  ;;  %1828 = vmatprep.subr.bf16.mxu1 %v1844_v2  ;;  %v1863_v21 = vld [vmem:[%s2188_s0 + $0xb0] sm:$0xff]   ;;  %v1864_v22 = vld [vmem:[%s2188_s0 + $0x38] sm:$0xff]   ;;  %v1866_v24 = vld [vmem:[%s2188_s0 + $0x40] sm:$0xff]  }
   0x9   :  { %v1865_v23 = vld [vmem:[%s2188_s0 + $0xb8] sm:$0xff]   ;;  %v1867_v25 = vld [vmem:[%s2188_s0 + $0xc0] sm:$0xff]   ;;  %v1868_v26 = vld [vmem:[%s2188_s0 + $0x48] sm:$0xff]  }
   0xa   :  { %v1869_v27 = vld [vmem:[%s2188_s0 + $0xc8] sm:$0xff]   ;;  %v1870_v28 = vld [vmem:[%s2188_s0 + $0x50] sm:$0xff]   ;;  %v1872_v30 = vld [vmem:[%s2188_s0 + $0x58] sm:$0xff]  }
   0xb   :  { %1751 = vmatpush3.bf16.msra.mxu0 %v1844_v2  ;;  %1836 = vmatpush3.bf16.msra.mxu1 %v1844_v2  ;;  %v1871_v29 = vld [vmem:[%s2188_s0 + $0xd0] sm:$0xff]   ;;  %v1873_v31 = vld [vmem:[%s2188_s0 + $0xd8] sm:$0xff]   ;;  %v1874_v32 = vld [vmem:[%s2188_s0 + $0x60] sm:$0xff]  }
   0xc   :  { %1752 = vmatprep.subr.bf16.mxu0 %v1845_v3  ;;  %1829 = vmatprep.subr.bf16.mxu1 %v1845_v3  ;;  %v1875_v33 = vld [vmem:[%s2188_s0 + $0xe0] sm:$0xff]   ;;  %v1876_v34 = vld [vmem:[%s2188_s0 + $0x68] sm:$0xff]   ;;  %v1878_v36 = vld [vmem:[%s2188_s0 + $0x70] sm:$0xff]  }
   0xd   :  { %v1877_v35 = vld [vmem:[%s2188_s0 + $0xe8] sm:$0xff]   ;;  %v1879_v37 = vld [vmem:[%s2188_s0 + $0xf0] sm:$0xff]   ;;  %v1880_v38 = vld [vmem:[%s2188_s0 + $0x78] sm:$0xff]  }
   0xe   :  { %v1881_v39 = vld [vmem:[%s2188_s0 + $0xf8] sm:$0xff]   ;;  %v2025_v41 = vld [vmem:[%s2189_s2] ss:$0 sm:$0xff] }
   0xf   :  { %1753 = vmatpush3.bf16.msra.mxu0 %v1845_v3  ;;  %1837 = vmatpush3.bf16.msra.mxu1 %v1845_v3 }
  0x10   :  { %1754 = vmatprep.subr.bf16.mxu0 %v1846_v6  ;;  %1830 = vmatprep.subr.bf16.mxu1 %v1846_v6 }
  0x13   :  { %1755 = vmatpush3.bf16.msra.mxu0 %v1846_v6  ;;  %1838 = vmatpush3.bf16.msra.mxu1 %v1846_v6 }
  0x14   :  { %1756 = vmatprep.subr.bf16.mxu0 %v1847_v7  ;;  %1831 = vmatprep.subr.bf16.mxu1 %v1847_v7 }
  0x17   :  { %1757 = vmatpush3.bf16.msra.mxu0 %v1847_v7  ;;  %1839 = vmatpush3.bf16.msra.mxu1 %v1847_v7 }
  0x18   :  { %1758 = vmatprep.subr.bf16.mxu0 %v1848_v8  ;;  %1832 = vmatprep.subr.bf16.mxu1 %v1848_v8 }
  0x1b   :  { %1759 = vmatpush3.bf16.msra.mxu0 %v1848_v8  ;;  %1840 = vmatpush3.bf16.msra.mxu1 %v1848_v8 }
  0x1c   :  { %1760 = vmatprep.subr.bf16.mxu0 %v1849_v9  ;;  %1833 = vmatprep.subr.bf16.mxu1 %v1849_v9 }
  0x1f   :  { %1761 = vmatpush3.bf16.msra.mxu0 %v1849_v9  ;;  %1841 = vmatpush3.bf16.msra.mxu1 %v1849_v9 }
  0x22   :  { %1763 = vmatmul.mubr.bf16.vlgmr.msra.gmra.mrb[0].mxu0 %v1852_v10  ;;  %1795 = vmatmul.mubr.bf16.vlgmr.msra.gmra.mrb[0].mxu1 %v1853_v11 }
  0x23   :  { %1766 = vmatprep.mubr.bf16.mxu0 %v1854_v12  ;;  %1798 = vmatprep.mubr.bf16.mxu1 %v1855_v13 }
  0x2a   :  { %1767 = vmatmul.mubr.bf16.gmra.mrb[4].mxu0 %v1856_v14  ;;  %1799 = vmatmul.mubr.bf16.gmra.mrb[4].mxu1 %v1857_v15 }
  0x2b   :  { %1770 = vmatprep.mubr.bf16.mxu0 %v1858_v16  ;;  %1802 = vmatprep.mubr.bf16.mxu1 %v1859_v17 }
  0x32   :  { %1771 = vmatmul.mubr.bf16.gmra.mrb[8].mxu0 %v1860_v18  ;;  %1803 = vmatmul.mubr.bf16.gmra.mrb[8].mxu1 %v1861_v19 }
  0x33   :  { %1774 = vmatprep.mubr.bf16.mxu0 %v1862_v20  ;;  %1806 = vmatprep.mubr.bf16.mxu1 %v1863_v21 }
  0x3a   :  { %1775 = vmatmul.mubr.bf16.gmra.mrb[12].mxu0 %v1864_v22  ;;  %1807 = vmatmul.mubr.bf16.gmra.mrb[12].mxu1 %v1865_v23 }
  0x3b   :  { %1778 = vmatprep.mubr.bf16.mxu0 %v1866_v24  ;;  %1810 = vmatprep.mubr.bf16.mxu1 %v1867_v25 }
  0x42   :  { %1779 = vmatmul.mubr.bf16.gmra.mrb[16].mxu0 %v1868_v26  ;;  %1811 = vmatmul.mubr.bf16.gmra.mrb[16].mxu1 %v1869_v27 }
  0x43   :  { %1782 = vmatprep.mubr.bf16.mxu0 %v1870_v28  ;;  %1814 = vmatprep.mubr.bf16.mxu1 %v1871_v29 }
  0x4a   :  { %1783 = vmatmul.mubr.bf16.gmra.mrb[20].mxu0 %v1872_v30  ;;  %1815 = vmatmul.mubr.bf16.gmra.mrb[20].mxu1 %v1873_v31 }
  0x4b   :  { %1786 = vmatprep.mubr.bf16.mxu0 %v1874_v32  ;;  %1818 = vmatprep.mubr.bf16.mxu1 %v1875_v33 }
  0x52   :  { %1787 = vmatmul.mubr.bf16.gmra.mrb[24].mxu0 %v1876_v34  ;;  %1819 = vmatmul.mubr.bf16.gmra.mrb[24].mxu1 %v1877_v35 }
  0x53   :  { %1790 = vmatprep.mubr.bf16.mxu0 %v1878_v36  ;;  %1822 = vmatprep.mubr.bf16.mxu1 %v1879_v37 }
  0x5a   :  { %1791 = vmatmul.mubr.bf16.gmra.mrb[28].mxu0 %v1880_v38  ;;  %1823 = vmatmul.mubr.bf16.gmra.mrb[28].mxu1 %v1881_v39 }
  0xf5   :  { %v1764_v40 = vpop.f32.mrb[0].mxu0  ;;  %v1796_v42 = vpop.f32.mrb[0].mxu1 }
  0xf6   :  { %v501_v43 = vpop.f32.mrb[1].mxu0  ;;  %v629_v44 = vpop.f32.mrb[1].mxu1  ;;  %v960_v47 = vadd.f32 %v1764_v40, %v2025_v41  ;;  %v992_v48 = vadd.f32 %v1796_v42, %v2025_v41 }
  0xf7   :  { %v1765_v45 = vpop.f32.mrb[2].mxu0  ;;  %v1797_v46 = vpop.f32.mrb[2].mxu1  ;;  %v958_v53 = vadd.f32 %v2025_v41, %v501_v43  ;;  %v990_v54 = vadd.f32 %v2025_v41, %v629_v44 }
  0xf8   :  { %v961_v49 = vadd.f32 %v1765_v45, %v2025_v41  ;;  %v993_v50 = vadd.f32 %v1797_v46, %v2025_v41  ;;  %v504_v51 = vpop.f32.mrb[3].mxu0  ;;  %v632_v52 = vpop.f32.mrb[3].mxu1 }
  0xf9   :  { %v959_v55 = vadd.f32 %v2025_v41, %v504_v51  ;;  %v991_v56 = vadd.f32 %v2025_v41, %v632_v52 }
  0xfa   :  { %v1523_v57 = vpack.c.bf16 %v961_v49, %v960_v47  ;;  %v1603_v58 = vpack.c.bf16 %v993_v50, %v992_v48 }
  0xfb   :  { %v1518_v59 = vpack.c.bf16 %v959_v55, %v958_v53  ;;  %v1598_v60 = vpack.c.bf16 %v991_v56, %v990_v54 }
  0xfc   :  { %1675 = vst [vmem:[%s2190_s3 + $0x8] sm:$0xff] %v1523_v57   ;;  %1691 = vst [vmem:[%s2190_s3 + $0x88] sm:$0xff] %v1603_v58  }
  0xfd   :  { %1519 = vst [vmem:[%s2190_s3] sm:$0xff] %v1518_v59   ;;  %1690 = vst [vmem:[%s2190_s3 + $0x80] sm:$0xff] %v1598_v60   ;;  %v1768_v61 = vpop.f32.mrb[4].mxu0  ;;  %v1800_v62 = vpop.f32.mrb[4].mxu1 }
  0xfe   :  { %v517_v63 = vpop.f32.mrb[5].mxu0  ;;  %v645_v0 = vpop.f32.mrb[5].mxu1  ;;  %v964_v3 = vadd.f32 %v1768_v61, %v2025_v41  ;;  %v996_v4 = vadd.f32 %v1800_v62, %v2025_v41 }
  0xff   :  { %v1769_v1 = vpop.f32.mrb[6].mxu0  ;;  %v1801_v2 = vpop.f32.mrb[6].mxu1  ;;  %v962_v9 = vadd.f32 %v2025_v41, %v517_v63  ;;  %v994_v10 = vadd.f32 %v2025_v41, %v645_v0 }
 0x100   :  { %v965_v5 = vadd.f32 %v1769_v1, %v2025_v41  ;;  %v997_v6 = vadd.f32 %v1801_v2, %v2025_v41  ;;  %v520_v7 = vpop.f32.mrb[7].mxu0  ;;  %v648_v8 = vpop.f32.mrb[7].mxu1 }
 0x101   :  { %v963_v11 = vadd.f32 %v2025_v41, %v520_v7  ;;  %v995_v12 = vadd.f32 %v2025_v41, %v648_v8 }
 0x102   :  { %v1533_v13 = vpack.c.bf16 %v965_v5, %v964_v3  ;;  %v1613_v14 = vpack.c.bf16 %v997_v6, %v996_v4 }
 0x103   :  { %v1528_v15 = vpack.c.bf16 %v963_v11, %v962_v9  ;;  %v1608_v16 = vpack.c.bf16 %v995_v12, %v994_v10 }
 0x104   :  { %1677 = vst [vmem:[%s2190_s3 + $0x18] sm:$0xff] %v1533_v13   ;;  %1693 = vst [vmem:[%s2190_s3 + $0x98] sm:$0xff] %v1613_v14  }
 0x105   :  { %1676 = vst [vmem:[%s2190_s3 + $0x10] sm:$0xff] %v1528_v15   ;;  %1692 = vst [vmem:[%s2190_s3 + $0x90] sm:$0xff] %v1608_v16   ;;  %v1772_v17 = vpop.f32.mrb[8].mxu0  ;;  %v1804_v18 = vpop.f32.mrb[8].mxu1 }
 0x106   :  { %v533_v19 = vpop.f32.mrb[9].mxu0  ;;  %v661_v20 = vpop.f32.mrb[9].mxu1  ;;  %v968_v23 = vadd.f32 %v1772_v17, %v2025_v41  ;;  %v1000_v24 = vadd.f32 %v1804_v18, %v2025_v41 }
 0x107   :  { %v1773_v21 = vpop.f32.mrb[10].mxu0  ;;  %v1805_v22 = vpop.f32.mrb[10].mxu1  ;;  %v966_v29 = vadd.f32 %v2025_v41, %v533_v19  ;;  %v998_v30 = vadd.f32 %v2025_v41, %v661_v20 }
 0x108   :  { %v969_v25 = vadd.f32 %v1773_v21, %v2025_v41  ;;  %v1001_v26 = vadd.f32 %v1805_v22, %v2025_v41  ;;  %v536_v27 = vpop.f32.mrb[11].mxu0  ;;  %v664_v28 = vpop.f32.mrb[11].mxu1 }
 0x109   :  { %v967_v31 = vadd.f32 %v2025_v41, %v536_v27  ;;  %v999_v32 = vadd.f32 %v2025_v41, %v664_v28 }
 0x10a   :  { %v1543_v33 = vpack.c.bf16 %v969_v25, %v968_v23  ;;  %v1623_v34 = vpack.c.bf16 %v1001_v26, %v1000_v24 }
 0x10b   :  { %v1538_v35 = vpack.c.bf16 %v967_v31, %v966_v29  ;;  %v1618_v36 = vpack.c.bf16 %v999_v32, %v998_v30 }
 0x10c   :  { %1679 = vst [vmem:[%s2190_s3 + $0x28] sm:$0xff] %v1543_v33   ;;  %1695 = vst [vmem:[%s2190_s3 + $0xa8] sm:$0xff] %v1623_v34  }
 0x10d   :  { %1678 = vst [vmem:[%s2190_s3 + $0x20] sm:$0xff] %v1538_v35   ;;  %1694 = vst [vmem:[%s2190_s3 + $0xa0] sm:$0xff] %v1618_v36   ;;  %v1776_v37 = vpop.f32.mrb[12].mxu0  ;;  %v1808_v38 = vpop.f32.mrb[12].mxu1 }
 0x10e   :  { %v549_v39 = vpop.f32.mrb[13].mxu0  ;;  %v677_v40 = vpop.f32.mrb[13].mxu1  ;;  %v972_v44 = vadd.f32 %v1776_v37, %v2025_v41  ;;  %v1004_v45 = vadd.f32 %v1808_v38, %v2025_v41 }
 0x10f   :  { %v1777_v42 = vpop.f32.mrb[14].mxu0  ;;  %v1809_v43 = vpop.f32.mrb[14].mxu1  ;;  %v970_v50 = vadd.f32 %v2025_v41, %v549_v39  ;;  %v1002_v51 = vadd.f32 %v2025_v41, %v677_v40 }
 0x110   :  { %v973_v46 = vadd.f32 %v1777_v42, %v2025_v41  ;;  %v1005_v47 = vadd.f32 %v1809_v43, %v2025_v41  ;;  %v552_v48 = vpop.f32.mrb[15].mxu0  ;;  %v680_v49 = vpop.f32.mrb[15].mxu1 }
 0x111   :  { %v971_v52 = vadd.f32 %v2025_v41, %v552_v48  ;;  %v1003_v53 = vadd.f32 %v2025_v41, %v680_v49 }
 0x112   :  { %v1553_v54 = vpack.c.bf16 %v973_v46, %v972_v44  ;;  %v1633_v55 = vpack.c.bf16 %v1005_v47, %v1004_v45 }
 0x113   :  { %v1548_v56 = vpack.c.bf16 %v971_v52, %v970_v50  ;;  %v1628_v57 = vpack.c.bf16 %v1003_v53, %v1002_v51 }
 0x114   :  { %1681 = vst [vmem:[%s2190_s3 + $0x38] sm:$0xff] %v1553_v54   ;;  %1697 = vst [vmem:[%s2190_s3 + $0xb8] sm:$0xff] %v1633_v55  }
 0x115   :  { %1680 = vst [vmem:[%s2190_s3 + $0x30] sm:$0xff] %v1548_v56   ;;  %1696 = vst [vmem:[%s2190_s3 + $0xb0] sm:$0xff] %v1628_v57   ;;  %v1780_v58 = vpop.f32.mrb[16].mxu0  ;;  %v1812_v59 = vpop.f32.mrb[16].mxu1 }
 0x116   :  { %v565_v60 = vpop.f32.mrb[17].mxu0  ;;  %v693_v61 = vpop.f32.mrb[17].mxu1  ;;  %v976_v0 = vadd.f32 %v1780_v58, %v2025_v41  ;;  %v1008_v1 = vadd.f32 %v1812_v59, %v2025_v41 }
 0x117   :  { %v1781_v62 = vpop.f32.mrb[18].mxu0  ;;  %v1813_v63 = vpop.f32.mrb[18].mxu1  ;;  %v974_v6 = vadd.f32 %v2025_v41, %v565_v60  ;;  %v1006_v7 = vadd.f32 %v2025_v41, %v693_v61 }
 0x118   :  { %v977_v2 = vadd.f32 %v1781_v62, %v2025_v41  ;;  %v1009_v3 = vadd.f32 %v1813_v63, %v2025_v41  ;;  %v568_v4 = vpop.f32.mrb[19].mxu0  ;;  %v696_v5 = vpop.f32.mrb[19].mxu1 }
 0x119   :  { %v975_v8 = vadd.f32 %v2025_v41, %v568_v4  ;;  %v1007_v9 = vadd.f32 %v2025_v41, %v696_v5 }
 0x11a   :  { %v1563_v10 = vpack.c.bf16 %v977_v2, %v976_v0  ;;  %v1643_v11 = vpack.c.bf16 %v1009_v3, %v1008_v1 }
 0x11b   :  { %v1558_v12 = vpack.c.bf16 %v975_v8, %v974_v6  ;;  %v1638_v13 = vpack.c.bf16 %v1007_v9, %v1006_v7 }
 0x11c   :  { %1683 = vst [vmem:[%s2190_s3 + $0x48] sm:$0xff] %v1563_v10   ;;  %1699 = vst [vmem:[%s2190_s3 + $0xc8] sm:$0xff] %v1643_v11  }
 0x11d   :  { %1682 = vst [vmem:[%s2190_s3 + $0x40] sm:$0xff] %v1558_v12   ;;  %1698 = vst [vmem:[%s2190_s3 + $0xc0] sm:$0xff] %v1638_v13   ;;  %v1784_v14 = vpop.f32.mrb[20].mxu0  ;;  %v1816_v15 = vpop.f32.mrb[20].mxu1 }
 0x11e   :  { %v581_v16 = vpop.f32.mrb[21].mxu0  ;;  %v709_v17 = vpop.f32.mrb[21].mxu1  ;;  %v980_v20 = vadd.f32 %v1784_v14, %v2025_v41  ;;  %v1012_v21 = vadd.f32 %v1816_v15, %v2025_v41 }
 0x11f   :  { %v1785_v18 = vpop.f32.mrb[22].mxu0  ;;  %v1817_v19 = vpop.f32.mrb[22].mxu1  ;;  %v978_v26 = vadd.f32 %v2025_v41, %v581_v16  ;;  %v1010_v27 = vadd.f32 %v2025_v41, %v709_v17 }
 0x120   :  { %v981_v22 = vadd.f32 %v1785_v18, %v2025_v41  ;;  %v1013_v23 = vadd.f32 %v1817_v19, %v2025_v41  ;;  %v584_v24 = vpop.f32.mrb[23].mxu0  ;;  %v712_v25 = vpop.f32.mrb[23].mxu1 }
 0x121   :  { %v979_v28 = vadd.f32 %v2025_v41, %v584_v24  ;;  %v1011_v29 = vadd.f32 %v2025_v41, %v712_v25 }
 0x122   :  { %v1573_v30 = vpack.c.bf16 %v981_v22, %v980_v20  ;;  %v1653_v31 = vpack.c.bf16 %v1013_v23, %v1012_v21 }
 0x123   :  { %v1568_v32 = vpack.c.bf16 %v979_v28, %v978_v26  ;;  %v1648_v33 = vpack.c.bf16 %v1011_v29, %v1010_v27 }
 0x124   :  { %1685 = vst [vmem:[%s2190_s3 + $0x58] sm:$0xff] %v1573_v30   ;;  %1701 = vst [vmem:[%s2190_s3 + $0xd8] sm:$0xff] %v1653_v31  }
 0x125   :  { %1684 = vst [vmem:[%s2190_s3 + $0x50] sm:$0xff] %v1568_v32   ;;  %1700 = vst [vmem:[%s2190_s3 + $0xd0] sm:$0xff] %v1648_v33   ;;  %v1788_v34 = vpop.f32.mrb[24].mxu0  ;;  %v1820_v35 = vpop.f32.mrb[24].mxu1 }
 0x126   :  { %v597_v36 = vpop.f32.mrb[25].mxu0  ;;  %v725_v37 = vpop.f32.mrb[25].mxu1  ;;  %v984_v40 = vadd.f32 %v1788_v34, %v2025_v41  ;;  %v1016_v42 = vadd.f32 %v1820_v35, %v2025_v41 }
 0x127   :  { %v1789_v38 = vpop.f32.mrb[26].mxu0  ;;  %v1821_v39 = vpop.f32.mrb[26].mxu1  ;;  %v982_v47 = vadd.f32 %v2025_v41, %v597_v36  ;;  %v1014_v48 = vadd.f32 %v2025_v41, %v725_v37 }
 0x128   :  { %v985_v43 = vadd.f32 %v1789_v38, %v2025_v41  ;;  %v1017_v44 = vadd.f32 %v1821_v39, %v2025_v41  ;;  %v600_v45 = vpop.f32.mrb[27].mxu0  ;;  %v728_v46 = vpop.f32.mrb[27].mxu1 }
 0x129   :  { %v983_v49 = vadd.f32 %v2025_v41, %v600_v45  ;;  %v1015_v50 = vadd.f32 %v2025_v41, %v728_v46 }
 0x12a   :  { %v1583_v51 = vpack.c.bf16 %v985_v43, %v984_v40  ;;  %v1663_v52 = vpack.c.bf16 %v1017_v44, %v1016_v42 }
 0x12b   :  { %v1578_v53 = vpack.c.bf16 %v983_v49, %v982_v47  ;;  %v1658_v54 = vpack.c.bf16 %v1015_v50, %v1014_v48 }
 0x12c   :  { %1687 = vst [vmem:[%s2190_s3 + $0x68] sm:$0xff] %v1583_v51   ;;  %1703 = vst [vmem:[%s2190_s3 + $0xe8] sm:$0xff] %v1663_v52  }
 0x12d   :  { %1686 = vst [vmem:[%s2190_s3 + $0x60] sm:$0xff] %v1578_v53   ;;  %1702 = vst [vmem:[%s2190_s3 + $0xe0] sm:$0xff] %v1658_v54   ;;  %v1792_v55 = vpop.f32.mrb[28].mxu0  ;;  %v1824_v56 = vpop.f32.mrb[28].mxu1 }
 0x12e   :  { %v613_v57 = vpop.f32.mrb[29].mxu0  ;;  %v741_v58 = vpop.f32.mrb[29].mxu1  ;;  %v988_v61 = vadd.f32 %v1792_v55, %v2025_v41  ;;  %v1020_v62 = vadd.f32 %v1824_v56, %v2025_v41 }
 0x12f   :  { %v1793_v59 = vpop.f32.mrb[30].mxu0  ;;  %v1825_v60 = vpop.f32.mrb[30].mxu1  ;;  %v986_v3 = vadd.f32 %v2025_v41, %v613_v57  ;;  %v1018_v4 = vadd.f32 %v2025_v41, %v741_v58 }
 0x130   :  { %v989_v63 = vadd.f32 %v1793_v59, %v2025_v41  ;;  %v1021_v0 = vadd.f32 %v1825_v60, %v2025_v41  ;;  %v616_v1 = vpop.f32.mrb[31].mxu0  ;;  %v744_v2 = vpop.f32.mrb[31].mxu1 }
 0x131   :  { %v987_v5 = vadd.f32 %v2025_v41, %v616_v1  ;;  %v1019_v6 = vadd.f32 %v2025_v41, %v744_v2 }
 0x132   :  { %v1593_v7 = vpack.c.bf16 %v989_v63, %v988_v61  ;;  %v1673_v8 = vpack.c.bf16 %v1021_v0, %v1020_v62 }
 0x133   :  { %v1588_v9 = vpack.c.bf16 %v987_v5, %v986_v3  ;;  %v1668_v10 = vpack.c.bf16 %v1019_v6, %v1018_v4 }
 0x134   :  { %1689 = vst [vmem:[%s2190_s3 + $0x78] sm:$0xff] %v1593_v7   ;;  %1705 = vst [vmem:[%s2190_s3 + $0xf8] sm:$0xff] %v1673_v8  }
 0x135   :  { %1688 = vst [vmem:[%s2190_s3 + $0x70] sm:$0xff] %v1588_v9   ;;  %1704 = vst [vmem:[%s2190_s3 + $0xf0] sm:$0xff] %v1668_v10  }

// kernel: efficientnet_segmentation_forward.11
= control target key start
LH: loop header
LB: loop body
LE: loop exit
PB: predicated region body
PF: predicated region fallthrough
CT: control target
= control target key end

     0   :  { %9 = vsyncpa [#allocation4], 0  ;;  %s4371_s0 = inlined_call_operand.vmem [shape: bf16[2,3,16,16], index: 0, kind: input, shape index: {}]   ;;  %s4372_s1 = inlined_call_operand.vmem [shape: bf16[512,16], index: 1, kind: input, shape index: {}]   ;;  %s4373_s2 = inlined_call_operand.vmem [shape: bf16[16,640], index: 2, kind: input, shape index: {}]   ;;  %s4374_s3 = inlined_call_operand.vmem [shape: f32[3], index: 3, kind: input, shape index: {}]   ;;  %s4375_s4 = inlined_call_operand.hbm [shape: f32[2,3,512,640], index: 4, kind: output, shape index: {}]  }
   0x1   :  { %10 = vsyncpa [#allocation3], 0 }
   0x2   :  { %12 = vsyncpa [#allocation3 + $0x1], 0  ;;  %s3097_s15 = smov 0   ;;  %s3099_s16 = smov 0  }
   0x3   :  { %s3101_s17 = smov 0   ;;  %s3103_s18 = smov 0  }
   0x4   :  { %s3105_s19 = smov 0   ;;  %s3107_s20 = smov 0  }
   0x5   :  { %s3109_s21 = smov 0   ;;  %s3111_s22 = smov 0  }
   0x6 LB: > { %s2447_s23 = sadd.s32 4294967295, %s3065_s22   ;;  %s2448_s24 = sadd.s32 4294967294, %s3065_s22   ;;  %s3065_s22 = sphi %s3111_s22, %s18_s22   ;;  %s3061_s21 = sphi %s3109_s21, %s4387_s21   ;;  %s3057_s20 = sphi %s3107_s20, %s4386_s20   ;;  %s3053_s19 = sphi %s3105_s19, %s4385_s19   ;;  %s3049_s18 = sphi %s3103_s18, %s4384_s18   ;;  %s3045_s17 = sphi %s3101_s17, %s4383_s17   ;;  %s3041_s16 = sphi %s3099_s16, %s4382_s16   ;;  %s3037_s15 = sphi %s3097_s15, %s4381_s15  }
   0x7   : > { %s27_s25 = sadd.s32 1, %s3057_s20  ;;  %s30_s26 = sadd.s32 1, %s3061_s21 }
   0x8   : > { %p28_p0 = scmp.ge.s32.totalorder %s27_s25, 3  ;;  %s130_s27 = sadd.s32 1, %s3045_s17 }
   0x9   : > { %p140_p1 = scmp.ne.s32.totalorder %s3045_s17, %s3041_s16  ;;  %p141_p2 = scmp.eq.s32.totalorder %s2447_s23, 5 }
   0xa   : > { %s4389_s25 = smov (%p28_p0, %s27_s25), 0  ;;  %s4391_s26 = smov (!%p28_p0, %s30_s26), %s3061_s21 }
   0xb   : > { %s126_s28 = ssub.s32 %s3057_s20, %s4389_s25  ;;  %p3149_p3 = por %p141_p2, %p140_p1 }
   0xc   : > { %p32_p4 = scmp.ge.s32.totalorder %s4391_s26, 2  ;;  %p146_p5 = scmp.ne.s32.totalorder %s3041_s16, %s3037_s15 }
   0xd   : > { %p147_p6 = scmp.eq.s32.totalorder %s2448_s24, 5  ;;  %p2449_p7 = scmp.ge.s32.totalorder %s3065_s22, 1 }
   0xe   : > { %s4393_s26 = smov (%p32_p4, %s4391_s26), 0  ;;  %p154_p9 = scmp.lt.s32.totalorder %s3065_s22, 7 }
   0xf   : > { %p3158_p8 = por %p147_p6, %p146_p5  ;;  %s125_s5 = ssub.s32 %s3061_s21, %s4393_s26 }
  0x10   : > { %s127_s6 = sor.u32 %s126_s28, %s125_s5  ;;  %p3165_p10 = pnand %p2449_p7, %p154_p9 }
  0x11   : > { %s4377_s30 = scalar_select %p3158_p8, 1, 0 }
  0x12   : > { %p128_p11 = scmp.eq.s32.totalorder %s127_s6, 0  ;;  %p3169_p12 = scmp.eq.s32.totalorder %s2447_s23, 0 }
  0x13   : > { %p2833_p13 = pneg %p3165_p10  ;;  %s173_s11 = sshll.u32 %s4374_s3, 4  ;;  %s174_s11 = int_to_ptr.vmem [resolvable:$true] %s173_s11 }
  0x14   : > { %s3179_s12 = scalar_select %p128_p11, %s3045_s17, %s130_s27  }
  0x15   : > { %p2834_p0 = pnand %p3169_p12, %p2833_p13  ;;  %s2952_s13 = scalar_lea.vmem %s174_s11, 16 }
  0x16   : > { %p2953_p1 = scmp.ne.s32.totalorder %s174_s11, %s2952_s13  ;;  %p2960_p6 = scmp.lt.s32.totalorder %s174_s11, %s174_s11 }
  0x17   : > { %p2954_p2 = pneg %p2834_p0  ;;  %p2961_p7 = scmp.lt.s32.totalorder %s2952_s13, %s2952_s13 }
  0x19   : > { %p2955_p4 = pnand %p2954_p2, %p2953_p1  ;;  %p2962_p9 = por %p2961_p7, %p2960_p6 }
  0x1b   : > { %p2956_p5 = pneg %p2955_p4 }
  0x1d   : > { %p2963_p8 = pnand %p2962_p9, %p2956_p5 }
  0x1f   : > { %2966 = shalt.err (!%p2963_p8)
}
  0x20   : > { %s3067_s14 = smov [#allocation2]   ;;  %198 = sbr.rel (%p3165_p10) target bundleno = 881 (0x371), region = 36 }
  0x21   : > { %2836 = dma.vmem_to_smem (!%p2834_p0), %s174_s11, 16, %s3067_s14, [#allocation4]  }
  0x27   : > { %3028 = dma.done.wait (%p3169_p12), [#allocation4], 16  }
  0x28   : > { %3030 = vsyncadd (%p3169_p12), [#allocation4], 4294967280 }
  0x29   : > { %204 = sfence }
  0x2a   : > { %p229_p11 = scmp.lt.s32.totalorder %s3053_s19, 1  ;;  %p231_p13 = scmp.lt.s32.totalorder %s3049_s18, 2  ;;  %v2913_v0 = vld [vmem:[%s4372_s1] sm:$0xff]   ;;  %vm471_vm0 = vcmask 130048   ;;  %v2914_v2 = vld [vmem:[%s4372_s1 + $0x8] sm:$0xff]   ;;  %v2915_v3 = vld [vmem:[%s4372_s1 + $0x10] sm:$0xff]  }
  0x2b   : > { %2693 = vmatprep.mubr.msk.bf16.mxu0 %vm471_vm0, %v2913_v0  ;;  %v2916_v4 = vld [vmem:[%s4372_s1 + $0x18] sm:$0xff]   ;;  %v2917_v5 = vld [vmem:[%s4372_s1 + $0x20] sm:$0xff]   ;;  %v2918_v6 = vld [vmem:[%s4372_s1 + $0x28] sm:$0xff]   ;;  %v3068_v31 = vmov 0   ;;  %s2825_s10 = smul.u32 320, %s3049_s18 }
  0x2c   : > { %s230_s27 = scalar_select %p229_p11, %s3053_s19, 1  ;;  %v2919_v7 = vld [vmem:[%s4372_s1 + $0x30] sm:$0xff]   ;;  %v2920_v8 = vld [vmem:[%s4372_s1 + $0x38] sm:$0xff]   ;;  %v2921_v9 = vld [vmem:[%s4372_s1 + $0x40] sm:$0xff]   ;;  %1051 = vmatprep.mubr.bf16.mxu1 %v3068_v31 }
  0x2d   : > { %s232_s28 = scalar_select %p231_p13, %s3049_s18, 2  ;;  %v2922_v10 = vld [vmem:[%s4372_s1 + $0x48] sm:$0xff]   ;;  %v2923_v11 = vld [vmem:[%s4372_s1 + $0x50] sm:$0xff]   ;;  %v2924_v12 = vld [vmem:[%s4372_s1 + $0x58] sm:$0xff]  }
  0x2e   : > { %s2824_s5 = smul.u32 6, %s230_s27  ;;  %v2925_v13 = vld [vmem:[%s4372_s1 + $0x60] sm:$0xff]   ;;  %v2926_v14 = vld [vmem:[%s4372_s1 + $0x68] sm:$0xff]   ;;  %v2927_v15 = vld [vmem:[%s4372_s1 + $0x70] sm:$0xff]  }
  0x2f   : > { %s2454_s6 = sshll.u32 %s232_s28, 1  ;;  %v2928_v16 = vld [vmem:[%s4372_s1 + $0x78] sm:$0xff]   ;;  %v2929_v17 = vld [vmem:[%s4372_s1 + $0x80] sm:$0xff]   ;;  %v2930_v18 = vld [vmem:[%s4372_s1 + $0x88] sm:$0xff]  }
  0x30   : > { %s235_s7 = sadd.s32 %s2824_s5, %s2454_s6  ;;  %v2931_v19 = vld [vmem:[%s4372_s1 + $0x90] sm:$0xff]   ;;  %v2932_v20 = vld [vmem:[%s4372_s1 + $0x98] sm:$0xff]   ;;  %v2933_v21 = vld [vmem:[%s4372_s1 + $0xa0] sm:$0xff]   ;;  %s895_s6 = sld [smem:[#allocation2 + %s3049_s18]] }
  0x31   : > { %s2455_s8 = sshll.u32 %s235_s7, 2  ;;  %v2934_v22 = vld [vmem:[%s4372_s1 + $0xa8] sm:$0xff]   ;;  %v2935_v23 = vld [vmem:[%s4372_s1 + $0xb0] sm:$0xff]   ;;  %v2945_v24 = vld [vmem:[%s4373_s2 + $0x4] ss:$20 sps:$4 sm:$0xff]   ;;  %s226_s7 = sand.u32 1, %s3041_s16  }
  0x32   : > { %s237_s11 = scalar_lea.vmem %s4371_s0, %s2455_s8  ;;  %v2950_v25 = vld [vmem:[%s4373_s2 + $0xc] ss:$20 sps:$4 sm:$0xff]   ;;  %v2936_v26 = vld [vmem:[%s4372_s1 + $0xb8] sm:$0xff]   ;;  %1019 = vmatprep.subr.bf16.mxu1 %v2945_v24  ;;  %v2951_v30 = vld [vmem:[%s4373_s2 + $0x10] ss:$20 sps:$4 sm:$0xff]   ;;  %s2823_s8 = smul.u32 2560, %s226_s7 }
  0x33   : > { %v2912_v1 = vld [vmem:[%s237_s11] sm:$0xff]   ;;  %v2948_v28 = vld [vmem:[%s4373_s2 + $0x8] ss:$20 sps:$4 sm:$0xff]   ;;  %v2939_v33 = vld [vmem:[%s4372_s1 + $0xd0] sm:$0xff]   ;;  %s2826_s11 = smul.u32 960, %s3053_s19  ;;  %s4319_s27 = scalar_lea.sflag [#allocation3], %s226_s7 }
  0x34   : > { %2691 = vmatprep.subr.bf16.mxu0 %v2912_v1  ;;  %v2947_v27 = vld [vmem:[%s4373_s2] ss:$20 sps:$4 sm:$0xff]   ;;  %v2938_v32 = vld [vmem:[%s4372_s1 + $0xc8] sm:$0xff]   ;;  %v2940_v34 = vld [vmem:[%s4372_s1 + $0xd8] sm:$0xff]   ;;  %s3577_s9 = scalar_lea.vmem [#allocation5], %s2823_s8  ;;  %s3069_s5 = smov [#allocation5]  }
  0x35   : > { %2692 = vmatpush3.bf16.msra.mxu0 %v2912_v1  ;;  %v2937_v29 = vld [vmem:[%s4372_s1 + $0xc0] sm:$0xff]   ;;  %1020 = vmatpush1.bf16.msra.mxu1 %v2947_v27  ;;  %v2942_v36 = vld [vmem:[%s4372_s1 + $0xe8] sm:$0xff]   ;;  %v2943_v37 = vld [vmem:[%s4372_s1 + $0xf0] sm:$0xff]   ;;  %s2347_s13 = sadd.s32 %s2826_s11, %s2825_s10  ;;  %s2350_s19 = sshll.u32 %s3577_s9, 4  ;;  %s4311_s19 = int_to_ptr.vmem [resolvable:$true] %s2350_s19 }
  0x36   : > { %1372 = vmatprep.subr.bf16.mxu0 %v2950_v25  ;;  %2757 = vmatprep.subr.bf16.mxu1 %v2951_v30  ;;  %v2941_v35 = vld [vmem:[%s4372_s1 + $0xe0] sm:$0xff]   ;;  %v2944_v38 = vld [vmem:[%s4372_s1 + $0xf8] sm:$0xff]   ;;  %s2622_s18 = sshll.u32 %s2347_s13, 7  ;;  %s2967_s28 = scalar_lea.vmem %s4311_s19, 40960 }
  0x37   : > { %s4309_s24 = scalar_lea.hbm %s4375_s4, %s2622_s18  ;;  %p2968_p8 = scmp.ne.s32.totalorder %s4311_s19, %s2967_s28 }
  0x38   : > { %2694 = vmatmul.mubr.msk.bf16.vlgmr.msra.gmra.mrb[0].mxu0 %vm471_vm0, %v2914_v2 }
  0x39   : > { %2697 = vmatprep.mubr.msk.bf16.mxu0 %vm471_vm0, %v2915_v3  ;;  %1373 = vmatpush1.bf16.msra.mxu0 %v2948_v28  ;;  %p2969_p10 = pnand %p2968_p8, %p3149_p3 }
  0x3b   : > { %p2970_p12 = pneg %p2969_p10 }
  0x40   : > { %2698 = vmatmul.mubr.msk.bf16.gmra.mrb[4].mxu0 %vm471_vm0, %v2916_v4 }
  0x41   : > { %2701 = vmatprep.mubr.msk.bf16.mxu0 %vm471_vm0, %v2917_v5 }
  0x48   : > { %2702 = vmatmul.mubr.msk.bf16.gmra.mrb[8].mxu0 %vm471_vm0, %v2918_v6 }
  0x49   : > { %2705 = vmatprep.mubr.msk.bf16.mxu0 %vm471_vm0, %v2919_v7 }
  0x50   : > { %2706 = vmatmul.mubr.msk.bf16.gmra.mrb[12].mxu0 %vm471_vm0, %v2920_v8 }
  0x51   : > { %2709 = vmatprep.mubr.msk.bf16.mxu0 %vm471_vm0, %v2921_v9 }
  0x58   : > { %2710 = vmatmul.mubr.msk.bf16.gmra.mrb[16].mxu0 %vm471_vm0, %v2922_v10 }
  0x59   : > { %2713 = vmatprep.mubr.msk.bf16.mxu0 %vm471_vm0, %v2923_v11 }
  0x60   : > { %2714 = vmatmul.mubr.msk.bf16.gmra.mrb[20].mxu0 %vm471_vm0, %v2924_v12 }
  0x61   : > { %2717 = vmatprep.mubr.msk.bf16.mxu0 %vm471_vm0, %v2925_v13 }
  0x68   : > { %2718 = vmatmul.mubr.msk.bf16.gmra.mrb[24].mxu0 %vm471_vm0, %v2926_v14 }
  0x69   : > { %2721 = vmatprep.mubr.msk.bf16.mxu0 %vm471_vm0, %v2927_v15 }
  0x70   : > { %2722 = vmatmul.mubr.msk.bf16.gmra.mrb[28].mxu0 %vm471_vm0, %v2928_v16 }
  0x71   : > { %2725 = vmatprep.mubr.msk.bf16.mxu0 %vm471_vm0, %v2929_v17 }
  0x78   : > { %2726 = vmatmul.mubr.msk.bf16.gmra.mrb[32].mxu0 %vm471_vm0, %v2930_v18 }
  0x79   : > { %2729 = vmatprep.mubr.msk.bf16.mxu0 %vm471_vm0, %v2931_v19 }
  0x80   : > { %2730 = vmatmul.mubr.msk.bf16.gmra.mrb[36].mxu0 %vm471_vm0, %v2932_v20 }
  0x81   : > { %2733 = vmatprep.mubr.msk.bf16.mxu0 %vm471_vm0, %v2933_v21 }
  0x88   : > { %2734 = vmatmul.mubr.msk.bf16.gmra.mrb[40].mxu0 %vm471_vm0, %v2934_v22 }
  0x89   : > { %2737 = vmatprep.mubr.msk.bf16.mxu0 %vm471_vm0, %v2935_v23 }
  0x90   : > { %2738 = vmatmul.mubr.msk.bf16.gmra.mrb[44].mxu0 %vm471_vm0, %v2936_v26 }
  0x91   : > { %2741 = vmatprep.mubr.msk.bf16.mxu0 %vm471_vm0, %v2937_v29 }
  0x98   : > { %2742 = vmatmul.mubr.msk.bf16.gmra.mrb[48].mxu0 %vm471_vm0, %v2938_v32 }
  0x99   : > { %2745 = vmatprep.mubr.msk.bf16.mxu0 %vm471_vm0, %v2939_v33 }
  0xa0   : > { %2746 = vmatmul.mubr.msk.bf16.gmra.mrb[52].mxu0 %vm471_vm0, %v2940_v34 }
  0xa1   : > { %2749 = vmatprep.mubr.msk.bf16.mxu0 %vm471_vm0, %v2941_v35 }
  0xa8   : > { %2750 = vmatmul.mubr.msk.bf16.gmra.mrb[56].mxu0 %vm471_vm0, %v2942_v36 }
  0xa9   : > { %2753 = vmatprep.mubr.msk.bf16.mxu0 %vm471_vm0, %v2943_v37 }
  0xb0   : > { %2754 = vmatmul.mubr.msk.bf16.gmra.mrb[60].mxu0 %vm471_vm0, %v2944_v38 }
  0xb1   : > { %1404 = vmatprep.mubr.bf16.mxu0 %v3068_v31 }
 0x10b   : > { %v2695_v39 = vpop.f32.mrb[0].mxu0 }
 0x10c   : > { %v602_v40 = vpop.f32.mrb[1].mxu0 }
 0x10d   : > { %v2696_v41 = vpop.f32.mrb[2].mxu0 }
 0x10e   : > { %v3341_v42 = vpack.c.bf16 %v2696_v41, %v2695_v39  ;;  %v605_v43 = vpop.f32.mrb[3].mxu0 }
 0x10f   : > { %v3343_v44 = vpack.c.bf16 %v605_v43, %v602_v40 }
 0x111   : > { %2526 = vmatmul.mubr.msk.bf16.vlgmr.msra.gmra.mrb[0].mxu1 %vm471_vm0, %v3343_v44  ;;  %2558 = vmatmul.mubr.msk.bf16.vlgmr.msra.gmra.mrb[64].mxu0 %vm471_vm0, %v3343_v44 }
 0x112   : > { %2758 = vmatpush3.bf16.msra.mxu1 %v2951_v30  ;;  %1061 = vmatprep.mubr.bf16.mxu1 %v3068_v31 }
 0x113   : > { %v2699_v45 = vpop.f32.mrb[4].mxu0  ;;  %1414 = vmatprep.mubr.bf16.mxu0 %v3068_v31 }
 0x114   : > { %v618_v46 = vpop.f32.mrb[5].mxu0 }
 0x115   : > { %v2700_v47 = vpop.f32.mrb[6].mxu0 }
 0x116   : > { %v3351_v48 = vpack.c.bf16 %v2700_v47, %v2699_v45  ;;  %v621_v49 = vpop.f32.mrb[7].mxu0 }
 0x117   : > { %v3353_v50 = vpack.c.bf16 %v621_v49, %v618_v46 }
 0x119   : > { %2527 = vmatmul.mubr.msk.bf16.gmra.mrb[4].mxu1 %vm471_vm0, %v3341_v42  ;;  %2559 = vmatmul.mubr.msk.bf16.gmra.mrb[68].mxu0 %vm471_vm0, %v3341_v42 }
 0x11a   : > { %1071 = vmatprep.mubr.bf16.mxu1 %v3068_v31  ;;  %1424 = vmatprep.mubr.bf16.mxu0 %v3068_v31 }
 0x11b   : > { %v2703_v51 = vpop.f32.mrb[8].mxu0 }
 0x11c   : > { %v634_v52 = vpop.f32.mrb[9].mxu0 }
 0x11d   : > { %v2704_v53 = vpop.f32.mrb[10].mxu0 }
 0x11e   : > { %v3361_v54 = vpack.c.bf16 %v2704_v53, %v2703_v51  ;;  %v637_v55 = vpop.f32.mrb[11].mxu0 }
 0x11f   : > { %v3363_v56 = vpack.c.bf16 %v637_v55, %v634_v52 }
 0x121   : > { %2528 = vmatmul.mubr.msk.bf16.gmra.mrb[8].mxu1 %vm471_vm0, %v3353_v50  ;;  %2560 = vmatmul.mubr.msk.bf16.gmra.mrb[72].mxu0 %vm471_vm0, %v3353_v50 }
 0x122   : > { %1081 = vmatprep.mubr.bf16.mxu1 %v3068_v31  ;;  %1434 = vmatprep.mubr.bf16.mxu0 %v3068_v31 }
 0x123   : > { %v2707_v57 = vpop.f32.mrb[12].mxu0 }
 0x124   : > { %v650_v58 = vpop.f32.mrb[13].mxu0 }
 0x125   : > { %v2708_v59 = vpop.f32.mrb[14].mxu0 }
 0x126   : > { %v3371_v60 = vpack.c.bf16 %v2708_v59, %v2707_v57  ;;  %v653_v61 = vpop.f32.mrb[15].mxu0 }
 0x127   : > { %v3373_v62 = vpack.c.bf16 %v653_v61, %v650_v58 }
 0x129   : > { %2529 = vmatmul.mubr.msk.bf16.gmra.mrb[12].mxu1 %vm471_vm0, %v3351_v48  ;;  %2561 = vmatmul.mubr.msk.bf16.gmra.mrb[76].mxu0 %vm471_vm0, %v3351_v48 }
 0x12a   : > { %1091 = vmatprep.mubr.bf16.mxu1 %v3068_v31  ;;  %1444 = vmatprep.mubr.bf16.mxu0 %v3068_v31 }
 0x12b   : > { %v2711_v63 = vpop.f32.mrb[16].mxu0 }
 0x12c   : > { %v666_v0 = vpop.f32.mrb[17].mxu0 }
 0x12d   : > { %v2712_v1 = vpop.f32.mrb[18].mxu0 }
 0x12e   : > { %v3381_v2 = vpack.c.bf16 %v2712_v1, %v2711_v63  ;;  %v669_v3 = vpop.f32.mrb[19].mxu0 }
 0x12f   : > { %v3383_v4 = vpack.c.bf16 %v669_v3, %v666_v0 }
 0x131   : > { %2530 = vmatmul.mubr.msk.bf16.gmra.mrb[16].mxu1 %vm471_vm0, %v3363_v56  ;;  %2562 = vmatmul.mubr.msk.bf16.gmra.mrb[80].mxu0 %vm471_vm0, %v3363_v56 }
 0x132   : > { %1101 = vmatprep.mubr.bf16.mxu1 %v3068_v31  ;;  %1454 = vmatprep.mubr.bf16.mxu0 %v3068_v31 }
 0x133   : > { %v2715_v5 = vpop.f32.mrb[20].mxu0 }
 0x134   : > { %v682_v6 = vpop.f32.mrb[21].mxu0 }
 0x135   : > { %v2716_v7 = vpop.f32.mrb[22].mxu0 }
 0x136   : > { %v3391_v8 = vpack.c.bf16 %v2716_v7, %v2715_v5  ;;  %v685_v9 = vpop.f32.mrb[23].mxu0 }
 0x137   : > { %v3393_v10 = vpack.c.bf16 %v685_v9, %v682_v6 }
 0x139   : > { %2531 = vmatmul.mubr.msk.bf16.gmra.mrb[20].mxu1 %vm471_vm0, %v3361_v54  ;;  %2563 = vmatmul.mubr.msk.bf16.gmra.mrb[84].mxu0 %vm471_vm0, %v3361_v54 }
 0x13a   : > { %1111 = vmatprep.mubr.bf16.mxu1 %v3068_v31  ;;  %1464 = vmatprep.mubr.bf16.mxu0 %v3068_v31 }
 0x13b   : > { %v2719_v11 = vpop.f32.mrb[24].mxu0 }
 0x13c   : > { %v698_v12 = vpop.f32.mrb[25].mxu0 }
 0x13d   : > { %v2720_v13 = vpop.f32.mrb[26].mxu0 }
 0x13e   : > { %v3401_v14 = vpack.c.bf16 %v2720_v13, %v2719_v11  ;;  %v701_v15 = vpop.f32.mrb[27].mxu0 }
 0x13f   : > { %v3403_v16 = vpack.c.bf16 %v701_v15, %v698_v12 }
 0x141   : > { %2532 = vmatmul.mubr.msk.bf16.gmra.mrb[24].mxu1 %vm471_vm0, %v3373_v62  ;;  %2564 = vmatmul.mubr.msk.bf16.gmra.mrb[88].mxu0 %vm471_vm0, %v3373_v62 }
 0x142   : > { %1121 = vmatprep.mubr.bf16.mxu1 %v3068_v31  ;;  %1474 = vmatprep.mubr.bf16.mxu0 %v3068_v31 }
 0x143   : > { %v2723_v17 = vpop.f32.mrb[28].mxu0 }
 0x144   : > { %v714_v18 = vpop.f32.mrb[29].mxu0 }
 0x145   : > { %v2724_v19 = vpop.f32.mrb[30].mxu0 }
 0x146   : > { %v3411_v20 = vpack.c.bf16 %v2724_v19, %v2723_v17  ;;  %v717_v21 = vpop.f32.mrb[31].mxu0 }
 0x147   : > { %v3413_v22 = vpack.c.bf16 %v717_v21, %v714_v18 }
 0x149   : > { %2533 = vmatmul.mubr.msk.bf16.gmra.mrb[28].mxu1 %vm471_vm0, %v3371_v60  ;;  %2565 = vmatmul.mubr.msk.bf16.gmra.mrb[92].mxu0 %vm471_vm0, %v3371_v60 }
 0x14a   : > { %1131 = vmatprep.mubr.bf16.mxu1 %v3068_v31  ;;  %1484 = vmatprep.mubr.bf16.mxu0 %v3068_v31 }
 0x14b   : > { %v2727_v23 = vpop.f32.mrb[32].mxu0 }
 0x14c   : > { %v730_v24 = vpop.f32.mrb[33].mxu0 }
 0x14d   : > { %v2728_v25 = vpop.f32.mrb[34].mxu0 }
 0x14e   : > { %v3421_v26 = vpack.c.bf16 %v2728_v25, %v2727_v23  ;;  %v733_v27 = vpop.f32.mrb[35].mxu0 }
 0x14f   : > { %v3423_v28 = vpack.c.bf16 %v733_v27, %v730_v24  ;;  %v3569_v24 = vstv %s895_s6  ;;  %s2971_s6 = sshll.u32 %s3069_s5, 4  ;;  %s2972_s6 = int_to_ptr.vmem [resolvable:$false] %s2971_s6 }
 0x150   : > { %s2973_s8 = scalar_lea.vmem %s2972_s6, 81920  ;;  %p2974_p0 = scmp.lt.s32.totalorder %s4311_s19, %s2972_s6 }
 0x151   : > { %2534 = vmatmul.mubr.msk.bf16.gmra.mrb[32].mxu1 %vm471_vm0, %v3383_v4  ;;  %2566 = vmatmul.mubr.msk.bf16.gmra.mrb[96].mxu0 %vm471_vm0, %v3383_v4  ;;  %p2975_p1 = scmp.lt.s32.totalorder %s2973_s8, %s2967_s28 }
 0x152   : > { %1141 = vmatprep.mubr.bf16.mxu1 %v3068_v31  ;;  %1494 = vmatprep.mubr.bf16.mxu0 %v3068_v31 }
 0x153   : > { %v2731_v29 = vpop.f32.mrb[36].mxu0  ;;  %p2976_p2 = por %p2975_p1, %p2974_p0 }
 0x154   : > { %v746_v30 = vpop.f32.mrb[37].mxu0 }
 0x155   : > { %v2732_v32 = vpop.f32.mrb[38].mxu0  ;;  %p2977_p4 = pnand %p2976_p2, %p2970_p12 }
 0x156   : > { %v3431_v33 = vpack.c.bf16 %v2732_v32, %v2731_v29  ;;  %v749_v34 = vpop.f32.mrb[39].mxu0 }
 0x157   : > { %v3433_v35 = vpack.c.bf16 %v749_v34, %v746_v30 }
 0x159   : > { %2535 = vmatmul.mubr.msk.bf16.gmra.mrb[36].mxu1 %vm471_vm0, %v3381_v2  ;;  %2567 = vmatmul.mubr.msk.bf16.gmra.mrb[100].mxu0 %vm471_vm0, %v3381_v2 }
 0x15a   : > { %1151 = vmatprep.mubr.bf16.mxu1 %v3068_v31  ;;  %1504 = vmatprep.mubr.bf16.mxu0 %v3068_v31 }
 0x15b   : > { %v2735_v36 = vpop.f32.mrb[40].mxu0 }
 0x15c   : > { %v762_v37 = vpop.f32.mrb[41].mxu0 }
 0x15d   : > { %v2736_v38 = vpop.f32.mrb[42].mxu0 }
 0x15e   : > { %v3441_v39 = vpack.c.bf16 %v2736_v38, %v2735_v36  ;;  %v765_v40 = vpop.f32.mrb[43].mxu0 }
 0x15f   : > { %v3443_v41 = vpack.c.bf16 %v765_v40, %v762_v37 }
 0x161   : > { %2536 = vmatmul.mubr.msk.bf16.gmra.mrb[40].mxu1 %vm471_vm0, %v3393_v10  ;;  %2568 = vmatmul.mubr.msk.bf16.gmra.mrb[104].mxu0 %vm471_vm0, %v3393_v10 }
 0x162   : > { %1161 = vmatprep.mubr.bf16.mxu1 %v3068_v31  ;;  %1514 = vmatprep.mubr.bf16.mxu0 %v3068_v31 }
 0x163   : > { %v2739_v43 = vpop.f32.mrb[44].mxu0 }
 0x164   : > { %v778_v45 = vpop.f32.mrb[45].mxu0 }
 0x165   : > { %v2740_v46 = vpop.f32.mrb[46].mxu0 }
 0x166   : > { %v3451_v47 = vpack.c.bf16 %v2740_v46, %v2739_v43  ;;  %v781_v49 = vpop.f32.mrb[47].mxu0 }
 0x167   : > { %v3453_v51 = vpack.c.bf16 %v781_v49, %v778_v45 }
 0x169   : > { %2537 = vmatmul.mubr.msk.bf16.gmra.mrb[44].mxu1 %vm471_vm0, %v3391_v8  ;;  %2569 = vmatmul.mubr.msk.bf16.gmra.mrb[108].mxu0 %vm471_vm0, %v3391_v8 }
 0x16a   : > { %1171 = vmatprep.mubr.bf16.mxu1 %v3068_v31  ;;  %1524 = vmatprep.mubr.bf16.mxu0 %v3068_v31 }
 0x16b   : > { %v2743_v52 = vpop.f32.mrb[48].mxu0 }
 0x16c   : > { %v794_v53 = vpop.f32.mrb[49].mxu0 }
 0x16d   : > { %v2744_v55 = vpop.f32.mrb[50].mxu0 }
 0x16e   : > { %v3461_v57 = vpack.c.bf16 %v2744_v55, %v2743_v52  ;;  %v797_v58 = vpop.f32.mrb[51].mxu0 }
 0x16f   : > { %v3463_v59 = vpack.c.bf16 %v797_v58, %v794_v53 }
 0x171   : > { %2538 = vmatmul.mubr.msk.bf16.gmra.mrb[48].mxu1 %vm471_vm0, %v3403_v16  ;;  %2570 = vmatmul.mubr.msk.bf16.gmra.mrb[112].mxu0 %vm471_vm0, %v3403_v16 }
 0x172   : > { %1181 = vmatprep.mubr.bf16.mxu1 %v3068_v31  ;;  %1534 = vmatprep.mubr.bf16.mxu0 %v3068_v31 }
 0x173   : > { %v2747_v61 = vpop.f32.mrb[52].mxu0 }
 0x174   : > { %v810_v63 = vpop.f32.mrb[53].mxu0 }
 0x175   : > { %v2748_v0 = vpop.f32.mrb[54].mxu0 }
 0x176   : > { %v3471_v1 = vpack.c.bf16 %v2748_v0, %v2747_v61  ;;  %v813_v3 = vpop.f32.mrb[55].mxu0 }
 0x177   : > { %v3473_v5 = vpack.c.bf16 %v813_v3, %v810_v63 }
 0x179   : > { %2539 = vmatmul.mubr.msk.bf16.gmra.mrb[52].mxu1 %vm471_vm0, %v3401_v14  ;;  %2571 = vmatmul.mubr.msk.bf16.gmra.mrb[116].mxu0 %vm471_vm0, %v3401_v14 }
 0x17a   : > { %1191 = vmatprep.mubr.bf16.mxu1 %v3068_v31  ;;  %1544 = vmatprep.mubr.bf16.mxu0 %v3068_v31 }
 0x17b   : > { %v2751_v6 = vpop.f32.mrb[56].mxu0 }
 0x17c   : > { %v826_v7 = vpop.f32.mrb[57].mxu0 }
 0x17d   : > { %v2752_v9 = vpop.f32.mrb[58].mxu0 }
 0x17e   : > { %v3481_v11 = vpack.c.bf16 %v2752_v9, %v2751_v6  ;;  %v829_v12 = vpop.f32.mrb[59].mxu0 }
 0x17f   : > { %v3483_v13 = vpack.c.bf16 %v829_v12, %v826_v7 }
 0x181   : > { %2540 = vmatmul.mubr.msk.bf16.gmra.mrb[56].mxu1 %vm471_vm0, %v3413_v22  ;;  %2572 = vmatmul.mubr.msk.bf16.gmra.mrb[120].mxu0 %vm471_vm0, %v3413_v22 }
 0x182   : > { %1201 = vmatprep.mubr.bf16.mxu1 %v3068_v31  ;;  %1554 = vmatprep.mubr.bf16.mxu0 %v3068_v31 }
 0x183   : > { %v2755_v15 = vpop.f32.mrb[60].mxu0 }
 0x184   : > { %v842_v17 = vpop.f32.mrb[61].mxu0 }
 0x185   : > { %v2756_v18 = vpop.f32.mrb[62].mxu0 }
 0x186   : > { %v3491_v19 = vpack.c.bf16 %v2756_v18, %v2755_v15  ;;  %v845_v21 = vpop.f32.mrb[63].mxu0 }
 0x187   : > { %v3493_v23 = vpack.c.bf16 %v845_v21, %v842_v17 }
 0x189   : > { %2541 = vmatmul.mubr.msk.bf16.gmra.mrb[60].mxu1 %vm471_vm0, %v3411_v20  ;;  %2573 = vmatmul.mubr.msk.bf16.gmra.mrb[124].mxu0 %vm471_vm0, %v3411_v20 }
 0x18a   : > { %1211 = vmatprep.mubr.bf16.mxu1 %v3068_v31  ;;  %1564 = vmatprep.mubr.bf16.mxu0 %v3068_v31 }
 0x191   : > { %2542 = vmatmul.mubr.msk.bf16.gmra.mrb[64].mxu1 %vm471_vm0, %v3423_v28  ;;  %2574 = vmatmul.mubr.msk.bf16.gmra.mrb[128].mxu0 %vm471_vm0, %v3423_v28 }
 0x192   : > { %1221 = vmatprep.mubr.bf16.mxu1 %v3068_v31  ;;  %1574 = vmatprep.mubr.bf16.mxu0 %v3068_v31 }
 0x199   : > { %2543 = vmatmul.mubr.msk.bf16.gmra.mrb[68].mxu1 %vm471_vm0, %v3421_v26  ;;  %2575 = vmatmul.mubr.msk.bf16.gmra.mrb[132].mxu0 %vm471_vm0, %v3421_v26 }
 0x19a   : > { %1231 = vmatprep.mubr.bf16.mxu1 %v3068_v31  ;;  %1584 = vmatprep.mubr.bf16.mxu0 %v3068_v31 }
 0x1a1   : > { %2544 = vmatmul.mubr.msk.bf16.gmra.mrb[72].mxu1 %vm471_vm0, %v3433_v35  ;;  %2576 = vmatmul.mubr.msk.bf16.gmra.mrb[136].mxu0 %vm471_vm0, %v3433_v35 }
 0x1a2   : > { %1241 = vmatprep.mubr.bf16.mxu1 %v3068_v31  ;;  %1594 = vmatprep.mubr.bf16.mxu0 %v3068_v31 }
 0x1a9   : > { %2545 = vmatmul.mubr.msk.bf16.gmra.mrb[76].mxu1 %vm471_vm0, %v3431_v33  ;;  %2577 = vmatmul.mubr.msk.bf16.gmra.mrb[140].mxu0 %vm471_vm0, %v3431_v33 }
 0x1aa   : > { %1251 = vmatprep.mubr.bf16.mxu1 %v3068_v31  ;;  %1604 = vmatprep.mubr.bf16.mxu0 %v3068_v31 }
 0x1b1   : > { %2546 = vmatmul.mubr.msk.bf16.gmra.mrb[80].mxu1 %vm471_vm0, %v3443_v41  ;;  %2578 = vmatmul.mubr.msk.bf16.gmra.mrb[144].mxu0 %vm471_vm0, %v3443_v41 }
 0x1b2   : > { %1261 = vmatprep.mubr.bf16.mxu1 %v3068_v31  ;;  %1614 = vmatprep.mubr.bf16.mxu0 %v3068_v31 }
 0x1b9   : > { %2547 = vmatmul.mubr.msk.bf16.gmra.mrb[84].mxu1 %vm471_vm0, %v3441_v39  ;;  %2579 = vmatmul.mubr.msk.bf16.gmra.mrb[148].mxu0 %vm471_vm0, %v3441_v39 }
 0x1ba   : > { %1271 = vmatprep.mubr.bf16.mxu1 %v3068_v31  ;;  %1624 = vmatprep.mubr.bf16.mxu0 %v3068_v31 }
 0x1c1   : > { %2548 = vmatmul.mubr.msk.bf16.gmra.mrb[88].mxu1 %vm471_vm0, %v3453_v51  ;;  %2580 = vmatmul.mubr.msk.bf16.gmra.mrb[152].mxu0 %vm471_vm0, %v3453_v51 }
 0x1c2   : > { %1281 = vmatprep.mubr.bf16.mxu1 %v3068_v31  ;;  %1634 = vmatprep.mubr.bf16.mxu0 %v3068_v31 }
 0x1c9   : > { %2549 = vmatmul.mubr.msk.bf16.gmra.mrb[92].mxu1 %vm471_vm0, %v3451_v47  ;;  %2581 = vmatmul.mubr.msk.bf16.gmra.mrb[156].mxu0 %vm471_vm0, %v3451_v47 }
 0x1ca   : > { %1291 = vmatprep.mubr.bf16.mxu1 %v3068_v31  ;;  %1644 = vmatprep.mubr.bf16.mxu0 %v3068_v31 }
 0x1d1   : > { %2550 = vmatmul.mubr.msk.bf16.gmra.mrb[96].mxu1 %vm471_vm0, %v3463_v59  ;;  %2582 = vmatmul.mubr.msk.bf16.gmra.mrb[160].mxu0 %vm471_vm0, %v3463_v59 }
 0x1d2   : > { %1301 = vmatprep.mubr.bf16.mxu1 %v3068_v31  ;;  %1654 = vmatprep.mubr.bf16.mxu0 %v3068_v31 }
 0x1d9   : > { %2551 = vmatmul.mubr.msk.bf16.gmra.mrb[100].mxu1 %vm471_vm0, %v3461_v57  ;;  %2583 = vmatmul.mubr.msk.bf16.gmra.mrb[164].mxu0 %vm471_vm0, %v3461_v57 }
 0x1da   : > { %1311 = vmatprep.mubr.bf16.mxu1 %v3068_v31  ;;  %1664 = vmatprep.mubr.bf16.mxu0 %v3068_v31 }
 0x1e1   : > { %2552 = vmatmul.mubr.msk.bf16.gmra.mrb[104].mxu1 %vm471_vm0, %v3473_v5  ;;  %2584 = vmatmul.mubr.msk.bf16.gmra.mrb[168].mxu0 %vm471_vm0, %v3473_v5 }
 0x1e2   : > { %1321 = vmatprep.mubr.bf16.mxu1 %v3068_v31  ;;  %1674 = vmatprep.mubr.bf16.mxu0 %v3068_v31 }
 0x1e4   : > { %v1053_v25 = vpop.f32.mrb[0].mxu1  ;;  %v1406_v27 = vpop.f32.mrb[64].mxu0 }
 0x1e5   : > { %v1054_v29 = vadd.f32 %v1053_v25, %v3569_v24  ;;  %v1407_v30 = vadd.f32 %v1406_v27, %v3569_v24  ;;  %v1055_v32 = vpop.f32.mrb[1].mxu1  ;;  %v1408_v34 = vpop.f32.mrb[65].mxu0 }
 0x1e6   : > { %v1056_v36 = vadd.f32 %v1055_v32, %v3569_v24  ;;  %v1409_v37 = vadd.f32 %v1408_v34, %v3569_v24  ;;  %v1057_v38 = vpop.f32.mrb[2].mxu1  ;;  %v1410_v40 = vpop.f32.mrb[66].mxu0 }
 0x1e7   : > { %2014 = vst [vmem:[%s3577_s9] sm:$0xff] %v1054_v29  ;;  %2016 = vst [vmem:[%s3577_s9 + $0x10] sm:$0xff] %v1407_v30  ;;  %v1058_v43 = vadd.f32 %v1057_v38, %v3569_v24  ;;  %v1411_v45 = vadd.f32 %v1410_v40, %v3569_v24  ;;  %v1059_v46 = vpop.f32.mrb[3].mxu1  ;;  %v1412_v49 = vpop.f32.mrb[67].mxu0 }
 0x1e8   : > { %2015 = vst [vmem:[%s3577_s9 + $0x8] sm:$0xff] %v1056_v36  ;;  %2017 = vst [vmem:[%s3577_s9 + $0x18] sm:$0xff] %v1409_v37  ;;  %v1060_v52 = vadd.f32 %v1059_v46, %v3569_v24  ;;  %v1413_v53 = vadd.f32 %v1412_v49, %v3569_v24 }
 0x1e9   : > { %2019 = vst [vmem:[%s3577_s9 + $0x28] sm:$0xff] %v1058_v43  ;;  %2021 = vst [vmem:[%s3577_s9 + $0x38] sm:$0xff] %v1411_v45  ;;  %2553 = vmatmul.mubr.msk.bf16.gmra.mrb[108].mxu1 %vm471_vm0, %v3471_v1  ;;  %2585 = vmatmul.mubr.msk.bf16.gmra.mrb[172].mxu0 %vm471_vm0, %v3471_v1 }
 0x1ea   : > { %2020 = vst [vmem:[%s3577_s9 + $0x30] sm:$0xff] %v1060_v52  ;;  %2022 = vst [vmem:[%s3577_s9 + $0x40] sm:$0xff] %v1413_v53  ;;  %1331 = vmatprep.mubr.bf16.mxu1 %v3068_v31  ;;  %1684 = vmatprep.mubr.bf16.mxu0 %v3068_v31 }
 0x1ec   : > { %v1063_v55 = vpop.f32.mrb[4].mxu1  ;;  %v1416_v58 = vpop.f32.mrb[68].mxu0 }
 0x1ed   : > { %v1064_v61 = vadd.f32 %v1063_v55, %v3569_v24  ;;  %v1417_v63 = vadd.f32 %v1416_v58, %v3569_v24  ;;  %v1065_v0 = vpop.f32.mrb[5].mxu1  ;;  %v1418_v3 = vpop.f32.mrb[69].mxu0 }
 0x1ee   : > { %v1066_v6 = vadd.f32 %v1065_v0, %v3569_v24  ;;  %v1419_v7 = vadd.f32 %v1418_v3, %v3569_v24  ;;  %v1067_v9 = vpop.f32.mrb[6].mxu1  ;;  %v1420_v12 = vpop.f32.mrb[70].mxu0 }
 0x1ef   : > { %2024 = vst [vmem:[%s3577_s9 + $0x50] sm:$0xff] %v1064_v61  ;;  %2026 = vst [vmem:[%s3577_s9 + $0x60] sm:$0xff] %v1417_v63  ;;  %v1068_v15 = vadd.f32 %v1067_v9, %v3569_v24  ;;  %v1421_v17 = vadd.f32 %v1420_v12, %v3569_v24  ;;  %v1069_v18 = vpop.f32.mrb[7].mxu1  ;;  %v1422_v21 = vpop.f32.mrb[71].mxu0 }
 0x1f0   : > { %2025 = vst [vmem:[%s3577_s9 + $0x58] sm:$0xff] %v1066_v6  ;;  %2027 = vst [vmem:[%s3577_s9 + $0x68] sm:$0xff] %v1419_v7  ;;  %v1070_v25 = vadd.f32 %v1069_v18, %v3569_v24  ;;  %v1423_v27 = vadd.f32 %v1422_v21, %v3569_v24 }
 0x1f1   : > { %2029 = vst [vmem:[%s3577_s9 + $0x78] sm:$0xff] %v1068_v15  ;;  %2031 = vst [vmem:[%s3577_s9 + $0x88] sm:$0xff] %v1421_v17  ;;  %2554 = vmatmul.mubr.msk.bf16.gmra.mrb[112].mxu1 %vm471_vm0, %v3483_v13  ;;  %2586 = vmatmul.mubr.msk.bf16.gmra.mrb[176].mxu0 %vm471_vm0, %v3483_v13 }
 0x1f2   : > { %2030 = vst [vmem:[%s3577_s9 + $0x80] sm:$0xff] %v1070_v25  ;;  %2032 = vst [vmem:[%s3577_s9 + $0x90] sm:$0xff] %v1423_v27  ;;  %1341 = vmatprep.mubr.bf16.mxu1 %v3068_v31  ;;  %1694 = vmatprep.mubr.bf16.mxu0 %v3068_v31 }
 0x1f4   : > { %v1073_v29 = vpop.f32.mrb[8].mxu1  ;;  %v1426_v30 = vpop.f32.mrb[72].mxu0 }
 0x1f5   : > { %v1074_v32 = vadd.f32 %v1073_v29, %v3569_v24  ;;  %v1427_v34 = vadd.f32 %v1426_v30, %v3569_v24  ;;  %v1075_v36 = vpop.f32.mrb[9].mxu1  ;;  %v1428_v37 = vpop.f32.mrb[73].mxu0 }
 0x1f6   : > { %v1076_v38 = vadd.f32 %v1075_v36, %v3569_v24  ;;  %v1429_v40 = vadd.f32 %v1428_v37, %v3569_v24  ;;  %v1077_v43 = vpop.f32.mrb[10].mxu1  ;;  %v1430_v45 = vpop.f32.mrb[74].mxu0 }
 0x1f7   : > { %2034 = vst [vmem:[%s3577_s9 + $0xa0] sm:$0xff] %v1074_v32  ;;  %2036 = vst [vmem:[%s3577_s9 + $0xb0] sm:$0xff] %v1427_v34  ;;  %v1078_v46 = vadd.f32 %v1077_v43, %v3569_v24  ;;  %v1431_v49 = vadd.f32 %v1430_v45, %v3569_v24  ;;  %v1079_v52 = vpop.f32.mrb[11].mxu1  ;;  %v1432_v53 = vpop.f32.mrb[75].mxu0 }
 0x1f8   : > { %2035 = vst [vmem:[%s3577_s9 + $0xa8] sm:$0xff] %v1076_v38  ;;  %2037 = vst [vmem:[%s3577_s9 + $0xb8] sm:$0xff] %v1429_v40  ;;  %v1080_v55 = vadd.f32 %v1079_v52, %v3569_v24  ;;  %v1433_v58 = vadd.f32 %v1432_v53, %v3569_v24 }
 0x1f9   : > { %2039 = vst [vmem:[%s3577_s9 + $0xc8] sm:$0xff] %v1078_v46  ;;  %2041 = vst [vmem:[%s3577_s9 + $0xd8] sm:$0xff] %v1431_v49  ;;  %2555 = vmatmul.mubr.msk.bf16.gmra.mrb[116].mxu1 %vm471_vm0, %v3481_v11  ;;  %2587 = vmatmul.mubr.msk.bf16.gmra.mrb[180].mxu0 %vm471_vm0, %v3481_v11 }
 0x1fa   : > { %2040 = vst [vmem:[%s3577_s9 + $0xd0] sm:$0xff] %v1080_v55  ;;  %2042 = vst [vmem:[%s3577_s9 + $0xe0] sm:$0xff] %v1433_v58  ;;  %1351 = vmatprep.mubr.bf16.mxu1 %v3068_v31  ;;  %1704 = vmatprep.mubr.bf16.mxu0 %v3068_v31 }
 0x1fc   : > { %v1083_v61 = vpop.f32.mrb[12].mxu1  ;;  %v1436_v63 = vpop.f32.mrb[76].mxu0 }
 0x1fd   : > { %v1084_v0 = vadd.f32 %v1083_v61, %v3569_v24  ;;  %v1437_v3 = vadd.f32 %v1436_v63, %v3569_v24  ;;  %v1085_v6 = vpop.f32.mrb[13].mxu1  ;;  %v1438_v7 = vpop.f32.mrb[77].mxu0 }
 0x1fe   : > { %v1086_v9 = vadd.f32 %v1085_v6, %v3569_v24  ;;  %v1439_v12 = vadd.f32 %v1438_v7, %v3569_v24  ;;  %v1087_v15 = vpop.f32.mrb[14].mxu1  ;;  %v1440_v17 = vpop.f32.mrb[78].mxu0 }
 0x1ff   : > { %2044 = vst [vmem:[%s3577_s9 + $0xf0] sm:$0xff] %v1084_v0  ;;  %2046 = vst [vmem:[%s3577_s9 + $0x100] sm:$0xff] %v1437_v3  ;;  %v1088_v18 = vadd.f32 %v1087_v15, %v3569_v24  ;;  %v1441_v21 = vadd.f32 %v1440_v17, %v3569_v24  ;;  %v1089_v25 = vpop.f32.mrb[15].mxu1  ;;  %v1442_v27 = vpop.f32.mrb[79].mxu0 }
 0x200   : > { %2045 = vst [vmem:[%s3577_s9 + $0xf8] sm:$0xff] %v1086_v9  ;;  %2047 = vst [vmem:[%s3577_s9 + $0x108] sm:$0xff] %v1439_v12  ;;  %v1090_v29 = vadd.f32 %v1089_v25, %v3569_v24  ;;  %v1443_v30 = vadd.f32 %v1442_v27, %v3569_v24 }
 0x201   : > { %2049 = vst [vmem:[%s3577_s9 + $0x118] sm:$0xff] %v1088_v18  ;;  %2051 = vst [vmem:[%s3577_s9 + $0x128] sm:$0xff] %v1441_v21  ;;  %2556 = vmatmul.mubr.msk.bf16.gmra.mrb[120].mxu1 %vm471_vm0, %v3493_v23  ;;  %2588 = vmatmul.mubr.msk.bf16.gmra.mrb[184].mxu0 %vm471_vm0, %v3493_v23 }
 0x202   : > { %2050 = vst [vmem:[%s3577_s9 + $0x120] sm:$0xff] %v1090_v29  ;;  %2052 = vst [vmem:[%s3577_s9 + $0x130] sm:$0xff] %v1443_v30  ;;  %1361 = vmatprep.mubr.bf16.mxu1 %v3068_v31  ;;  %1714 = vmatprep.mubr.bf16.mxu0 %v3068_v31 }
 0x204   : > { %v1093_v32 = vpop.f32.mrb[16].mxu1  ;;  %v1446_v34 = vpop.f32.mrb[80].mxu0 }
 0x205   : > { %v1094_v36 = vadd.f32 %v1093_v32, %v3569_v24  ;;  %v1447_v37 = vadd.f32 %v1446_v34, %v3569_v24  ;;  %v1095_v38 = vpop.f32.mrb[17].mxu1  ;;  %v1448_v40 = vpop.f32.mrb[81].mxu0 }
 0x206   : > { %v1096_v43 = vadd.f32 %v1095_v38, %v3569_v24  ;;  %v1449_v45 = vadd.f32 %v1448_v40, %v3569_v24  ;;  %v1097_v46 = vpop.f32.mrb[18].mxu1  ;;  %v1450_v49 = vpop.f32.mrb[82].mxu0 }
 0x207   : > { %2054 = vst [vmem:[%s3577_s9 + $0x140] sm:$0xff] %v1094_v36  ;;  %2056 = vst [vmem:[%s3577_s9 + $0x150] sm:$0xff] %v1447_v37  ;;  %v1098_v31 = vadd.f32 %v1097_v46, %v3569_v24  ;;  %v1451_v52 = vadd.f32 %v1450_v49, %v3569_v24  ;;  %v1099_v53 = vpop.f32.mrb[19].mxu1  ;;  %v1452_v55 = vpop.f32.mrb[83].mxu0 }
 0x208   : > { %2055 = vst [vmem:[%s3577_s9 + $0x148] sm:$0xff] %v1096_v43  ;;  %2057 = vst [vmem:[%s3577_s9 + $0x158] sm:$0xff] %v1449_v45  ;;  %v1100_v58 = vadd.f32 %v1099_v53, %v3569_v24  ;;  %v1453_v61 = vadd.f32 %v1452_v55, %v3569_v24 }
 0x209   : > { %2059 = vst [vmem:[%s3577_s9 + $0x168] sm:$0xff] %v1098_v31  ;;  %2061 = vst [vmem:[%s3577_s9 + $0x178] sm:$0xff] %v1451_v52  ;;  %2557 = vmatmul.mubr.msk.bf16.gmra.mrb[124].mxu1 %vm471_vm0, %v3491_v19  ;;  %2589 = vmatmul.mubr.msk.bf16.gmra.mrb[188].mxu0 %vm471_vm0, %v3491_v19 }
 0x20a   : > { %2060 = vst [vmem:[%s3577_s9 + $0x170] sm:$0xff] %v1100_v58  ;;  %2062 = vst [vmem:[%s3577_s9 + $0x180] sm:$0xff] %v1453_v61  ;;  %2759 = vmatprep.mubr.msk.bf16.mxu1 %vm471_vm0, %v3343_v44 }
 0x20c   : > { %v1103_v63 = vpop.f32.mrb[20].mxu1  ;;  %v1456_v0 = vpop.f32.mrb[84].mxu0 }
 0x20d   : > { %v1104_v3 = vadd.f32 %v1103_v63, %v3569_v24  ;;  %v1457_v6 = vadd.f32 %v1456_v0, %v3569_v24  ;;  %v1105_v7 = vpop.f32.mrb[21].mxu1  ;;  %v1458_v9 = vpop.f32.mrb[85].mxu0 }
 0x20e   : > { %v1106_v12 = vadd.f32 %v1105_v7, %v3569_v24  ;;  %v1459_v15 = vadd.f32 %v1458_v9, %v3569_v24  ;;  %v1107_v17 = vpop.f32.mrb[22].mxu1  ;;  %v1460_v44 = vpop.f32.mrb[86].mxu0 }
 0x20f   : > { %2064 = vst [vmem:[%s3577_s9 + $0x190] sm:$0xff] %v1104_v3  ;;  %2066 = vst [vmem:[%s3577_s9 + $0x1a0] sm:$0xff] %v1457_v6  ;;  %v1108_v18 = vadd.f32 %v1107_v17, %v3569_v24  ;;  %v1461_v21 = vadd.f32 %v1460_v44, %v3569_v24  ;;  %v1109_v25 = vpop.f32.mrb[23].mxu1  ;;  %v1462_v27 = vpop.f32.mrb[87].mxu0 }
 0x210   : > { %2065 = vst [vmem:[%s3577_s9 + $0x198] sm:$0xff] %v1106_v12  ;;  %2067 = vst [vmem:[%s3577_s9 + $0x1a8] sm:$0xff] %v1459_v15  ;;  %v1110_v29 = vadd.f32 %v1109_v25, %v3569_v24  ;;  %v1463_v30 = vadd.f32 %v1462_v27, %v3569_v24 }
 0x211   : > { %2069 = vst [vmem:[%s3577_s9 + $0x1b8] sm:$0xff] %v1108_v18  ;;  %2071 = vst [vmem:[%s3577_s9 + $0x1c8] sm:$0xff] %v1461_v21  ;;  %2760 = vmatmul.mubr.msk.bf16.vlgmr.msra.gmra.mrb[128].mxu1 %vm471_vm0, %v3341_v42 }
 0x212   : > { %2070 = vst [vmem:[%s3577_s9 + $0x1c0] sm:$0xff] %v1110_v29  ;;  %2072 = vst [vmem:[%s3577_s9 + $0x1d0] sm:$0xff] %v1463_v30  ;;  %2763 = vmatprep.mubr.msk.bf16.mxu1 %vm471_vm0, %v3353_v50 }
 0x214   : > { %v1113_v32 = vpop.f32.mrb[24].mxu1  ;;  %v1466_v34 = vpop.f32.mrb[88].mxu0 }
 0x215   : > { %v1114_v36 = vadd.f32 %v1113_v32, %v3569_v24  ;;  %v1467_v37 = vadd.f32 %v1466_v34, %v3569_v24  ;;  %v1115_v38 = vpop.f32.mrb[25].mxu1  ;;  %v1468_v40 = vpop.f32.mrb[89].mxu0 }
 0x216   : > { %v1116_v43 = vadd.f32 %v1115_v38, %v3569_v24  ;;  %v1469_v42 = vadd.f32 %v1468_v40, %v3569_v24  ;;  %v1117_v45 = vpop.f32.mrb[26].mxu1  ;;  %v1470_v50 = vpop.f32.mrb[90].mxu0 }
 0x217   : > { %2074 = vst [vmem:[%s3577_s9 + $0x1e0] sm:$0xff] %v1114_v36  ;;  %2076 = vst [vmem:[%s3577_s9 + $0x1f0] sm:$0xff] %v1467_v37  ;;  %v1118_v46 = vadd.f32 %v1117_v45, %v3569_v24  ;;  %v1471_v49 = vadd.f32 %v1470_v50, %v3569_v24  ;;  %v1119_v31 = vpop.f32.mrb[27].mxu1  ;;  %v1472_v52 = vpop.f32.mrb[91].mxu0 }
 0x218   : > { %2075 = vst [vmem:[%s3577_s9 + $0x1e8] sm:$0xff] %v1116_v43  ;;  %2077 = vst [vmem:[%s3577_s9 + $0x1f8] sm:$0xff] %v1469_v42  ;;  %v1120_v53 = vadd.f32 %v1119_v31, %v3569_v24  ;;  %v1473_v55 = vadd.f32 %v1472_v52, %v3569_v24 }
 0x219   : > { %2079 = vst [vmem:[%s3577_s9 + $0x208] sm:$0xff] %v1118_v46  ;;  %2081 = vst [vmem:[%s3577_s9 + $0x218] sm:$0xff] %v1471_v49  ;;  %2764 = vmatmul.mubr.msk.bf16.gmra.mrb[132].mxu1 %vm471_vm0, %v3351_v48 }
 0x21a   : > { %2080 = vst [vmem:[%s3577_s9 + $0x210] sm:$0xff] %v1120_v53  ;;  %2082 = vst [vmem:[%s3577_s9 + $0x220] sm:$0xff] %v1473_v55  ;;  %2767 = vmatprep.mubr.msk.bf16.mxu1 %vm471_vm0, %v3363_v56 }
 0x21c   : > { %v1123_v58 = vpop.f32.mrb[28].mxu1  ;;  %v1476_v61 = vpop.f32.mrb[92].mxu0 }
 0x21d   : > { %v1124_v63 = vadd.f32 %v1123_v58, %v3569_v24  ;;  %v1477_v0 = vadd.f32 %v1476_v61, %v3569_v24  ;;  %v1125_v3 = vpop.f32.mrb[29].mxu1  ;;  %v1478_v6 = vpop.f32.mrb[93].mxu0 }
 0x21e   : > { %v1126_v7 = vadd.f32 %v1125_v3, %v3569_v24  ;;  %v1479_v48 = vadd.f32 %v1478_v6, %v3569_v24  ;;  %v1127_v9 = vpop.f32.mrb[30].mxu1  ;;  %v1480_v56 = vpop.f32.mrb[94].mxu0 }
 0x21f   : > { %2084 = vst [vmem:[%s3577_s9 + $0x230] sm:$0xff] %v1124_v63  ;;  %2086 = vst [vmem:[%s3577_s9 + $0x240] sm:$0xff] %v1477_v0  ;;  %v1128_v12 = vadd.f32 %v1127_v9, %v3569_v24  ;;  %v1481_v15 = vadd.f32 %v1480_v56, %v3569_v24  ;;  %v1129_v17 = vpop.f32.mrb[31].mxu1  ;;  %v1482_v44 = vpop.f32.mrb[95].mxu0 }
 0x220   : > { %2085 = vst [vmem:[%s3577_s9 + $0x238] sm:$0xff] %v1126_v7  ;;  %2087 = vst [vmem:[%s3577_s9 + $0x248] sm:$0xff] %v1479_v48  ;;  %v1130_v18 = vadd.f32 %v1129_v17, %v3569_v24  ;;  %v1483_v21 = vadd.f32 %v1482_v44, %v3569_v24 }
 0x221   : > { %2089 = vst [vmem:[%s3577_s9 + $0x258] sm:$0xff] %v1128_v12  ;;  %2091 = vst [vmem:[%s3577_s9 + $0x268] sm:$0xff] %v1481_v15  ;;  %2768 = vmatmul.mubr.msk.bf16.gmra.mrb[136].mxu1 %vm471_vm0, %v3361_v54 }
 0x222   : > { %2090 = vst [vmem:[%s3577_s9 + $0x260] sm:$0xff] %v1130_v18  ;;  %2092 = vst [vmem:[%s3577_s9 + $0x270] sm:$0xff] %v1483_v21  ;;  %2771 = vmatprep.mubr.msk.bf16.mxu1 %vm471_vm0, %v3373_v62 }
 0x224   : > { %v1133_v25 = vpop.f32.mrb[32].mxu1  ;;  %v1486_v27 = vpop.f32.mrb[96].mxu0 }
 0x225   : > { %v1134_v29 = vadd.f32 %v1133_v25, %v3569_v24  ;;  %v1487_v30 = vadd.f32 %v1486_v27, %v3569_v24  ;;  %v1135_v32 = vpop.f32.mrb[33].mxu1  ;;  %v1488_v34 = vpop.f32.mrb[97].mxu0 }
 0x226   : > { %v1136_v36 = vadd.f32 %v1135_v32, %v3569_v24  ;;  %v1489_v54 = vadd.f32 %v1488_v34, %v3569_v24  ;;  %v1137_v37 = vpop.f32.mrb[34].mxu1  ;;  %v1490_v62 = vpop.f32.mrb[98].mxu0 }
 0x227   : > { %2094 = vst [vmem:[%s3577_s9 + $0x280] sm:$0xff] %v1134_v29  ;;  %2096 = vst [vmem:[%s3577_s9 + $0x290] sm:$0xff] %v1487_v30  ;;  %v1138_v38 = vadd.f32 %v1137_v37, %v3569_v24  ;;  %v1491_v40 = vadd.f32 %v1490_v62, %v3569_v24  ;;  %v1139_v43 = vpop.f32.mrb[35].mxu1  ;;  %v1492_v42 = vpop.f32.mrb[99].mxu0 }
 0x228   : > { %2095 = vst [vmem:[%s3577_s9 + $0x288] sm:$0xff] %v1136_v36  ;;  %2097 = vst [vmem:[%s3577_s9 + $0x298] sm:$0xff] %v1489_v54  ;;  %v1140_v45 = vadd.f32 %v1139_v43, %v3569_v24  ;;  %v1493_v50 = vadd.f32 %v1492_v42, %v3569_v24 }
 0x229   : > { %2099 = vst [vmem:[%s3577_s9 + $0x2a8] sm:$0xff] %v1138_v38  ;;  %2101 = vst [vmem:[%s3577_s9 + $0x2b8] sm:$0xff] %v1491_v40  ;;  %2772 = vmatmul.mubr.msk.bf16.gmra.mrb[140].mxu1 %vm471_vm0, %v3371_v60 }
 0x22a   : > { %2100 = vst [vmem:[%s3577_s9 + $0x2b0] sm:$0xff] %v1140_v45  ;;  %2102 = vst [vmem:[%s3577_s9 + $0x2c0] sm:$0xff] %v1493_v50  ;;  %2775 = vmatprep.mubr.msk.bf16.mxu1 %vm471_vm0, %v3383_v4 }
 0x22c   : > { %v1143_v46 = vpop.f32.mrb[36].mxu1  ;;  %v1496_v49 = vpop.f32.mrb[100].mxu0 }
 0x22d   : > { %v1144_v31 = vadd.f32 %v1143_v46, %v3569_v24  ;;  %v1497_v52 = vadd.f32 %v1496_v49, %v3569_v24  ;;  %v1145_v53 = vpop.f32.mrb[37].mxu1  ;;  %v1498_v55 = vpop.f32.mrb[101].mxu0 }
 0x22e   : > { %v1146_v58 = vadd.f32 %v1145_v53, %v3569_v24  ;;  %v1499_v60 = vadd.f32 %v1498_v55, %v3569_v24  ;;  %v1147_v61 = vpop.f32.mrb[38].mxu1  ;;  %v1500_v4 = vpop.f32.mrb[102].mxu0 }
 0x22f   : > { %2104 = vst [vmem:[%s3577_s9 + $0x2d0] sm:$0xff] %v1144_v31  ;;  %2106 = vst [vmem:[%s3577_s9 + $0x2e0] sm:$0xff] %v1497_v52  ;;  %v1148_v63 = vadd.f32 %v1147_v61, %v3569_v24  ;;  %v1501_v0 = vadd.f32 %v1500_v4, %v3569_v24  ;;  %v1149_v3 = vpop.f32.mrb[39].mxu1  ;;  %v1502_v6 = vpop.f32.mrb[103].mxu0 }
 0x230   : > { %2105 = vst [vmem:[%s3577_s9 + $0x2d8] sm:$0xff] %v1146_v58  ;;  %2107 = vst [vmem:[%s3577_s9 + $0x2e8] sm:$0xff] %v1499_v60  ;;  %v1150_v7 = vadd.f32 %v1149_v3, %v3569_v24  ;;  %v1503_v48 = vadd.f32 %v1502_v6, %v3569_v24 }
 0x231   : > { %2109 = vst [vmem:[%s3577_s9 + $0x2f8] sm:$0xff] %v1148_v63  ;;  %2111 = vst [vmem:[%s3577_s9 + $0x308] sm:$0xff] %v1501_v0  ;;  %2776 = vmatmul.mubr.msk.bf16.gmra.mrb[144].mxu1 %vm471_vm0, %v3381_v2 }
 0x232   : > { %2110 = vst [vmem:[%s3577_s9 + $0x300] sm:$0xff] %v1150_v7  ;;  %2112 = vst [vmem:[%s3577_s9 + $0x310] sm:$0xff] %v1503_v48  ;;  %2779 = vmatprep.mubr.msk.bf16.mxu1 %vm471_vm0, %v3393_v10 }
 0x234   : > { %v1153_v9 = vpop.f32.mrb[40].mxu1  ;;  %v1506_v56 = vpop.f32.mrb[104].mxu0 }
 0x235   : > { %v1154_v12 = vadd.f32 %v1153_v9, %v3569_v24  ;;  %v1507_v15 = vadd.f32 %v1506_v56, %v3569_v24  ;;  %v1155_v17 = vpop.f32.mrb[41].mxu1  ;;  %v1508_v44 = vpop.f32.mrb[105].mxu0 }
 0x236   : > { %v1156_v18 = vadd.f32 %v1155_v17, %v3569_v24  ;;  %v1509_v2 = vadd.f32 %v1508_v44, %v3569_v24  ;;  %v1157_v21 = vpop.f32.mrb[42].mxu1  ;;  %v1510_v10 = vpop.f32.mrb[106].mxu0 }
 0x237   : > { %2114 = vst [vmem:[%s3577_s9 + $0x320] sm:$0xff] %v1154_v12  ;;  %2116 = vst [vmem:[%s3577_s9 + $0x330] sm:$0xff] %v1507_v15  ;;  %v1158_v25 = vadd.f32 %v1157_v21, %v3569_v24  ;;  %v1511_v27 = vadd.f32 %v1510_v10, %v3569_v24  ;;  %v1159_v29 = vpop.f32.mrb[43].mxu1  ;;  %v1512_v30 = vpop.f32.mrb[107].mxu0 }
 0x238   : > { %2115 = vst [vmem:[%s3577_s9 + $0x328] sm:$0xff] %v1156_v18  ;;  %2117 = vst [vmem:[%s3577_s9 + $0x338] sm:$0xff] %v1509_v2  ;;  %v1160_v32 = vadd.f32 %v1159_v29, %v3569_v24  ;;  %v1513_v34 = vadd.f32 %v1512_v30, %v3569_v24 }
 0x239   : > { %2119 = vst [vmem:[%s3577_s9 + $0x348] sm:$0xff] %v1158_v25  ;;  %2121 = vst [vmem:[%s3577_s9 + $0x358] sm:$0xff] %v1511_v27  ;;  %2780 = vmatmul.mubr.msk.bf16.gmra.mrb[148].mxu1 %vm471_vm0, %v3391_v8 }
 0x23a   : > { %2120 = vst [vmem:[%s3577_s9 + $0x350] sm:$0xff] %v1160_v32  ;;  %2122 = vst [vmem:[%s3577_s9 + $0x360] sm:$0xff] %v1513_v34  ;;  %2783 = vmatprep.mubr.msk.bf16.mxu1 %vm471_vm0, %v3403_v16 }
 0x23c   : > { %v1163_v36 = vpop.f32.mrb[44].mxu1  ;;  %v1516_v54 = vpop.f32.mrb[108].mxu0 }
 0x23d   : > { %v1164_v37 = vadd.f32 %v1163_v36, %v3569_v24  ;;  %v1517_v62 = vadd.f32 %v1516_v54, %v3569_v24  ;;  %v1165_v38 = vpop.f32.mrb[45].mxu1  ;;  %v1518_v40 = vpop.f32.mrb[109].mxu0 }
 0x23e   : > { %v1166_v43 = vadd.f32 %v1165_v38, %v3569_v24  ;;  %v1519_v8 = vadd.f32 %v1518_v40, %v3569_v24  ;;  %v1167_v42 = vpop.f32.mrb[46].mxu1  ;;  %v1520_v16 = vpop.f32.mrb[110].mxu0 }
 0x23f   : > { %2124 = vst [vmem:[%s3577_s9 + $0x370] sm:$0xff] %v1164_v37  ;;  %2126 = vst [vmem:[%s3577_s9 + $0x380] sm:$0xff] %v1517_v62  ;;  %v1168_v45 = vadd.f32 %v1167_v42, %v3569_v24  ;;  %v1521_v50 = vadd.f32 %v1520_v16, %v3569_v24  ;;  %v1169_v46 = vpop.f32.mrb[47].mxu1  ;;  %v1522_v49 = vpop.f32.mrb[111].mxu0 }
 0x240   : > { %2125 = vst [vmem:[%s3577_s9 + $0x378] sm:$0xff] %v1166_v43  ;;  %2127 = vst [vmem:[%s3577_s9 + $0x388] sm:$0xff] %v1519_v8  ;;  %v1170_v31 = vadd.f32 %v1169_v46, %v3569_v24  ;;  %v1523_v52 = vadd.f32 %v1522_v49, %v3569_v24 }
 0x241   : > { %2129 = vst [vmem:[%s3577_s9 + $0x398] sm:$0xff] %v1168_v45  ;;  %2131 = vst [vmem:[%s3577_s9 + $0x3a8] sm:$0xff] %v1521_v50  ;;  %2784 = vmatmul.mubr.msk.bf16.gmra.mrb[152].mxu1 %vm471_vm0, %v3401_v14 }
 0x242   : > { %2130 = vst [vmem:[%s3577_s9 + $0x3a0] sm:$0xff] %v1170_v31  ;;  %2132 = vst [vmem:[%s3577_s9 + $0x3b0] sm:$0xff] %v1523_v52  ;;  %2787 = vmatprep.mubr.msk.bf16.mxu1 %vm471_vm0, %v3413_v22 }
 0x244   : > { %v1173_v53 = vpop.f32.mrb[48].mxu1  ;;  %v1526_v55 = vpop.f32.mrb[112].mxu0 }
 0x245   : > { %v1174_v58 = vadd.f32 %v1173_v53, %v3569_v24  ;;  %v1527_v60 = vadd.f32 %v1526_v55, %v3569_v24  ;;  %v1175_v61 = vpop.f32.mrb[49].mxu1  ;;  %v1528_v4 = vpop.f32.mrb[113].mxu0 }
 0x246   : > { %v1176_v63 = vadd.f32 %v1175_v61, %v3569_v24  ;;  %v1529_v14 = vadd.f32 %v1528_v4, %v3569_v24  ;;  %v1177_v0 = vpop.f32.mrb[50].mxu1  ;;  %v1530_v22 = vpop.f32.mrb[114].mxu0 }
 0x247   : > { %2134 = vst [vmem:[%s3577_s9 + $0x3c0] sm:$0xff] %v1174_v58  ;;  %2136 = vst [vmem:[%s3577_s9 + $0x3d0] sm:$0xff] %v1527_v60  ;;  %v1178_v3 = vadd.f32 %v1177_v0, %v3569_v24  ;;  %v1531_v6 = vadd.f32 %v1530_v22, %v3569_v24  ;;  %v1179_v7 = vpop.f32.mrb[51].mxu1  ;;  %v1532_v48 = vpop.f32.mrb[115].mxu0 }
 0x248   : > { %2135 = vst [vmem:[%s3577_s9 + $0x3c8] sm:$0xff] %v1176_v63  ;;  %2137 = vst [vmem:[%s3577_s9 + $0x3d8] sm:$0xff] %v1529_v14  ;;  %v1180_v9 = vadd.f32 %v1179_v7, %v3569_v24  ;;  %v1533_v56 = vadd.f32 %v1532_v48, %v3569_v24 }
 0x249   : > { %2139 = vst [vmem:[%s3577_s9 + $0x3e8] sm:$0xff] %v1178_v3  ;;  %2141 = vst [vmem:[%s3577_s9 + $0x3f8] sm:$0xff] %v1531_v6  ;;  %2788 = vmatmul.mubr.msk.bf16.gmra.mrb[156].mxu1 %vm471_vm0, %v3411_v20 }
 0x24a   : > { %2140 = vst [vmem:[%s3577_s9 + $0x3f0] sm:$0xff] %v1180_v9  ;;  %2142 = vst [vmem:[%s3577_s9 + $0x400] sm:$0xff] %v1533_v56  ;;  %2791 = vmatprep.mubr.msk.bf16.mxu1 %vm471_vm0, %v3423_v28 }
 0x24c   : > { %v1183_v12 = vpop.f32.mrb[52].mxu1  ;;  %v1536_v15 = vpop.f32.mrb[116].mxu0 }
 0x24d   : > { %v1184_v17 = vadd.f32 %v1183_v12, %v3569_v24  ;;  %v1537_v44 = vadd.f32 %v1536_v15, %v3569_v24  ;;  %v1185_v18 = vpop.f32.mrb[53].mxu1  ;;  %v1538_v2 = vpop.f32.mrb[117].mxu0 }
 0x24e   : > { %v1186_v21 = vadd.f32 %v1185_v18, %v3569_v24  ;;  %v1539_v20 = vadd.f32 %v1538_v2, %v3569_v24  ;;  %v1187_v10 = vpop.f32.mrb[54].mxu1  ;;  %v1540_v28 = vpop.f32.mrb[118].mxu0 }
 0x24f   : > { %2144 = vst [vmem:[%s3577_s9 + $0x410] sm:$0xff] %v1184_v17  ;;  %2146 = vst [vmem:[%s3577_s9 + $0x420] sm:$0xff] %v1537_v44  ;;  %v1188_v25 = vadd.f32 %v1187_v10, %v3569_v24  ;;  %v1541_v27 = vadd.f32 %v1540_v28, %v3569_v24  ;;  %v1189_v29 = vpop.f32.mrb[55].mxu1  ;;  %v1542_v30 = vpop.f32.mrb[119].mxu0 }
 0x250   : > { %2145 = vst [vmem:[%s3577_s9 + $0x418] sm:$0xff] %v1186_v21  ;;  %2147 = vst [vmem:[%s3577_s9 + $0x428] sm:$0xff] %v1539_v20  ;;  %v1190_v32 = vadd.f32 %v1189_v29, %v3569_v24  ;;  %v1543_v34 = vadd.f32 %v1542_v30, %v3569_v24 }
 0x251   : > { %2149 = vst [vmem:[%s3577_s9 + $0x438] sm:$0xff] %v1188_v25  ;;  %2151 = vst [vmem:[%s3577_s9 + $0x448] sm:$0xff] %v1541_v27  ;;  %2792 = vmatmul.mubr.msk.bf16.gmra.mrb[160].mxu1 %vm471_vm0, %v3421_v26 }
 0x252   : > { %2150 = vst [vmem:[%s3577_s9 + $0x440] sm:$0xff] %v1190_v32  ;;  %2152 = vst [vmem:[%s3577_s9 + $0x450] sm:$0xff] %v1543_v34  ;;  %2795 = vmatprep.mubr.msk.bf16.mxu1 %vm471_vm0, %v3433_v35 }
 0x254   : > { %v1193_v36 = vpop.f32.mrb[56].mxu1  ;;  %v1546_v54 = vpop.f32.mrb[120].mxu0 }
 0x255   : > { %v1194_v37 = vadd.f32 %v1193_v36, %v3569_v24  ;;  %v1547_v62 = vadd.f32 %v1546_v54, %v3569_v24  ;;  %v1195_v38 = vpop.f32.mrb[57].mxu1  ;;  %v1548_v40 = vpop.f32.mrb[121].mxu0 }
 0x256   : > { %v1196_v43 = vadd.f32 %v1195_v38, %v3569_v24  ;;  %v1549_v26 = vadd.f32 %v1548_v40, %v3569_v24  ;;  %v1197_v8 = vpop.f32.mrb[58].mxu1  ;;  %v1550_v35 = vpop.f32.mrb[122].mxu0 }
 0x257   : > { %2154 = vst [vmem:[%s3577_s9 + $0x460] sm:$0xff] %v1194_v37  ;;  %2156 = vst [vmem:[%s3577_s9 + $0x470] sm:$0xff] %v1547_v62  ;;  %v1198_v42 = vadd.f32 %v1197_v8, %v3569_v24  ;;  %v1551_v16 = vadd.f32 %v1550_v35, %v3569_v24  ;;  %v1199_v45 = vpop.f32.mrb[59].mxu1  ;;  %v1552_v50 = vpop.f32.mrb[123].mxu0 }
 0x258   : > { %2155 = vst [vmem:[%s3577_s9 + $0x468] sm:$0xff] %v1196_v43  ;;  %2157 = vst [vmem:[%s3577_s9 + $0x478] sm:$0xff] %v1549_v26  ;;  %v1200_v46 = vadd.f32 %v1199_v45, %v3569_v24  ;;  %v1553_v49 = vadd.f32 %v1552_v50, %v3569_v24 }
 0x259   : > { %2159 = vst [vmem:[%s3577_s9 + $0x488] sm:$0xff] %v1198_v42  ;;  %2161 = vst [vmem:[%s3577_s9 + $0x498] sm:$0xff] %v1551_v16  ;;  %2796 = vmatmul.mubr.msk.bf16.gmra.mrb[164].mxu1 %vm471_vm0, %v3431_v33 }
 0x25a   : > { %2160 = vst [vmem:[%s3577_s9 + $0x490] sm:$0xff] %v1200_v46  ;;  %2162 = vst [vmem:[%s3577_s9 + $0x4a0] sm:$0xff] %v1553_v49  ;;  %2799 = vmatprep.mubr.msk.bf16.mxu1 %vm471_vm0, %v3443_v41 }
 0x25c   : > { %v1203_v31 = vpop.f32.mrb[60].mxu1  ;;  %v1556_v52 = vpop.f32.mrb[124].mxu0 }
 0x25d   : > { %v1204_v53 = vadd.f32 %v1203_v31, %v3569_v24  ;;  %v1557_v55 = vadd.f32 %v1556_v52, %v3569_v24  ;;  %v1205_v58 = vpop.f32.mrb[61].mxu1  ;;  %v1558_v60 = vpop.f32.mrb[125].mxu0 }
 0x25e   : > { %v1206_v61 = vadd.f32 %v1205_v58, %v3569_v24  ;;  %v1559_v33 = vadd.f32 %v1558_v60, %v3569_v24  ;;  %v1207_v4 = vpop.f32.mrb[62].mxu1  ;;  %v1560_v41 = vpop.f32.mrb[126].mxu0 }
 0x25f   : > { %2164 = vst [vmem:[%s3577_s9 + $0x4b0] sm:$0xff] %v1204_v53  ;;  %2166 = vst [vmem:[%s3577_s9 + $0x4c0] sm:$0xff] %v1557_v55  ;;  %v1208_v63 = vadd.f32 %v1207_v4, %v3569_v24  ;;  %v1561_v14 = vadd.f32 %v1560_v41, %v3569_v24  ;;  %v1209_v0 = vpop.f32.mrb[63].mxu1  ;;  %v1562_v22 = vpop.f32.mrb[127].mxu0 }
 0x260   : > { %2165 = vst [vmem:[%s3577_s9 + $0x4b8] sm:$0xff] %v1206_v61  ;;  %2167 = vst [vmem:[%s3577_s9 + $0x4c8] sm:$0xff] %v1559_v33  ;;  %v1210_v3 = vadd.f32 %v1209_v0, %v3569_v24  ;;  %v1563_v6 = vadd.f32 %v1562_v22, %v3569_v24 }
 0x261   : > { %2169 = vst [vmem:[%s3577_s9 + $0x4d8] sm:$0xff] %v1208_v63  ;;  %2171 = vst [vmem:[%s3577_s9 + $0x4e8] sm:$0xff] %v1561_v14  ;;  %2800 = vmatmul.mubr.msk.bf16.gmra.mrb[168].mxu1 %vm471_vm0, %v3441_v39 }
 0x262   : > { %2170 = vst [vmem:[%s3577_s9 + $0x4e0] sm:$0xff] %v1210_v3  ;;  %2172 = vst [vmem:[%s3577_s9 + $0x4f0] sm:$0xff] %v1563_v6  ;;  %2803 = vmatprep.mubr.msk.bf16.mxu1 %vm471_vm0, %v3453_v51 }
 0x264   : > { %v1213_v7 = vpop.f32.mrb[64].mxu1  ;;  %v1566_v48 = vpop.f32.mrb[128].mxu0 }
 0x265   : > { %v1214_v9 = vadd.f32 %v1213_v7, %v3569_v24  ;;  %v1567_v56 = vadd.f32 %v1566_v48, %v3569_v24  ;;  %v1215_v12 = vpop.f32.mrb[65].mxu1  ;;  %v1568_v15 = vpop.f32.mrb[129].mxu0 }
 0x266   : > { %v1216_v17 = vadd.f32 %v1215_v12, %v3569_v24  ;;  %v1569_v39 = vadd.f32 %v1568_v15, %v3569_v24  ;;  %v1217_v44 = vpop.f32.mrb[66].mxu1  ;;  %v1570_v51 = vpop.f32.mrb[130].mxu0 }
 0x267   : > { %2174 = vst [vmem:[%s3577_s9 + $0x500] sm:$0xff] %v1214_v9  ;;  %2176 = vst [vmem:[%s3577_s9 + $0x510] sm:$0xff] %v1567_v56  ;;  %v1218_v18 = vadd.f32 %v1217_v44, %v3569_v24  ;;  %v1571_v2 = vadd.f32 %v1570_v51, %v3569_v24  ;;  %v1219_v21 = vpop.f32.mrb[67].mxu1  ;;  %v1572_v20 = vpop.f32.mrb[131].mxu0 }
 0x268   : > { %2175 = vst [vmem:[%s3577_s9 + $0x508] sm:$0xff] %v1216_v17  ;;  %2177 = vst [vmem:[%s3577_s9 + $0x518] sm:$0xff] %v1569_v39  ;;  %v1220_v10 = vadd.f32 %v1219_v21, %v3569_v24  ;;  %v1573_v28 = vadd.f32 %v1572_v20, %v3569_v24 }
 0x269   : > { %2179 = vst [vmem:[%s3577_s9 + $0x528] sm:$0xff] %v1218_v18  ;;  %2181 = vst [vmem:[%s3577_s9 + $0x538] sm:$0xff] %v1571_v2  ;;  %2804 = vmatmul.mubr.msk.bf16.gmra.mrb[172].mxu1 %vm471_vm0, %v3451_v47 }
 0x26a   : > { %2180 = vst [vmem:[%s3577_s9 + $0x530] sm:$0xff] %v1220_v10  ;;  %2182 = vst [vmem:[%s3577_s9 + $0x540] sm:$0xff] %v1573_v28  ;;  %2807 = vmatprep.mubr.msk.bf16.mxu1 %vm471_vm0, %v3463_v59 }
 0x26c   : > { %v1223_v25 = vpop.f32.mrb[68].mxu1  ;;  %v1576_v27 = vpop.f32.mrb[132].mxu0 }
 0x26d   : > { %v1224_v29 = vadd.f32 %v1223_v25, %v3569_v24  ;;  %v1577_v30 = vadd.f32 %v1576_v27, %v3569_v24  ;;  %v1225_v32 = vpop.f32.mrb[69].mxu1  ;;  %v1578_v34 = vpop.f32.mrb[133].mxu0 }
 0x26e   : > { %v1226_v36 = vadd.f32 %v1225_v32, %v3569_v24  ;;  %v1579_v47 = vadd.f32 %v1578_v34, %v3569_v24  ;;  %v1227_v54 = vpop.f32.mrb[70].mxu1  ;;  %v1580_v59 = vpop.f32.mrb[134].mxu0 }
 0x26f   : > { %2184 = vst [vmem:[%s3577_s9 + $0x550] sm:$0xff] %v1224_v29  ;;  %2186 = vst [vmem:[%s3577_s9 + $0x560] sm:$0xff] %v1577_v30  ;;  %v1228_v37 = vadd.f32 %v1227_v54, %v3569_v24  ;;  %v1581_v62 = vadd.f32 %v1580_v59, %v3569_v24  ;;  %v1229_v38 = vpop.f32.mrb[71].mxu1  ;;  %v1582_v40 = vpop.f32.mrb[135].mxu0 }
 0x270   : > { %2185 = vst [vmem:[%s3577_s9 + $0x558] sm:$0xff] %v1226_v36  ;;  %2187 = vst [vmem:[%s3577_s9 + $0x568] sm:$0xff] %v1579_v47  ;;  %v1230_v43 = vadd.f32 %v1229_v38, %v3569_v24  ;;  %v1583_v26 = vadd.f32 %v1582_v40, %v3569_v24 }
 0x271   : > { %2189 = vst [vmem:[%s3577_s9 + $0x578] sm:$0xff] %v1228_v37  ;;  %2191 = vst [vmem:[%s3577_s9 + $0x588] sm:$0xff] %v1581_v62  ;;  %2808 = vmatmul.mubr.msk.bf16.gmra.mrb[176].mxu1 %vm471_vm0, %v3461_v57 }
 0x272   : > { %2190 = vst [vmem:[%s3577_s9 + $0x580] sm:$0xff] %v1230_v43  ;;  %2192 = vst [vmem:[%s3577_s9 + $0x590] sm:$0xff] %v1583_v26  ;;  %2811 = vmatprep.mubr.msk.bf16.mxu1 %vm471_vm0, %v3473_v5 }
 0x274   : > { %v1233_v8 = vpop.f32.mrb[72].mxu1  ;;  %v1586_v35 = vpop.f32.mrb[136].mxu0 }
 0x275   : > { %v1234_v42 = vadd.f32 %v1233_v8, %v3569_v24  ;;  %v1587_v16 = vadd.f32 %v1586_v35, %v3569_v24  ;;  %v1235_v45 = vpop.f32.mrb[73].mxu1  ;;  %v1588_v50 = vpop.f32.mrb[137].mxu0 }
 0x276   : > { %v1236_v46 = vadd.f32 %v1235_v45, %v3569_v24  ;;  %v1589_v57 = vadd.f32 %v1588_v50, %v3569_v24  ;;  %v1237_v49 = vpop.f32.mrb[74].mxu1  ;;  %v1590_v5 = vpop.f32.mrb[138].mxu0 }
 0x277   : > { %2194 = vst [vmem:[%s3577_s9 + $0x5a0] sm:$0xff] %v1234_v42  ;;  %2196 = vst [vmem:[%s3577_s9 + $0x5b0] sm:$0xff] %v1587_v16  ;;  %v1238_v31 = vadd.f32 %v1237_v49, %v3569_v24  ;;  %v1591_v52 = vadd.f32 %v1590_v5, %v3569_v24  ;;  %v1239_v53 = vpop.f32.mrb[75].mxu1  ;;  %v1592_v55 = vpop.f32.mrb[139].mxu0 }
 0x278   : > { %2195 = vst [vmem:[%s3577_s9 + $0x5a8] sm:$0xff] %v1236_v46  ;;  %2197 = vst [vmem:[%s3577_s9 + $0x5b8] sm:$0xff] %v1589_v57  ;;  %v1240_v58 = vadd.f32 %v1239_v53, %v3569_v24  ;;  %v1593_v60 = vadd.f32 %v1592_v55, %v3569_v24 }
 0x279   : > { %2199 = vst [vmem:[%s3577_s9 + $0x5c8] sm:$0xff] %v1238_v31  ;;  %2201 = vst [vmem:[%s3577_s9 + $0x5d8] sm:$0xff] %v1591_v52  ;;  %2812 = vmatmul.mubr.msk.bf16.gmra.mrb[180].mxu1 %vm471_vm0, %v3471_v1 }
 0x27a   : > { %2200 = vst [vmem:[%s3577_s9 + $0x5d0] sm:$0xff] %v1240_v58  ;;  %2202 = vst [vmem:[%s3577_s9 + $0x5e0] sm:$0xff] %v1593_v60  ;;  %2815 = vmatprep.mubr.msk.bf16.mxu1 %vm471_vm0, %v3483_v13 }
 0x27c   : > { %v1243_v61 = vpop.f32.mrb[76].mxu1  ;;  %v1596_v33 = vpop.f32.mrb[140].mxu0 }
 0x27d   : > { %v1244_v4 = vadd.f32 %v1243_v61, %v3569_v24  ;;  %v1597_v41 = vadd.f32 %v1596_v33, %v3569_v24  ;;  %v1245_v63 = vpop.f32.mrb[77].mxu1  ;;  %v1598_v14 = vpop.f32.mrb[141].mxu0 }
 0x27e   : > { %v1246_v0 = vadd.f32 %v1245_v63, %v3569_v24  ;;  %v1599_v1 = vadd.f32 %v1598_v14, %v3569_v24  ;;  %v1247_v22 = vpop.f32.mrb[78].mxu1  ;;  %v1600_v13 = vpop.f32.mrb[142].mxu0 }
 0x27f   : > { %2204 = vst [vmem:[%s3577_s9 + $0x5f0] sm:$0xff] %v1244_v4  ;;  %2206 = vst [vmem:[%s3577_s9 + $0x600] sm:$0xff] %v1597_v41  ;;  %v1248_v3 = vadd.f32 %v1247_v22, %v3569_v24  ;;  %v1601_v6 = vadd.f32 %v1600_v13, %v3569_v24  ;;  %v1249_v7 = vpop.f32.mrb[79].mxu1  ;;  %v1602_v48 = vpop.f32.mrb[143].mxu0 }
 0x280   : > { %2205 = vst [vmem:[%s3577_s9 + $0x5f8] sm:$0xff] %v1246_v0  ;;  %2207 = vst [vmem:[%s3577_s9 + $0x608] sm:$0xff] %v1599_v1  ;;  %v1250_v9 = vadd.f32 %v1249_v7, %v3569_v24  ;;  %v1603_v56 = vadd.f32 %v1602_v48, %v3569_v24 }
 0x281   : > { %2209 = vst [vmem:[%s3577_s9 + $0x618] sm:$0xff] %v1248_v3  ;;  %2211 = vst [vmem:[%s3577_s9 + $0x628] sm:$0xff] %v1601_v6  ;;  %2816 = vmatmul.mubr.msk.bf16.gmra.mrb[184].mxu1 %vm471_vm0, %v3481_v11 }
 0x282   : > { %2210 = vst [vmem:[%s3577_s9 + $0x620] sm:$0xff] %v1250_v9  ;;  %2212 = vst [vmem:[%s3577_s9 + $0x630] sm:$0xff] %v1603_v56  ;;  %2819 = vmatprep.mubr.msk.bf16.mxu1 %vm471_vm0, %v3493_v23 }
 0x284   : > { %v1253_v12 = vpop.f32.mrb[80].mxu1  ;;  %v1606_v15 = vpop.f32.mrb[144].mxu0 }
 0x285   : > { %v1254_v17 = vadd.f32 %v1253_v12, %v3569_v24  ;;  %v1607_v39 = vadd.f32 %v1606_v15, %v3569_v24  ;;  %v1255_v44 = vpop.f32.mrb[81].mxu1  ;;  %v1608_v51 = vpop.f32.mrb[145].mxu0 }
 0x286   : > { %v1256_v18 = vadd.f32 %v1255_v44, %v3569_v24  ;;  %v1609_v11 = vadd.f32 %v1608_v51, %v3569_v24  ;;  %v1257_v2 = vpop.f32.mrb[82].mxu1  ;;  %v1610_v23 = vpop.f32.mrb[146].mxu0 }
 0x287   : > { %2214 = vst [vmem:[%s3577_s9 + $0x640] sm:$0xff] %v1254_v17  ;;  %2216 = vst [vmem:[%s3577_s9 + $0x650] sm:$0xff] %v1607_v39  ;;  %v1258_v21 = vadd.f32 %v1257_v2, %v3569_v24  ;;  %v1611_v20 = vadd.f32 %v1610_v23, %v3569_v24  ;;  %v1259_v10 = vpop.f32.mrb[83].mxu1  ;;  %v1612_v28 = vpop.f32.mrb[147].mxu0 }
 0x288   : > { %2215 = vst [vmem:[%s3577_s9 + $0x648] sm:$0xff] %v1256_v18  ;;  %2217 = vst [vmem:[%s3577_s9 + $0x658] sm:$0xff] %v1609_v11  ;;  %v1260_v25 = vadd.f32 %v1259_v10, %v3569_v24  ;;  %v1613_v27 = vadd.f32 %v1612_v28, %v3569_v24 }
 0x289   : > { %2219 = vst [vmem:[%s3577_s9 + $0x668] sm:$0xff] %v1258_v21  ;;  %2221 = vst [vmem:[%s3577_s9 + $0x678] sm:$0xff] %v1611_v20  ;;  %2820 = vmatmul.mubr.msk.bf16.gmra.mrb[188].mxu1 %vm471_vm0, %v3491_v19 }
 0x28a   : > { %2220 = vst [vmem:[%s3577_s9 + $0x670] sm:$0xff] %v1260_v25  ;;  %2222 = vst [vmem:[%s3577_s9 + $0x680] sm:$0xff] %v1613_v27 }
 0x28c   : > { %v1263_v29 = vpop.f32.mrb[84].mxu1  ;;  %v1616_v30 = vpop.f32.mrb[148].mxu0 }
 0x28d   : > { %v1264_v32 = vadd.f32 %v1263_v29, %v3569_v24  ;;  %v1617_v34 = vadd.f32 %v1616_v30, %v3569_v24  ;;  %v1265_v36 = vpop.f32.mrb[85].mxu1  ;;  %v1618_v47 = vpop.f32.mrb[149].mxu0 }
 0x28e   : > { %v1266_v54 = vadd.f32 %v1265_v36, %v3569_v24  ;;  %v1619_v59 = vadd.f32 %v1618_v47, %v3569_v24  ;;  %v1267_v19 = vpop.f32.mrb[86].mxu1  ;;  %v1620_v37 = vpop.f32.mrb[150].mxu0 }
 0x28f   : > { %2224 = vst [vmem:[%s3577_s9 + $0x690] sm:$0xff] %v1264_v32  ;;  %2226 = vst [vmem:[%s3577_s9 + $0x6a0] sm:$0xff] %v1617_v34  ;;  %v1268_v62 = vadd.f32 %v1267_v19, %v3569_v24  ;;  %v1621_v38 = vadd.f32 %v1620_v37, %v3569_v24  ;;  %v1269_v40 = vpop.f32.mrb[87].mxu1  ;;  %v1622_v43 = vpop.f32.mrb[151].mxu0 }
 0x290   : > { %2225 = vst [vmem:[%s3577_s9 + $0x698] sm:$0xff] %v1266_v54  ;;  %2227 = vst [vmem:[%s3577_s9 + $0x6a8] sm:$0xff] %v1619_v59  ;;  %v1270_v26 = vadd.f32 %v1269_v40, %v3569_v24  ;;  %v1623_v8 = vadd.f32 %v1622_v43, %v3569_v24 }
 0x291   : > { %2229 = vst [vmem:[%s3577_s9 + $0x6b8] sm:$0xff] %v1268_v62  ;;  %2231 = vst [vmem:[%s3577_s9 + $0x6c8] sm:$0xff] %v1621_v38 }
 0x292   : > { %2230 = vst [vmem:[%s3577_s9 + $0x6c0] sm:$0xff] %v1270_v26  ;;  %2232 = vst [vmem:[%s3577_s9 + $0x6d0] sm:$0xff] %v1623_v8 }
 0x294   : > { %v1273_v35 = vpop.f32.mrb[88].mxu1  ;;  %v1626_v42 = vpop.f32.mrb[152].mxu0 }
 0x295   : > { %v1274_v16 = vadd.f32 %v1273_v35, %v3569_v24  ;;  %v1627_v45 = vadd.f32 %v1626_v42, %v3569_v24  ;;  %v1275_v50 = vpop.f32.mrb[89].mxu1  ;;  %v1628_v46 = vpop.f32.mrb[153].mxu0 }
 0x296   : > { %v1276_v57 = vadd.f32 %v1275_v50, %v3569_v24  ;;  %v1629_v49 = vadd.f32 %v1628_v46, %v3569_v24  ;;  %v1277_v5 = vpop.f32.mrb[90].mxu1  ;;  %v1630_v31 = vpop.f32.mrb[154].mxu0 }
 0x297   : > { %2234 = vst [vmem:[%s3577_s9 + $0x6e0] sm:$0xff] %v1274_v16  ;;  %2236 = vst [vmem:[%s3577_s9 + $0x6f0] sm:$0xff] %v1627_v45  ;;  %v1278_v52 = vadd.f32 %v1277_v5, %v3569_v24  ;;  %v1631_v53 = vadd.f32 %v1630_v31, %v3569_v24  ;;  %v1279_v55 = vpop.f32.mrb[91].mxu1  ;;  %v1632_v58 = vpop.f32.mrb[155].mxu0 }
 0x298   : > { %2235 = vst [vmem:[%s3577_s9 + $0x6e8] sm:$0xff] %v1276_v57  ;;  %2237 = vst [vmem:[%s3577_s9 + $0x6f8] sm:$0xff] %v1629_v49  ;;  %v1280_v60 = vadd.f32 %v1279_v55, %v3569_v24  ;;  %v1633_v61 = vadd.f32 %v1632_v58, %v3569_v24 }
 0x299   : > { %2239 = vst [vmem:[%s3577_s9 + $0x708] sm:$0xff] %v1278_v52  ;;  %2241 = vst [vmem:[%s3577_s9 + $0x718] sm:$0xff] %v1631_v53 }
 0x29a   : > { %2240 = vst [vmem:[%s3577_s9 + $0x710] sm:$0xff] %v1280_v60  ;;  %2242 = vst [vmem:[%s3577_s9 + $0x720] sm:$0xff] %v1633_v61 }
 0x29c   : > { %v1283_v33 = vpop.f32.mrb[92].mxu1  ;;  %v1636_v4 = vpop.f32.mrb[156].mxu0 }
 0x29d   : > { %v1284_v41 = vadd.f32 %v1283_v33, %v3569_v24  ;;  %v1637_v63 = vadd.f32 %v1636_v4, %v3569_v24  ;;  %v1285_v14 = vpop.f32.mrb[93].mxu1  ;;  %v1638_v0 = vpop.f32.mrb[157].mxu0 }
 0x29e   : > { %v1286_v1 = vadd.f32 %v1285_v14, %v3569_v24  ;;  %v1639_v22 = vadd.f32 %v1638_v0, %v3569_v24  ;;  %v1287_v13 = vpop.f32.mrb[94].mxu1  ;;  %v1640_v3 = vpop.f32.mrb[158].mxu0 }
 0x29f   : > { %2244 = vst [vmem:[%s3577_s9 + $0x730] sm:$0xff] %v1284_v41  ;;  %2246 = vst [vmem:[%s3577_s9 + $0x740] sm:$0xff] %v1637_v63  ;;  %v1288_v6 = vadd.f32 %v1287_v13, %v3569_v24  ;;  %v1641_v7 = vadd.f32 %v1640_v3, %v3569_v24  ;;  %v1289_v48 = vpop.f32.mrb[95].mxu1  ;;  %v1642_v9 = vpop.f32.mrb[159].mxu0 }
 0x2a0   : > { %2245 = vst [vmem:[%s3577_s9 + $0x738] sm:$0xff] %v1286_v1  ;;  %2247 = vst [vmem:[%s3577_s9 + $0x748] sm:$0xff] %v1639_v22  ;;  %v1290_v56 = vadd.f32 %v1289_v48, %v3569_v24  ;;  %v1643_v12 = vadd.f32 %v1642_v9, %v3569_v24 }
 0x2a1   : > { %2249 = vst [vmem:[%s3577_s9 + $0x758] sm:$0xff] %v1288_v6  ;;  %2251 = vst [vmem:[%s3577_s9 + $0x768] sm:$0xff] %v1641_v7 }
 0x2a2   : > { %2250 = vst [vmem:[%s3577_s9 + $0x760] sm:$0xff] %v1290_v56  ;;  %2252 = vst [vmem:[%s3577_s9 + $0x770] sm:$0xff] %v1643_v12 }
 0x2a4   : > { %v1293_v15 = vpop.f32.mrb[96].mxu1  ;;  %v1646_v17 = vpop.f32.mrb[160].mxu0 }
 0x2a5   : > { %v1294_v39 = vadd.f32 %v1293_v15, %v3569_v24  ;;  %v1647_v44 = vadd.f32 %v1646_v17, %v3569_v24  ;;  %v1295_v51 = vpop.f32.mrb[97].mxu1  ;;  %v1648_v18 = vpop.f32.mrb[161].mxu0 }
 0x2a6   : > { %v1296_v11 = vadd.f32 %v1295_v51, %v3569_v24  ;;  %v1649_v2 = vadd.f32 %v1648_v18, %v3569_v24  ;;  %v1297_v23 = vpop.f32.mrb[98].mxu1  ;;  %v1650_v21 = vpop.f32.mrb[162].mxu0 }
 0x2a7   : > { %2254 = vst [vmem:[%s3577_s9 + $0x780] sm:$0xff] %v1294_v39  ;;  %2256 = vst [vmem:[%s3577_s9 + $0x790] sm:$0xff] %v1647_v44  ;;  %v1298_v20 = vadd.f32 %v1297_v23, %v3569_v24  ;;  %v1651_v10 = vadd.f32 %v1650_v21, %v3569_v24  ;;  %v1299_v28 = vpop.f32.mrb[99].mxu1  ;;  %v1652_v25 = vpop.f32.mrb[163].mxu0 }
 0x2a8   : > { %2255 = vst [vmem:[%s3577_s9 + $0x788] sm:$0xff] %v1296_v11  ;;  %2257 = vst [vmem:[%s3577_s9 + $0x798] sm:$0xff] %v1649_v2  ;;  %v1300_v27 = vadd.f32 %v1299_v28, %v3569_v24  ;;  %v1653_v29 = vadd.f32 %v1652_v25, %v3569_v24 }
 0x2a9   : > { %2259 = vst [vmem:[%s3577_s9 + $0x7a8] sm:$0xff] %v1298_v20  ;;  %2261 = vst [vmem:[%s3577_s9 + $0x7b8] sm:$0xff] %v1651_v10 }
 0x2aa   : > { %2260 = vst [vmem:[%s3577_s9 + $0x7b0] sm:$0xff] %v1300_v27  ;;  %2262 = vst [vmem:[%s3577_s9 + $0x7c0] sm:$0xff] %v1653_v29 }
 0x2ac   : > { %v1303_v30 = vpop.f32.mrb[100].mxu1  ;;  %v1656_v32 = vpop.f32.mrb[164].mxu0 }
 0x2ad   : > { %v1304_v34 = vadd.f32 %v1303_v30, %v3569_v24  ;;  %v1657_v36 = vadd.f32 %v1656_v32, %v3569_v24  ;;  %v1305_v47 = vpop.f32.mrb[101].mxu1  ;;  %v1658_v54 = vpop.f32.mrb[165].mxu0 }
 0x2ae   : > { %v1306_v59 = vadd.f32 %v1305_v47, %v3569_v24  ;;  %v1659_v19 = vadd.f32 %v1658_v54, %v3569_v24  ;;  %v1307_v37 = vpop.f32.mrb[102].mxu1  ;;  %v1660_v62 = vpop.f32.mrb[166].mxu0 }
 0x2af   : > { %2264 = vst [vmem:[%s3577_s9 + $0x7d0] sm:$0xff] %v1304_v34  ;;  %2266 = vst [vmem:[%s3577_s9 + $0x7e0] sm:$0xff] %v1657_v36  ;;  %v1308_v38 = vadd.f32 %v1307_v37, %v3569_v24  ;;  %v1661_v40 = vadd.f32 %v1660_v62, %v3569_v24  ;;  %v1309_v43 = vpop.f32.mrb[103].mxu1  ;;  %v1662_v26 = vpop.f32.mrb[167].mxu0 }
 0x2b0   : > { %2265 = vst [vmem:[%s3577_s9 + $0x7d8] sm:$0xff] %v1306_v59  ;;  %2267 = vst [vmem:[%s3577_s9 + $0x7e8] sm:$0xff] %v1659_v19  ;;  %v1310_v8 = vadd.f32 %v1309_v43, %v3569_v24  ;;  %v1663_v35 = vadd.f32 %v1662_v26, %v3569_v24 }
 0x2b1   : > { %2269 = vst [vmem:[%s3577_s9 + $0x7f8] sm:$0xff] %v1308_v38  ;;  %2271 = vst [vmem:[%s3577_s9 + $0x808] sm:$0xff] %v1661_v40 }
 0x2b2   : > { %2270 = vst [vmem:[%s3577_s9 + $0x800] sm:$0xff] %v1310_v8  ;;  %2272 = vst [vmem:[%s3577_s9 + $0x810] sm:$0xff] %v1663_v35 }
 0x2b4   : > { %v1313_v42 = vpop.f32.mrb[104].mxu1  ;;  %v1666_v16 = vpop.f32.mrb[168].mxu0 }
 0x2b5   : > { %v1314_v45 = vadd.f32 %v1313_v42, %v3569_v24  ;;  %v1667_v50 = vadd.f32 %v1666_v16, %v3569_v24  ;;  %v1315_v46 = vpop.f32.mrb[105].mxu1  ;;  %v1668_v57 = vpop.f32.mrb[169].mxu0 }
 0x2b6   : > { %v1316_v49 = vadd.f32 %v1315_v46, %v3569_v24  ;;  %v1669_v5 = vadd.f32 %v1668_v57, %v3569_v24  ;;  %v1317_v31 = vpop.f32.mrb[106].mxu1  ;;  %v1670_v52 = vpop.f32.mrb[170].mxu0 }
 0x2b7   : > { %2274 = vst [vmem:[%s3577_s9 + $0x820] sm:$0xff] %v1314_v45  ;;  %2276 = vst [vmem:[%s3577_s9 + $0x830] sm:$0xff] %v1667_v50  ;;  %v1318_v53 = vadd.f32 %v1317_v31, %v3569_v24  ;;  %v1671_v55 = vadd.f32 %v1670_v52, %v3569_v24  ;;  %v1319_v58 = vpop.f32.mrb[107].mxu1  ;;  %v1672_v60 = vpop.f32.mrb[171].mxu0 }
 0x2b8   : > { %2275 = vst [vmem:[%s3577_s9 + $0x828] sm:$0xff] %v1316_v49  ;;  %2277 = vst [vmem:[%s3577_s9 + $0x838] sm:$0xff] %v1669_v5  ;;  %v1320_v61 = vadd.f32 %v1319_v58, %v3569_v24  ;;  %v1673_v33 = vadd.f32 %v1672_v60, %v3569_v24 }
 0x2b9   : > { %2279 = vst [vmem:[%s3577_s9 + $0x848] sm:$0xff] %v1318_v53  ;;  %2281 = vst [vmem:[%s3577_s9 + $0x858] sm:$0xff] %v1671_v55 }
 0x2ba   : > { %2280 = vst [vmem:[%s3577_s9 + $0x850] sm:$0xff] %v1320_v61  ;;  %2282 = vst [vmem:[%s3577_s9 + $0x860] sm:$0xff] %v1673_v33 }
 0x2bc   : > { %v1323_v4 = vpop.f32.mrb[108].mxu1  ;;  %v1676_v41 = vpop.f32.mrb[172].mxu0 }
 0x2bd   : > { %v1324_v63 = vadd.f32 %v1323_v4, %v3569_v24  ;;  %v1677_v14 = vadd.f32 %v1676_v41, %v3569_v24  ;;  %v1325_v0 = vpop.f32.mrb[109].mxu1  ;;  %v1678_v1 = vpop.f32.mrb[173].mxu0 }
 0x2be   : > { %v1326_v22 = vadd.f32 %v1325_v0, %v3569_v24  ;;  %v1679_v13 = vadd.f32 %v1678_v1, %v3569_v24  ;;  %v1327_v3 = vpop.f32.mrb[110].mxu1  ;;  %v1680_v6 = vpop.f32.mrb[174].mxu0 }
 0x2bf   : > { %2284 = vst [vmem:[%s3577_s9 + $0x870] sm:$0xff] %v1324_v63  ;;  %2286 = vst [vmem:[%s3577_s9 + $0x880] sm:$0xff] %v1677_v14  ;;  %v1328_v7 = vadd.f32 %v1327_v3, %v3569_v24  ;;  %v1681_v48 = vadd.f32 %v1680_v6, %v3569_v24  ;;  %v1329_v9 = vpop.f32.mrb[111].mxu1  ;;  %v1682_v56 = vpop.f32.mrb[175].mxu0 }
 0x2c0   : > { %2285 = vst [vmem:[%s3577_s9 + $0x878] sm:$0xff] %v1326_v22  ;;  %2287 = vst [vmem:[%s3577_s9 + $0x888] sm:$0xff] %v1679_v13  ;;  %v1330_v12 = vadd.f32 %v1329_v9, %v3569_v24  ;;  %v1683_v15 = vadd.f32 %v1682_v56, %v3569_v24 }
 0x2c1   : > { %2289 = vst [vmem:[%s3577_s9 + $0x898] sm:$0xff] %v1328_v7  ;;  %2291 = vst [vmem:[%s3577_s9 + $0x8a8] sm:$0xff] %v1681_v48 }
 0x2c2   : > { %2290 = vst [vmem:[%s3577_s9 + $0x8a0] sm:$0xff] %v1330_v12  ;;  %2292 = vst [vmem:[%s3577_s9 + $0x8b0] sm:$0xff] %v1683_v15 }
 0x2c4   : > { %v1333_v17 = vpop.f32.mrb[112].mxu1  ;;  %v1686_v39 = vpop.f32.mrb[176].mxu0 }
 0x2c5   : > { %v1334_v44 = vadd.f32 %v1333_v17, %v3569_v24  ;;  %v1687_v51 = vadd.f32 %v1686_v39, %v3569_v24  ;;  %v1335_v18 = vpop.f32.mrb[113].mxu1  ;;  %v1688_v11 = vpop.f32.mrb[177].mxu0 }
 0x2c6   : > { %v1336_v2 = vadd.f32 %v1335_v18, %v3569_v24  ;;  %v1689_v23 = vadd.f32 %v1688_v11, %v3569_v24  ;;  %v1337_v21 = vpop.f32.mrb[114].mxu1  ;;  %v1690_v20 = vpop.f32.mrb[178].mxu0 }
 0x2c7   : > { %2294 = vst [vmem:[%s3577_s9 + $0x8c0] sm:$0xff] %v1334_v44  ;;  %2296 = vst [vmem:[%s3577_s9 + $0x8d0] sm:$0xff] %v1687_v51  ;;  %v1338_v10 = vadd.f32 %v1337_v21, %v3569_v24  ;;  %v1691_v28 = vadd.f32 %v1690_v20, %v3569_v24  ;;  %v1339_v25 = vpop.f32.mrb[115].mxu1  ;;  %v1692_v27 = vpop.f32.mrb[179].mxu0 }
 0x2c8   : > { %2295 = vst [vmem:[%s3577_s9 + $0x8c8] sm:$0xff] %v1336_v2  ;;  %2297 = vst [vmem:[%s3577_s9 + $0x8d8] sm:$0xff] %v1689_v23  ;;  %v1340_v29 = vadd.f32 %v1339_v25, %v3569_v24  ;;  %v1693_v30 = vadd.f32 %v1692_v27, %v3569_v24 }
 0x2c9   : > { %2299 = vst [vmem:[%s3577_s9 + $0x8e8] sm:$0xff] %v1338_v10  ;;  %2301 = vst [vmem:[%s3577_s9 + $0x8f8] sm:$0xff] %v1691_v28 }
 0x2ca   : > { %2300 = vst [vmem:[%s3577_s9 + $0x8f0] sm:$0xff] %v1340_v29  ;;  %2302 = vst [vmem:[%s3577_s9 + $0x900] sm:$0xff] %v1693_v30 }
 0x2cc   : > { %v1343_v32 = vpop.f32.mrb[116].mxu1  ;;  %v1696_v34 = vpop.f32.mrb[180].mxu0 }
 0x2cd   : > { %v1344_v36 = vadd.f32 %v1343_v32, %v3569_v24  ;;  %v1697_v47 = vadd.f32 %v1696_v34, %v3569_v24  ;;  %v1345_v54 = vpop.f32.mrb[117].mxu1  ;;  %v1698_v59 = vpop.f32.mrb[181].mxu0 }
 0x2ce   : > { %v1346_v19 = vadd.f32 %v1345_v54, %v3569_v24  ;;  %v1699_v37 = vadd.f32 %v1698_v59, %v3569_v24  ;;  %v1347_v62 = vpop.f32.mrb[118].mxu1  ;;  %v1700_v38 = vpop.f32.mrb[182].mxu0 }
 0x2cf   : > { %2304 = vst [vmem:[%s3577_s9 + $0x910] sm:$0xff] %v1344_v36  ;;  %2306 = vst [vmem:[%s3577_s9 + $0x920] sm:$0xff] %v1697_v47  ;;  %v1348_v40 = vadd.f32 %v1347_v62, %v3569_v24  ;;  %v1701_v43 = vadd.f32 %v1700_v38, %v3569_v24  ;;  %v1349_v26 = vpop.f32.mrb[119].mxu1  ;;  %v1702_v8 = vpop.f32.mrb[183].mxu0 }
 0x2d0   : > { %2305 = vst [vmem:[%s3577_s9 + $0x918] sm:$0xff] %v1346_v19  ;;  %2307 = vst [vmem:[%s3577_s9 + $0x928] sm:$0xff] %v1699_v37  ;;  %v1350_v35 = vadd.f32 %v1349_v26, %v3569_v24  ;;  %v1703_v42 = vadd.f32 %v1702_v8, %v3569_v24 }
 0x2d1   : > { %2309 = vst [vmem:[%s3577_s9 + $0x938] sm:$0xff] %v1348_v40  ;;  %2311 = vst [vmem:[%s3577_s9 + $0x948] sm:$0xff] %v1701_v43 }
 0x2d2   : > { %2310 = vst [vmem:[%s3577_s9 + $0x940] sm:$0xff] %v1350_v35  ;;  %2312 = vst [vmem:[%s3577_s9 + $0x950] sm:$0xff] %v1703_v42 }
 0x2d4   : > { %v1353_v16 = vpop.f32.mrb[120].mxu1  ;;  %v1706_v45 = vpop.f32.mrb[184].mxu0 }
 0x2d5   : > { %v1354_v50 = vadd.f32 %v1353_v16, %v3569_v24  ;;  %v1707_v46 = vadd.f32 %v1706_v45, %v3569_v24  ;;  %v1355_v57 = vpop.f32.mrb[121].mxu1  ;;  %v1708_v49 = vpop.f32.mrb[185].mxu0 }
 0x2d6   : > { %v1356_v5 = vadd.f32 %v1355_v57, %v3569_v24  ;;  %v1709_v31 = vadd.f32 %v1708_v49, %v3569_v24  ;;  %v1357_v52 = vpop.f32.mrb[122].mxu1  ;;  %v1710_v53 = vpop.f32.mrb[186].mxu0 }
 0x2d7   : > { %2314 = vst [vmem:[%s3577_s9 + $0x960] sm:$0xff] %v1354_v50  ;;  %2316 = vst [vmem:[%s3577_s9 + $0x970] sm:$0xff] %v1707_v46  ;;  %v1358_v55 = vadd.f32 %v1357_v52, %v3569_v24  ;;  %v1711_v58 = vadd.f32 %v1710_v53, %v3569_v24  ;;  %v1359_v60 = vpop.f32.mrb[123].mxu1  ;;  %v1712_v61 = vpop.f32.mrb[187].mxu0 }
 0x2d8   : > { %2315 = vst [vmem:[%s3577_s9 + $0x968] sm:$0xff] %v1356_v5  ;;  %2317 = vst [vmem:[%s3577_s9 + $0x978] sm:$0xff] %v1709_v31  ;;  %v1360_v33 = vadd.f32 %v1359_v60, %v3569_v24  ;;  %v1713_v4 = vadd.f32 %v1712_v61, %v3569_v24 }
 0x2d9   : > { %2319 = vst [vmem:[%s3577_s9 + $0x988] sm:$0xff] %v1358_v55  ;;  %2321 = vst [vmem:[%s3577_s9 + $0x998] sm:$0xff] %v1711_v58 }
 0x2da   : > { %2320 = vst [vmem:[%s3577_s9 + $0x990] sm:$0xff] %v1360_v33  ;;  %2322 = vst [vmem:[%s3577_s9 + $0x9a0] sm:$0xff] %v1713_v4 }
 0x2dc   : > { %v1363_v41 = vpop.f32.mrb[124].mxu1  ;;  %v1716_v63 = vpop.f32.mrb[188].mxu0 }
 0x2dd   : > { %v1364_v14 = vadd.f32 %v1363_v41, %v3569_v24  ;;  %v1717_v0 = vadd.f32 %v1716_v63, %v3569_v24  ;;  %v1365_v1 = vpop.f32.mrb[125].mxu1  ;;  %v1718_v22 = vpop.f32.mrb[189].mxu0 }
 0x2de   : > { %v1366_v13 = vadd.f32 %v1365_v1, %v3569_v24  ;;  %v1719_v3 = vadd.f32 %v1718_v22, %v3569_v24  ;;  %v1367_v6 = vpop.f32.mrb[126].mxu1  ;;  %v1720_v7 = vpop.f32.mrb[190].mxu0 }
 0x2df   : > { %2324 = vst [vmem:[%s3577_s9 + $0x9b0] sm:$0xff] %v1364_v14  ;;  %2326 = vst [vmem:[%s3577_s9 + $0x9c0] sm:$0xff] %v1717_v0  ;;  %v1368_v48 = vadd.f32 %v1367_v6, %v3569_v24  ;;  %v1721_v9 = vadd.f32 %v1720_v7, %v3569_v24  ;;  %v1369_v56 = vpop.f32.mrb[127].mxu1  ;;  %v1722_v12 = vpop.f32.mrb[191].mxu0 }
 0x2e0   : > { %2325 = vst [vmem:[%s3577_s9 + $0x9b8] sm:$0xff] %v1366_v13  ;;  %2327 = vst [vmem:[%s3577_s9 + $0x9c8] sm:$0xff] %v1719_v3  ;;  %v1370_v15 = vadd.f32 %v1369_v56, %v3569_v24  ;;  %v1723_v17 = vadd.f32 %v1722_v12, %v3569_v24 }
 0x2e1   : > { %2329 = vst [vmem:[%s3577_s9 + $0x9d8] sm:$0xff] %v1368_v48  ;;  %2331 = vst [vmem:[%s3577_s9 + $0x9e8] sm:$0xff] %v1721_v9 }
 0x2e2   : > { %2330 = vst [vmem:[%s3577_s9 + $0x9e0] sm:$0xff] %v1370_v15  ;;  %2332 = vst [vmem:[%s3577_s9 + $0x9f0] sm:$0xff] %v1723_v17 }
 0x2e4   : > { %v2761_v39 = vpop.f32.mrb[128].mxu1 }
 0x2e5   : > { %v1768_v44 = vadd.f32 %v2761_v39, %v3569_v24  ;;  %v1759_v51 = vpop.f32.mrb[129].mxu1 }
 0x2e6   : > { %v1760_v18 = vadd.f32 %v1759_v51, %v3569_v24  ;;  %v2762_v11 = vpop.f32.mrb[130].mxu1 }
 0x2e7   : > { %2028 = vst [vmem:[%s3577_s9 + $0x70] sm:$0xff] %v1768_v44  ;;  %v1771_v2 = vadd.f32 %v2762_v11, %v3569_v24  ;;  %v1762_v23 = vpop.f32.mrb[131].mxu1 }
 0x2e8   : > { %2018 = vst [vmem:[%s3577_s9 + $0x20] sm:$0xff] %v1760_v18  ;;  %v1763_v21 = vadd.f32 %v1762_v23, %v3569_v24 }
 0x2e9   : > { %2033 = vst [vmem:[%s3577_s9 + $0x98] sm:$0xff] %v1771_v2 }
 0x2ea   : > { %2023 = vst [vmem:[%s3577_s9 + $0x48] sm:$0xff] %v1763_v21 }
 0x2ec   : > { %v2765_v20 = vpop.f32.mrb[132].mxu1 }
 0x2ed   : > { %v1784_v10 = vadd.f32 %v2765_v20, %v3569_v24  ;;  %v1775_v28 = vpop.f32.mrb[133].mxu1 }
 0x2ee   : > { %v1776_v25 = vadd.f32 %v1775_v28, %v3569_v24  ;;  %v2766_v27 = vpop.f32.mrb[134].mxu1 }
 0x2ef   : > { %2048 = vst [vmem:[%s3577_s9 + $0x110] sm:$0xff] %v1784_v10  ;;  %v1787_v29 = vadd.f32 %v2766_v27, %v3569_v24  ;;  %v1778_v30 = vpop.f32.mrb[135].mxu1 }
 0x2f0   : > { %2038 = vst [vmem:[%s3577_s9 + $0xc0] sm:$0xff] %v1776_v25  ;;  %v1779_v32 = vadd.f32 %v1778_v30, %v3569_v24 }
 0x2f1   : > { %2053 = vst [vmem:[%s3577_s9 + $0x138] sm:$0xff] %v1787_v29 }
 0x2f2   : > { %2043 = vst [vmem:[%s3577_s9 + $0xe8] sm:$0xff] %v1779_v32 }
 0x2f4   : > { %v2769_v34 = vpop.f32.mrb[136].mxu1 }
 0x2f5   : > { %v1800_v36 = vadd.f32 %v2769_v34, %v3569_v24  ;;  %v1791_v47 = vpop.f32.mrb[137].mxu1 }
 0x2f6   : > { %v1792_v54 = vadd.f32 %v1791_v47, %v3569_v24  ;;  %v2770_v59 = vpop.f32.mrb[138].mxu1 }
 0x2f7   : > { %2068 = vst [vmem:[%s3577_s9 + $0x1b0] sm:$0xff] %v1800_v36  ;;  %v1803_v19 = vadd.f32 %v2770_v59, %v3569_v24  ;;  %v1794_v37 = vpop.f32.mrb[139].mxu1 }
 0x2f8   : > { %2058 = vst [vmem:[%s3577_s9 + $0x160] sm:$0xff] %v1792_v54  ;;  %v1795_v62 = vadd.f32 %v1794_v37, %v3569_v24 }
 0x2f9   : > { %2073 = vst [vmem:[%s3577_s9 + $0x1d8] sm:$0xff] %v1803_v19 }
 0x2fa   : > { %2063 = vst [vmem:[%s3577_s9 + $0x188] sm:$0xff] %v1795_v62 }
 0x2fc   : > { %v2773_v38 = vpop.f32.mrb[140].mxu1 }
 0x2fd   : > { %v1816_v40 = vadd.f32 %v2773_v38, %v3569_v24  ;;  %v1807_v43 = vpop.f32.mrb[141].mxu1 }
 0x2fe   : > { %v1808_v26 = vadd.f32 %v1807_v43, %v3569_v24  ;;  %v2774_v8 = vpop.f32.mrb[142].mxu1 }
 0x2ff   : > { %2088 = vst [vmem:[%s3577_s9 + $0x250] sm:$0xff] %v1816_v40  ;;  %v1819_v35 = vadd.f32 %v2774_v8, %v3569_v24  ;;  %v1810_v42 = vpop.f32.mrb[143].mxu1 }
 0x300   : > { %2078 = vst [vmem:[%s3577_s9 + $0x200] sm:$0xff] %v1808_v26  ;;  %v1811_v16 = vadd.f32 %v1810_v42, %v3569_v24 }
 0x301   : > { %2093 = vst [vmem:[%s3577_s9 + $0x278] sm:$0xff] %v1819_v35 }
 0x302   : > { %2083 = vst [vmem:[%s3577_s9 + $0x228] sm:$0xff] %v1811_v16 }
 0x304   : > { %v2777_v45 = vpop.f32.mrb[144].mxu1 }
 0x305   : > { %v1832_v50 = vadd.f32 %v2777_v45, %v3569_v24  ;;  %v1823_v46 = vpop.f32.mrb[145].mxu1 }
 0x306   : > { %v1824_v57 = vadd.f32 %v1823_v46, %v3569_v24  ;;  %v2778_v49 = vpop.f32.mrb[146].mxu1 }
 0x307   : > { %2108 = vst [vmem:[%s3577_s9 + $0x2f0] sm:$0xff] %v1832_v50  ;;  %v1835_v5 = vadd.f32 %v2778_v49, %v3569_v24  ;;  %v1826_v31 = vpop.f32.mrb[147].mxu1 }
 0x308   : > { %2098 = vst [vmem:[%s3577_s9 + $0x2a0] sm:$0xff] %v1824_v57  ;;  %v1827_v52 = vadd.f32 %v1826_v31, %v3569_v24 }
 0x309   : > { %2113 = vst [vmem:[%s3577_s9 + $0x318] sm:$0xff] %v1835_v5 }
 0x30a   : > { %2103 = vst [vmem:[%s3577_s9 + $0x2c8] sm:$0xff] %v1827_v52 }
 0x30c   : > { %v2781_v53 = vpop.f32.mrb[148].mxu1 }
 0x30d   : > { %v1848_v55 = vadd.f32 %v2781_v53, %v3569_v24  ;;  %v1839_v58 = vpop.f32.mrb[149].mxu1 }
 0x30e   : > { %v1840_v60 = vadd.f32 %v1839_v58, %v3569_v24  ;;  %v2782_v61 = vpop.f32.mrb[150].mxu1 }
 0x30f   : > { %2128 = vst [vmem:[%s3577_s9 + $0x390] sm:$0xff] %v1848_v55  ;;  %v1851_v33 = vadd.f32 %v2782_v61, %v3569_v24  ;;  %v1842_v4 = vpop.f32.mrb[151].mxu1 }
 0x310   : > { %2118 = vst [vmem:[%s3577_s9 + $0x340] sm:$0xff] %v1840_v60  ;;  %v1843_v41 = vadd.f32 %v1842_v4, %v3569_v24 }
 0x311   : > { %2133 = vst [vmem:[%s3577_s9 + $0x3b8] sm:$0xff] %v1851_v33 }
 0x312   : > { %2123 = vst [vmem:[%s3577_s9 + $0x368] sm:$0xff] %v1843_v41 }
 0x314   : > { %v2785_v63 = vpop.f32.mrb[152].mxu1 }
 0x315   : > { %v1864_v14 = vadd.f32 %v2785_v63, %v3569_v24  ;;  %v1855_v0 = vpop.f32.mrb[153].mxu1 }
 0x316   : > { %v1856_v1 = vadd.f32 %v1855_v0, %v3569_v24  ;;  %v2786_v22 = vpop.f32.mrb[154].mxu1 }
 0x317   : > { %2148 = vst [vmem:[%s3577_s9 + $0x430] sm:$0xff] %v1864_v14  ;;  %v1867_v13 = vadd.f32 %v2786_v22, %v3569_v24  ;;  %v1858_v3 = vpop.f32.mrb[155].mxu1 }
 0x318   : > { %2138 = vst [vmem:[%s3577_s9 + $0x3e0] sm:$0xff] %v1856_v1  ;;  %v1859_v6 = vadd.f32 %v1858_v3, %v3569_v24 }
 0x319   : > { %2153 = vst [vmem:[%s3577_s9 + $0x458] sm:$0xff] %v1867_v13 }
 0x31a   : > { %2143 = vst [vmem:[%s3577_s9 + $0x408] sm:$0xff] %v1859_v6 }
 0x31c   : > { %v2789_v7 = vpop.f32.mrb[156].mxu1 }
 0x31d   : > { %v1880_v48 = vadd.f32 %v2789_v7, %v3569_v24  ;;  %v1871_v9 = vpop.f32.mrb[157].mxu1 }
 0x31e   : > { %v1872_v56 = vadd.f32 %v1871_v9, %v3569_v24  ;;  %v2790_v12 = vpop.f32.mrb[158].mxu1 }
 0x31f   : > { %2168 = vst [vmem:[%s3577_s9 + $0x4d0] sm:$0xff] %v1880_v48  ;;  %v1883_v15 = vadd.f32 %v2790_v12, %v3569_v24  ;;  %v1874_v17 = vpop.f32.mrb[159].mxu1 }
 0x320   : > { %2158 = vst [vmem:[%s3577_s9 + $0x480] sm:$0xff] %v1872_v56  ;;  %v1875_v39 = vadd.f32 %v1874_v17, %v3569_v24 }
 0x321   : > { %2173 = vst [vmem:[%s3577_s9 + $0x4f8] sm:$0xff] %v1883_v15 }
 0x322   : > { %2163 = vst [vmem:[%s3577_s9 + $0x4a8] sm:$0xff] %v1875_v39 }
 0x324   : > { %v2793_v44 = vpop.f32.mrb[160].mxu1 }
 0x325   : > { %v1896_v51 = vadd.f32 %v2793_v44, %v3569_v24  ;;  %v1887_v18 = vpop.f32.mrb[161].mxu1 }
 0x326   : > { %v1888_v11 = vadd.f32 %v1887_v18, %v3569_v24  ;;  %v2794_v2 = vpop.f32.mrb[162].mxu1 }
 0x327   : > { %2188 = vst [vmem:[%s3577_s9 + $0x570] sm:$0xff] %v1896_v51  ;;  %v1899_v23 = vadd.f32 %v2794_v2, %v3569_v24  ;;  %v1890_v21 = vpop.f32.mrb[163].mxu1 }
 0x328   : > { %2178 = vst [vmem:[%s3577_s9 + $0x520] sm:$0xff] %v1888_v11  ;;  %v1891_v20 = vadd.f32 %v1890_v21, %v3569_v24 }
 0x329   : > { %2193 = vst [vmem:[%s3577_s9 + $0x598] sm:$0xff] %v1899_v23 }
 0x32a   : > { %2183 = vst [vmem:[%s3577_s9 + $0x548] sm:$0xff] %v1891_v20 }
 0x32c   : > { %v2797_v10 = vpop.f32.mrb[164].mxu1 }
 0x32d   : > { %v1912_v28 = vadd.f32 %v2797_v10, %v3569_v24  ;;  %v1903_v25 = vpop.f32.mrb[165].mxu1 }
 0x32e   : > { %v1904_v27 = vadd.f32 %v1903_v25, %v3569_v24  ;;  %v2798_v29 = vpop.f32.mrb[166].mxu1 }
 0x32f   : > { %2208 = vst [vmem:[%s3577_s9 + $0x610] sm:$0xff] %v1912_v28  ;;  %v1915_v30 = vadd.f32 %v2798_v29, %v3569_v24  ;;  %v1906_v32 = vpop.f32.mrb[167].mxu1 }
 0x330   : > { %2198 = vst [vmem:[%s3577_s9 + $0x5c0] sm:$0xff] %v1904_v27  ;;  %v1907_v34 = vadd.f32 %v1906_v32, %v3569_v24 }
 0x331   : > { %2213 = vst [vmem:[%s3577_s9 + $0x638] sm:$0xff] %v1915_v30 }
 0x332   : > { %2203 = vst [vmem:[%s3577_s9 + $0x5e8] sm:$0xff] %v1907_v34 }
 0x334   : > { %v2801_v36 = vpop.f32.mrb[168].mxu1 }
 0x335   : > { %v1928_v47 = vadd.f32 %v2801_v36, %v3569_v24  ;;  %v1919_v54 = vpop.f32.mrb[169].mxu1 }
 0x336   : > { %v1920_v59 = vadd.f32 %v1919_v54, %v3569_v24  ;;  %v2802_v19 = vpop.f32.mrb[170].mxu1 }
 0x337   : > { %2228 = vst [vmem:[%s3577_s9 + $0x6b0] sm:$0xff] %v1928_v47  ;;  %v1931_v37 = vadd.f32 %v2802_v19, %v3569_v24  ;;  %v1922_v62 = vpop.f32.mrb[171].mxu1 }
 0x338   : > { %2218 = vst [vmem:[%s3577_s9 + $0x660] sm:$0xff] %v1920_v59  ;;  %v1923_v38 = vadd.f32 %v1922_v62, %v3569_v24 }
 0x339   : > { %2233 = vst [vmem:[%s3577_s9 + $0x6d8] sm:$0xff] %v1931_v37 }
 0x33a   : > { %2223 = vst [vmem:[%s3577_s9 + $0x688] sm:$0xff] %v1923_v38 }
 0x33c   : > { %v2805_v40 = vpop.f32.mrb[172].mxu1 }
 0x33d   : > { %v1944_v43 = vadd.f32 %v2805_v40, %v3569_v24  ;;  %v1935_v26 = vpop.f32.mrb[173].mxu1 }
 0x33e   : > { %v1936_v8 = vadd.f32 %v1935_v26, %v3569_v24  ;;  %v2806_v35 = vpop.f32.mrb[174].mxu1 }
 0x33f   : > { %2248 = vst [vmem:[%s3577_s9 + $0x750] sm:$0xff] %v1944_v43  ;;  %v1947_v42 = vadd.f32 %v2806_v35, %v3569_v24  ;;  %v1938_v16 = vpop.f32.mrb[175].mxu1 }
 0x340   : > { %2238 = vst [vmem:[%s3577_s9 + $0x700] sm:$0xff] %v1936_v8  ;;  %v1939_v45 = vadd.f32 %v1938_v16, %v3569_v24 }
 0x341   : > { %2253 = vst [vmem:[%s3577_s9 + $0x778] sm:$0xff] %v1947_v42 }
 0x342   : > { %2243 = vst [vmem:[%s3577_s9 + $0x728] sm:$0xff] %v1939_v45 }
 0x344   : > { %v2809_v50 = vpop.f32.mrb[176].mxu1 }
 0x345   : > { %v1960_v46 = vadd.f32 %v2809_v50, %v3569_v24  ;;  %v1951_v57 = vpop.f32.mrb[177].mxu1 }
 0x346   : > { %v1952_v49 = vadd.f32 %v1951_v57, %v3569_v24  ;;  %v2810_v5 = vpop.f32.mrb[178].mxu1 }
 0x347   : > { %2268 = vst [vmem:[%s3577_s9 + $0x7f0] sm:$0xff] %v1960_v46  ;;  %v1963_v31 = vadd.f32 %v2810_v5, %v3569_v24  ;;  %v1954_v52 = vpop.f32.mrb[179].mxu1 }
 0x348   : > { %2258 = vst [vmem:[%s3577_s9 + $0x7a0] sm:$0xff] %v1952_v49  ;;  %v1955_v53 = vadd.f32 %v1954_v52, %v3569_v24 }
 0x349   : > { %2273 = vst [vmem:[%s3577_s9 + $0x818] sm:$0xff] %v1963_v31 }
 0x34a   : > { %2263 = vst [vmem:[%s3577_s9 + $0x7c8] sm:$0xff] %v1955_v53 }
 0x34c   : > { %v2813_v55 = vpop.f32.mrb[180].mxu1 }
 0x34d   : > { %v1976_v58 = vadd.f32 %v2813_v55, %v3569_v24  ;;  %v1967_v60 = vpop.f32.mrb[181].mxu1 }
 0x34e   : > { %v1968_v61 = vadd.f32 %v1967_v60, %v3569_v24  ;;  %v2814_v33 = vpop.f32.mrb[182].mxu1 }
 0x34f   : > { %2288 = vst [vmem:[%s3577_s9 + $0x890] sm:$0xff] %v1976_v58  ;;  %v1979_v4 = vadd.f32 %v2814_v33, %v3569_v24  ;;  %v1970_v41 = vpop.f32.mrb[183].mxu1 }
 0x350   : > { %2278 = vst [vmem:[%s3577_s9 + $0x840] sm:$0xff] %v1968_v61  ;;  %v1971_v63 = vadd.f32 %v1970_v41, %v3569_v24 }
 0x351   : > { %2293 = vst [vmem:[%s3577_s9 + $0x8b8] sm:$0xff] %v1979_v4 }
 0x352   : > { %2283 = vst [vmem:[%s3577_s9 + $0x868] sm:$0xff] %v1971_v63 }
 0x354   : > { %v2817_v14 = vpop.f32.mrb[184].mxu1 }
 0x355   : > { %v1992_v0 = vadd.f32 %v2817_v14, %v3569_v24  ;;  %v1983_v1 = vpop.f32.mrb[185].mxu1 }
 0x356   : > { %v1984_v22 = vadd.f32 %v1983_v1, %v3569_v24  ;;  %v2818_v13 = vpop.f32.mrb[186].mxu1 }
 0x357   : > { %2308 = vst [vmem:[%s3577_s9 + $0x930] sm:$0xff] %v1992_v0  ;;  %v1995_v3 = vadd.f32 %v2818_v13, %v3569_v24  ;;  %v1986_v6 = vpop.f32.mrb[187].mxu1 }
 0x358   : > { %2298 = vst [vmem:[%s3577_s9 + $0x8e0] sm:$0xff] %v1984_v22  ;;  %v1987_v7 = vadd.f32 %v1986_v6, %v3569_v24 }
 0x359   : > { %2313 = vst [vmem:[%s3577_s9 + $0x958] sm:$0xff] %v1995_v3 }
 0x35a   : > { %2303 = vst [vmem:[%s3577_s9 + $0x908] sm:$0xff] %v1987_v7 }
 0x35c   : > { %v2821_v48 = vpop.f32.mrb[188].mxu1 }
 0x35d   : > { %v2008_v9 = vadd.f32 %v2821_v48, %v3569_v24  ;;  %v1999_v56 = vpop.f32.mrb[189].mxu1 }
 0x35e   : > { %v2000_v12 = vadd.f32 %v1999_v56, %v3569_v24  ;;  %v2822_v15 = vpop.f32.mrb[190].mxu1 }
 0x35f   : > { %2328 = vst [vmem:[%s3577_s9 + $0x9d0] sm:$0xff] %v2008_v9  ;;  %v2011_v17 = vadd.f32 %v2822_v15, %v3569_v24  ;;  %v2002_v39 = vpop.f32.mrb[191].mxu1 }
 0x360   : > { %2318 = vst [vmem:[%s3577_s9 + $0x980] sm:$0xff] %v2000_v12  ;;  %v2003_v44 = vadd.f32 %v2002_v39, %v3569_v24 }
 0x361   : > { %2333 = vst [vmem:[%s3577_s9 + $0x9f8] sm:$0xff] %v2011_v17 }
 0x362   : > { %2323 = vst [vmem:[%s3577_s9 + $0x9a8] sm:$0xff] %v2003_v44 }
 0x363   : > { %2980 = shalt.err (!%p2977_p4)
}
 0x364   : > { %s2981_s7 = scalar_lea.hbm %s4309_s24, 40960  ;;  %s2985_s11 = scalar_lea.hbm %s4375_s4, 245760 }
 0x365   : > { %p2982_p5 = scmp.ne.s32.totalorder %s4309_s24, %s2981_s7  ;;  %p2986_p9 = scmp.lt.u32.totalorder %s4309_s24, %s4375_s4 }
 0x366   : > { %p2987_p11 = scmp.lt.u32.totalorder %s2985_s11, %s2981_s7  ;;  %p2989_p8 = scmp.lt.u32.totalorder %s2981_s7, %s4309_s24 }
 0x367   : > { %p2983_p6 = pnand %p2982_p5, %p3149_p3 }
 0x368   : > { %p2988_p13 = por %p2987_p11, %p2986_p9 }
 0x369   : > { %p2984_p7 = pneg %p2983_p6 }
 0x36a   : > { %p2990_p10 = por %p2989_p8, %p2988_p13 }
 0x36c   : > { %p2991_p12 = pnand %p2990_p10, %p2984_p7 }
 0x36e   : > { %2994 = shalt.err (!%p2991_p12)
}
 0x36f   : > { %s3070_s14 = smov 640   ;;  %s3071_s23 = smov 40  }
 0x370   : > { %2831 = dma.vmem_to_hbm [thread:$0]  (%p3149_p3), %s4311_s19, 40960, %s4309_s24, %s4319_s27, %s3070_s14, %s3070_s14, %s3071_s23  }
 0x371 PF: > { %p2843_p0 = scmp.ge.s32.totalorder %s3065_s22, 2  ;;  %s2365_s28 = sand.u32 1, %s3037_s15  }
 0x372   : > { %p4380_p1 = scmp.ne.s32.totalorder %s4377_s30, 0  ;;  %s2366_s5 = scalar_lea.sflag [#allocation3], %s2365_s28 }
 0x374   : > { %p2838_p2 = pnand %p2843_p0, %p4380_p1 }
 0x376   : > { %3032 = dma.done.wait (!%p2838_p2), %s2366_s5, 40960  }
 0x377   : > { %3034 = vsyncadd (!%p2838_p2), %s2366_s5, 4294926336  ;;  %s18_s22 = sadd.s32 1, %s3065_s22   ;;  %s4381_s15 = smov %s3041_s16 }
 0x378   : > { %p15_p4 = scmp.ge.s32.totalorder %s18_s22, 8   ;;  %s4382_s16 = smov %s3045_s17 }
 0x379   : > { %s4383_s17 = smov %s3179_s12  ;;  %s4384_s18 = smov %s3057_s20 }
 0x37a   : > { %s4385_s19 = smov %s3061_s21  ;;  %s4386_s20 = smov %s4389_s25 }
 0x37b   : > { %s4387_s21 = smov %s4393_s26  ;;  %17 = sbr.rel (!%p15_p4) target bundleno = 6 (0x6), region = 76 }
 0x382   :  { %2371 = vsyncpa [#allocation3], 1 }
 0x383   :  { %2373 = vsyncpa [#allocation3 + $0x1], 1 }
 0x384   :  { %2374 = vsyncpa [#allocation4], 1 }
 0x385   :  { %2376 = vsyncpa [#allocation4 + $0x1], 1 }

</bundles_post_ra>
